<compile_context>
chip_gen: v7x
topology: tpu7x:2x2x1
jax: 0.10.0
libtpu: 0.0.40
codegen_flags: <defaults>
</compile_context>

<pallas_src>
import functools

import jax
import jax.numpy as jnp
import numpy as np
from jax.experimental import pallas as pl
from jax.experimental.pallas import tpu as pltpu


def _round_up(v, m):
    return ((v + m - 1) // m) * m


def _pick_batch_tile(n, ho, wo, c_in, ci_p, co_p, act_bytes):
    """Largest divisor of n whose fused block comfortably fits VMEM, targeting M >= 256."""
    per_b = (
        2 * (ho + 1) * (wo + 1) * 4 * c_in * act_bytes    # s2d input block, double-buffered
        + 2 * 4 * ho * wo * co_p * 4                      # f32 output block, double-buffered
        + (ho + 2) * (wo + 2) * ci_p * act_bytes          # hdown scratch (single buffer)
    )
    budget = 40 * 1024 * 1024
    best = 1
    for d in range(1, n + 1):
        if n % d:
            continue
        if d * ho * wo <= 1024 and d * per_b <= budget:
            best = d
        if d * ho * wo >= 256:
            break
    return best


# ----------------------------------------------------------------------------- fused kernel

def _fused_kernel(x_ref, wk_ref, bd_ref, wf_ref, o_ref, hd_ref, *,
                  bt, ho, wo, c_in, eps=1e-5):
    """LeakyReLU + Conv2d(k4,s2,p1) + bias + ReLU + ConvTranspose2d(k4,s2,p1) + InstanceNorm2d.

    x_ref : (bt, ho+1, wo+1, 4*C)   space-to-depth of the zero-padded input (compute dtype)
    wk_ref: (4, 4*C, Cip)           down-conv tap-grouped weights, tap index = 2*a + b
    bd_ref: (1, Cip)                down-conv bias (f32)
    wf_ref: (16, Cip, Cop)          up-conv flipped taps, index = ((ry*2+rx)*2+a)*2+b
    o_ref : (bt, 4*ho, wo, Cop)     phase-major output (f32); phase ph=ry*2+rx at rows ph*ho
    hd_ref: (bt, ho+2, wo+2, Cip)   VMEM scratch: ReLU'd down output with a zero halo ring
    """
    ci_p = wk_ref.shape[2]
    co_p = wf_ref.shape[2]
    m = bt * ho * wo

    # ------------- down: LeakyReLU(0.2) -> Conv2d -> +bias -> ReLU -> VMEM scratch
    xa = x_ref[...]
    xa = jnp.where(xa >= 0, xa, 0.2 * xa)            # leaky(0)=0, so zero padding commutes
    acc = jnp.zeros((m, ci_p), jnp.float32)
    for a in range(2):
        for b in range(2):
            sl = xa[:, a:a + ho, b:b + wo, :].reshape(m, 4 * c_in)
            acc = acc + jnp.dot(sl, wk_ref[2 * a + b],
                                preferred_element_type=jnp.float32)
    hdn = jnp.maximum(acc + bd_ref[...], 0.0).astype(hd_ref.dtype)

    # zero halo ring: only the 4 thin border slabs (redone each step -> megacore safe).
    zrow = jnp.zeros((bt, 1, wo + 2, ci_p), hd_ref.dtype)
    zcol = jnp.zeros((bt, ho, 1, ci_p), hd_ref.dtype)
    hd_ref[:, 0:1, :, :] = zrow
    hd_ref[:, ho + 1:ho + 2, :, :] = zrow
    hd_ref[:, 1:ho + 1, 0:1, :] = zcol
    hd_ref[:, 1:ho + 1, wo + 1:wo + 2, :] = zcol
    hd_ref[:, 1:1 + ho, 1:1 + wo, :] = hdn.reshape(bt, ho, wo, ci_p)

    # ------------- up: ConvTranspose2d as 4 sub-pixel phases + InstanceNorm2d
    # Per-image stats via a block-diagonal selector matmul (keeps reductions 2-D / on MXU).
    col = jax.lax.broadcasted_iota(jnp.int32, (bt, m), 1)
    lo = jax.lax.broadcasted_iota(jnp.int32, (bt, m), 0) * (ho * wo)
    sel = jnp.where(jnp.logical_and(col >= lo, col < lo + ho * wo), 1.0, 0.0)
    sel = sel.astype(jnp.float32)

    sum_acc = jnp.zeros((bt, co_p), jnp.float32)
    sq_acc = jnp.zeros((bt, co_p), jnp.float32)
    for ry in range(2):
        for rx in range(2):
            ph = ry * 2 + rx
            pacc = jnp.zeros((m, co_p), jnp.float32)
            for a in range(2):
                for b in range(2):
                    sl = hd_ref[:, ry + a:ry + a + ho, rx + b:rx + b + wo, :]
                    pacc = pacc + jnp.dot(sl.reshape(m, ci_p),
                                          wf_ref[(ph * 2 + a) * 2 + b],
                                          preferred_element_type=jnp.float32)
            # ConvT bias omitted: a per-channel constant cancels under InstanceNorm2d.
            sum_acc = sum_acc + jnp.dot(sel, pacc, preferred_element_type=jnp.float32)
            sq_acc = sq_acc + jnp.dot(sel, pacc * pacc, preferred_element_type=jnp.float32)
            o_ref[:, ph * ho:(ph + 1) * ho, :, :] = pacc.reshape(bt, ho, wo, co_p)

    # InstanceNorm2d (affine=False, eps=1e-5, biased var) over the full spatial extent
    # (all 4 phases jointly), per image & channel; second pass re-reads the VMEM output
    # block and normalizes in place (only one phase ever live in registers).
    n_pix = float(4 * ho * wo)
    mean = sum_acc / n_pix
    var = jnp.maximum(sq_acc / n_pix - mean * mean, 0.0)
    inv = jax.lax.rsqrt(var + eps)
    mean_b = jnp.broadcast_to(mean.reshape(bt, 1, 1, co_p), (bt, ho, wo, co_p))
    inv_b = jnp.broadcast_to(inv.reshape(bt, 1, 1, co_p), (bt, ho, wo, co_p))
    for ph in range(4):
        v = o_ref[:, ph * ho:(ph + 1) * ho, :, :]
        o_ref[:, ph * ho:(ph + 1) * ho, :, :] = (v - mean_b) * inv_b


# ----------------------------------------------------------------------------- forward

def connection_block_innermost(x, w_down, b_down, w_up, b_up,
                               compute_dtype=jnp.bfloat16, batch_tile=None):
    n, c_in, h, w = x.shape
    assert h % 2 == 0 and w % 2 == 0, "k=4,s=2,p=1 conv expects even spatial dims"
    inner_nc = w_down.shape[0]
    outer_nc = w_up.shape[1]
    ho, wo = h // 2, w // 2
    ci_p = _round_up(inner_nc, 128)        # lane-dense conv-output channels
    co_p = _round_up(outer_nc, 128)
    cd = jnp.dtype(jnp.float32 if compute_dtype is None else compute_dtype)

    bt = batch_tile if batch_tile is not None else _pick_batch_tile(
        n, ho, wo, c_in, ci_p, co_p, cd.itemsize)
    assert n % bt == 0

    # space-to-depth of the zero-padded input (input-sized; no im2col blowup), cast ONCE to
    # the MXU compute dtype here (hoisted cast).
    xp = jnp.pad(x, ((0, 0), (0, 0), (1, 1), (1, 1)))
    xp = jnp.transpose(xp, (0, 2, 3, 1))                                    # NHWC
    xs = xp.reshape(n, ho + 1, 2, wo + 1, 2, c_in)
    xs = jnp.transpose(xs, (0, 1, 3, 2, 4, 5)).reshape(n, ho + 1, wo + 1, 4 * c_in)
    xs = xs.astype(cd)

    # tap-grouped down-conv weights (tiny, trace-time), lane-padded + pre-cast.
    wk = jnp.transpose(w_down, (2, 3, 1, 0))                                # (ky,kx,c,co)
    wk = jnp.pad(wk, ((0, 0), (0, 0), (0, 0), (0, ci_p - inner_nc)))
    wk = wk.reshape(2, 2, 2, 2, c_in, ci_p)                                 # (a,dy,b,dx,c,co)
    wk = jnp.transpose(wk, (0, 2, 1, 3, 4, 5)).reshape(4, 4 * c_in, ci_p).astype(cd)
    bd = jnp.pad(b_down, (0, ci_p - inner_nc)).reshape(1, ci_p).astype(jnp.float32)

    # phase/tap-grouped up-conv flipped weights: Wflip[ky,kx,ci,co] = w_up[ci,co,3-ky,3-kx];
    # phase (ry,rx), tap (a,b) uses (ky,kx) = (2a+ry, 2b+rx).  b_up is NOT passed (it is a
    # mathematical no-op under InstanceNorm2d with affine=False).
    wf = jnp.transpose(w_up[:, :, ::-1, ::-1], (2, 3, 0, 1))                # (ky,kx,ci,co)
    wf = jnp.pad(wf, ((0, 0), (0, 0), (0, ci_p - inner_nc), (0, co_p - outer_nc)))
    wf = wf.reshape(2, 2, 2, 2, ci_p, co_p)                                 # (a,ry,b,rx,ci,co)
    wf = jnp.transpose(wf, (1, 3, 0, 2, 4, 5)).reshape(16, ci_p, co_p).astype(cd)

    # VMEM budget hint: double-buffered activation/output blocks + weights + scratch + slack.
    act = cd.itemsize
    need = (2 * bt * (ho + 1) * (wo + 1) * 4 * c_in * act
            + 2 * bt * 4 * ho * wo * co_p * 4
            + 2 * (4 * 4 * c_in * ci_p * act + 16 * ci_p * co_p * act + ci_p * 4)
            + bt * (ho + 2) * (wo + 2) * ci_p * act)
    vmem_limit = int(max(32 << 20, min(1.5 * need + (4 << 20), 100 << 20)))

    y_ph = pl.pallas_call(
        functools.partial(_fused_kernel, bt=bt, ho=ho, wo=wo, c_in=c_in),
        out_shape=jax.ShapeDtypeStruct((n, 4 * ho, wo, co_p), jnp.float32),
        grid_spec=pltpu.PrefetchScalarGridSpec(
            num_scalar_prefetch=0,
            grid=(n // bt,),
            in_specs=[
                pl.BlockSpec((bt, ho + 1, wo + 1, 4 * c_in), lambda i: (i, 0, 0, 0)),
                pl.BlockSpec((4, 4 * c_in, ci_p), lambda i: (0, 0, 0)),
                pl.BlockSpec((1, ci_p), lambda i: (0, 0)),
                pl.BlockSpec((16, ci_p, co_p), lambda i: (0, 0, 0)),
            ],
            out_specs=pl.BlockSpec((bt, 4 * ho, wo, co_p), lambda i: (i, 0, 0, 0)),
            scratch_shapes=[pltpu.VMEM((bt, ho + 2, wo + 2, ci_p), cd)],
        ),
        compiler_params=pltpu.CompilerParams(
            dimension_semantics=("parallel",),
            vmem_limit_bytes=vmem_limit),
    )(xs, wk, bd, wf)

    # interleave the 4 output phases back to NCHW (output-sized transpose only), slicing off
    # the lane padding.
    y = y_ph.reshape(n, 2, 2, ho, wo, co_p)                                 # (n, ry, rx, i, j, c)
    y = jnp.transpose(y, (0, 5, 3, 1, 4, 2)).reshape(n, co_p, h, w)[:, :outer_nc]

    # Skip branch carries leaky_relu(x) (PyTorch inplace LeakyReLU mutates x before the cat);
    # XLA fuses this elementwise op into the concat copy.
    x_act = jnp.where(x >= 0, x, 0.2 * x)
    return jnp.concatenate([x_act, y], axis=1)                              # (N, 2*outer_nc, H, W)


# ----------------------------------------------------------------------------- reference (pure JAX)

def reference(x, w_down, b_down, w_up, b_up):
    xa = jnp.where(x >= 0, x, 0.2 * x)
    hd = jax.lax.conv_general_dilated(xa, w_down, (2, 2), ((1, 1), (1, 1)),
                                      dimension_numbers=('NCHW', 'OIHW', 'NCHW'))
    hd = jnp.maximum(hd + b_down[None, :, None, None], 0.0)
    w_eq = jnp.transpose(w_up, (1, 0, 2, 3))[:, :, ::-1, ::-1]
    y = jax.lax.conv_general_dilated(hd, w_eq, (1, 1), ((2, 2), (2, 2)),
                                     lhs_dilation=(2, 2),
                                     dimension_numbers=('NCHW', 'OIHW', 'NCHW'))
    y = y + b_up[None, :, None, None]
    mean = jnp.mean(y, axis=(2, 3), keepdims=True)
    var = jnp.mean((y - mean) ** 2, axis=(2, 3), keepdims=True)
    y = (y - mean) / jnp.sqrt(var + 1e-5)
    return jnp.concatenate([xa, y], axis=1)


# ----------------------------------------------------------------------------- params

def init_params(key, input_nc, inner_nc, outer_nc):
    k1, k2, k3, k4 = jax.random.split(key, 4)
    bd = 1.0 / np.sqrt(input_nc * 16)
    w_down = jax.random.uniform(k1, (inner_nc, input_nc, 4, 4), jnp.float32, -bd, bd)
    b_down = jax.random.uniform(k2, (inner_nc,), jnp.float32, -bd, bd)
    bu = 1.0 / np.sqrt(inner_nc * 16)
    w_up = jax.random.uniform(k3, (inner_nc, outer_nc, 4, 4), jnp.float32, -bu, bu)
    b_up = jax.random.uniform(k4, (outer_nc,), jnp.float32, -bu, bu)
    return w_down, b_down, w_up, b_up


if __name__ == "__main__":
    key = jax.random.PRNGKey(0)
    kx, kp = jax.random.split(key)
    N, OUTER_NC, INNER_NC, H, W = 2, 4, 8, 16, 16          # input_nc defaults to outer_nc

    x = jax.random.normal(kx, (N, OUTER_NC, H, W), jnp.float32)
    w_down, b_down, w_up, b_up = init_params(kp, OUTER_NC, INNER_NC, OUTER_NC)

    ref = reference(x, w_down, b_down, w_up, b_up)

    # default path: bf16 MXU operands, f32 accumulation + f32 InstanceNorm
    fwd = jax.jit(connection_block_innermost)
    out = jax.block_until_ready(fwd(x, w_down, b_down, w_up, b_up))
    assert out.shape == (N, 2 * OUTER_NC, H, W), out.shape
    np.testing.assert_allclose(np.asarray(out), np.asarray(ref), rtol=1e-1, atol=1e-1)

    # strict numerical check with f32 compute
    fwd_f32 = jax.jit(functools.partial(connection_block_innermost,
                                        compute_dtype=jnp.float32))
    out_f32 = jax.block_until_ready(fwd_f32(x, w_down, b_down, w_up, b_up))
    np.testing.assert_allclose(np.asarray(out_f32), np.asarray(ref), rtol=2e-3, atol=2e-3)

    print("KERNEL_OK")
</pallas_src>

<mosaic_0001>
module attributes {stable_mosaic.version = 11 : i64} {
  func.func @_fused_kernel(%arg0: i32, %arg1: memref<2x9x9x16xbf16, #tpu.memory_space<vmem>>, %arg2: memref<4x16x128xbf16, #tpu.memory_space<vmem>>, %arg3: memref<1x128xf32, #tpu.memory_space<vmem>>, %arg4: memref<16x128x128xbf16, #tpu.memory_space<vmem>>, %arg5: memref<2x32x8x128xf32, #tpu.memory_space<vmem>>, %arg6: memref<2x10x10x128xbf16, #tpu.memory_space<vmem>>) attributes {dimension_semantics = [#tpu.dimension_semantics<parallel>], iteration_bounds = array<i64: 1>, scalar_prefetch = 0 : i64, scratch_operands = 1 : i64, tpu.core_type = #tpu.core_type<tc>, window_params = [{transform_indices = @transform_0, window_bounds = array<i64: 2, 9, 9, 16>}, {pipeline_mode = #tpu.pipeline_mode<synchronous>, transform_indices = @transform_1, window_bounds = array<i64: 4, 16, 128>}, {pipeline_mode = #tpu.pipeline_mode<synchronous>, transform_indices = @transform_2, window_bounds = array<i64: 1, 128>}, {pipeline_mode = #tpu.pipeline_mode<synchronous>, transform_indices = @transform_3, window_bounds = array<i64: 16, 128, 128>}, {transform_indices = @transform_4, window_bounds = array<i64: 2, 32, 8, 128>}]} {
    %c0 = arith.constant 0 : index
    %c0_0 = arith.constant 0 : index
    %c0_1 = arith.constant 0 : index
    %c0_2 = arith.constant 0 : index
    %0 = vector.load %arg1[%c0, %c0_0, %c0_1, %c0_2] : memref<2x9x9x16xbf16, #tpu.memory_space<vmem>>, vector<2x9x9x16xbf16>
    %cst = arith.constant 0.000000e+00 : bf16
    %1 = vector.broadcast %cst : bf16 to vector<2x9x9x16xbf16>
    %2 = arith.cmpf oge, %0, %1 : vector<2x9x9x16xbf16>
    %cst_3 = arith.constant 2.001950e-01 : bf16
    %3 = vector.broadcast %cst_3 : bf16 to vector<2x9x9x16xbf16>
    %4 = arith.mulf %3, %0 : vector<2x9x9x16xbf16>
    %5 = arith.select %2, %0, %4 : vector<2x9x9x16xi1>, vector<2x9x9x16xbf16>
    %cst_4 = arith.constant 0.000000e+00 : f32
    %6 = vector.broadcast %cst_4 : f32 to vector<128x128xf32>
    %7 = vector.extract_strided_slice %5 {offsets = [0, 0, 0, 0], sizes = [2, 8, 8, 16], strides = [1, 1, 1, 1]} : vector<2x9x9x16xbf16> to vector<2x8x8x16xbf16>
    %8 = vector.shape_cast %7 : vector<2x8x8x16xbf16> to vector<128x16xbf16>
    %c0_5 = arith.constant 0 : index
    %c0_6 = arith.constant 0 : index
    %c0_7 = arith.constant 0 : index
    %9 = vector.load %arg2[%c0_5, %c0_6, %c0_7] : memref<4x16x128xbf16, #tpu.memory_space<vmem>>, vector<1x16x128xbf16>
    %10 = vector.shape_cast %9 : vector<1x16x128xbf16> to vector<16x128xbf16>
    %cst_8 = arith.constant dense<0.000000e+00> : vector<128x128xf32>
    %11 = tpu.matmul %8, %10, %cst_8 {dimension_numbers = #tpu.dot_dimension_numbers<[1], [0], [0], [1], [0, 0, 1, 1], [], []>} : vector<128x16xbf16>, vector<16x128xbf16>, vector<128x128xf32> -> vector<128x128xf32>
    %12 = arith.addf %6, %11 : vector<128x128xf32>
    %13 = vector.extract_strided_slice %5 {offsets = [0, 0, 1, 0], sizes = [2, 8, 8, 16], strides = [1, 1, 1, 1]} : vector<2x9x9x16xbf16> to vector<2x8x8x16xbf16>
    %14 = vector.shape_cast %13 : vector<2x8x8x16xbf16> to vector<128x16xbf16>
    %c1 = arith.constant 1 : index
    %c0_9 = arith.constant 0 : index
    %c0_10 = arith.constant 0 : index
    %15 = vector.load %arg2[%c1, %c0_9, %c0_10] : memref<4x16x128xbf16, #tpu.memory_space<vmem>>, vector<1x16x128xbf16>
    %16 = vector.shape_cast %15 : vector<1x16x128xbf16> to vector<16x128xbf16>
    %cst_11 = arith.constant dense<0.000000e+00> : vector<128x128xf32>
    %17 = tpu.matmul %14, %16, %cst_11 {dimension_numbers = #tpu.dot_dimension_numbers<[1], [0], [0], [1], [0, 0, 1, 1], [], []>} : vector<128x16xbf16>, vector<16x128xbf16>, vector<128x128xf32> -> vector<128x128xf32>
    %18 = arith.addf %12, %17 : vector<128x128xf32>
    %19 = vector.extract_strided_slice %5 {offsets = [0, 1, 0, 0], sizes = [2, 8, 8, 16], strides = [1, 1, 1, 1]} : vector<2x9x9x16xbf16> to vector<2x8x8x16xbf16>
    %20 = vector.shape_cast %19 : vector<2x8x8x16xbf16> to vector<128x16xbf16>
    %c2 = arith.constant 2 : index
    %c0_12 = arith.constant 0 : index
    %c0_13 = arith.constant 0 : index
    %21 = vector.load %arg2[%c2, %c0_12, %c0_13] : memref<4x16x128xbf16, #tpu.memory_space<vmem>>, vector<1x16x128xbf16>
    %22 = vector.shape_cast %21 : vector<1x16x128xbf16> to vector<16x128xbf16>
    %cst_14 = arith.constant dense<0.000000e+00> : vector<128x128xf32>
    %23 = tpu.matmul %20, %22, %cst_14 {dimension_numbers = #tpu.dot_dimension_numbers<[1], [0], [0], [1], [0, 0, 1, 1], [], []>} : vector<128x16xbf16>, vector<16x128xbf16>, vector<128x128xf32> -> vector<128x128xf32>
    %24 = arith.addf %18, %23 : vector<128x128xf32>
    %25 = vector.extract_strided_slice %5 {offsets = [0, 1, 1, 0], sizes = [2, 8, 8, 16], strides = [1, 1, 1, 1]} : vector<2x9x9x16xbf16> to vector<2x8x8x16xbf16>
    %26 = vector.shape_cast %25 : vector<2x8x8x16xbf16> to vector<128x16xbf16>
    %c3 = arith.constant 3 : index
    %c0_15 = arith.constant 0 : index
    %c0_16 = arith.constant 0 : index
    %27 = vector.load %arg2[%c3, %c0_15, %c0_16] : memref<4x16x128xbf16, #tpu.memory_space<vmem>>, vector<1x16x128xbf16>
    %28 = vector.shape_cast %27 : vector<1x16x128xbf16> to vector<16x128xbf16>
    %cst_17 = arith.constant dense<0.000000e+00> : vector<128x128xf32>
    %29 = tpu.matmul %26, %28, %cst_17 {dimension_numbers = #tpu.dot_dimension_numbers<[1], [0], [0], [1], [0, 0, 1, 1], [], []>} : vector<128x16xbf16>, vector<16x128xbf16>, vector<128x128xf32> -> vector<128x128xf32>
    %30 = arith.addf %24, %29 : vector<128x128xf32>
    %c0_18 = arith.constant 0 : index
    %c0_19 = arith.constant 0 : index
    %31 = vector.load %arg3[%c0_18, %c0_19] : memref<1x128xf32, #tpu.memory_space<vmem>>, vector<1x128xf32>
    %32 = vector.broadcast %31 : vector<1x128xf32> to vector<128x128xf32>
    %33 = arith.addf %30, %32 : vector<128x128xf32>
    %cst_20 = arith.constant 0.000000e+00 : f32
    %34 = vector.broadcast %cst_20 : f32 to vector<128x128xf32>
    %35 = arith.maximumf %33, %34 : vector<128x128xf32>
    %36 = arith.truncf %35 : vector<128x128xf32> to vector<128x128xbf16>
    %cst_21 = arith.constant 0.000000e+00 : bf16
    %37 = vector.broadcast %cst_21 : bf16 to vector<2x1x10x128xbf16>
    %cst_22 = arith.constant 0.000000e+00 : bf16
    %38 = vector.broadcast %cst_22 : bf16 to vector<2x8x1x128xbf16>
    %c0_23 = arith.constant 0 : index
    %c0_24 = arith.constant 0 : index
    %c0_25 = arith.constant 0 : index
    %c0_26 = arith.constant 0 : index
    %39 = vector.load %arg6[%c0_23, %c0_24, %c0_25, %c0_26] : memref<2x10x10x128xbf16, #tpu.memory_space<vmem>>, vector<2x1x10x128xbf16>
    tpu.vector_store %arg6[%c0_23, %c0_24, %c0_25, %c0_26], %37 {strides = array<i32>} : memref<2x10x10x128xbf16, #tpu.memory_space<vmem>>, vector<2x1x10x128xbf16>,
    %c0_27 = arith.constant 0 : index
    %c9 = arith.constant 9 : index
    %c0_28 = arith.constant 0 : index
    %c0_29 = arith.constant 0 : index
    %40 = vector.load %arg6[%c0_27, %c9, %c0_28, %c0_29] : memref<2x10x10x128xbf16, #tpu.memory_space<vmem>>, vector<2x1x10x128xbf16>
    tpu.vector_store %arg6[%c0_27, %c9, %c0_28, %c0_29], %37 {strides = array<i32>} : memref<2x10x10x128xbf16, #tpu.memory_space<vmem>>, vector<2x1x10x128xbf16>,
    %c0_30 = arith.constant 0 : index
    %c1_31 = arith.constant 1 : index
    %c0_32 = arith.constant 0 : index
    %c0_33 = arith.constant 0 : index
    %41 = vector.load %arg6[%c0_30, %c1_31, %c0_32, %c0_33] : memref<2x10x10x128xbf16, #tpu.memory_space<vmem>>, vector<2x8x1x128xbf16>
    tpu.vector_store %arg6[%c0_30, %c1_31, %c0_32, %c0_33], %38 {strides = array<i32>} : memref<2x10x10x128xbf16, #tpu.memory_space<vmem>>, vector<2x8x1x128xbf16>,
    %c0_34 = arith.constant 0 : index
    %c1_35 = arith.constant 1 : index
    %c9_36 = arith.constant 9 : index
    %c0_37 = arith.constant 0 : index
    %42 = vector.load %arg6[%c0_34, %c1_35, %c9_36, %c0_37] : memref<2x10x10x128xbf16, #tpu.memory_space<vmem>>, vector<2x8x1x128xbf16>
    tpu.vector_store %arg6[%c0_34, %c1_35, %c9_36, %c0_37], %38 {strides = array<i32>} : memref<2x10x10x128xbf16, #tpu.memory_space<vmem>>, vector<2x8x1x128xbf16>,
    %43 = vector.shape_cast %36 : vector<128x128xbf16> to vector<2x8x8x128xbf16>
    %c0_38 = arith.constant 0 : index
    %c1_39 = arith.constant 1 : index
    %c1_40 = arith.constant 1 : index
    %c0_41 = arith.constant 0 : index
    %44 = vector.load %arg6[%c0_38, %c1_39, %c1_40, %c0_41] : memref<2x10x10x128xbf16, #tpu.memory_space<vmem>>, vector<2x8x8x128xbf16>
    tpu.vector_store %arg6[%c0_38, %c1_39, %c1_40, %c0_41], %43 {strides = array<i32>} : memref<2x10x10x128xbf16, #tpu.memory_space<vmem>>, vector<2x8x8x128xbf16>,
    %45 = tpu.iota {dimensions = array<i32: 1>} : vector<2x128xi32>
    %46 = tpu.iota {dimensions = array<i32: 0>} : vector<2x128xi32>
    %c64_i32 = arith.constant 64 : i32
    %47 = vector.broadcast %c64_i32 : i32 to vector<2x128xi32>
    %48 = arith.muli %46, %47 : vector<2x128xi32>
    %49 = arith.cmpi sge, %45, %48 : vector<2x128xi32>
    %c64_i32_42 = arith.constant 64 : i32
    %50 = vector.broadcast %c64_i32_42 : i32 to vector<2x128xi32>
    %51 = arith.addi %48, %50 : vector<2x128xi32>
    %52 = arith.cmpi slt, %45, %51 : vector<2x128xi32>
    %53 = arith.andi %49, %52 : vector<2x128xi1>
    %cst_43 = arith.constant 1.000000e+00 : f32
    %cst_44 = arith.constant 0.000000e+00 : f32
    %54 = vector.broadcast %cst_43 : f32 to vector<2x128xf32>
    %55 = vector.broadcast %cst_44 : f32 to vector<2x128xf32>
    %56 = arith.select %53, %54, %55 : vector<2x128xi1>, vector<2x128xf32>
    %cst_45 = arith.constant 0.000000e+00 : f32
    %57 = vector.broadcast %cst_45 : f32 to vector<2x128xf32>
    %cst_46 = arith.constant 0.000000e+00 : f32
    %58 = vector.broadcast %cst_46 : f32 to vector<2x128xf32>
    %cst_47 = arith.constant 0.000000e+00 : f32
    %59 = vector.broadcast %cst_47 : f32 to vector<128x128xf32>
    %c0_48 = arith.constant 0 : index
    %c0_49 = arith.constant 0 : index
    %c0_50 = arith.constant 0 : index
    %c0_51 = arith.constant 0 : index
    %60 = vector.load %arg6[%c0_48, %c0_49, %c0_50, %c0_51] : memref<2x10x10x128xbf16, #tpu.memory_space<vmem>>, vector<2x8x8x128xbf16>
    %61 = vector.shape_cast %60 : vector<2x8x8x128xbf16> to vector<128x128xbf16>
    %c0_52 = arith.constant 0 : index
    %c0_53 = arith.constant 0 : index
    %c0_54 = arith.constant 0 : index
    %62 = vector.load %arg4[%c0_52, %c0_53, %c0_54] : memref<16x128x128xbf16, #tpu.memory_space<vmem>>, vector<1x128x128xbf16>
    %63 = vector.shape_cast %62 : vector<1x128x128xbf16> to vector<128x128xbf16>
    %cst_55 = arith.constant dense<0.000000e+00> : vector<128x128xf32>
    %64 = tpu.matmul %61, %63, %cst_55 {dimension_numbers = #tpu.dot_dimension_numbers<[1], [0], [0], [1], [0, 0, 1, 1], [], []>} : vector<128x128xbf16>, vector<128x128xbf16>, vector<128x128xf32> -> vector<128x128xf32>
    %65 = arith.addf %59, %64 : vector<128x128xf32>
    %c0_56 = arith.constant 0 : index
    %c0_57 = arith.constant 0 : index
    %c1_58 = arith.constant 1 : index
    %c0_59 = arith.constant 0 : index
    %66 = vector.load %arg6[%c0_56, %c0_57, %c1_58, %c0_59] : memref<2x10x10x128xbf16, #tpu.memory_space<vmem>>, vector<2x8x8x128xbf16>
    %67 = vector.shape_cast %66 : vector<2x8x8x128xbf16> to vector<128x128xbf16>
    %c1_60 = arith.constant 1 : index
    %c0_61 = arith.constant 0 : index
    %c0_62 = arith.constant 0 : index
    %68 = vector.load %arg4[%c1_60, %c0_61, %c0_62] : memref<16x128x128xbf16, #tpu.memory_space<vmem>>, vector<1x128x128xbf16>
    %69 = vector.shape_cast %68 : vector<1x128x128xbf16> to vector<128x128xbf16>
    %cst_63 = arith.constant dense<0.000000e+00> : vector<128x128xf32>
    %70 = tpu.matmul %67, %69, %cst_63 {dimension_numbers = #tpu.dot_dimension_numbers<[1], [0], [0], [1], [0, 0, 1, 1], [], []>} : vector<128x128xbf16>, vector<128x128xbf16>, vector<128x128xf32> -> vector<128x128xf32>
    %71 = arith.addf %65, %70 : vector<128x128xf32>
    %c0_64 = arith.constant 0 : index
    %c1_65 = arith.constant 1 : index
    %c0_66 = arith.constant 0 : index
    %c0_67 = arith.constant 0 : index
    %72 = vector.load %arg6[%c0_64, %c1_65, %c0_66, %c0_67] : memref<2x10x10x128xbf16, #tpu.memory_space<vmem>>, vector<2x8x8x128xbf16>
    %73 = vector.shape_cast %72 : vector<2x8x8x128xbf16> to vector<128x128xbf16>
    %c2_68 = arith.constant 2 : index
    %c0_69 = arith.constant 0 : index
    %c0_70 = arith.constant 0 : index
    %74 = vector.load %arg4[%c2_68, %c0_69, %c0_70] : memref<16x128x128xbf16, #tpu.memory_space<vmem>>, vector<1x128x128xbf16>
    %75 = vector.shape_cast %74 : vector<1x128x128xbf16> to vector<128x128xbf16>
    %cst_71 = arith.constant dense<0.000000e+00> : vector<128x128xf32>
    %76 = tpu.matmul %73, %75, %cst_71 {dimension_numbers = #tpu.dot_dimension_numbers<[1], [0], [0], [1], [0, 0, 1, 1], [], []>} : vector<128x128xbf16>, vector<128x128xbf16>, vector<128x128xf32> -> vector<128x128xf32>
    %77 = arith.addf %71, %76 : vector<128x128xf32>
    %c0_72 = arith.constant 0 : index
    %c1_73 = arith.constant 1 : index
    %c1_74 = arith.constant 1 : index
    %c0_75 = arith.constant 0 : index
    %78 = vector.load %arg6[%c0_72, %c1_73, %c1_74, %c0_75] : memref<2x10x10x128xbf16, #tpu.memory_space<vmem>>, vector<2x8x8x128xbf16>
    %79 = vector.shape_cast %78 : vector<2x8x8x128xbf16> to vector<128x128xbf16>
    %c3_76 = arith.constant 3 : index
    %c0_77 = arith.constant 0 : index
    %c0_78 = arith.constant 0 : index
    %80 = vector.load %arg4[%c3_76, %c0_77, %c0_78] : memref<16x128x128xbf16, #tpu.memory_space<vmem>>, vector<1x128x128xbf16>
    %81 = vector.shape_cast %80 : vector<1x128x128xbf16> to vector<128x128xbf16>
    %cst_79 = arith.constant dense<0.000000e+00> : vector<128x128xf32>
    %82 = tpu.matmul %79, %81, %cst_79 {dimension_numbers = #tpu.dot_dimension_numbers<[1], [0], [0], [1], [0, 0, 1, 1], [], []>} : vector<128x128xbf16>, vector<128x128xbf16>, vector<128x128xf32> -> vector<128x128xf32>
    %83 = arith.addf %77, %82 : vector<128x128xf32>
    %cst_80 = arith.constant dense<0.000000e+00> : vector<2x128xf32>
    %84 = tpu.matmul %56, %83, %cst_80 {dimension_numbers = #tpu.dot_dimension_numbers<[1], [0], [0], [1], [0, 0, 1, 1], [], []>} : vector<2x128xf32>, vector<128x128xf32>, vector<2x128xf32> -> vector<2x128xf32>
    %85 = arith.addf %57, %84 : vector<2x128xf32>
    %86 = arith.mulf %83, %83 : vector<128x128xf32>
    %cst_81 = arith.constant dense<0.000000e+00> : vector<2x128xf32>
    %87 = tpu.matmul %56, %86, %cst_81 {dimension_numbers = #tpu.dot_dimension_numbers<[1], [0], [0], [1], [0, 0, 1, 1], [], []>} : vector<2x128xf32>, vector<128x128xf32>, vector<2x128xf32> -> vector<2x128xf32>
    %88 = arith.addf %58, %87 : vector<2x128xf32>
    %89 = vector.shape_cast %83 : vector<128x128xf32> to vector<2x8x8x128xf32>
    %c0_82 = arith.constant 0 : index
    %c0_83 = arith.constant 0 : index
    %c0_84 = arith.constant 0 : index
    %c0_85 = arith.constant 0 : index
    %90 = vector.load %arg5[%c0_82, %c0_83, %c0_84, %c0_85] : memref<2x32x8x128xf32, #tpu.memory_space<vmem>>, vector<2x8x8x128xf32>
    tpu.vector_store %arg5[%c0_82, %c0_83, %c0_84, %c0_85], %89 {strides = array<i32>} : memref<2x32x8x128xf32, #tpu.memory_space<vmem>>, vector<2x8x8x128xf32>,
    %cst_86 = arith.constant 0.000000e+00 : f32
    %91 = vector.broadcast %cst_86 : f32 to vector<128x128xf32>
    %c0_87 = arith.constant 0 : index
    %c0_88 = arith.constant 0 : index
    %c1_89 = arith.constant 1 : index
    %c0_90 = arith.constant 0 : index
    %92 = vector.load %arg6[%c0_87, %c0_88, %c1_89, %c0_90] : memref<2x10x10x128xbf16, #tpu.memory_space<vmem>>, vector<2x8x8x128xbf16>
    %93 = vector.shape_cast %92 : vector<2x8x8x128xbf16> to vector<128x128xbf16>
    %c4 = arith.constant 4 : index
    %c0_91 = arith.constant 0 : index
    %c0_92 = arith.constant 0 : index
    %94 = vector.load %arg4[%c4, %c0_91, %c0_92] : memref<16x128x128xbf16, #tpu.memory_space<vmem>>, vector<1x128x128xbf16>
    %95 = vector.shape_cast %94 : vector<1x128x128xbf16> to vector<128x128xbf16>
    %cst_93 = arith.constant dense<0.000000e+00> : vector<128x128xf32>
    %96 = tpu.matmul %93, %95, %cst_93 {dimension_numbers = #tpu.dot_dimension_numbers<[1], [0], [0], [1], [0, 0, 1, 1], [], []>} : vector<128x128xbf16>, vector<128x128xbf16>, vector<128x128xf32> -> vector<128x128xf32>
    %97 = arith.addf %91, %96 : vector<128x128xf32>
    %c0_94 = arith.constant 0 : index
    %c0_95 = arith.constant 0 : index
    %c2_96 = arith.constant 2 : index
    %c0_97 = arith.constant 0 : index
    %98 = vector.load %arg6[%c0_94, %c0_95, %c2_96, %c0_97] : memref<2x10x10x128xbf16, #tpu.memory_space<vmem>>, vector<2x8x8x128xbf16>
    %99 = vector.shape_cast %98 : vector<2x8x8x128xbf16> to vector<128x128xbf16>
    %c5 = arith.constant 5 : index
    %c0_98 = arith.constant 0 : index
    %c0_99 = arith.constant 0 : index
    %100 = vector.load %arg4[%c5, %c0_98, %c0_99] : memref<16x128x128xbf16, #tpu.memory_space<vmem>>, vector<1x128x128xbf16>
    %101 = vector.shape_cast %100 : vector<1x128x128xbf16> to vector<128x128xbf16>
    %cst_100 = arith.constant dense<0.000000e+00> : vector<128x128xf32>
    %102 = tpu.matmul %99, %101, %cst_100 {dimension_numbers = #tpu.dot_dimension_numbers<[1], [0], [0], [1], [0, 0, 1, 1], [], []>} : vector<128x128xbf16>, vector<128x128xbf16>, vector<128x128xf32> -> vector<128x128xf32>
    %103 = arith.addf %97, %102 : vector<128x128xf32>
    %c0_101 = arith.constant 0 : index
    %c1_102 = arith.constant 1 : index
    %c1_103 = arith.constant 1 : index
    %c0_104 = arith.constant 0 : index
    %104 = vector.load %arg6[%c0_101, %c1_102, %c1_103, %c0_104] : memref<2x10x10x128xbf16, #tpu.memory_space<vmem>>, vector<2x8x8x128xbf16>
    %105 = vector.shape_cast %104 : vector<2x8x8x128xbf16> to vector<128x128xbf16>
    %c6 = arith.constant 6 : index
    %c0_105 = arith.constant 0 : index
    %c0_106 = arith.constant 0 : index
    %106 = vector.load %arg4[%c6, %c0_105, %c0_106] : memref<16x128x128xbf16, #tpu.memory_space<vmem>>, vector<1x128x128xbf16>
    %107 = vector.shape_cast %106 : vector<1x128x128xbf16> to vector<128x128xbf16>
    %cst_107 = arith.constant dense<0.000000e+00> : vector<128x128xf32>
    %108 = tpu.matmul %105, %107, %cst_107 {dimension_numbers = #tpu.dot_dimension_numbers<[1], [0], [0], [1], [0, 0, 1, 1], [], []>} : vector<128x128xbf16>, vector<128x128xbf16>, vector<128x128xf32> -> vector<128x128xf32>
    %109 = arith.addf %103, %108 : vector<128x128xf32>
    %c0_108 = arith.constant 0 : index
    %c1_109 = arith.constant 1 : index
    %c2_110 = arith.constant 2 : index
    %c0_111 = arith.constant 0 : index
    %110 = vector.load %arg6[%c0_108, %c1_109, %c2_110, %c0_111] : memref<2x10x10x128xbf16, #tpu.memory_space<vmem>>, vector<2x8x8x128xbf16>
    %111 = vector.shape_cast %110 : vector<2x8x8x128xbf16> to vector<128x128xbf16>
    %c7 = arith.constant 7 : index
    %c0_112 = arith.constant 0 : index
    %c0_113 = arith.constant 0 : index
    %112 = vector.load %arg4[%c7, %c0_112, %c0_113] : memref<16x128x128xbf16, #tpu.memory_space<vmem>>, vector<1x128x128xbf16>
    %113 = vector.shape_cast %112 : vector<1x128x128xbf16> to vector<128x128xbf16>
    %cst_114 = arith.constant dense<0.000000e+00> : vector<128x128xf32>
    %114 = tpu.matmul %111, %113, %cst_114 {dimension_numbers = #tpu.dot_dimension_numbers<[1], [0], [0], [1], [0, 0, 1, 1], [], []>} : vector<128x128xbf16>, vector<128x128xbf16>, vector<128x128xf32> -> vector<128x128xf32>
    %115 = arith.addf %109, %114 : vector<128x128xf32>
    %cst_115 = arith.constant dense<0.000000e+00> : vector<2x128xf32>
    %116 = tpu.matmul %56, %115, %cst_115 {dimension_numbers = #tpu.dot_dimension_numbers<[1], [0], [0], [1], [0, 0, 1, 1], [], []>} : vector<2x128xf32>, vector<128x128xf32>, vector<2x128xf32> -> vector<2x128xf32>
    %117 = arith.addf %85, %116 : vector<2x128xf32>
    %118 = arith.mulf %115, %115 : vector<128x128xf32>
    %cst_116 = arith.constant dense<0.000000e+00> : vector<2x128xf32>
    %119 = tpu.matmul %56, %118, %cst_116 {dimension_numbers = #tpu.dot_dimension_numbers<[1], [0], [0], [1], [0, 0, 1, 1], [], []>} : vector<2x128xf32>, vector<128x128xf32>, vector<2x128xf32> -> vector<2x128xf32>
    %120 = arith.addf %88, %119 : vector<2x128xf32>
    %121 = vector.shape_cast %115 : vector<128x128xf32> to vector<2x8x8x128xf32>
    %c0_117 = arith.constant 0 : index
    %c8 = arith.constant 8 : index
    %c0_118 = arith.constant 0 : index
    %c0_119 = arith.constant 0 : index
    %122 = vector.load %arg5[%c0_117, %c8, %c0_118, %c0_119] : memref<2x32x8x128xf32, #tpu.memory_space<vmem>>, vector<2x8x8x128xf32>
    tpu.vector_store %arg5[%c0_117, %c8, %c0_118, %c0_119], %121 {strides = array<i32>} : memref<2x32x8x128xf32, #tpu.memory_space<vmem>>, vector<2x8x8x128xf32>,
    %cst_120 = arith.constant 0.000000e+00 : f32
    %123 = vector.broadcast %cst_120 : f32 to vector<128x128xf32>
    %c0_121 = arith.constant 0 : index
    %c1_122 = arith.constant 1 : index
    %c0_123 = arith.constant 0 : index
    %c0_124 = arith.constant 0 : index
    %124 = vector.load %arg6[%c0_121, %c1_122, %c0_123, %c0_124] : memref<2x10x10x128xbf16, #tpu.memory_space<vmem>>, vector<2x8x8x128xbf16>
    %125 = vector.shape_cast %124 : vector<2x8x8x128xbf16> to vector<128x128xbf16>
    %c8_125 = arith.constant 8 : index
    %c0_126 = arith.constant 0 : index
    %c0_127 = arith.constant 0 : index
    %126 = vector.load %arg4[%c8_125, %c0_126, %c0_127] : memref<16x128x128xbf16, #tpu.memory_space<vmem>>, vector<1x128x128xbf16>
    %127 = vector.shape_cast %126 : vector<1x128x128xbf16> to vector<128x128xbf16>
    %cst_128 = arith.constant dense<0.000000e+00> : vector<128x128xf32>
    %128 = tpu.matmul %125, %127, %cst_128 {dimension_numbers = #tpu.dot_dimension_numbers<[1], [0], [0], [1], [0, 0, 1, 1], [], []>} : vector<128x128xbf16>, vector<128x128xbf16>, vector<128x128xf32> -> vector<128x128xf32>
    %129 = arith.addf %123, %128 : vector<128x128xf32>
    %c0_129 = arith.constant 0 : index
    %c1_130 = arith.constant 1 : index
    %c1_131 = arith.constant 1 : index
    %c0_132 = arith.constant 0 : index
    %130 = vector.load %arg6[%c0_129, %c1_130, %c1_131, %c0_132] : memref<2x10x10x128xbf16, #tpu.memory_space<vmem>>, vector<2x8x8x128xbf16>
    %131 = vector.shape_cast %130 : vector<2x8x8x128xbf16> to vector<128x128xbf16>
    %c9_133 = arith.constant 9 : index
    %c0_134 = arith.constant 0 : index
    %c0_135 = arith.constant 0 : index
    %132 = vector.load %arg4[%c9_133, %c0_134, %c0_135] : memref<16x128x128xbf16, #tpu.memory_space<vmem>>, vector<1x128x128xbf16>
    %133 = vector.shape_cast %132 : vector<1x128x128xbf16> to vector<128x128xbf16>
    %cst_136 = arith.constant dense<0.000000e+00> : vector<128x128xf32>
    %134 = tpu.matmul %131, %133, %cst_136 {dimension_numbers = #tpu.dot_dimension_numbers<[1], [0], [0], [1], [0, 0, 1, 1], [], []>} : vector<128x128xbf16>, vector<128x128xbf16>, vector<128x128xf32> -> vector<128x128xf32>
    %135 = arith.addf %129, %134 : vector<128x128xf32>
    %c0_137 = arith.constant 0 : index
    %c2_138 = arith.constant 2 : index
    %c0_139 = arith.constant 0 : index
    %c0_140 = arith.constant 0 : index
    %136 = vector.load %arg6[%c0_137, %c2_138, %c0_139, %c0_140] : memref<2x10x10x128xbf16, #tpu.memory_space<vmem>>, vector<2x8x8x128xbf16>
    %137 = vector.shape_cast %136 : vector<2x8x8x128xbf16> to vector<128x128xbf16>
    %c10 = arith.constant 10 : index
    %c0_141 = arith.constant 0 : index
    %c0_142 = arith.constant 0 : index
    %138 = vector.load %arg4[%c10, %c0_141, %c0_142] : memref<16x128x128xbf16, #tpu.memory_space<vmem>>, vector<1x128x128xbf16>
    %139 = vector.shape_cast %138 : vector<1x128x128xbf16> to vector<128x128xbf16>
    %cst_143 = arith.constant dense<0.000000e+00> : vector<128x128xf32>
    %140 = tpu.matmul %137, %139, %cst_143 {dimension_numbers = #tpu.dot_dimension_numbers<[1], [0], [0], [1], [0, 0, 1, 1], [], []>} : vector<128x128xbf16>, vector<128x128xbf16>, vector<128x128xf32> -> vector<128x128xf32>
    %141 = arith.addf %135, %140 : vector<128x128xf32>
    %c0_144 = arith.constant 0 : index
    %c2_145 = arith.constant 2 : index
    %c1_146 = arith.constant 1 : index
    %c0_147 = arith.constant 0 : index
    %142 = vector.load %arg6[%c0_144, %c2_145, %c1_146, %c0_147] : memref<2x10x10x128xbf16, #tpu.memory_space<vmem>>, vector<2x8x8x128xbf16>
    %143 = vector.shape_cast %142 : vector<2x8x8x128xbf16> to vector<128x128xbf16>
    %c11 = arith.constant 11 : index
    %c0_148 = arith.constant 0 : index
    %c0_149 = arith.constant 0 : index
    %144 = vector.load %arg4[%c11, %c0_148, %c0_149] : memref<16x128x128xbf16, #tpu.memory_space<vmem>>, vector<1x128x128xbf16>
    %145 = vector.shape_cast %144 : vector<1x128x128xbf16> to vector<128x128xbf16>
    %cst_150 = arith.constant dense<0.000000e+00> : vector<128x128xf32>
    %146 = tpu.matmul %143, %145, %cst_150 {dimension_numbers = #tpu.dot_dimension_numbers<[1], [0], [0], [1], [0, 0, 1, 1], [], []>} : vector<128x128xbf16>, vector<128x128xbf16>, vector<128x128xf32> -> vector<128x128xf32>
    %147 = arith.addf %141, %146 : vector<128x128xf32>
    %cst_151 = arith.constant dense<0.000000e+00> : vector<2x128xf32>
    %148 = tpu.matmul %56, %147, %cst_151 {dimension_numbers = #tpu.dot_dimension_numbers<[1], [0], [0], [1], [0, 0, 1, 1], [], []>} : vector<2x128xf32>, vector<128x128xf32>, vector<2x128xf32> -> vector<2x128xf32>
    %149 = arith.addf %117, %148 : vector<2x128xf32>
    %150 = arith.mulf %147, %147 : vector<128x128xf32>
    %cst_152 = arith.constant dense<0.000000e+00> : vector<2x128xf32>
    %151 = tpu.matmul %56, %150, %cst_152 {dimension_numbers = #tpu.dot_dimension_numbers<[1], [0], [0], [1], [0, 0, 1, 1], [], []>} : vector<2x128xf32>, vector<128x128xf32>, vector<2x128xf32> -> vector<2x128xf32>
    %152 = arith.addf %120, %151 : vector<2x128xf32>
    %153 = vector.shape_cast %147 : vector<128x128xf32> to vector<2x8x8x128xf32>
    %c0_153 = arith.constant 0 : index
    %c16 = arith.constant 16 : index
    %c0_154 = arith.constant 0 : index
    %c0_155 = arith.constant 0 : index
    %154 = vector.load %arg5[%c0_153, %c16, %c0_154, %c0_155] : memref<2x32x8x128xf32, #tpu.memory_space<vmem>>, vector<2x8x8x128xf32>
    tpu.vector_store %arg5[%c0_153, %c16, %c0_154, %c0_155], %153 {strides = array<i32>} : memref<2x32x8x128xf32, #tpu.memory_space<vmem>>, vector<2x8x8x128xf32>,
    %cst_156 = arith.constant 0.000000e+00 : f32
    %155 = vector.broadcast %cst_156 : f32 to vector<128x128xf32>
    %c0_157 = arith.constant 0 : index
    %c1_158 = arith.constant 1 : index
    %c1_159 = arith.constant 1 : index
    %c0_160 = arith.constant 0 : index
    %156 = vector.load %arg6[%c0_157, %c1_158, %c1_159, %c0_160] : memref<2x10x10x128xbf16, #tpu.memory_space<vmem>>, vector<2x8x8x128xbf16>
    %157 = vector.shape_cast %156 : vector<2x8x8x128xbf16> to vector<128x128xbf16>
    %c12 = arith.constant 12 : index
    %c0_161 = arith.constant 0 : index
    %c0_162 = arith.constant 0 : index
    %158 = vector.load %arg4[%c12, %c0_161, %c0_162] : memref<16x128x128xbf16, #tpu.memory_space<vmem>>, vector<1x128x128xbf16>
    %159 = vector.shape_cast %158 : vector<1x128x128xbf16> to vector<128x128xbf16>
    %cst_163 = arith.constant dense<0.000000e+00> : vector<128x128xf32>
    %160 = tpu.matmul %157, %159, %cst_163 {dimension_numbers = #tpu.dot_dimension_numbers<[1], [0], [0], [1], [0, 0, 1, 1], [], []>} : vector<128x128xbf16>, vector<128x128xbf16>, vector<128x128xf32> -> vector<128x128xf32>
    %161 = arith.addf %155, %160 : vector<128x128xf32>
    %c0_164 = arith.constant 0 : index
    %c1_165 = arith.constant 1 : index
    %c2_166 = arith.constant 2 : index
    %c0_167 = arith.constant 0 : index
    %162 = vector.load %arg6[%c0_164, %c1_165, %c2_166, %c0_167] : memref<2x10x10x128xbf16, #tpu.memory_space<vmem>>, vector<2x8x8x128xbf16>
    %163 = vector.shape_cast %162 : vector<2x8x8x128xbf16> to vector<128x128xbf16>
    %c13 = arith.constant 13 : index
    %c0_168 = arith.constant 0 : index
    %c0_169 = arith.constant 0 : index
    %164 = vector.load %arg4[%c13, %c0_168, %c0_169] : memref<16x128x128xbf16, #tpu.memory_space<vmem>>, vector<1x128x128xbf16>
    %165 = vector.shape_cast %164 : vector<1x128x128xbf16> to vector<128x128xbf16>
    %cst_170 = arith.constant dense<0.000000e+00> : vector<128x128xf32>
    %166 = tpu.matmul %163, %165, %cst_170 {dimension_numbers = #tpu.dot_dimension_numbers<[1], [0], [0], [1], [0, 0, 1, 1], [], []>} : vector<128x128xbf16>, vector<128x128xbf16>, vector<128x128xf32> -> vector<128x128xf32>
    %167 = arith.addf %161, %166 : vector<128x128xf32>
    %c0_171 = arith.constant 0 : index
    %c2_172 = arith.constant 2 : index
    %c1_173 = arith.constant 1 : index
    %c0_174 = arith.constant 0 : index
    %168 = vector.load %arg6[%c0_171, %c2_172, %c1_173, %c0_174] : memref<2x10x10x128xbf16, #tpu.memory_space<vmem>>, vector<2x8x8x128xbf16>
    %169 = vector.shape_cast %168 : vector<2x8x8x128xbf16> to vector<128x128xbf16>
    %c14 = arith.constant 14 : index
    %c0_175 = arith.constant 0 : index
    %c0_176 = arith.constant 0 : index
    %170 = vector.load %arg4[%c14, %c0_175, %c0_176] : memref<16x128x128xbf16, #tpu.memory_space<vmem>>, vector<1x128x128xbf16>
    %171 = vector.shape_cast %170 : vector<1x128x128xbf16> to vector<128x128xbf16>
    %cst_177 = arith.constant dense<0.000000e+00> : vector<128x128xf32>
    %172 = tpu.matmul %169, %171, %cst_177 {dimension_numbers = #tpu.dot_dimension_numbers<[1], [0], [0], [1], [0, 0, 1, 1], [], []>} : vector<128x128xbf16>, vector<128x128xbf16>, vector<128x128xf32> -> vector<128x128xf32>
    %173 = arith.addf %167, %172 : vector<128x128xf32>
    %c0_178 = arith.constant 0 : index
    %c2_179 = arith.constant 2 : index
    %c2_180 = arith.constant 2 : index
    %c0_181 = arith.constant 0 : index
    %174 = vector.load %arg6[%c0_178, %c2_179, %c2_180, %c0_181] : memref<2x10x10x128xbf16, #tpu.memory_space<vmem>>, vector<2x8x8x128xbf16>
    %175 = vector.shape_cast %174 : vector<2x8x8x128xbf16> to vector<128x128xbf16>
    %c15 = arith.constant 15 : index
    %c0_182 = arith.constant 0 : index
    %c0_183 = arith.constant 0 : index
    %176 = vector.load %arg4[%c15, %c0_182, %c0_183] : memref<16x128x128xbf16, #tpu.memory_space<vmem>>, vector<1x128x128xbf16>
    %177 = vector.shape_cast %176 : vector<1x128x128xbf16> to vector<128x128xbf16>
    %cst_184 = arith.constant dense<0.000000e+00> : vector<128x128xf32>
    %178 = tpu.matmul %175, %177, %cst_184 {dimension_numbers = #tpu.dot_dimension_numbers<[1], [0], [0], [1], [0, 0, 1, 1], [], []>} : vector<128x128xbf16>, vector<128x128xbf16>, vector<128x128xf32> -> vector<128x128xf32>
    %179 = arith.addf %173, %178 : vector<128x128xf32>
    %cst_185 = arith.constant dense<0.000000e+00> : vector<2x128xf32>
    %180 = tpu.matmul %56, %179, %cst_185 {dimension_numbers = #tpu.dot_dimension_numbers<[1], [0], [0], [1], [0, 0, 1, 1], [], []>} : vector<2x128xf32>, vector<128x128xf32>, vector<2x128xf32> -> vector<2x128xf32>
    %181 = arith.addf %149, %180 : vector<2x128xf32>
    %182 = arith.mulf %179, %179 : vector<128x128xf32>
    %cst_186 = arith.constant dense<0.000000e+00> : vector<2x128xf32>
    %183 = tpu.matmul %56, %182, %cst_186 {dimension_numbers = #tpu.dot_dimension_numbers<[1], [0], [0], [1], [0, 0, 1, 1], [], []>} : vector<2x128xf32>, vector<128x128xf32>, vector<2x128xf32> -> vector<2x128xf32>
    %184 = arith.addf %152, %183 : vector<2x128xf32>
    %185 = vector.shape_cast %179 : vector<128x128xf32> to vector<2x8x8x128xf32>
    %c0_187 = arith.constant 0 : index
    %c24 = arith.constant 24 : index
    %c0_188 = arith.constant 0 : index
    %c0_189 = arith.constant 0 : index
    %186 = vector.load %arg5[%c0_187, %c24, %c0_188, %c0_189] : memref<2x32x8x128xf32, #tpu.memory_space<vmem>>, vector<2x8x8x128xf32>
    tpu.vector_store %arg5[%c0_187, %c24, %c0_188, %c0_189], %185 {strides = array<i32>} : memref<2x32x8x128xf32, #tpu.memory_space<vmem>>, vector<2x8x8x128xf32>,
    %cst_190 = arith.constant 2.560000e+02 : f32
    %187 = vector.broadcast %cst_190 : f32 to vector<2x128xf32>
    %188 = arith.divf %181, %187 : vector<2x128xf32>
    %cst_191 = arith.constant 2.560000e+02 : f32
    %189 = vector.broadcast %cst_191 : f32 to vector<2x128xf32>
    %190 = arith.divf %184, %189 : vector<2x128xf32>
    %191 = arith.mulf %188, %188 : vector<2x128xf32>
    %192 = arith.subf %190, %191 : vector<2x128xf32>
    %cst_192 = arith.constant 0.000000e+00 : f32
    %193 = vector.broadcast %cst_192 : f32 to vector<2x128xf32>
    %194 = arith.maximumf %192, %193 : vector<2x128xf32>
    %cst_193 = arith.constant 9.99999974E-6 : f32
    %195 = vector.broadcast %cst_193 : f32 to vector<2x128xf32>
    %196 = arith.addf %194, %195 : vector<2x128xf32>
    %197 = math.rsqrt %196 : vector<2x128xf32>
    %198 = vector.shape_cast %188 : vector<2x128xf32> to vector<2x1x1x128xf32>
    %199 = vector.shape_cast %198 : vector<2x1x1x128xf32> to vector<2x1x1x128xf32>
    %200 = vector.broadcast %199 : vector<2x1x1x128xf32> to vector<2x8x8x128xf32>
    %201 = vector.shape_cast %197 : vector<2x128xf32> to vector<2x1x1x128xf32>
    %202 = vector.shape_cast %201 : vector<2x1x1x128xf32> to vector<2x1x1x128xf32>
    %203 = vector.broadcast %202 : vector<2x1x1x128xf32> to vector<2x8x8x128xf32>
    %c0_194 = arith.constant 0 : index
    %c0_195 = arith.constant 0 : index
    %c0_196 = arith.constant 0 : index
    %c0_197 = arith.constant 0 : index
    %204 = vector.load %arg5[%c0_194, %c0_195, %c0_196, %c0_197] : memref<2x32x8x128xf32, #tpu.memory_space<vmem>>, vector<2x8x8x128xf32>
    %205 = arith.subf %204, %200 : vector<2x8x8x128xf32>
    %206 = arith.mulf %205, %203 : vector<2x8x8x128xf32>
    %c0_198 = arith.constant 0 : index
    %c0_199 = arith.constant 0 : index
    %c0_200 = arith.constant 0 : index
    %c0_201 = arith.constant 0 : index
    %207 = vector.load %arg5[%c0_198, %c0_199, %c0_200, %c0_201] : memref<2x32x8x128xf32, #tpu.memory_space<vmem>>, vector<2x8x8x128xf32>
    tpu.vector_store %arg5[%c0_198, %c0_199, %c0_200, %c0_201], %206 {strides = array<i32>} : memref<2x32x8x128xf32, #tpu.memory_space<vmem>>, vector<2x8x8x128xf32>,
    %c0_202 = arith.constant 0 : index
    %c8_203 = arith.constant 8 : index
    %c0_204 = arith.constant 0 : index
    %c0_205 = arith.constant 0 : index
    %208 = vector.load %arg5[%c0_202, %c8_203, %c0_204, %c0_205] : memref<2x32x8x128xf32, #tpu.memory_space<vmem>>, vector<2x8x8x128xf32>
    %209 = arith.subf %208, %200 : vector<2x8x8x128xf32>
    %210 = arith.mulf %209, %203 : vector<2x8x8x128xf32>
    %c0_206 = arith.constant 0 : index
    %c8_207 = arith.constant 8 : index
    %c0_208 = arith.constant 0 : index
    %c0_209 = arith.constant 0 : index
    %211 = vector.load %arg5[%c0_206, %c8_207, %c0_208, %c0_209] : memref<2x32x8x128xf32, #tpu.memory_space<vmem>>, vector<2x8x8x128xf32>
    tpu.vector_store %arg5[%c0_206, %c8_207, %c0_208, %c0_209], %210 {strides = array<i32>} : memref<2x32x8x128xf32, #tpu.memory_space<vmem>>, vector<2x8x8x128xf32>,
    %c0_210 = arith.constant 0 : index
    %c16_211 = arith.constant 16 : index
    %c0_212 = arith.constant 0 : index
    %c0_213 = arith.constant 0 : index
    %212 = vector.load %arg5[%c0_210, %c16_211, %c0_212, %c0_213] : memref<2x32x8x128xf32, #tpu.memory_space<vmem>>, vector<2x8x8x128xf32>
    %213 = arith.subf %212, %200 : vector<2x8x8x128xf32>
    %214 = arith.mulf %213, %203 : vector<2x8x8x128xf32>
    %c0_214 = arith.constant 0 : index
    %c16_215 = arith.constant 16 : index
    %c0_216 = arith.constant 0 : index
    %c0_217 = arith.constant 0 : index
    %215 = vector.load %arg5[%c0_214, %c16_215, %c0_216, %c0_217] : memref<2x32x8x128xf32, #tpu.memory_space<vmem>>, vector<2x8x8x128xf32>
    tpu.vector_store %arg5[%c0_214, %c16_215, %c0_216, %c0_217], %214 {strides = array<i32>} : memref<2x32x8x128xf32, #tpu.memory_space<vmem>>, vector<2x8x8x128xf32>,
    %c0_218 = arith.constant 0 : index
    %c24_219 = arith.constant 24 : index
    %c0_220 = arith.constant 0 : index
    %c0_221 = arith.constant 0 : index
    %216 = vector.load %arg5[%c0_218, %c24_219, %c0_220, %c0_221] : memref<2x32x8x128xf32, #tpu.memory_space<vmem>>, vector<2x8x8x128xf32>
    %217 = arith.subf %216, %200 : vector<2x8x8x128xf32>
    %218 = arith.mulf %217, %203 : vector<2x8x8x128xf32>
    %c0_222 = arith.constant 0 : index
    %c24_223 = arith.constant 24 : index
    %c0_224 = arith.constant 0 : index
    %c0_225 = arith.constant 0 : index
    %219 = vector.load %arg5[%c0_222, %c24_223, %c0_224, %c0_225] : memref<2x32x8x128xf32, #tpu.memory_space<vmem>>, vector<2x8x8x128xf32>
    tpu.vector_store %arg5[%c0_222, %c24_223, %c0_224, %c0_225], %218 {strides = array<i32>} : memref<2x32x8x128xf32, #tpu.memory_space<vmem>>, vector<2x8x8x128xf32>,
    return
  }
  func.func @transform_0(%arg0: i32) -> (i32, i32, i32, i32) {
    %c0_i32 = arith.constant 0 : i32
    %c0_i32_0 = arith.constant 0 : i32
    %c0_i32_1 = arith.constant 0 : i32
    %c0_i32_2 = arith.constant 0 : i32
    return %arg0, %c0_i32, %c0_i32_0, %c0_i32_1 : i32, i32, i32, i32
  }
  func.func @transform_1(%arg0: i32) -> (i32, i32, i32) {
    %c0_i32 = arith.constant 0 : i32
    %c0_i32_0 = arith.constant 0 : i32
    %c0_i32_1 = arith.constant 0 : i32
    %c0_i32_2 = arith.constant 0 : i32
    return %c0_i32, %c0_i32_0, %c0_i32_1 : i32, i32, i32
  }
  func.func @transform_2(%arg0: i32) -> (i32, i32) {
    %c0_i32 = arith.constant 0 : i32
    %c0_i32_0 = arith.constant 0 : i32
    %c0_i32_1 = arith.constant 0 : i32
    return %c0_i32, %c0_i32_0 : i32, i32
  }
  func.func @transform_3(%arg0: i32) -> (i32, i32, i32) {
    %c0_i32 = arith.constant 0 : i32
    %c0_i32_0 = arith.constant 0 : i32
    %c0_i32_1 = arith.constant 0 : i32
    %c0_i32_2 = arith.constant 0 : i32
    return %c0_i32, %c0_i32_0, %c0_i32_1 : i32, i32, i32
  }
  func.func @transform_4(%arg0: i32) -> (i32, i32, i32, i32) {
    %c0_i32 = arith.constant 0 : i32
    %c0_i32_0 = arith.constant 0 : i32
    %c0_i32_1 = arith.constant 0 : i32
    %c0_i32_2 = arith.constant 0 : i32
    return %arg0, %c0_i32, %c0_i32_0, %c0_i32_1 : i32, i32, i32, i32
  }
}

</mosaic_0001>

<bundles_post_ra>
// kernel: connection_block_innermost.1
= control target key start
LH: loop header
LB: loop body
LE: loop exit
PB: predicated region body
PF: predicated region fallthrough
CT: control target
= control target key end

     0   :  { %vm165_vm10 = vsmask.f32 3328  ;;  %vm166_vm11 = vsmask.f32 7440  ;;  %vm425_vm12 = vcmask 130048   ;;  %s14125_s1 = inlined_call_operand.vmem [shape: bf16[4,16,128], index: 1, kind: input, shape index: {}]   ;;  %s14126_s0 = inlined_call_operand.vmem [shape: bf16[2,9,9,16], index: 0, kind: input, shape index: {}]   ;;  %s14127_s3 = inlined_call_operand.vmem [shape: bf16[16,128,128], index: 3, kind: input, shape index: {}]   ;;  %s14128_s2 = inlined_call_operand.vmem [shape: f32[1,128], index: 2, kind: input, shape index: {}]   ;;  %s14129_s4 = inlined_call_operand.vmem [shape: f32[2,32,8,128], index: 4, kind: output, shape index: {}]  }
   0x1   :  { %v10939_v0 = vld [vmem:[%s14125_s1 + $0x8] sm:$0xff]   ;;  %v19_v1 = vld [vmem:[%s14126_s0] sm:$0xf]  ;;  %v20_v2 = vld [vmem:[%s14126_s0 + $0x4] sm:$0x1] }
   0x2   :  { %v21_v3 = vld [vmem:[%s14126_s0 + $0x8] sm:$0xf]  ;;  %9625 = vmatprep.subr.bf16.mxu0 %v10939_v0  ;;  %v22_v4 = vld [vmem:[%s14126_s0 + $0xc] sm:$0x1]  ;;  %v23_v5 = vld [vmem:[%s14126_s0 + $0x10] sm:$0xf] }
   0x3   :  { %v24_v6 = vld [vmem:[%s14126_s0 + $0x14] sm:$0x1]  ;;  %9626 = vmatpush3.bf16.msra.mxu0 %v10939_v0  ;;  %v25_v7 = vld [vmem:[%s14126_s0 + $0x18] sm:$0xf]  ;;  %v26_v8 = vld [vmem:[%s14126_s0 + $0x1c] sm:$0x1] }
   0x4   :  { %v27_v9 = vld [vmem:[%s14126_s0 + $0x20] sm:$0xf]  ;;  %v28_v10 = vld [vmem:[%s14126_s0 + $0x24] sm:$0x1]  ;;  %vm55_vm0 = vcmp.ge.bf16.partialorder %v19_v1, 0  ;;  %vm56_vm1 = vcmp.ge.bf16.partialorder %v20_v2, 0  ;;  %vm11207_vm13 = vmor %vm165_vm10, %vm166_vm11 }
   0x5   :  { %vm57_vm2 = vcmp.ge.bf16.partialorder %v21_v3, 0  ;;  %vm58_vm3 = vcmp.ge.bf16.partialorder %v22_v4, 0  ;;  %vm59_vm4 = vcmp.ge.bf16.partialorder %v23_v5, 0  ;;  %vm60_vm5 = vcmp.ge.bf16.partialorder %v24_v6, 0  ;;  %v11189_v28 = vld [vmem:[%s14125_s1] sm:$0xff]  }
   0x6   :  { %vm61_vm6 = vcmp.ge.bf16.partialorder %v25_v7, 0  ;;  %vm62_vm7 = vcmp.ge.bf16.partialorder %v26_v8, 0  ;;  %vm63_vm8 = vcmp.ge.bf16.partialorder %v27_v9, 0  ;;  %vm64_vm9 = vcmp.ge.bf16.partialorder %v28_v10, 0  ;;  %9643 = vmatprep.subr.bf16.mxu0 %v11189_v28  ;;  %v29_v62 = vld [vmem:[%s14126_s0 + $0x28] sm:$0xf] }
   0x7   :  { %v91_v11 = vmul.bf16 1045249613, %v19_v1  ;;  %v92_v12 = vmul.bf16 1045249613, %v20_v2  ;;  %v93_v13 = vmul.bf16 1045249613, %v21_v3 }
   0x8   :  { %v94_v14 = vmul.bf16 1045249613, %v22_v4  ;;  %v95_v15 = vmul.bf16 1045249613, %v23_v5  ;;  %v96_v16 = vmul.bf16 1045249613, %v24_v6 }
   0x9   :  { %v97_v17 = vmul.bf16 1045249613, %v25_v7  ;;  %v98_v18 = vmul.bf16 1045249613, %v26_v8  ;;  %v11172_v19 = vsel %vm55_vm0, %v19_v1, %v91_v11  ;;  %v99_v20 = vmul.bf16 1045249613, %v27_v9 }
   0xa   :  { %v100_v21 = vmul.bf16 1045249613, %v28_v10  ;;  %v128_v22 = vsel %vm56_vm1, %v20_v2, %v92_v12  ;;  %v11176_v23 = vsel %vm57_vm2, %v21_v3, %v93_v13  ;;  %v130_v24 = vsel %vm58_vm3, %v22_v4, %v94_v14  ;;  %v30_v3 = vld [vmem:[%s14126_s0 + $0x2c] sm:$0x1]  ;;  %v33_v13 = vld [vmem:[%s14126_s0 + $0x38] sm:$0xf] }
   0xb   :  { %v11180_v25 = vsel %vm59_vm4, %v23_v5, %v95_v15  ;;  %v132_v26 = vsel %vm60_vm5, %v24_v6, %v96_v16  ;;  %v11184_v27 = vsel %vm61_vm6, %v25_v7, %v97_v17  ;;  %v134_v29 = vsel %vm62_vm7, %v26_v8, %v98_v18  ;;  %v31_v8 = vld [vmem:[%s14126_s0 + $0x30] sm:$0xf]  ;;  %v34_v14 = vld [vmem:[%s14126_s0 + $0x3c] sm:$0x1] }
   0xc   :  { %v11193_v30 = vsel %vm63_vm8, %v27_v9, %v99_v20  ;;  %v136_v31 = vsel %vm64_vm9, %v28_v10, %v100_v21  ;;  %v169_v32 = vshrl.u32 %v11172_v19, 16  ;;  %v172_v33 = vshll.u32 %v11172_v19, 16  ;;  %v32_v9 = vld [vmem:[%s14126_s0 + $0x34] sm:$0x1] }
   0xd   :  { %v178_v34 = vshll.u32 %v128_v22, 16  ;;  %v183_v35 = vshrl.u32 %v11176_v23, 16  ;;  %v186_v36 = vshll.u32 %v11176_v23, 16  ;;  %v192_v38 = vshll.u32 %v130_v24, 16 }
   0xe   :  { %v171_v37 = vrot.slane %v169_v32, 4  ;;  %v197_v39 = vshrl.u32 %v11180_v25, 16  ;;  %v200_v40 = vshll.u32 %v11180_v25, 16  ;;  %v174_v41 = vrot.slane %v172_v33, 5  ;;  %v11257_v32 = vld [vmem:[%s14125_s1 + $0x10] sm:$0xff]  }
   0xf   :  { %v180_v42 = vrot.slane %v178_v34, 5  ;;  %v185_v43 = vrot.slane %v183_v35, 4  ;;  %v188_v44 = vrot.slane %v186_v36, 5  ;;  %v194_v45 = vrot.slane %v192_v38, 5 }
  0x10   :  { %v199_v46 = vrot.slane %v197_v39, 4  ;;  %v202_v47 = vrot.slane %v200_v40, 5  ;;  %v206_v48 = vshll.u32 %v132_v26, 16  ;;  %v175_v49 = vor.u32 %v174_v41, %v171_v37  ;;  %v37_v37 = vld [vmem:[%s14126_s0 + $0x48] sm:$0xf] }
  0x11   :  { %v189_v50 = vor.u32 %v188_v44, %v185_v43  ;;  %v211_v51 = vshrl.u32 %v11184_v27, 16  ;;  %v214_v52 = vshll.u32 %v11184_v27, 16  ;;  %v220_v56 = vshll.u32 %v134_v29, 16 }
  0x12   :  { %v203_v54 = vor.u32 %v202_v47, %v199_v46  ;;  %v208_v55 = vrot.slane %v206_v48, 5  ;;  %v225_v57 = vshrl.u32 %v11193_v30, 16  ;;  %v176_v58 = vrot.slane %v175_v49, 4  ;;  %v38_v46 = vld [vmem:[%s14126_s0 + $0x4c] sm:$0x1] }
  0x13   :  { %v190_v59 = vrot.slane %v189_v50, 4  ;;  %v213_v60 = vrot.slane %v211_v51, 4  ;;  %v216_v61 = vrot.slane %v214_v52, 5  ;;  %v222_v0 = vrot.slane %v220_v56, 5 }
  0x14   :  { %v204_v63 = vrot.slane %v203_v54, 4  ;;  %v227_v1 = vrot.slane %v225_v57, 4  ;;  %v228_v2 = vshll.u32 %v11193_v30, 16  ;;  %v181_v4 = vsel %vm11207_vm13, %v176_v58, %v180_v42 }
  0x15   :  { %v11223_v5 = vsel %vm11207_vm13, %v190_v59, %v194_v45  ;;  %v217_v6 = vor.u32 %v216_v61, %v213_v60  ;;  %v234_v7 = vshll.u32 %v136_v31, 16  ;;  %vm65_vm14 = vcmp.ge.bf16.partialorder %v29_v62, 0  ;;  %v40_v59 = vld [vmem:[%s14126_s0 + $0x54] sm:$0x1] }
  0x16   :  { %v11233_v10 = vsel %vm11207_vm13, %v204_v63, %v208_v55  ;;  %v230_v11 = vrot.slane %v228_v2, 5  ;;  %v8380_v12 = vcombine.low %v181_v4, %v11223_v5  ;;  %vm66_vm15 = vcmp.ge.bf16.partialorder %v30_v3, 0 }
  0x17   :  { %v218_v15 = vrot.slane %v217_v6, 4  ;;  %v236_v16 = vrot.slane %v234_v7, 5  ;;  %v8435_v17 = vcombine.low %v11223_v5, %v11233_v10  ;;  %v101_v20 = vmul.bf16 1045249613, %v29_v62  ;;  %v42_v7 = vld [vmem:[%s14126_s0 + $0x5c] sm:$0x1] }
  0x18   :  { %v231_v18 = vor.u32 %v230_v11, %v227_v1  ;;  %9627 = vmatprep.mubr.msk.bf16.mxu0 %vm425_vm12, %v8380_v12  ;;  %v102_v21 = vmul.bf16 1045249613, %v30_v3  ;;  %vm67_vm0 = vcmp.ge.bf16.partialorder %v31_v8, 0  ;;  %vm68_vm1 = vcmp.ge.bf16.partialorder %v32_v9, 0  ;;  %v1122_v5 = vld [vmem:[#allocation2 + $0x18] sm:$0x1] }
  0x19   :  { %v11247_v22 = vsel %vm11207_vm13, %v218_v15, %v222_v0  ;;  %vm69_vm2 = vcmp.ge.bf16.partialorder %v33_v13, 0  ;;  %vm70_vm3 = vcmp.ge.bf16.partialorder %v34_v14, 0  ;;  %v11252_v29 = vsel %vm65_vm14, %v29_v62, %v101_v20 }
  0x1a   :  { %v232_v24 = vrot.slane %v231_v18, 4  ;;  %v8381_v26 = vcombine.low %v11233_v10, %v11247_v22  ;;  %v138_v31 = vsel %vm66_vm15, %v30_v3, %v102_v21  ;;  %v239_v33 = vshrl.u32 %v11252_v29, 16  ;;  %v41_v3 = vld [vmem:[%s14126_s0 + $0x58] sm:$0xf]  ;;  %v1172_v10 = vld [vmem:[#allocation2 + $0x1c] sm:$0x1] }
  0x1b   :  { %v242_v34 = vshll.u32 %v11252_v29, 16  ;;  %v248_v35 = vshll.u32 %v138_v31, 16  ;;  %v103_v36 = vmul.bf16 1045249613, %v31_v8  ;;  %v104_v39 = vmul.bf16 1045249613, %v32_v9 }
  0x1c   :  { %v11266_v38 = vsel %vm11207_vm13, %v232_v24, %v236_v16  ;;  %9628 = vmatmul.mubr.msk.bf16.vlgmr.msra.gmra.mrb[0].mxu0 %vm425_vm12, %v8381_v26  ;;  %v105_v40 = vmul.bf16 1045249613, %v33_v13  ;;  %v106_v41 = vmul.bf16 1045249613, %v34_v14  ;;  %v241_v43 = vrot.slane %v239_v33, 4 }
  0x1d   :  { %v8436_v42 = vcombine.low %v11247_v22, %v11266_v38  ;;  %9644 = vmatpush3.bf16.msra.mxu0 %v11189_v28  ;;  %v244_v44 = vrot.slane %v242_v34, 5  ;;  %v250_v45 = vrot.slane %v248_v35, 5  ;;  %v11276_v47 = vsel %vm67_vm0, %v31_v8, %v103_v36  ;;  %v39_v28 = vld [vmem:[%s14126_s0 + $0x50] sm:$0xf]  ;;  %v43_v33 = vld [vmem:[%s14126_s0 + $0x60] sm:$0xf] }
  0x1e   :  { %v140_v48 = vsel %vm68_vm1, %v32_v9, %v104_v39  ;;  %v11280_v49 = vsel %vm69_vm2, %v33_v13, %v105_v40  ;;  %v142_v50 = vsel %vm70_vm3, %v34_v14, %v106_v41  ;;  %9661 = vmatprep.subr.bf16.mxu0 %v11257_v32  ;;  %v253_v52 = vshrl.u32 %v11276_v47, 16  ;;  %v44_v39 = vld [vmem:[%s14126_s0 + $0x64] sm:$0x1] }
  0x1f   :  { %v245_v51 = vor.u32 %v244_v44, %v241_v43  ;;  %v256_v54 = vshll.u32 %v11276_v47, 16  ;;  %v262_v55 = vshll.u32 %v140_v48, 16  ;;  %v267_v56 = vshrl.u32 %v11280_v49, 16 }
  0x20   :  { %v270_v57 = vshll.u32 %v11280_v49, 16  ;;  %v276_v58 = vshll.u32 %v142_v50, 16  ;;  %vm73_vm4 = vcmp.ge.bf16.partialorder %v37_v37, 0  ;;  %v255_v61 = vrot.slane %v253_v52, 4 }
  0x21   :  { %v246_v60 = vrot.slane %v245_v51, 4  ;;  %v258_v62 = vrot.slane %v256_v54, 5  ;;  %v264_v63 = vrot.slane %v262_v55, 5  ;;  %v269_v0 = vrot.slane %v267_v56, 4 }
  0x22   :  { %v272_v1 = vrot.slane %v270_v57, 5  ;;  %v278_v2 = vrot.slane %v276_v58, 5  ;;  %vm74_vm5 = vcmp.ge.bf16.partialorder %v38_v46, 0  ;;  %vm75_vm6 = vcmp.ge.bf16.partialorder %v39_v28, 0 }
  0x23   :  { %v11299_v4 = vsel %vm11207_vm13, %v246_v60, %v250_v45  ;;  %v259_v6 = vor.u32 %v258_v62, %v255_v61  ;;  %vm76_vm7 = vcmp.ge.bf16.partialorder %v40_v59, 0  ;;  %v109_v11 = vmul.bf16 1045249613, %v37_v37  ;;  %v45_v45 = vld [vmem:[%s14126_s0 + $0x68] sm:$0xf] }
  0x24   :  { %v8382_v8 = vcombine.low %v11266_v38, %v11299_v4  ;;  %v273_v9 = vor.u32 %v272_v1, %v269_v0  ;;  %v110_v12 = vmul.bf16 1045249613, %v38_v46  ;;  %v111_v14 = vmul.bf16 1045249613, %v39_v28  ;;  %v47_v1 = vld [vmem:[%s14126_s0 + $0x70] sm:$0xf] }
  0x25   :  { %v260_v13 = vrot.slane %v259_v6, 4  ;;  %v112_v15 = vmul.bf16 1045249613, %v40_v59  ;;  %vm77_vm8 = vcmp.ge.bf16.partialorder %v41_v3, 0  ;;  %v11308_v18 = vsel %vm73_vm4, %v37_v37, %v109_v11  ;;  %v1166_v38 = vld [vmem:[#allocation2 + $0xc] sm:$0x1] }
  0x26   :  { %9631 = vmatprep.mubr.msk.bf16.mxu0 %vm425_vm12, %v8382_v8  ;;  %v274_v16 = vrot.slane %v273_v9, 4  ;;  %v146_v20 = vsel %vm74_vm5, %v38_v46, %v110_v12  ;;  %vm78_vm9 = vcmp.ge.bf16.partialorder %v42_v7, 0  ;;  %v11316_v24 = vsel %vm75_vm6, %v39_v28, %v111_v14  ;;  %v46_v28 = vld [vmem:[%s14126_s0 + $0x6c] sm:$0x1] }
  0x27   :  { %v11313_v21 = vsel %vm11207_vm13, %v260_v13, %v264_v63  ;;  %v148_v26 = vsel %vm76_vm7, %v40_v59, %v112_v15  ;;  %v281_v31 = vshrl.u32 %v11308_v18, 16  ;;  %v284_v35 = vshll.u32 %v11308_v18, 16  ;;  %v49_v15 = vld [vmem:[%s14126_s0 + $0x78] sm:$0xf] }
  0x28   :  { %v11325_v34 = vsel %vm11207_vm13, %v274_v16, %v278_v2  ;;  %v290_v36 = vshll.u32 %v146_v20, 16  ;;  %v295_v37 = vshrl.u32 %v11316_v24, 16  ;;  %v298_v43 = vshll.u32 %v11316_v24, 16  ;;  %v48_v2 = vld [vmem:[%s14126_s0 + $0x74] sm:$0x1] }
  0x29   :  { %v8383_v40 = vcombine.low %v11313_v21, %v11325_v34  ;;  %v283_v41 = vrot.slane %v281_v31, 4  ;;  %v304_v44 = vshll.u32 %v148_v26, 16  ;;  %v286_v46 = vrot.slane %v284_v35, 5  ;;  %v50_v16 = vld [vmem:[%s14126_s0 + $0x7c] sm:$0x1] }
  0x2a   :  { %v292_v48 = vrot.slane %v290_v36, 5  ;;  %v297_v50 = vrot.slane %v295_v37, 4  ;;  %vm79_vm10 = vcmp.ge.bf16.partialorder %v43_v33, 0  ;;  %v300_v51 = vrot.slane %v298_v43, 5 }
  0x2b   :  { %9632 = vmatmul.mubr.msk.bf16.gmra.mrb[4].mxu0 %vm425_vm12, %v8383_v40  ;;  %v306_v52 = vrot.slane %v304_v44, 5  ;;  %vm80_vm11 = vcmp.ge.bf16.partialorder %v44_v39, 0  ;;  %v113_v54 = vmul.bf16 1045249613, %v41_v3  ;;  %v287_v55 = vor.u32 %v286_v46, %v283_v41 }
  0x2c   :  { %v114_v56 = vmul.bf16 1045249613, %v42_v7  ;;  %v115_v57 = vmul.bf16 1045249613, %v43_v33  ;;  %v116_v58 = vmul.bf16 1045249613, %v44_v39  ;;  %v301_v59 = vor.u32 %v300_v51, %v297_v50 }
  0x2d   :  { %v11343_v60 = vsel %vm77_vm8, %v41_v3, %v113_v54  ;;  %vm81_vm14 = vcmp.ge.bf16.partialorder %v45_v45, 0  ;;  %vm82_vm15 = vcmp.ge.bf16.partialorder %v46_v28, 0  ;;  %v288_v61 = vrot.slane %v287_v55, 4  ;;  %v10943_v3 = vld [vmem:[%s14127_s3 + $0x80] sm:$0xff]  }
  0x2e   :  { %v150_v62 = vsel %vm78_vm9, %v42_v7, %v114_v56  ;;  %v11347_v63 = vsel %vm79_vm10, %v43_v33, %v115_v57  ;;  %v152_v0 = vsel %vm80_vm11, %v44_v39, %v116_v58  ;;  %v302_v6 = vrot.slane %v301_v59, 4  ;;  %9761 = vmatprep.subr.bf16.mxu1 %v10943_v3  ;;  %v52_v58 = vld [vmem:[%s14126_s0 + $0x84] sm:$0x1] }
  0x2f   :  { %v309_v8 = vshrl.u32 %v11343_v60, 16  ;;  %v312_v7 = vshll.u32 %v11343_v60, 16  ;;  %v318_v9 = vshll.u32 %v150_v62, 16  ;;  %v293_v11 = vsel %vm11207_vm13, %v288_v61, %v292_v48  ;;  %9762 = vmatpush3.bf16.msra.mxu1 %v10943_v3 }
  0x30   :  { %v323_v12 = vshrl.u32 %v11347_v63, 16  ;;  %v326_v13 = vshll.u32 %v11347_v63, 16  ;;  %v332_v14 = vshll.u32 %v152_v0, 16  ;;  %v11372_v20 = vsel %vm11207_vm13, %v302_v6, %v306_v52  ;;  %v51_v52 = vld [vmem:[%s14126_s0 + $0x80] sm:$0xf] }
  0x31   :  { %v311_v26 = vrot.slane %v309_v8, 4  ;;  %v314_v31 = vrot.slane %v312_v7, 5  ;;  %v320_v33 = vrot.slane %v318_v9, 5  ;;  %v8384_v35 = vcombine.low %v293_v11, %v11372_v20 }
  0x32   :  { %v325_v36 = vrot.slane %v323_v12, 4  ;;  %v328_v37 = vrot.slane %v326_v13, 5  ;;  %v334_v39 = vrot.slane %v332_v14, 5  ;;  %vm83_vm0 = vcmp.ge.bf16.partialorder %v47_v1, 0 }
  0x33   :  { %v315_v40 = vor.u32 %v314_v31, %v311_v26  ;;  %vm84_vm1 = vcmp.ge.bf16.partialorder %v48_v2, 0  ;;  %v117_v41 = vmul.bf16 1045249613, %v45_v45  ;;  %9635 = vmatprep.mubr.msk.bf16.mxu0 %vm425_vm12, %v8384_v35  ;;  %v118_v44 = vmul.bf16 1045249613, %v46_v28 }
  0x34   :  { %v329_v43 = vor.u32 %v328_v37, %v325_v36  ;;  %v119_v46 = vmul.bf16 1045249613, %v47_v1  ;;  %v120_v48 = vmul.bf16 1045249613, %v48_v2  ;;  %vm85_vm2 = vcmp.ge.bf16.partialorder %v49_v15, 0 }
  0x35   :  { %v316_v50 = vrot.slane %v315_v40, 4  ;;  %v11377_v51 = vsel %vm81_vm14, %v45_v45, %v117_v41  ;;  %vm86_vm3 = vcmp.ge.bf16.partialorder %v50_v16, 0  ;;  %v154_v55 = vsel %vm82_vm15, %v46_v28, %v118_v44 }
  0x36   :  { %v330_v54 = vrot.slane %v329_v43, 4  ;;  %v11383_v56 = vsel %vm83_vm0, %v47_v1, %v119_v46  ;;  %v156_v57 = vsel %vm84_vm1, %v48_v2, %v120_v48  ;;  %v337_v59 = vshrl.u32 %v11377_v51, 16 }
  0x37   :  { %v11390_v45 = vsel %vm11207_vm13, %v316_v50, %v320_v33  ;;  %v340_v61 = vshll.u32 %v11377_v51, 16  ;;  %v346_v62 = vshll.u32 %v154_v55, 16  ;;  %v351_v28 = vshrl.u32 %v11383_v56, 16 }
  0x38   :  { %v11396_v0 = vsel %vm11207_vm13, %v330_v54, %v334_v39  ;;  %v354_v1 = vshll.u32 %v11383_v56, 16  ;;  %v360_v2 = vshll.u32 %v156_v57, 16  ;;  %v339_v6 = vrot.slane %v337_v59, 4 }
  0x39   :  { %v8385_v3 = vcombine.low %v11390_v45, %v11396_v0  ;;  %v342_v8 = vrot.slane %v340_v61, 5  ;;  %v348_v7 = vrot.slane %v346_v62, 5  ;;  %v353_v9 = vrot.slane %v351_v28, 4 }
  0x3a   :  { %v356_v11 = vrot.slane %v354_v1, 5  ;;  %v362_v12 = vrot.slane %v360_v2, 5  ;;  %vm87_vm4 = vcmp.ge.bf16.partialorder %v51_v52, 0  ;;  %vm88_vm5 = vcmp.ge.bf16.partialorder %v52_v58, 0 }
  0x3b   :  { %9636 = vmatmul.mubr.msk.bf16.gmra.mrb[8].mxu0 %vm425_vm12, %v8385_v3  ;;  %v343_v13 = vor.u32 %v342_v8, %v339_v6  ;;  %v121_v14 = vmul.bf16 1045249613, %v49_v15  ;;  %v122_v26 = vmul.bf16 1045249613, %v50_v16  ;;  %v123_v33 = vmul.bf16 1045249613, %v51_v52 }
  0x3c   :  { %v357_v31 = vor.u32 %v356_v11, %v353_v9  ;;  %v124_v35 = vmul.bf16 1045249613, %v52_v58  ;;  %v8398_v40 = vcombine.low %v11180_v25, %v11184_v27  ;;  %v53_v3 = vld [vmem:[%s14126_s0 + $0x88] sm:$0xf]  ;;  %v8416_v9 = vcombine.low %v11176_v23, %v11180_v25  ;;  %v10946_v25 = vld [vmem:[%s14127_s3 + $0x90] sm:$0xff]  }
  0x3d   :  { %v344_v36 = vrot.slane %v343_v13, 4  ;;  %v11404_v37 = vsel %vm85_vm2, %v49_v15, %v121_v14  ;;  %v158_v39 = vsel %vm86_vm3, %v50_v16, %v122_v26  ;;  %v11409_v43 = vsel %vm87_vm4, %v51_v52, %v123_v33 }
  0x3e   :  { %v358_v41 = vrot.slane %v357_v31, 4  ;;  %v160_v44 = vsel %vm88_vm5, %v52_v58, %v124_v35  ;;  %v365_v46 = vshrl.u32 %v11404_v37, 16  ;;  %v368_v50 = vshll.u32 %v11404_v37, 16  ;;  %v35_v58 = vld [vmem:[%s14126_s0 + $0x40] sm:$0xf] }
  0x3f   :  { %v11414_v48 = vsel %vm11207_vm13, %v344_v36, %v348_v7  ;;  %v374_v54 = vshll.u32 %v158_v39, 16  ;;  %v379_v15 = vshrl.u32 %v11409_v43, 16  ;;  %v382_v52 = vshll.u32 %v11409_v43, 16 }
  0x40   :  { %v11420_v16 = vsel %vm11207_vm13, %v358_v41, %v362_v12  ;;  %v367_v55 = vrot.slane %v365_v46, 4  ;;  %v388_v57 = vshll.u32 %v160_v44, 16  ;;  %v370_v61 = vrot.slane %v368_v50, 5  ;;  %v36_v12 = vld [vmem:[%s14126_s0 + $0x44] sm:$0x1] }
  0x41   :  { %v8386_v59 = vcombine.low %v11414_v48, %v11420_v16  ;;  %v376_v62 = vrot.slane %v374_v54, 5  ;;  %v381_v28 = vrot.slane %v379_v15, 4  ;;  %v384_v1 = vrot.slane %v382_v52, 5  ;;  %v54_v44 = vld [vmem:[%s14126_s0 + $0x8c] sm:$0x1] }
  0x42   :  { %v390_v2 = vrot.slane %v388_v57, 5  ;;  %v371_v6 = vor.u32 %v370_v61, %v367_v55  ;;  %v8397_v7 = vcombine.low %v11172_v19, %v11176_v23  ;;  %v8417_v11 = vcombine.low %v11184_v27, %v11193_v30  ;;  %v10944_v23 = vld [vmem:[%s14127_s3 + $0x88] sm:$0xff]   ;;  %v10945_v27 = vld [vmem:[%s14127_s3 + $0x40] sm:$0xff]  }
  0x43   :  { %9639 = vmatprep.mubr.msk.bf16.mxu0 %vm425_vm12, %v8386_v59  ;;  %v385_v8 = vor.u32 %v384_v1, %v381_v28  ;;  %v8418_v14 = vcombine.low %v11252_v29, %v11276_v47  ;;  %vm71_vm6 = vcmp.ge.bf16.partialorder %v35_v58, 0  ;;  %v107_v26 = vmul.bf16 1045249613, %v35_v58  ;;  %9763 = vmatprep.subr.bf16.mxu1 %v10944_v23 }
  0x44   :  { %v372_v13 = vrot.slane %v371_v6, 4  ;;  %v8420_v19 = vcombine.low %v11316_v24, %v11343_v60  ;;  %v8421_v33 = vcombine.low %v11347_v63, %v11377_v51  ;;  %v8422_v35 = vcombine.low %v11383_v56, %v11404_v37  ;;  %9764 = vmatpush3.bf16.msra.mxu1 %v10944_v23  ;;  %v10956_v23 = vld [vmem:[%s14127_s3 + $0xb8] sm:$0xff]  }
  0x45   :  { %v386_v31 = vrot.slane %v385_v8, 4  ;;  %v143_v39 = vsel %vm71_vm6, %v35_v58, %v107_v26  ;;  %vm89_vm7 = vcmp.ge.bf16.partialorder %v53_v3, 0  ;;  %v125_v41 = vmul.bf16 1045249613, %v53_v3  ;;  %9765 = vmatprep.subr.bf16.mxu1 %v10946_v25 }
  0x46   :  { %v11451_v36 = vsel %vm11207_vm13, %v372_v13, %v376_v62  ;;  %v8419_v50 = vcombine.low %v11280_v49, %v143_v39  ;;  %v873_v54 = vshrl.u32 %v143_v39, 16  ;;  %v876_v15 = vshll.u32 %v143_v39, 16 }
  0x47   :  { %v391_v46 = vsel %vm11207_vm13, %v386_v31, %v390_v2  ;;  %v161_v52 = vsel %vm89_vm7, %v53_v3, %v125_v41  ;;  %v8437_v57 = vcombine.low %v11299_v4, %v11313_v21  ;;  %vm72_vm8 = vcmp.ge.bf16.partialorder %v36_v12, 0 }
  0x48   :  { %v8387_v55 = vcombine.low %v11451_v36, %v391_v46  ;;  %v875_v58 = vrot.slane %v873_v54, 4  ;;  %v878_v59 = vrot.slane %v876_v15, 5  ;;  %v8423_v61 = vcombine.low %v11409_v43, %v161_v52  ;;  %9766 = vmatpush3.bf16.msra.mxu1 %v10946_v25  ;;  %v11642_v25 = vld [vmem:[%s14127_s3 + $0xc0] sm:$0xff]  }
  0x49   :  { %v887_v62 = vshrl.u32 %v161_v52, 16  ;;  %v890_v28 = vshll.u32 %v161_v52, 16  ;;  %v108_v1 = vmul.bf16 1045249613, %v36_v12  ;;  %v8439_v2 = vcombine.low %v11372_v20, %v11390_v45 }
  0x4a   :  { %9640 = vmatmul.mubr.msk.bf16.gmra.mrb[12].mxu0 %vm425_vm12, %v8387_v55  ;;  %v8440_v6 = vcombine.low %v11396_v0, %v11414_v48  ;;  %v879_v4 = vor.u32 %v878_v59, %v875_v58  ;;  %v8441_v21 = vcombine.low %v11420_v16, %v11451_v36  ;;  %vm90_vm9 = vcmp.ge.bf16.partialorder %v54_v44, 0  ;;  %v10942_v48 = vld [vmem:[%s14125_s1 + $0x18] sm:$0xff]   ;;  %v10949_v59 = vld [vmem:[%s14127_s3 + $0x50] sm:$0xff]  }
  0x4b   :  { %9645 = vmatprep.mubr.msk.bf16.mxu0 %vm425_vm12, %v8397_v7  ;;  %v889_v3 = vrot.slane %v887_v62, 4  ;;  %v892_v8 = vrot.slane %v890_v28, 5  ;;  %v144_v13 = vsel %vm72_vm8, %v36_v12, %v108_v1  ;;  %v126_v26 = vmul.bf16 1045249613, %v54_v44  ;;  %v1137_v62 = vld [vmem:[#allocation2 + $0x40] sm:$0x1] }
  0x4c   :  { %v880_v31 = vrot.slane %v879_v4, 4  ;;  %v882_v39 = vshll.u32 %v144_v13, 16  ;;  %v8399_v20 = vcombine.low %v11193_v30, %v11252_v29  ;;  %v8400_v55 = vcombine.low %v11276_v47, %v11280_v49  ;;  %v1116_v29 = vld [vmem:[#allocation2 + $0x8] sm:$0x1]  ;;  %v1187_v28 = vld [vmem:[#allocation2 + $0x44] sm:$0x1] }
  0x4d   :  { %v162_v41 = vsel %vm90_vm9, %v54_v44, %v126_v26  ;;  %v893_v54 = vor.u32 %v892_v8, %v889_v3  ;;  %v8401_v52 = vcombine.low %v11308_v18, %v11316_v24  ;;  %v8404_v49 = vcombine.low %v11404_v37, %v11409_v43  ;;  %v1125_v24 = vld [vmem:[#allocation2 + $0x20] sm:$0x1]  ;;  %v10948_v43 = vld [vmem:[%s14127_s3 + $0x98] sm:$0xff]   ;;  %v10952_v1 = vld [vmem:[%s14127_s3 + $0xa8] sm:$0xff]  }
  0x4e   :  { %v884_v45 = vrot.slane %v882_v39, 5  ;;  %v896_v0 = vshll.u32 %v162_v41, 16  ;;  %vm1113_vm10 = vcmask 1040384   ;;  %vm1114_vm11 = vsmask.f32 256  ;;  %9767 = vmatprep.subr.bf16.mxu1 %v10948_v43  ;;  %v10951_v13 = vld [vmem:[%s14127_s3 + $0x58] sm:$0xff]  }
  0x4f   :  { %v894_v7 = vrot.slane %v893_v54, 4  ;;  %vm1164_vm14 = vsmask.f32 7938  ;;  %vm11552_vm15 = vmand %vm1113_vm10, %vm1114_vm11  ;;  %9768 = vmatpush3.bf16.msra.mxu1 %v10948_v43  ;;  %v1131_v3 = vld [vmem:[#allocation2 + $0x30] sm:$0x1]  ;;  %v11107_v26 = vmov 0  }
  0x50   :  { %v885_v16 = vsel %vm11207_vm13, %v880_v31, %v884_v45  ;;  %v898_v36 = vrot.slane %v896_v0, 5  ;;  %v1117_v47 = vsel %vm11552_vm15, 0, %v1116_v29  ;;  %v1181_v4 = vld [vmem:[#allocation2 + $0x34] sm:$0x1]  ;;  %1103 = vst [vmem:[#allocation2] sm:$0xf] %v11107_v26 }
  0x51   :  { %v8438_v12 = vcombine.low %v11325_v34, %v885_v16  ;;  %v8403_v34 = vcombine.low %v11377_v51, %v11383_v56  ;;  %1118 = vst [vmem:[#allocation2 + $0x8] sm:$0x1] %v1117_v47  ;;  %v1119_v51 = vld [vmem:[#allocation2 + $0x10] sm:$0x1]  ;;  %1104 = vst [vmem:[#allocation2 + $0x4] sm:$0x1] %v11107_v26 }
  0x52   :  { %9646 = vmatmul.mubr.msk.bf16.vlgmr.msra.gmra.mrb[0].mxu0 %vm425_vm12, %v8398_v40  ;;  %v899_v44 = vsel %vm11207_vm13, %v894_v7, %v898_v36  ;;  %v1120_v37 = vsel %vm11552_vm15, 0, %v1119_v51  ;;  %v1169_v40 = vld [vmem:[#allocation2 + $0x14] sm:$0x1]  ;;  %1105 = vst [vmem:[#allocation2 + $0x50] sm:$0xf] %v11107_v26  ;;  %vm1414_vm0 = vcmask 1043456  }
  0x53   :  { %9662 = vmatpush3.bf16.msra.mxu0 %v11257_v32  ;;  %9649 = vmatprep.mubr.msk.bf16.mxu0 %vm425_vm12, %v8399_v20  ;;  %v8442_v15 = vcombine.low %v391_v46, %v899_v44  ;;  %v8402_v32 = vcombine.low %v11343_v60, %v11347_v63  ;;  %v1126_v60 = vsel %vm11552_vm15, 0, %v1125_v24  ;;  %v1175_v63 = vld [vmem:[#allocation2 + $0x24] sm:$0x1]  ;;  %1121 = vst [vmem:[#allocation2 + $0x10] sm:$0x1] %v1120_v37  ;;  %vm11715_vm1 = vmand %vm1414_vm0, %vm1164_vm14  ;;  %vm3242_vm2 = vcmask 1042432  }
  0x54   :  { %9679 = vmatprep.subr.bf16.mxu0 %v10942_v48  ;;  %1127 = vst [vmem:[#allocation2 + $0x20] sm:$0x1] %v1126_v60  ;;  %v1128_v46 = vld [vmem:[#allocation2 + $0x28] sm:$0x1]  ;;  %1106 = vst [vmem:[#allocation2 + $0x54] sm:$0x1] %v11107_v26 }
  0x55   :  { %1108 = vst [vmem:[#allocation2 + $0x48] sm:$0xf] %v11107_v26  ;;  %1109 = vst [vmem:[#allocation2 + $0x4c] sm:$0x1] %v11107_v26  ;;  %v1146_v31 = vld [vmem:[#allocation2 + $0x68] sm:$0x1] }
  0x56   :  { %1110 = vst [vmem:[#allocation2 + $0x98] sm:$0xf] %v11107_v26  ;;  %1111 = vst [vmem:[#allocation2 + $0x9c] sm:$0x1] %v11107_v26  ;;  %v1196_v39 = vld [vmem:[#allocation2 + $0x6c] sm:$0x1] }
  0x57   :  { %v1147_v41 = vsel %vm11552_vm15, 0, %v1146_v31  ;;  %v1140_v20 = vld [vmem:[#allocation2 + $0x58] sm:$0x1]  ;;  %v1190_v45 = vld [vmem:[#allocation2 + $0x5c] sm:$0x1]  ;;  %v10953_v44 = vld [vmem:[%s14127_s3 + $0x60] sm:$0xff]  }
  0x58   :  { %1148 = vst [vmem:[#allocation2 + $0x68] sm:$0x1] %v1147_v41  ;;  %v1141_v0 = vsel %vm11552_vm15, 0, %v1140_v20  ;;  %v1149_v7 = vld [vmem:[#allocation2 + $0x70] sm:$0x1]  ;;  %vm3243_vm3 = vcmask 1046532  }
  0x59   :  { %v1199_v16 = vld [vmem:[#allocation2 + $0x74] sm:$0x1]  ;;  %1142 = vst [vmem:[#allocation2 + $0x58] sm:$0x1] %v1141_v0  ;;  %v1150_v36 = vsel %vm11552_vm15, 0, %v1149_v7  ;;  %vm12017_vm4 = vmor %vm3242_vm2, %vm3243_vm3  ;;  %vm11109_vm5 = vmmov 0  }
  0x5a   :  { %9650 = vmatmul.mubr.msk.bf16.gmra.mrb[4].mxu0 %vm425_vm12, %v8400_v55  ;;  %1151 = vst [vmem:[#allocation2 + $0x70] sm:$0x1] %v1150_v36  ;;  %v1193_v55 = vld [vmem:[#allocation2 + $0x64] sm:$0x1]  ;;  %v1202_v47 = vld [vmem:[#allocation2 + $0x7c] sm:$0x1] }
  0x5b   :  { %9653 = vmatprep.mubr.msk.bf16.mxu0 %vm425_vm12, %v8401_v52  ;;  %v10954_v52 = vld [vmem:[%s14127_s3 + $0xb0] sm:$0xff]   ;;  %v1155_v37 = vld [vmem:[#allocation2 + $0x80] sm:$0x1]  ;;  %v11695_v7 = vld [vmem:[#allocation2] sm:$0xe] }
  0x5c   :  { %v1161_v24 = vld [vmem:[#allocation2 + $0x90] sm:$0x1]  ;;  %v1211_v60 = vld [vmem:[#allocation2 + $0x94] sm:$0x1]  ;;  %v1156_v43 = vsel %vm11552_vm15, 0, %v1155_v37 }
  0x5d   :  { %v1162_v51 = vsel %vm11552_vm15, 0, %v1161_v24  ;;  %1157 = vst [vmem:[#allocation2 + $0x80] sm:$0x1] %v1156_v43 }
  0x5e   :  { %1163 = vst [vmem:[#allocation2 + $0x90] sm:$0x1] %v1162_v51  ;;  %v1416_v51 = vld [vmem:[#allocation2 + $0x8] sm:$0xf] }
  0x62   :  { %9654 = vmatmul.mubr.msk.bf16.gmra.mrb[8].mxu0 %vm425_vm12, %v8402_v32 }
  0x63   :  { %9657 = vmatprep.mubr.msk.bf16.mxu0 %vm425_vm12, %v8403_v34 }
  0x6a   :  { %9658 = vmatmul.mubr.msk.bf16.gmra.mrb[12].mxu0 %vm425_vm12, %v8404_v49  ;;  %v10955_v49 = vld [vmem:[%s14127_s3 + $0x68] sm:$0xff]  }
  0x6b   :  { %9663 = vmatprep.mubr.msk.bf16.mxu0 %vm425_vm12, %v8416_v9 }
  0x72   :  { %9664 = vmatmul.mubr.msk.bf16.vlgmr.msra.gmra.mrb[0].mxu0 %vm425_vm12, %v8417_v11  ;;  %v10947_v11 = vld [vmem:[%s14127_s3 + $0x48] sm:$0xff]  }
  0x73   :  { %9680 = vmatpush3.bf16.msra.mxu0 %v10942_v48  ;;  %9667 = vmatprep.mubr.msk.bf16.mxu0 %vm425_vm12, %v8418_v14  ;;  %v1134_v14 = vld [vmem:[#allocation2 + $0x38] sm:$0x1] }
  0x74   :  { %9697 = vmatprep.subr.bf16.mxu0 %v10945_v27 }
  0x7a   :  { %9668 = vmatmul.mubr.msk.bf16.gmra.mrb[4].mxu0 %vm425_vm12, %v8419_v50  ;;  %v1178_v50 = vld [vmem:[#allocation2 + $0x2c] sm:$0x1] }
  0x7b   :  { %9671 = vmatprep.mubr.msk.bf16.mxu0 %vm425_vm12, %v8420_v19  ;;  %v1184_v19 = vld [vmem:[#allocation2 + $0x3c] sm:$0x1] }
  0x82   :  { %9672 = vmatmul.mubr.msk.bf16.gmra.mrb[8].mxu0 %vm425_vm12, %v8421_v33  ;;  %v1135_v33 = vsel %vm11552_vm15, 0, %v1134_v14  ;;  %v11673_v14 = vld [vmem:[#allocation2] sm:$0xf] }
  0x83   :  { %9675 = vmatprep.mubr.msk.bf16.mxu0 %vm425_vm12, %v8422_v35  ;;  %1136 = vst [vmem:[#allocation2 + $0x38] sm:$0x1] %v1135_v33  ;;  %v1571_v33 = vshrl.u32 %v11673_v14, 16 }
  0x8a   :  { %9676 = vmatmul.mubr.msk.bf16.gmra.mrb[12].mxu0 %vm425_vm12, %v8423_v61  ;;  %v10950_v61 = vld [vmem:[%s14127_s3 + $0xa0] sm:$0xff]  }
  0x8b   :  { %9681 = vmatprep.mubr.msk.bf16.mxu0 %vm425_vm12, %v8435_v17  ;;  %v1123_v17 = vsel %vm11552_vm15, 0, %v1122_v5  ;;  %9769 = vmatprep.subr.bf16.mxu1 %v10950_v61  ;;  %v1158_v5 = vld [vmem:[#allocation2 + $0x88] sm:$0x1] }
  0x8c   :  { %1124 = vst [vmem:[#allocation2 + $0x18] sm:$0x1] %v1123_v17  ;;  %9770 = vmatpush3.bf16.msra.mxu1 %v10950_v61  ;;  %v1159_v17 = vsel %vm11552_vm15, 0, %v1158_v5  ;;  %v1554_v61 = vld [vmem:[#allocation2 + $0x4] sm:$0x1] }
  0x8d   :  { %9771 = vmatprep.subr.bf16.mxu1 %v10952_v1  ;;  %1160 = vst [vmem:[#allocation2 + $0x88] sm:$0x1] %v1159_v17 }
  0x90   :  { %9772 = vmatpush3.bf16.msra.mxu1 %v10952_v1  ;;  %v1580_v1 = vshll.u32 %v1554_v61, 16  ;;  %v1434_v61 = vld [vmem:[#allocation2 + $0x20] sm:$0xf] }
  0x91   :  { %9773 = vmatprep.subr.bf16.mxu1 %v10954_v52 }
  0x92   :  { %9682 = vmatmul.mubr.msk.bf16.vlgmr.msra.gmra.mrb[0].mxu0 %vm425_vm12, %v8436_v42  ;;  %v11685_v26 = vrot.slane %v1580_v1, 5 }
  0x93   :  { %9685 = vmatprep.mubr.msk.bf16.mxu0 %vm425_vm12, %v8437_v57  ;;  %9698 = vmatpush3.bf16.msra.mxu0 %v10945_v27  ;;  %v1129_v57 = vsel %vm11552_vm15, 0, %v1128_v46  ;;  %v10958_v27 = vld [vmem:[%s14127_s3 + $0x70] sm:$0xff]  }
  0x94   :  { %9699 = vmatprep.subr.bf16.mxu0 %v10947_v11  ;;  %1130 = vst [vmem:[#allocation2 + $0x28] sm:$0x1] %v1129_v57  ;;  %9774 = vmatpush3.bf16.msra.mxu1 %v10954_v52 }
  0x95   :  { %9775 = vmatprep.subr.bf16.mxu1 %v10956_v23 }
  0x97   :  { %9700 = vmatpush3.bf16.msra.mxu0 %v10947_v11  ;;  %v11670_v11 = vld [vmem:[%s14127_s3] sm:$0xff]  }
  0x98   :  { %9701 = vmatprep.subr.bf16.mxu0 %v10949_v59  ;;  %9776 = vmatpush3.bf16.msra.mxu1 %v10956_v23 }
  0x99   :  { %9793 = vmatprep.subr.bf16.mxu1 %v11642_v25 }
  0x9a   :  { %9686 = vmatmul.mubr.msk.bf16.gmra.mrb[4].mxu0 %vm425_vm12, %v8438_v12 }
  0x9b   :  { %9689 = vmatprep.mubr.msk.bf16.mxu0 %vm425_vm12, %v8439_v2  ;;  %v1138_v2 = vsel %vm11552_vm15, 0, %v1137_v62  ;;  %9702 = vmatpush3.bf16.msra.mxu0 %v10949_v59  ;;  %v1562_v62 = vld [vmem:[#allocation2 + $0x54] sm:$0x1] }
  0x9c   :  { %1139 = vst [vmem:[#allocation2 + $0x40] sm:$0x1] %v1138_v2  ;;  %9703 = vmatprep.subr.bf16.mxu0 %v10951_v13 }
  0x9f   :  { %9704 = vmatpush3.bf16.msra.mxu0 %v10951_v13 }
  0xa0   :  { %9705 = vmatprep.subr.bf16.mxu0 %v10953_v44 }
  0xa2   :  { %9690 = vmatmul.mubr.msk.bf16.gmra.mrb[8].mxu0 %vm425_vm12, %v8440_v6 }
  0xa3   :  { %9693 = vmatprep.mubr.msk.bf16.mxu0 %vm425_vm12, %v8441_v21  ;;  %v1132_v21 = vsel %vm11552_vm15, 0, %v1131_v3  ;;  %9706 = vmatpush3.bf16.msra.mxu0 %v10953_v44  ;;  %v11680_v3 = vld [vmem:[%s14128_s2] ss:$0 sm:$0xff] }
  0xa4   :  { %1133 = vst [vmem:[#allocation2 + $0x30] sm:$0x1] %v1132_v21  ;;  %9707 = vmatprep.subr.bf16.mxu0 %v10955_v49 }
  0xa7   :  { %9708 = vmatpush3.bf16.msra.mxu0 %v10955_v49  ;;  %v8597_v49 = vrot.slane %v11695_v7, 9 }
  0xa8   :  { %9709 = vmatprep.subr.bf16.mxu0 %v10958_v27 }
  0xaa   :  { %9694 = vmatmul.mubr.msk.bf16.gmra.mrb[12].mxu0 %vm425_vm12, %v8442_v15  ;;  %vm11559_vm12 = vmand %vm1113_vm10, %vm1164_vm14  ;;  %v1143_v15 = vld [vmem:[#allocation2 + $0x60] sm:$0x1] }
  0xab   :  { %v1173_v42 = vsel %vm11559_vm12, 0, %v1172_v10  ;;  %v1167_v18 = vsel %vm11559_vm12, 0, %v1166_v38  ;;  %v1176_v56 = vsel %vm11559_vm12, 0, %v1175_v63  ;;  %v1170_v9 = vsel %vm11559_vm12, 0, %v1169_v40  ;;  %v1208_v10 = vld [vmem:[#allocation2 + $0x8c] sm:$0x1]  ;;  %9710 = vmatpush3.bf16.msra.mxu0 %v10958_v27 }
  0xac   :  { %1174 = vst [vmem:[#allocation2 + $0x1c] sm:$0x1] %v1173_v42  ;;  %1168 = vst [vmem:[#allocation2 + $0xc] sm:$0x1] %v1167_v18  ;;  %v1185_v35 = vsel %vm11559_vm12, 0, %v1184_v19  ;;  %v1179_v58 = vsel %vm11559_vm12, 0, %v1178_v50 }
  0xad   :  { %1177 = vst [vmem:[#allocation2 + $0x24] sm:$0x1] %v1176_v56  ;;  %1171 = vst [vmem:[#allocation2 + $0x14] sm:$0x1] %v1170_v9  ;;  %v1188_v6 = vsel %vm11559_vm12, 0, %v1187_v28  ;;  %v1182_v8 = vsel %vm11559_vm12, 0, %v1181_v4 }
  0xae   :  { %1186 = vst [vmem:[#allocation2 + $0x3c] sm:$0x1] %v1185_v35  ;;  %1180 = vst [vmem:[#allocation2 + $0x2c] sm:$0x1] %v1179_v58  ;;  %v1197_v54 = vsel %vm11559_vm12, 0, %v1196_v39  ;;  %v1191_v48 = vsel %vm11559_vm12, 0, %v1190_v45 }
  0xaf   :  { %1189 = vst [vmem:[#allocation2 + $0x44] sm:$0x1] %v1188_v6  ;;  %1183 = vst [vmem:[#allocation2 + $0x34] sm:$0x1] %v1182_v8  ;;  %v1200_v12 = vsel %vm11559_vm12, 0, %v1199_v16  ;;  %v1144_v32 = vsel %vm11552_vm15, 0, %v1143_v15 }
  0xb0   :  { %1198 = vst [vmem:[#allocation2 + $0x6c] sm:$0x1] %v1197_v54  ;;  %1192 = vst [vmem:[#allocation2 + $0x5c] sm:$0x1] %v1191_v48  ;;  %v1194_v34 = vsel %vm11559_vm12, 0, %v1193_v55  ;;  %v1209_v29 = vsel %vm11559_vm12, 0, %v1208_v10 }
  0xb1   :  { %1201 = vst [vmem:[#allocation2 + $0x74] sm:$0x1] %v1200_v12  ;;  %1145 = vst [vmem:[#allocation2 + $0x60] sm:$0x1] %v1144_v32  ;;  %v1152_v38 = vld [vmem:[#allocation2 + $0x78] sm:$0x1] }
  0xb2   :  { %1195 = vst [vmem:[#allocation2 + $0x64] sm:$0x1] %v1194_v34  ;;  %1210 = vst [vmem:[#allocation2 + $0x8c] sm:$0x1] %v1209_v29  ;;  %v1153_v42 = vsel %vm11552_vm15, 0, %v1152_v38  ;;  %v1203_v18 = vsel %vm11559_vm12, 0, %v1202_v47 }
  0xb3   :  { %1154 = vst [vmem:[#allocation2 + $0x78] sm:$0x1] %v1153_v42  ;;  %v10961_v63 = vld [vmem:[%s14127_s3 + $0x78] sm:$0xff]   ;;  %1204 = vst [vmem:[#allocation2 + $0x7c] sm:$0x1] %v1203_v18  ;;  %v1212_v56 = vsel %vm11559_vm12, 0, %v1211_v60 }
  0xb4   :  { %1213 = vst [vmem:[#allocation2 + $0x94] sm:$0x1] %v1212_v56  ;;  %v1205_v40 = vld [vmem:[#allocation2 + $0x84] sm:$0x1]  ;;  %9711 = vmatprep.subr.bf16.mxu0 %v10961_v63  ;;  %v1530_v19 = vld [vmem:[#allocation2 + $0x50] sm:$0xf] }
  0xb5   :  { %v1206_v9 = vsel %vm11559_vm12, 0, %v1205_v40  ;;  %9712 = vmatpush3.bf16.msra.mxu0 %v10961_v63  ;;  %v1574_v35 = vshll.u32 %v11673_v14, 16  ;;  %v1683_v46 = vshrl.u32 %v1530_v19, 16  ;;  %v1686_v22 = vshll.u32 %v1530_v19, 16  ;;  %v11693_v48 = vld [vmem:[#allocation2 + $0x4] sm:$0x1] }
  0xb6   :  { %1207 = vst [vmem:[#allocation2 + $0x84] sm:$0x1] %v1206_v9  ;;  %9729 = vmatprep.subr.bf16.mxu0 %v11670_v11  ;;  %v1573_v50 = vrot.slane %v1571_v33, 4  ;;  %v1692_v6 = vshll.u32 %v1562_v62, 16  ;;  %v11698_v12 = vld [vmem:[#allocation2] sm:$0xf] }
  0xb7   :  { %v1576_v57 = vrot.slane %v1574_v35, 5  ;;  %v1685_v58 = vrot.slane %v1683_v46, 4  ;;  %v1688_v59 = vrot.slane %v1686_v22, 5  ;;  %v3247_v23 = vrot.slane %v11693_v48, 5  ;;  %v1428_v38 = vld [vmem:[#allocation2 + $0x18] sm:$0xf] }
  0xb8   :  { %v11689_v39 = vrot.slane %v1692_v6, 5  ;;  %v2954_v10 = vshrl.u32 %v11698_v12, 16  ;;  %v2957_v17 = vshll.u32 %v11698_v12, 16  ;;  %v1431_v42 = vld [vmem:[#allocation2 + $0x1c] sm:$0x1] }
  0xb9   :  { %v1577_v28 = vor.u32 %v1576_v57, %v1573_v50  ;;  %v1689_v2 = vor.u32 %v1688_v59, %v1685_v58  ;;  %v1419_v33 = vld [vmem:[#allocation2 + $0xc] sm:$0x1]  ;;  %v1437_v6 = vld [vmem:[#allocation2 + $0x24] sm:$0x1]  ;;  %v10980_v9 = vld [vmem:[%s14127_s3 + $0xf8] sm:$0xff]  }
  0xbb   :  { %v11682_v21 = vrot.slane %v1577_v28, 4  ;;  %v11687_v31 = vrot.slane %v1689_v2, 4 }
  0xbd   :  { %v1583_v55 = vsel %vm11207_vm13, %v11682_v21, %v11685_v26  ;;  %v1695_v52 = vsel %vm11207_vm13, %v11687_v31, %v11689_v39 }
 0x165   :  { %v9683_v4 = vpop.f32.mrb[0].mxu0 }
 0x166   :  { %v1065_v8 = vadd.f32 %v9683_v4, %v11680_v3  ;;  %v977_v13 = vpop.f32.mrb[1].mxu0 }
 0x167   :  { %v1063_v41 = vadd.f32 %v11680_v3, %v977_v13  ;;  %v9684_v54 = vpop.f32.mrb[2].mxu0 }
 0x168   :  { %v1081_v20 = vmax.f32 %v1065_v8, 0.0  ;;  %v1066_v45 = vadd.f32 %v9684_v54, %v11680_v3  ;;  %v980_v0 = vpop.f32.mrb[3].mxu0 }
 0x169   :  { %v1079_v16 = vmax.f32 %v1063_v41, 0.0  ;;  %v1064_v36 = vadd.f32 %v11680_v3, %v980_v0  ;;  %v1425_v0 = vld [vmem:[#allocation2 + $0x14] sm:$0x1] }
 0x16a   :  { %v9183_v44 = vpack.c.bf16 %v1081_v20, %v1081_v20  ;;  %v1082_v15 = vmax.f32 %v1066_v45, 0.0  ;;  %v1422_v45 = vld [vmem:[#allocation2 + $0x10] sm:$0xf] }
 0x16b   :  { %v9181_v32 = vpack.c.bf16 %v1079_v16, %v1079_v16  ;;  %v1080_v34 = vmax.f32 %v1064_v36, 0.0 }
 0x16c   :  { %v1271_v27 = vshrl.u32 %v9183_v44, 16  ;;  %v9184_v5 = vpack.c.bf16 %v1082_v15, %v1082_v15  ;;  %v1274_v29 = vshll.u32 %v9183_v44, 16 }
 0x16d   :  { %v1255_v47 = vshrl.u32 %v9181_v32, 16  ;;  %v1258_v18 = vshll.u32 %v9181_v32, 16  ;;  %v9182_v24 = vpack.c.bf16 %v1080_v34, %v1080_v34  ;;  %v9687_v60 = vpop.f32.mrb[4].mxu0 }
 0x16e   :  { %v1273_v63 = vrot.slane %v1271_v27, 7  ;;  %v1279_v56 = vshrl.u32 %v9184_v5, 16  ;;  %v1282_v37 = vshll.u32 %v9184_v5, 16  ;;  %v1069_v40 = vadd.f32 %v9687_v60, %v11680_v3  ;;  %v993_v43 = vpop.f32.mrb[5].mxu0 }
 0x16f   :  { %v1257_v19 = vrot.slane %v1255_v47, 7  ;;  %v1263_v35 = vshrl.u32 %v9182_v24, 16  ;;  %v1266_v46 = vshll.u32 %v9182_v24, 16  ;;  %v1067_v22 = vadd.f32 %v11680_v3, %v993_v43  ;;  %v9688_v50 = vpop.f32.mrb[6].mxu0 }
 0x170   :  { %v1276_v57 = vor.u32 %v1274_v29, %v1273_v63  ;;  %v1277_v58 = vrot.slane %v1273_v63, 4  ;;  %v1281_v59 = vrot.slane %v1279_v56, 7  ;;  %v1085_v62 = vmax.f32 %v1069_v40, 0.0  ;;  %v996_v28 = vpop.f32.mrb[7].mxu0 }
 0x171   :  { %v1260_v1 = vor.u32 %v1258_v18, %v1257_v19  ;;  %v1261_v2 = vrot.slane %v1257_v19, 4  ;;  %v1265_v4 = vrot.slane %v1263_v35, 7  ;;  %v1083_v8 = vmax.f32 %v1067_v22, 0.0  ;;  %v1455_v22 = vld [vmem:[#allocation2 + $0x3c] sm:$0x1] }
 0x172   :  { %v1429_v13 = vsel %vm11715_vm1, %v1276_v57, %v1428_v38  ;;  %v1432_v41 = vsel %vm11552_vm15, %v1277_v58, %v1431_v42  ;;  %v1284_v54 = vor.u32 %v1282_v37, %v1281_v59  ;;  %v1285_v20 = vrot.slane %v1281_v59, 4  ;;  %v1452_v37 = vld [vmem:[#allocation2 + $0x38] sm:$0xf] }
 0x173   :  { %1430 = vst [vmem:[#allocation2 + $0x18] sm:$0xf] %v1429_v13  ;;  %1433 = vst [vmem:[#allocation2 + $0x1c] sm:$0x1] %v1432_v41  ;;  %v1417_v16 = vsel %vm11715_vm1, %v1260_v1, %v1416_v51  ;;  %v1420_v36 = vsel %vm11552_vm15, %v1261_v2, %v1419_v33  ;;  %v1268_v44 = vor.u32 %v1266_v46, %v1265_v4  ;;  %v1269_v15 = vrot.slane %v1265_v4, 4 }
 0x174   :  { %1418 = vst [vmem:[#allocation2 + $0x8] sm:$0xf] %v1417_v16  ;;  %1421 = vst [vmem:[#allocation2 + $0xc] sm:$0x1] %v1420_v36  ;;  %v1435_v32 = vsel %vm11715_vm1, %v1284_v54, %v1434_v61  ;;  %v1438_v34 = vsel %vm11552_vm15, %v1285_v20, %v1437_v6  ;;  %v9187_v27 = vpack.c.bf16 %v1085_v62, %v1085_v62  ;;  %v11740_v56 = vrot.slane %v2954_v10, 4 }
 0x175   :  { %v9185_v5 = vpack.c.bf16 %v1083_v8, %v1083_v8  ;;  %1436 = vst [vmem:[#allocation2 + $0x20] sm:$0xf] %v1435_v32  ;;  %1439 = vst [vmem:[#allocation2 + $0x24] sm:$0x1] %v1438_v34  ;;  %v1423_v29 = vsel %vm11715_vm1, %v1268_v44, %v1422_v45  ;;  %v1426_v38 = vsel %vm11552_vm15, %v1269_v15, %v1425_v0  ;;  %v9691_v18 = vpop.f32.mrb[8].mxu0 }
 0x176   :  { %v1070_v42 = vadd.f32 %v9688_v50, %v11680_v3  ;;  %v1068_v47 = vadd.f32 %v11680_v3, %v996_v28  ;;  %1424 = vst [vmem:[#allocation2 + $0x10] sm:$0xf] %v1423_v29  ;;  %1427 = vst [vmem:[#allocation2 + $0x14] sm:$0x1] %v1426_v38  ;;  %v1303_v24 = vshrl.u32 %v9187_v27, 16  ;;  %v1306_v60 = vshll.u32 %v9187_v27, 16 }
 0x177   :  { %v1287_v63 = vshrl.u32 %v9185_v5, 16  ;;  %v1009_v51 = vpop.f32.mrb[9].mxu0  ;;  %v1073_v19 = vadd.f32 %v9691_v18, %v11680_v3  ;;  %v1290_v57 = vshll.u32 %v9185_v5, 16  ;;  %v1440_v61 = vld [vmem:[#allocation2 + $0x28] sm:$0xf] }
 0x178   :  { %v1086_v40 = vmax.f32 %v1070_v42, 0.0  ;;  %v1084_v43 = vmax.f32 %v1068_v47, 0.0  ;;  %v1071_v33 = vadd.f32 %v11680_v3, %v1009_v51  ;;  %v9692_v35 = vpop.f32.mrb[10].mxu0  ;;  %v1305_v46 = vrot.slane %v1303_v24, 7  ;;  %v1443_v62 = vld [vmem:[#allocation2 + $0x2c] sm:$0x1] }
 0x179   :  { %v1289_v50 = vrot.slane %v1287_v63, 7  ;;  %v11745_v58 = vadd.f32 %v9692_v35, %v11680_v3  ;;  %v1012_v59 = vpop.f32.mrb[11].mxu0  ;;  %v1089_v1 = vmax.f32 %v1073_v19, 0.0  ;;  %v1458_v15 = vld [vmem:[#allocation2 + $0x40] sm:$0xf] }
 0x17a   :  { %v9188_v10 = vpack.c.bf16 %v1086_v40, %v1086_v40  ;;  %v9186_v28 = vpack.c.bf16 %v1084_v43, %v1084_v43  ;;  %v1087_v2 = vmax.f32 %v1071_v33, 0.0  ;;  %v1308_v6 = vor.u32 %v1306_v60, %v1305_v46  ;;  %v1461_v32 = vld [vmem:[#allocation2 + $0x44] sm:$0x1]  ;;  %v1446_v34 = vld [vmem:[#allocation2 + $0x30] sm:$0xf] }
 0x17b   :  { %v1309_v4 = vrot.slane %v1305_v46, 4  ;;  %v1292_v8 = vor.u32 %v1290_v57, %v1289_v50  ;;  %v1293_v13 = vrot.slane %v1289_v50, 4  ;;  %v1449_v27 = vld [vmem:[#allocation2 + $0x34] sm:$0x1]  ;;  %v9191_v38 = vpack.c.bf16 %v1089_v1, %v1089_v1 }
 0x17c   :  { %v1311_v41 = vshrl.u32 %v9188_v10, 16  ;;  %v1314_v54 = vshll.u32 %v9188_v10, 16  ;;  %v1295_v20 = vshrl.u32 %v9186_v28, 16  ;;  %v1298_v45 = vshll.u32 %v9186_v28, 16  ;;  %v10959_v46 = vld [vmem:[#allocation2 + $0x18] ss:$8 sps:$4 sm:$0xff]  }
 0x17d   :  { %v1453_v0 = vsel %vm11715_vm1, %v1308_v6, %v1452_v37  ;;  %v1456_v16 = vsel %vm11552_vm15, %v1309_v4, %v1455_v22  ;;  %v1441_v36 = vsel %vm11715_vm1, %v1292_v8, %v1440_v61  ;;  %v1444_v44 = vsel %vm11552_vm15, %v1293_v13, %v1443_v62  ;;  %v9695_v47 = vpop.f32.mrb[12].mxu0  ;;  %v10957_v51 = vld [vmem:[#allocation2 + $0x8] ss:$8 sps:$4 sm:$0xff]   ;;  %v1464_v13 = vld [vmem:[#allocation2 + $0x58] sm:$0xf] }
 0x17e   :  { %1454 = vst [vmem:[#allocation2 + $0x38] sm:$0xf] %v1453_v0  ;;  %1457 = vst [vmem:[#allocation2 + $0x3c] sm:$0x1] %v1456_v16  ;;  %v1313_v5 = vrot.slane %v1311_v41, 7  ;;  %v1297_v29 = vrot.slane %v1295_v20, 7  ;;  %v9189_v42 = vpack.c.bf16 %v1087_v2, %v1087_v2  ;;  %v1072_v24 = vadd.f32 %v11680_v3, %v1012_v59  ;;  %9777 = vmatprep.mubr.bf16.mxu1 %v10957_v51 }
 0x17f   :  { %1442 = vst [vmem:[#allocation2 + $0x28] sm:$0xf] %v1441_v36  ;;  %1445 = vst [vmem:[#allocation2 + $0x2c] sm:$0x1] %v1444_v44  ;;  %v1090_v18 = vmax.f32 %v11745_v58, 0.0  ;;  %v1077_v60 = vadd.f32 %v9695_v47, %v11680_v3  ;;  %v1025_v63 = vpop.f32.mrb[13].mxu0  ;;  %9778 = vmatmul.mubr.bf16.vlgmr.msra.gmra.mrb[0].mxu1 %v10959_v46 }
 0x180   :  { %v11760_v37 = vrot.slane %v2957_v17, 5  ;;  %v1316_v40 = vor.u32 %v1314_v54, %v1313_v5  ;;  %v1317_v43 = vrot.slane %v1313_v5, 4  ;;  %v1300_v19 = vor.u32 %v1298_v45, %v1297_v29  ;;  %v9696_v35 = vpop.f32.mrb[14].mxu0  ;;  %v10962_v22 = vld [vmem:[%s14127_s3 + $0xc8] sm:$0xff]   ;;  %9794 = vmatpush3.bf16.msra.mxu1 %v11642_v25  ;;  %v1467_v41 = vld [vmem:[#allocation2 + $0x5c] sm:$0x1] }
 0x181   :  { %v1301_v33 = vrot.slane %v1297_v29, 4  ;;  %v1335_v50 = vshrl.u32 %v9191_v38, 16  ;;  %v1338_v57 = vshll.u32 %v9191_v38, 16  ;;  %v1319_v58 = vshrl.u32 %v9189_v42, 16  ;;  %v1028_v61 = vpop.f32.mrb[15].mxu0  ;;  %9795 = vmatprep.subr.bf16.mxu1 %v10962_v22  ;;  %v10966_v16 = vld [vmem:[%s14127_s3 + $0xd0] sm:$0xff]  }
 0x182   :  { %v1322_v59 = vshll.u32 %v9189_v42, 16  ;;  %v1459_v12 = vsel %vm11715_vm1, %v1316_v40, %v1458_v15  ;;  %v1462_v17 = vsel %vm11552_vm15, %v1317_v43, %v1461_v32  ;;  %v1447_v62 = vsel %vm11715_vm1, %v1300_v19, %v1446_v34  ;;  %v1476_v28 = vld [vmem:[#allocation2 + $0x68] sm:$0xf]  ;;  %v1479_v2 = vld [vmem:[#allocation2 + $0x6c] sm:$0x1] }
 0x183   :  { %v1450_v10 = vsel %vm11552_vm15, %v1301_v33, %v1449_v27  ;;  %1460 = vst [vmem:[#allocation2 + $0x40] sm:$0xf] %v1459_v12  ;;  %1463 = vst [vmem:[#allocation2 + $0x44] sm:$0x1] %v1462_v17  ;;  %v1337_v1 = vrot.slane %v1335_v50, 7  ;;  %v1321_v6 = vrot.slane %v1319_v58, 7  ;;  %v9192_v4 = vpack.c.bf16 %v1090_v18, %v1090_v18 }
 0x184   :  { %1448 = vst [vmem:[#allocation2 + $0x30] sm:$0xf] %v1447_v62  ;;  %1451 = vst [vmem:[#allocation2 + $0x34] sm:$0x1] %v1450_v10  ;;  %v1088_v8 = vmax.f32 %v1072_v24, 0.0  ;;  %v1093_v54 = vmax.f32 %v1077_v60, 0.0  ;;  %v1075_v20 = vadd.f32 %v11680_v3, %v1025_v63  ;;  %v1078_v45 = vadd.f32 %v9696_v35, %v11680_v3  ;;  %9796 = vmatpush3.bf16.msra.mxu1 %v10962_v22 }
 0x185   :  { %v1076_v0 = vadd.f32 %v11680_v3, %v1028_v61  ;;  %v1340_v36 = vor.u32 %v1338_v57, %v1337_v1  ;;  %v1341_v44 = vrot.slane %v1337_v1, 4  ;;  %v1324_v15 = vor.u32 %v1322_v59, %v1321_v6  ;;  %v1482_v47 = vld [vmem:[#allocation2 + $0x70] sm:$0xf]  ;;  %v1485_v18 = vld [vmem:[#allocation2 + $0x74] sm:$0x1]  ;;  %v10968_v24 = vld [vmem:[%s14127_s3 + $0xd8] sm:$0xff]   ;;  %9797 = vmatprep.subr.bf16.mxu1 %v10966_v16 }
 0x186   :  { %v1325_v32 = vrot.slane %v1321_v6, 4  ;;  %v1343_v34 = vshrl.u32 %v9192_v4, 16  ;;  %v1346_v25 = vshll.u32 %v9192_v4, 16  ;;  %v9190_v27 = vpack.c.bf16 %v1088_v8, %v1088_v8  ;;  %v11791_v43 = vld [vmem:[#allocation2 + $0x8] sm:$0xf] }
 0x187   :  { %v9195_v5 = vpack.c.bf16 %v1093_v54, %v1093_v54  ;;  %v1477_v29 = vsel %vm11715_vm1, %v1340_v36, %v1476_v28  ;;  %v1480_v38 = vsel %vm11552_vm15, %v1341_v44, %v1479_v2  ;;  %v1465_v3 = vsel %vm11715_vm1, %v1324_v15, %v1464_v13  ;;  %v1470_v19 = vld [vmem:[#allocation2 + $0x60] sm:$0xf]  ;;  %v1473_v33 = vld [vmem:[#allocation2 + $0x64] sm:$0x1]  ;;  %v1500_v12 = vld [vmem:[#allocation2 + $0x88] sm:$0xf] }
 0x188   :  { %v1468_v42 = vsel %vm11552_vm15, %v1325_v32, %v1467_v41  ;;  %1478 = vst [vmem:[#allocation2 + $0x68] sm:$0xf] %v1477_v29  ;;  %1481 = vst [vmem:[#allocation2 + $0x6c] sm:$0x1] %v1480_v38  ;;  %v1345_v60 = vrot.slane %v1343_v34, 7  ;;  %v1327_v63 = vshrl.u32 %v9190_v27, 16  ;;  %9798 = vmatpush3.bf16.msra.mxu1 %v10966_v16 }
 0x189   :  { %1466 = vst [vmem:[#allocation2 + $0x58] sm:$0xf] %v1465_v3  ;;  %1469 = vst [vmem:[#allocation2 + $0x5c] sm:$0x1] %v1468_v42  ;;  %v1330_v51 = vshll.u32 %v9190_v27, 16  ;;  %v1367_v40 = vshrl.u32 %v9195_v5, 16  ;;  %9799 = vmatprep.subr.bf16.mxu1 %v10968_v24 }
 0x18a   :  { %v1370_v35 = vshll.u32 %v9195_v5, 16  ;;  %v1091_v46 = vmax.f32 %v1075_v20, 0.0  ;;  %v1094_v22 = vmax.f32 %v1078_v45, 0.0  ;;  %v1092_v50 = vmax.f32 %v1076_v0, 0.0  ;;  %v1503_v13 = vld [vmem:[#allocation2 + $0x8c] sm:$0x1] }
 0x18b   :  { %v1348_v57 = vor.u32 %v1346_v25, %v1345_v60  ;;  %v1349_v58 = vrot.slane %v1345_v60, 4  ;;  %v1329_v59 = vrot.slane %v1327_v63, 7  ;;  %v1369_v61 = vrot.slane %v1367_v40, 7  ;;  %v10963_v1 = vld [vmem:[#allocation2 + $0x28] ss:$8 sps:$4 sm:$0xff]   ;;  %v10972_v54 = vld [vmem:[%s14127_s3 + $0xe0] sm:$0xff]  }
 0x18c   :  { %v9193_v17 = vpack.c.bf16 %v1091_v46, %v1091_v46  ;;  %v9196_v62 = vpack.c.bf16 %v1094_v22, %v1094_v22  ;;  %v9194_v10 = vpack.c.bf16 %v1092_v50, %v1092_v50  ;;  %v1585_v28 = vshrl.u32 %v11791_v43, 16  ;;  %v10965_v41 = vld [vmem:[#allocation2 + $0x38] ss:$8 sps:$4 sm:$0xff]   ;;  %9781 = vmatprep.mubr.bf16.mxu1 %v10963_v1  ;;  %v1491_v32 = vld [vmem:[#allocation2 + $0x7c] sm:$0x1]  ;;  %9800 = vmatpush3.bf16.msra.mxu1 %v10968_v24 }
 0x18d   :  { %v1483_v2 = vsel %vm11715_vm1, %v1348_v57, %v1482_v47  ;;  %v1486_v6 = vsel %vm11552_vm15, %v1349_v58, %v1485_v18  ;;  %v1332_v4 = vor.u32 %v1330_v51, %v1329_v59  ;;  %v1333_v8 = vrot.slane %v1329_v59, 4  ;;  %v1488_v15 = vld [vmem:[#allocation2 + $0x78] sm:$0xf]  ;;  %v1555_v27 = vld [vmem:[#allocation2 + $0xc] sm:$0x1]  ;;  %9782 = vmatmul.mubr.bf16.gmra.mrb[4].mxu1 %v10965_v41  ;;  %9801 = vmatprep.subr.bf16.mxu1 %v10972_v54 }
 0x18e   :  { %1484 = vst [vmem:[#allocation2 + $0x70] sm:$0xf] %v1483_v2  ;;  %1487 = vst [vmem:[#allocation2 + $0x74] sm:$0x1] %v1486_v6  ;;  %v1372_v20 = vor.u32 %v1370_v35, %v1369_v61  ;;  %v1373_v45 = vrot.slane %v1369_v61, 4  ;;  %v1351_v0 = vshrl.u32 %v9193_v17, 16 }
 0x18f   :  { %v1354_v16 = vshll.u32 %v9193_v17, 16  ;;  %v1471_v36 = vsel %vm11715_vm1, %v1332_v4, %v1470_v19  ;;  %v1474_v44 = vsel %vm11552_vm15, %v1333_v8, %v1473_v33  ;;  %v1375_v34 = vshrl.u32 %v9196_v62, 16  ;;  %v11805_v5 = vld [vmem:[#allocation2 + $0x10] sm:$0xf]  ;;  %v1509_v47 = vld [vmem:[#allocation2 + $0x94] sm:$0x1] }
 0x190   :  { %v1378_v25 = vshll.u32 %v9196_v62, 16  ;;  %1472 = vst [vmem:[#allocation2 + $0x60] sm:$0xf] %v1471_v36  ;;  %1475 = vst [vmem:[#allocation2 + $0x64] sm:$0x1] %v1474_v44  ;;  %v1501_v29 = vsel %vm11715_vm1, %v1372_v20, %v1500_v12  ;;  %v1504_v38 = vsel %vm11552_vm15, %v1373_v45, %v1503_v13  ;;  %v1353_v3 = vrot.slane %v1351_v0, 7  ;;  %9802 = vmatpush3.bf16.msra.mxu1 %v10972_v54 }
 0x191   :  { %v1506_v42 = vld [vmem:[#allocation2 + $0x90] sm:$0xf]  ;;  %v1359_v18 = vshrl.u32 %v9194_v10, 16  ;;  %1502 = vst [vmem:[#allocation2 + $0x88] sm:$0xf] %v1501_v29  ;;  %v1377_v60 = vrot.slane %v1375_v34, 7 }
 0x192   :  { %1505 = vst [vmem:[#allocation2 + $0x8c] sm:$0x1] %v1504_v38  ;;  %v1362_v63 = vshll.u32 %v9194_v10, 16  ;;  %v1494_v51 = vld [vmem:[#allocation2 + $0x80] sm:$0xf]  ;;  %v1587_v40 = vrot.slane %v1585_v28, 4  ;;  %v1356_v35 = vor.u32 %v1354_v16, %v1353_v3 }
 0x193   :  { %v1588_v19 = vshll.u32 %v11791_v43, 16  ;;  %v10974_v33 = vld [vmem:[%s14127_s3 + $0xe8] sm:$0xff]   ;;  %v1357_v46 = vrot.slane %v1353_v3, 4  ;;  %v1361_v22 = vrot.slane %v1359_v18, 7  ;;  %v1497_v50 = vld [vmem:[#allocation2 + $0x84] sm:$0x1]  ;;  %v1380_v58 = vor.u32 %v1378_v25, %v1377_v60 }
 0x194   :  { %v1594_v57 = vshll.u32 %v1555_v27, 16  ;;  %v1381_v24 = vrot.slane %v1377_v60, 4  ;;  %v11815_v61 = vld [vmem:[#allocation2 + $0x18] sm:$0xf]  ;;  %v1599_v12 = vshrl.u32 %v11805_v5, 16  ;;  %v1489_v17 = vsel %vm11715_vm1, %v1356_v35, %v1488_v15  ;;  %9803 = vmatprep.subr.bf16.mxu1 %v10974_v33  ;;  %v10978_v20 = vld [vmem:[%s14127_s3 + $0xf0] sm:$0xff]  }
 0x195   :  { %v1590_v59 = vrot.slane %v1588_v19, 5  ;;  %v1492_v62 = vsel %vm11552_vm15, %v1357_v46, %v1491_v32  ;;  %v1364_v10 = vor.u32 %v1362_v63, %v1361_v22  ;;  %v1365_v28 = vrot.slane %v1361_v22, 4  ;;  %v1556_v1 = vld [vmem:[#allocation2 + $0x14] sm:$0x1]  ;;  %v1557_v2 = vld [vmem:[#allocation2 + $0x1c] sm:$0x1]  ;;  %9804 = vmatpush3.bf16.msra.mxu1 %v10974_v33 }
 0x196   :  { %1490 = vst [vmem:[#allocation2 + $0x78] sm:$0xf] %v1489_v17  ;;  %1493 = vst [vmem:[#allocation2 + $0x7c] sm:$0x1] %v1492_v62  ;;  %v1507_v6 = vsel %vm11715_vm1, %v1380_v58, %v1506_v42  ;;  %v1510_v4 = vsel %vm11552_vm15, %v1381_v24, %v1509_v47  ;;  %v1596_v13 = vrot.slane %v1594_v57, 5  ;;  %v1601_v0 = vrot.slane %v1599_v12, 4  ;;  %9805 = vmatprep.subr.bf16.mxu1 %v10978_v20 }
 0x197   :  { %v1591_v8 = vor.u32 %v1590_v59, %v1587_v40  ;;  %v11826_v41 = vld [vmem:[#allocation2 + $0x20] sm:$0xf]  ;;  %1508 = vst [vmem:[#allocation2 + $0x90] sm:$0xf] %v1507_v6  ;;  %1511 = vst [vmem:[#allocation2 + $0x94] sm:$0x1] %v1510_v4  ;;  %v1495_v54 = vsel %vm11715_vm1, %v1364_v10, %v1494_v51  ;;  %v1498_v45 = vsel %vm11552_vm15, %v1365_v28, %v1497_v50 }
 0x198   :  { %v1602_v16 = vshll.u32 %v11805_v5, 16  ;;  %v11836_v36 = vld [vmem:[#allocation2 + $0x28] sm:$0xf]  ;;  %v1558_v44 = vld [vmem:[#allocation2 + $0x24] sm:$0x1]  ;;  %v1608_v32 = vshll.u32 %v1556_v1, 16  ;;  %v8501_v51 = vcombine.low %v11673_v14, %v11791_v43 }
 0x199   :  { %1496 = vst [vmem:[#allocation2 + $0x80] sm:$0xf] %v1495_v54  ;;  %1499 = vst [vmem:[#allocation2 + $0x84] sm:$0x1] %v1498_v45  ;;  %v1592_v15 = vrot.slane %v1591_v8, 4  ;;  %v1613_v34 = vshrl.u32 %v11815_v61, 16  ;;  %9806 = vmatpush3.bf16.msra.mxu1 %v10978_v20 }
 0x19a   :  { %v1616_v25 = vshll.u32 %v11815_v61, 16  ;;  %v1604_v30 = vrot.slane %v1602_v16, 5  ;;  %v1622_v27 = vshll.u32 %v1557_v2, 16  ;;  %v1627_v29 = vshrl.u32 %v11826_v41, 16  ;;  %v10969_v3 = vld [vmem:[#allocation2 + $0x58] ss:$8 sps:$4 sm:$0xff]   ;;  %9807 = vmatprep.subr.bf16.mxu1 %v10980_v9 }
 0x19b   :  { %v1630_v38 = vshll.u32 %v11826_v41, 16  ;;  %v1597_v42 = vsel %vm11207_vm13, %v1592_v15, %v1596_v13  ;;  %v1615_v47 = vrot.slane %v1613_v34, 4  ;;  %v11847_v60 = vld [vmem:[#allocation2 + $0x30] sm:$0xf]  ;;  %v1610_v33 = vrot.slane %v1608_v32, 5  ;;  %9785 = vmatprep.mubr.bf16.mxu1 %v10969_v3  ;;  %v10967_v20 = vld [vmem:[%s14127_s3 + $0x8] sm:$0xff]  }
 0x19c   :  { %v1618_v18 = vrot.slane %v1616_v25, 5  ;;  %v10971_v63 = vld [vmem:[#allocation2 + $0x68] ss:$8 sps:$4 sm:$0xff]   ;;  %v8485_v40 = vcombine.low %v1583_v55, %v1597_v42  ;;  %v1605_v19 = vor.u32 %v1604_v30, %v1601_v0  ;;  %v1559_v35 = vld [vmem:[#allocation2 + $0x2c] sm:$0x1]  ;;  %v1629_v46 = vrot.slane %v1627_v29, 4 }
 0x19d   :  { %v1632_v50 = vrot.slane %v1630_v38, 5  ;;  %v1636_v57 = vshll.u32 %v1558_v44, 16  ;;  %v1641_v58 = vshrl.u32 %v11836_v36, 16  ;;  %v11857_v24 = vld [vmem:[#allocation2 + $0x38] sm:$0xf]  ;;  %9786 = vmatmul.mubr.bf16.gmra.mrb[8].mxu1 %v10971_v63  ;;  %v1624_v17 = vrot.slane %v1622_v27, 5 }
 0x19e   :  { %v1619_v22 = vor.u32 %v1618_v18, %v1615_v47  ;;  %v1560_v59 = vld [vmem:[#allocation2 + $0x34] sm:$0x1]  ;;  %9713 = vmatprep.mubr.bf16.mxu0 %v8485_v40  ;;  %v1606_v12 = vrot.slane %v1605_v19, 4  ;;  %v1644_v21 = vshll.u32 %v11836_v36, 16  ;;  %v1561_v26 = vld [vmem:[#allocation2 + $0x3c] sm:$0x1]  ;;  %9808 = vmatpush3.bf16.msra.mxu1 %v10980_v9 }
 0x19f   :  { %v1655_v55 = vshrl.u32 %v11847_v60, 16  ;;  %v1633_v10 = vor.u32 %v1632_v50, %v1629_v46  ;;  %v1643_v28 = vrot.slane %v1641_v58, 4  ;;  %v1650_v1 = vshll.u32 %v1559_v35, 16  ;;  %v11861_v2 = vld [vmem:[#allocation2 + $0x58] sm:$0xf]  ;;  %v10970_v58 = vld [vmem:[%s14127_s3 + $0x10] sm:$0xff]  }
 0x1a0   :  { %v1620_v62 = vrot.slane %v1619_v22, 4  ;;  %v1611_v6 = vsel %vm11207_vm13, %v1606_v12, %v1610_v33  ;;  %v1638_v4 = vrot.slane %v1636_v57, 5  ;;  %v1646_v8 = vrot.slane %v1644_v21, 5  ;;  %v10975_v44 = vld [vmem:[#allocation2 + $0x78] ss:$8 sps:$4 sm:$0xff]  }
 0x1a1   :  { %v1657_v13 = vrot.slane %v1655_v55, 4  ;;  %v1634_v45 = vrot.slane %v1633_v10, 4  ;;  %v1658_v0 = vshll.u32 %v11847_v60, 16  ;;  %v1664_v16 = vshll.u32 %v1560_v59, 16  ;;  %v1563_v30 = vld [vmem:[#allocation2 + $0x5c] sm:$0x1]  ;;  %9789 = vmatprep.mubr.bf16.mxu1 %v10975_v44 }
 0x1a2   :  { %v1625_v54 = vsel %vm11207_vm13, %v1620_v62, %v1624_v17  ;;  %v1647_v32 = vor.u32 %v1646_v8, %v1643_v28  ;;  %v1669_v34 = vshrl.u32 %v11857_v24, 16  ;;  %v1672_v25 = vshll.u32 %v11857_v24, 16  ;;  %v11873_v27 = vld [vmem:[#allocation2 + $0x60] sm:$0xf]  ;;  %v10977_v47 = vld [vmem:[#allocation2 + $0x88] ss:$8 sps:$4 sm:$0xff]  }
 0x1a3   :  { %v8486_v15 = vcombine.low %v1611_v6, %v1625_v54  ;;  %v1639_v29 = vsel %vm11207_vm13, %v1634_v45, %v1638_v4  ;;  %v1652_v38 = vrot.slane %v1650_v1, 5  ;;  %v1660_v3 = vrot.slane %v1658_v0, 5  ;;  %v1564_v22 = vld [vmem:[#allocation2 + $0x64] sm:$0x1]  ;;  %v11885_v12 = vld [vmem:[#allocation2 + $0x68] sm:$0xf] }
 0x1a4   :  { %v1678_v42 = vshll.u32 %v1561_v26, 16  ;;  %v1648_v18 = vrot.slane %v1647_v32, 4  ;;  %v1671_v63 = vrot.slane %v1669_v34, 4  ;;  %v1674_v40 = vrot.slane %v1672_v25, 5  ;;  %v1565_v62 = vld [vmem:[#allocation2 + $0x6c] sm:$0x1] }
 0x1a5   :  { %9714 = vmatmul.mubr.bf16.vlgmr.msra.gmra.mrb[16].mxu0 %v8486_v15  ;;  %v1697_v19 = vshrl.u32 %v11861_v2, 16  ;;  %v1661_v33 = vor.u32 %v1660_v3, %v1657_v13  ;;  %v1666_v35 = vrot.slane %v1664_v16, 5  ;;  %v1700_v9 = vshll.u32 %v11861_v2, 16  ;;  %9790 = vmatmul.mubr.bf16.gmra.mrb[12].mxu1 %v10977_v47  ;;  %v2423_v45 = vld [vmem:[#allocation2 + $0x8] sm:$0xf]  ;;  %v10973_v25 = vld [vmem:[%s14127_s3 + $0x18] sm:$0xff]  }
 0x1a6   :  { %9730 = vmatpush3.bf16.msra.mxu0 %v11670_v11  ;;  %v1706_v46 = vshll.u32 %v1563_v30, 16  ;;  %v1653_v50 = vsel %vm11207_vm13, %v1648_v18, %v1652_v38  ;;  %v1675_v57 = vor.u32 %v1674_v40, %v1671_v63  ;;  %v1711_v11 = vshrl.u32 %v11873_v27, 16  ;;  %v2424_v0 = vld [vmem:[#allocation2 + $0xc] sm:$0x1]  ;;  %v2425_v34 = vld [vmem:[#allocation2 + $0x10] sm:$0xf] }
 0x1a7   :  { %9731 = vmatprep.subr.bf16.mxu0 %v10967_v20  ;;  %v1699_v59 = vrot.slane %v1697_v19, 4  ;;  %v8487_v17 = vcombine.low %v1639_v29, %v1653_v50  ;;  %v1662_v21 = vrot.slane %v1661_v33, 4  ;;  %v1680_v26 = vrot.slane %v1678_v42, 5  ;;  %v2426_v19 = vld [vmem:[#allocation2 + $0x14] sm:$0x1] }
 0x1a8   :  { %v1702_v55 = vrot.slane %v1700_v9, 5  ;;  %v1676_v10 = vrot.slane %v1675_v57, 4  ;;  %v1713_v28 = vrot.slane %v1711_v11, 4  ;;  %v1714_v1 = vshll.u32 %v11873_v27, 16  ;;  %v11900_v9 = vld [vmem:[#allocation2 + $0x70] sm:$0xf] }
 0x1a9   :  { %v1720_v6 = vshll.u32 %v1564_v22, 16  ;;  %9717 = vmatprep.mubr.bf16.mxu0 %v8487_v17  ;;  %v1667_v4 = vsel %vm11207_vm13, %v1662_v21, %v1666_v35  ;;  %v1725_v13 = vshrl.u32 %v11885_v12, 16  ;;  %v1728_v54 = vshll.u32 %v11885_v12, 16  ;;  %v10976_v21 = vld [vmem:[%s14127_s3 + $0x20] sm:$0xff]   ;;  %v11912_v39 = vld [vmem:[#allocation2 + $0x78] sm:$0xf] }
 0x1aa   :  { %9732 = vmatpush3.bf16.msra.mxu0 %v10967_v20  ;;  %v1703_v8 = vor.u32 %v1702_v55, %v1699_v59  ;;  %v1681_v16 = vsel %vm11207_vm13, %v1676_v10, %v1680_v26  ;;  %v1708_v44 = vrot.slane %v1706_v46, 5  ;;  %v1716_v15 = vrot.slane %v1714_v1, 5  ;;  %v1566_v59 = vld [vmem:[#allocation2 + $0x74] sm:$0x1]  ;;  %v3198_v7 = vld [vmem:[#allocation2 + $0x20] sm:$0xe] }
 0x1ab   :  { %9733 = vmatprep.subr.bf16.mxu0 %v10970_v58  ;;  %v1734_v32 = vshll.u32 %v1565_v62, 16  ;;  %v8488_v20 = vcombine.low %v1667_v4, %v1681_v16  ;;  %v1727_v29 = vrot.slane %v1725_v13, 4  ;;  %v1730_v38 = vrot.slane %v1728_v54, 5 }
 0x1ac   :  { %v1704_v30 = vrot.slane %v1703_v8, 4  ;;  %v1717_v3 = vor.u32 %v1716_v15, %v1713_v28  ;;  %v1722_v42 = vrot.slane %v1720_v6, 5  ;;  %v2456_v47 = vshrl.u32 %v2423_v45, 16  ;;  %v11918_v8 = vld [vmem:[#allocation2 + $0x80] sm:$0xf]  ;;  %v10979_v15 = vld [vmem:[%s14127_s3 + $0x28] sm:$0xff]  }
 0x1ad   :  { %v2459_v18 = vshll.u32 %v2423_v45, 16  ;;  %9718 = vmatmul.mubr.bf16.gmra.mrb[20].mxu0 %v8488_v20  ;;  %v1731_v40 = vor.u32 %v1730_v38, %v1727_v29  ;;  %v2465_v33 = vshll.u32 %v2424_v0, 16  ;;  %v2470_v35 = vshrl.u32 %v2425_v34, 16  ;;  %v1568_v20 = vld [vmem:[#allocation2 + $0x84] sm:$0x1] }
 0x1ae   :  { %v1709_v63 = vsel %vm11207_vm13, %v1704_v30, %v1708_v44  ;;  %9734 = vmatpush3.bf16.msra.mxu0 %v10970_v58  ;;  %v1718_v22 = vrot.slane %v1717_v3, 4  ;;  %v2458_v50 = vrot.slane %v2456_v47, 4  ;;  %v1736_v17 = vrot.slane %v1734_v32, 5 }
 0x1af   :  { %v8489_v46 = vcombine.low %v1695_v52, %v1709_v63  ;;  %v2461_v57 = vrot.slane %v2459_v18, 5  ;;  %9735 = vmatprep.subr.bf16.mxu0 %v10973_v25  ;;  %v1732_v11 = vrot.slane %v1731_v40, 4  ;;  %v2472_v26 = vrot.slane %v2470_v35, 4  ;;  %v1567_v52 = vld [vmem:[#allocation2 + $0x7c] sm:$0x1] }
 0x1b0   :  { %v2473_v55 = vshll.u32 %v2425_v34, 16  ;;  %v1723_v58 = vsel %vm11207_vm13, %v1718_v22, %v1722_v42  ;;  %v2479_v31 = vshll.u32 %v2426_v19, 16  ;;  %v1739_v10 = vshrl.u32 %v11900_v9, 16 }
 0x1b1   :  { %9721 = vmatprep.mubr.bf16.mxu0 %v8489_v46  ;;  %v2462_v62 = vor.u32 %v2461_v57, %v2458_v50  ;;  %v1737_v28 = vsel %vm11207_vm13, %v1732_v11, %v1736_v17  ;;  %v1742_v6 = vshll.u32 %v11900_v9, 16  ;;  %v1748_v4 = vshll.u32 %v1566_v59, 16  ;;  %v10981_v11 = vld [vmem:[%s14127_s3 + $0x30] sm:$0xff]   ;;  %v2427_v17 = vld [vmem:[#allocation2 + $0x18] sm:$0xf] }
 0x1b2   :  { %v2475_v1 = vrot.slane %v2473_v55, 5  ;;  %9736 = vmatpush3.bf16.msra.mxu0 %v10973_v25  ;;  %v8490_v13 = vcombine.low %v1723_v58, %v1737_v28  ;;  %v2467_v45 = vrot.slane %v2465_v33, 5  ;;  %v1741_v0 = vrot.slane %v1739_v10, 4  ;;  %v11925_v25 = vld [vmem:[#allocation2 + $0x88] sm:$0xf] }
 0x1b3   :  { %v2463_v54 = vrot.slane %v2462_v62, 4  ;;  %9737 = vmatprep.subr.bf16.mxu0 %v10976_v21  ;;  %v2481_v44 = vrot.slane %v2479_v31, 5  ;;  %v1744_v32 = vrot.slane %v1742_v6, 5  ;;  %v1753_v34 = vshrl.u32 %v11912_v39, 16  ;;  %v1569_v33 = vld [vmem:[#allocation2 + $0x8c] sm:$0x1] }
 0x1b4   :  { %v2476_v16 = vor.u32 %v2475_v1, %v2472_v26  ;;  %v1750_v30 = vrot.slane %v1748_v4, 5  ;;  %v1756_v29 = vshll.u32 %v11912_v39, 16  ;;  %v1762_v38 = vshll.u32 %v1567_v52, 16  ;;  %v2428_v62 = vld [vmem:[#allocation2 + $0x1c] sm:$0x1] }
 0x1b5   :  { %v1767_v3 = vshrl.u32 %v11918_v8, 16  ;;  %9722 = vmatmul.mubr.bf16.gmra.mrb[24].mxu0 %v8490_v13  ;;  %v1745_v47 = vor.u32 %v1744_v32, %v1741_v0  ;;  %v1755_v18 = vrot.slane %v1753_v34, 4  ;;  %v1770_v63 = vshll.u32 %v11918_v8, 16  ;;  %v2429_v31 = vld [vmem:[#allocation2 + $0x20] sm:$0xf] }
 0x1b6   :  { %v2477_v42 = vrot.slane %v2476_v16, 4  ;;  %9738 = vmatpush3.bf16.msra.mxu0 %v10976_v21  ;;  %v2468_v40 = vsel %vm11207_vm13, %v2463_v54, %v2467_v45  ;;  %v1758_v19 = vrot.slane %v1756_v29, 5  ;;  %v1776_v46 = vshll.u32 %v1568_v20, 16  ;;  %v2430_v13 = vld [vmem:[#allocation2 + $0x24] sm:$0x1]  ;;  %v10983_v20 = vld [vmem:[%s14127_s3 + $0x38] sm:$0xff]  }
 0x1b7   :  { %v1769_v35 = vrot.slane %v1767_v3, 4  ;;  %9739 = vmatprep.subr.bf16.mxu0 %v10979_v15  ;;  %v1746_v50 = vrot.slane %v1745_v47, 4  ;;  %v1772_v57 = vrot.slane %v1770_v63, 5  ;;  %v1781_v59 = vshrl.u32 %v11925_v25, 16  ;;  %v2431_v34 = vld [vmem:[#allocation2 + $0x28] sm:$0xf] }
 0x1b8   :  { %v2482_v22 = vsel %vm11207_vm13, %v2477_v42, %v2481_v44  ;;  %v1759_v26 = vor.u32 %v1758_v19, %v1755_v18  ;;  %v1764_v55 = vrot.slane %v1762_v38, 5  ;;  %v1784_v58 = vshll.u32 %v11925_v25, 16  ;;  %v2432_v42 = vld [vmem:[#allocation2 + $0x2c] sm:$0x1]  ;;  %v2433_v47 = vld [vmem:[#allocation2 + $0x30] sm:$0xf] }
 0x1b9   :  { %v8565_v21 = vcombine.low %v2468_v40, %v2482_v22  ;;  %v1773_v52 = vor.u32 %v1772_v57, %v1769_v35  ;;  %v1778_v10 = vrot.slane %v1776_v46, 5  ;;  %v1783_v28 = vrot.slane %v1781_v59, 4  ;;  %v11950_v22 = vld [vmem:[%s14127_s3 + $0x140] sm:$0xff]  }
 0x1ba   :  { %v1790_v1 = vshll.u32 %v1569_v33, 16  ;;  %9740 = vmatpush3.bf16.msra.mxu0 %v10979_v15  ;;  %v1760_v6 = vrot.slane %v1759_v26, 4  ;;  %v1786_v4 = vrot.slane %v1784_v58, 5  ;;  %v2484_v54 = vshrl.u32 %v2427_v17, 16 }
 0x1bb   :  { %9809 = vmatprep.mubr.bf16.mxu1 %v8565_v21  ;;  %v2487_v45 = vshll.u32 %v2427_v17, 16  ;;  %v1751_v0 = vsel %vm11207_vm13, %v1746_v50, %v1750_v30  ;;  %v1774_v16 = vrot.slane %v1773_v52, 4  ;;  %9741 = vmatprep.subr.bf16.mxu0 %v10981_v11  ;;  %v2493_v44 = vshll.u32 %v2428_v62, 16  ;;  %v2434_v50 = vld [vmem:[#allocation2 + $0x34] sm:$0x1] }
 0x1bc   :  { %v2498_v32 = vshrl.u32 %v2429_v31, 16  ;;  %v1765_v15 = vsel %vm11207_vm13, %v1760_v6, %v1764_v55  ;;  %v1787_v29 = vor.u32 %v1786_v4, %v1783_v28  ;;  %v2486_v38 = vrot.slane %v2484_v54, 4 }
 0x1bd   :  { %v2489_v3 = vrot.slane %v2487_v45, 5  ;;  %v8491_v18 = vcombine.low %v1751_v0, %v1765_v15  ;;  %v1779_v30 = vsel %vm11207_vm13, %v1774_v16, %v1778_v10  ;;  %v1792_v63 = vrot.slane %v1790_v1, 5  ;;  %v2436_v1 = vld [vmem:[#allocation2 + $0x3c] sm:$0x1]  ;;  %v2437_v45 = vld [vmem:[#allocation2 + $0x40] sm:$0xf] }
 0x1be   :  { %v2500_v40 = vrot.slane %v2498_v32, 4  ;;  %v1788_v19 = vrot.slane %v1787_v29, 4  ;;  %v2501_v35 = vshll.u32 %v2429_v31, 16  ;;  %v2507_v46 = vshll.u32 %v2430_v13, 16  ;;  %9742 = vmatpush3.bf16.msra.mxu0 %v10981_v11  ;;  %v2435_v31 = vld [vmem:[#allocation2 + $0x38] sm:$0xf] }
 0x1bf   :  { %v2490_v33 = vor.u32 %v2489_v3, %v2486_v38  ;;  %9725 = vmatprep.mubr.bf16.mxu0 %v8491_v18  ;;  %v2512_v57 = vshrl.u32 %v2431_v34, 16  ;;  %v2515_v59 = vshll.u32 %v2431_v34, 16  ;;  %v2521_v17 = vshll.u32 %v2432_v42, 16  ;;  %9743 = vmatprep.subr.bf16.mxu0 %v10983_v20  ;;  %v2438_v42 = vld [vmem:[#allocation2 + $0x44] sm:$0x1] }
 0x1c0   :  { %v2526_v21 = vshrl.u32 %v2433_v47, 16  ;;  %v1793_v26 = vsel %vm11207_vm13, %v1788_v19, %v1792_v63  ;;  %v2495_v58 = vrot.slane %v2493_v44, 5  ;;  %v2503_v62 = vrot.slane %v2501_v35, 5  ;;  %v2440_v35 = vld [vmem:[#allocation2 + $0x5c] sm:$0x1] }
 0x1c1   :  { %v2491_v55 = vrot.slane %v2490_v33, 4  ;;  %v8492_v11 = vcombine.low %v1779_v30, %v1793_v26  ;;  %v2509_v52 = vrot.slane %v2507_v46, 5  ;;  %v2514_v10 = vrot.slane %v2512_v57, 4  ;;  %v2439_v33 = vld [vmem:[#allocation2 + $0x58] sm:$0xf] }
 0x1c2   :  { %v2517_v28 = vrot.slane %v2515_v59, 5  ;;  %v2504_v6 = vor.u32 %v2503_v62, %v2500_v40  ;;  %v2523_v4 = vrot.slane %v2521_v17, 5  ;;  %v2528_v13 = vrot.slane %v2526_v21, 4  ;;  %9744 = vmatpush3.bf16.msra.mxu0 %v10983_v20 }
 0x1c3   :  { %v2529_v54 = vshll.u32 %v2433_v47, 16  ;;  %9726 = vmatmul.mubr.bf16.gmra.mrb[28].mxu0 %v8492_v11  ;;  %v2496_v0 = vsel %vm11207_vm13, %v2491_v55, %v2495_v58  ;;  %v2535_v32 = vshll.u32 %v2434_v50, 16  ;;  %v2540_v44 = vshrl.u32 %v2435_v31, 16  ;;  %9825 = vmatprep.subr.bf16.mxu0 %v11950_v22  ;;  %v2441_v50 = vld [vmem:[#allocation2 + $0x60] sm:$0xf]  ;;  %v10987_v58 = vld [vmem:[%s14127_s3 + $0x148] sm:$0xff]  }
 0x1c4   :  { %v2518_v16 = vor.u32 %v2517_v28, %v2514_v10  ;;  %v2505_v34 = vrot.slane %v2504_v6, 4  ;;  %9745 = vmatprep.mubr.bf16.mxu0 %v8501_v51  ;;  %v2543_v29 = vshll.u32 %v2435_v31, 16  ;;  %v2549_v38 = vshll.u32 %v2436_v1, 16  ;;  %v2442_v11 = vld [vmem:[#allocation2 + $0x64] sm:$0x1] }
 0x1c5   :  { %v2531_v15 = vrot.slane %v2529_v54, 5  ;;  %v8502_v20 = vcombine.low %v11805_v5, %v11815_v61  ;;  %v2542_v47 = vrot.slane %v2540_v44, 4  ;;  %v2554_v18 = vshrl.u32 %v2437_v45, 16 }
 0x1c6   :  { %v2519_v3 = vrot.slane %v2518_v16, 4  ;;  %v2510_v30 = vsel %vm11207_vm13, %v2505_v34, %v2509_v52  ;;  %v2537_v40 = vrot.slane %v2535_v32, 5  ;;  %v2545_v19 = vrot.slane %v2543_v29, 5  ;;  %v10989_v29 = vld [vmem:[%s14127_s3 + $0x150] sm:$0xff]  }
 0x1c7   :  { %v2532_v63 = vor.u32 %v2531_v15, %v2528_v13  ;;  %v8566_v14 = vcombine.low %v2496_v0, %v2510_v30  ;;  %v2551_v43 = vrot.slane %v2549_v38, 5  ;;  %v2556_v51 = vrot.slane %v2554_v18, 4  ;;  %v2443_v13 = vld [vmem:[#allocation2 + $0x68] sm:$0xf]  ;;  %v2445_v0 = vld [vmem:[#allocation2 + $0x70] sm:$0xf] }
 0x1c8   :  { %v2557_v46 = vshll.u32 %v2437_v45, 16  ;;  %v2524_v57 = vsel %vm11207_vm13, %v2519_v3, %v2523_v4  ;;  %v2546_v61 = vor.u32 %v2545_v19, %v2542_v47  ;;  %v2563_v59 = vshll.u32 %v2438_v42, 16  ;;  %v2446_v19 = vld [vmem:[#allocation2 + $0x74] sm:$0x1] }
 0x1c9   :  { %v2533_v5 = vrot.slane %v2532_v63, 4  ;;  %9810 = vmatmul.mubr.bf16.vlgmr.msra.gmra.mrb[0].mxu1 %v8566_v14  ;;  %v8503_v21 = vcombine.low %v11826_v41, %v11836_v36  ;;  %v2568_v26 = vshrl.u32 %v2439_v33, 16  ;;  %v2571_v55 = vshll.u32 %v2439_v33, 16  ;;  %v2444_v41 = vld [vmem:[#allocation2 + $0x6c] sm:$0x1] }
 0x1ca   :  { %v2559_v17 = vrot.slane %v2557_v46, 5  ;;  %v2547_v31 = vrot.slane %v2546_v61, 4  ;;  %v2577_v52 = vshll.u32 %v2440_v35, 16  ;;  %v2582_v10 = vshrl.u32 %v2441_v50, 16  ;;  %v2447_v14 = vld [vmem:[#allocation2 + $0x78] sm:$0xf] }
 0x1cb   :  { %v2538_v62 = vsel %vm11207_vm13, %v2533_v5, %v2537_v40  ;;  %9746 = vmatmul.mubr.bf16.vlgmr.msra.gmra.mrb[16].mxu0 %v8502_v20  ;;  %v2570_v6 = vrot.slane %v2568_v26, 4  ;;  %v2573_v4 = vrot.slane %v2571_v55, 5  ;;  %v2565_v36 = vrot.slane %v2563_v59, 5  ;;  %v10991_v5 = vld [vmem:[%s14127_s3 + $0x158] sm:$0xff]  }
 0x1cc   :  { %v8567_v28 = vcombine.low %v2524_v57, %v2538_v62  ;;  %v2560_v1 = vor.u32 %v2559_v17, %v2556_v51  ;;  %9749 = vmatprep.mubr.bf16.mxu0 %v8503_v21  ;;  %v2584_v54 = vrot.slane %v2582_v10, 4  ;;  %v2585_v45 = vshll.u32 %v2441_v50, 16  ;;  %9826 = vmatpush3.bf16.msra.mxu0 %v11950_v22  ;;  %v2449_v57 = vld [vmem:[#allocation2 + $0x80] sm:$0xf]  ;;  %v11105_v21 = vld [vmem:[#allocation2 + $0x50] sm:$0xf] }
 0x1cd   :  { %v2960_v16 = vor.u32 %v11760_v37, %v11740_v56  ;;  %v2552_v32 = vsel %vm11207_vm13, %v2547_v31, %v2551_v43  ;;  %v2574_v34 = vor.u32 %v2573_v4, %v2570_v6  ;;  %v2591_v15 = vshll.u32 %v2442_v11, 16  ;;  %9827 = vmatprep.subr.bf16.mxu0 %v10987_v58  ;;  %v2448_v55 = vld [vmem:[#allocation2 + $0x7c] sm:$0x1]  ;;  %v2450_v6 = vld [vmem:[#allocation2 + $0x84] sm:$0x1] }
 0x1ce   :  { %9813 = vmatprep.mubr.bf16.mxu1 %v8567_v28  ;;  %v2561_v44 = vrot.slane %v2560_v1, 4  ;;  %v2579_v38 = vrot.slane %v2577_v52, 5  ;;  %v2587_v3 = vrot.slane %v2585_v45, 5  ;;  %v2596_v20 = vshrl.u32 %v2443_v13, 16  ;;  %v10993_v28 = vld [vmem:[%s14127_s3 + $0x160] sm:$0xff]  }
 0x1cf   :  { %v2599_v22 = vshll.u32 %v2443_v13, 16  ;;  %v2575_v47 = vrot.slane %v2574_v34, 4  ;;  %v2605_v18 = vshll.u32 %v2444_v41, 16  ;;  %v2610_v30 = vshrl.u32 %v2445_v0, 16  ;;  %v2451_v41 = vld [vmem:[#allocation2 + $0x88] sm:$0xf] }
 0x1d0   :  { %v2566_v42 = vsel %vm11207_vm13, %v2561_v44, %v2565_v36  ;;  %v2588_v40 = vor.u32 %v2587_v3, %v2584_v54  ;;  %9828 = vmatpush3.bf16.msra.mxu0 %v10987_v58  ;;  %v2598_v33 = vrot.slane %v2596_v20, 4  ;;  %v2593_v43 = vrot.slane %v2591_v15, 5  ;;  %v12048_v56 = vld [vmem:[#allocation2 + $0x2c] sm:$0x1]  ;;  %v3199_v37 = vld [vmem:[#allocation2 + $0x28] sm:$0xe] }
 0x1d1   :  { %v8568_v63 = vcombine.low %v2552_v32, %v2566_v42  ;;  %v2601_v35 = vrot.slane %v2599_v22, 5  ;;  %v8504_v51 = vcombine.low %v11847_v60, %v11857_v24  ;;  %v2612_v46 = vrot.slane %v2610_v30, 4  ;;  %9829 = vmatprep.subr.bf16.mxu0 %v10989_v29  ;;  %v11996_v32 = vld [vmem:[#allocation2 + $0x4] sm:$0x1]  ;;  %v2452_v22 = vld [vmem:[#allocation2 + $0x8c] sm:$0x1] }
 0x1d2   :  { %v2613_v50 = vshll.u32 %v2445_v0, 16  ;;  %v2580_v61 = vsel %vm11207_vm13, %v2575_v47, %v2579_v38  ;;  %v2589_v59 = vrot.slane %v2588_v40, 4  ;;  %v8505_v26 = vcombine.low %v11105_v21, %v11861_v2  ;;  %v2453_v0 = vld [vmem:[#allocation2 + $0x90] sm:$0xf]  ;;  %v2454_v40 = vld [vmem:[#allocation2 + $0x94] sm:$0x1] }
 0x1d3   :  { %9814 = vmatmul.mubr.bf16.gmra.mrb[4].mxu1 %v8568_v63  ;;  %v2602_v17 = vor.u32 %v2601_v35, %v2598_v33  ;;  %9750 = vmatmul.mubr.bf16.gmra.mrb[20].mxu0 %v8504_v51  ;;  %v2619_v24 = vshll.u32 %v2446_v19, 16  ;;  %v2624_v58 = vshrl.u32 %v2447_v14, 16  ;;  %v2627_v62 = vshll.u32 %v2447_v14, 16  ;;  %v10995_v33 = vld [vmem:[%s14127_s3 + $0x168] sm:$0xff]  }
 0x1d4   :  { %v2615_v60 = vrot.slane %v2613_v50, 5  ;;  %v2594_v31 = vsel %vm11207_vm13, %v2589_v59, %v2593_v43  ;;  %v2607_v52 = vrot.slane %v2605_v18, 5  ;;  %9753 = vmatprep.mubr.bf16.mxu0 %v8505_v26  ;;  %v2638_v10 = vshrl.u32 %v2449_v57, 16  ;;  %9830 = vmatpush3.bf16.msra.mxu0 %v10989_v29  ;;  %v3195_v50 = vld [vmem:[#allocation2 + $0x8] sm:$0xe]  ;;  %v10997_v26 = vld [vmem:[%s14127_s3 + $0x170] sm:$0xff]  }
 0x1d5   :  { %v2603_v11 = vrot.slane %v2602_v17, 4  ;;  %v8569_v1 = vcombine.low %v2580_v61, %v2594_v31  ;;  %v2626_v4 = vrot.slane %v2624_v58, 4  ;;  %v2629_v13 = vrot.slane %v2627_v62, 5  ;;  %9831 = vmatprep.subr.bf16.mxu0 %v10991_v5  ;;  %v12022_v31 = vld [vmem:[#allocation2 + $0x14] sm:$0x1] }
 0x1d6   :  { %v2616_v2 = vor.u32 %v2615_v60, %v2612_v46  ;;  %v2633_v36 = vshll.u32 %v2448_v55, 16  ;;  %v2640_v54 = vrot.slane %v2638_v10, 4  ;;  %v2641_v45 = vshll.u32 %v2449_v57, 16  ;;  %v12008_v46 = vld [vmem:[#allocation2 + $0xc] sm:$0x1] }
 0x1d7   :  { %v2963_v44 = vshll.u32 %v11996_v32, 16  ;;  %9817 = vmatprep.mubr.bf16.mxu1 %v8569_v1  ;;  %v2608_v34 = vsel %vm11207_vm13, %v2603_v11, %v2607_v52  ;;  %v2621_v29 = vrot.slane %v2619_v24, 5  ;;  %v2630_v38 = vor.u32 %v2629_v13, %v2626_v4  ;;  %v12028_v52 = vld [vmem:[#allocation2 + $0x1c] sm:$0x1]  ;;  %v3196_v10 = vld [vmem:[#allocation2 + $0x10] sm:$0xe] }
 0x1d8   :  { %v2617_v15 = vrot.slane %v2616_v2, 4  ;;  %v2643_v3 = vrot.slane %v2641_v45, 5  ;;  %v2647_v20 = vshll.u32 %v2450_v6, 16  ;;  %9832 = vmatpush3.bf16.msra.mxu0 %v10991_v5  ;;  %v2652_v42 = vshrl.u32 %v2451_v41, 16  ;;  %v3201_v32 = vld [vmem:[#allocation2 + $0x38] sm:$0xe] }
 0x1d9   :  { %v2655_v47 = vshll.u32 %v2451_v41, 16  ;;  %v2631_v30 = vrot.slane %v2630_v38, 4  ;;  %v8506_v63 = vcombine.low %v11873_v27, %v11885_v12  ;;  %v2666_v19 = vshrl.u32 %v2453_v0, 16  ;;  %9833 = vmatprep.subr.bf16.mxu0 %v10993_v28  ;;  %v10998_v41 = vld [vmem:[%s14127_s3 + $0x178] sm:$0xff]   ;;  %v3200_v38 = vld [vmem:[#allocation2 + $0x30] sm:$0xe] }
 0x1da   :  { %v2622_v18 = vsel %vm11207_vm13, %v2617_v15, %v2621_v29  ;;  %v2644_v14 = vor.u32 %v2643_v3, %v2640_v54  ;;  %v2654_v43 = vrot.slane %v2652_v42, 4  ;;  %v2635_v57 = vrot.slane %v2633_v36, 5  ;;  %v12046_v36 = vld [vmem:[#allocation2 + $0x24] sm:$0x1]  ;;  %v12052_v54 = vld [vmem:[#allocation2 + $0x34] sm:$0x1] }
 0x1db   :  { %v8570_v35 = vcombine.low %v2608_v34, %v2622_v18  ;;  %v2657_v51 = vrot.slane %v2655_v47, 5  ;;  %9754 = vmatmul.mubr.bf16.gmra.mrb[24].mxu0 %v8506_v63  ;;  %v2661_v5 = vshll.u32 %v2452_v22, 16  ;;  %v2668_v61 = vrot.slane %v2666_v19, 4  ;;  %v12064_v22 = vld [vmem:[#allocation2 + $0x3c] sm:$0x1] }
 0x1dc   :  { %v2669_v59 = vshll.u32 %v2453_v0, 16  ;;  %v2645_v27 = vrot.slane %v2644_v14, 4  ;;  %v2649_v12 = vrot.slane %v2647_v20, 5  ;;  %v8507_v21 = vcombine.low %v11900_v9, %v11912_v39  ;;  %9834 = vmatpush3.bf16.msra.mxu0 %v10993_v28  ;;  %v3197_v28 = vld [vmem:[#allocation2 + $0x18] sm:$0xe] }
 0x1dd   :  { %9818 = vmatmul.mubr.bf16.gmra.mrb[8].mxu1 %v8570_v35  ;;  %v2658_v17 = vor.u32 %v2657_v51, %v2654_v43  ;;  %v2675_v55 = vshll.u32 %v2454_v40, 16  ;;  %9835 = vmatprep.subr.bf16.mxu0 %v10995_v33  ;;  %v8598_v58 = vrot.slane %v3195_v50, 9  ;;  %v3251_v62 = vrot.slane %v12008_v46, 5  ;;  %v10999_v40 = vld [vmem:[%s14127_s3 + $0x100] sm:$0xff]   ;;  %v3203_v14 = vld [vmem:[#allocation2 + $0x58] sm:$0xe] }
 0x1de   :  { %v2671_v24 = vrot.slane %v2669_v59, 5  ;;  %v2636_v9 = vsel %vm11207_vm13, %v2631_v30, %v2635_v57  ;;  %v2650_v39 = vsel %vm11207_vm13, %v2645_v27, %v2649_v12  ;;  %9757 = vmatprep.mubr.bf16.mxu0 %v8507_v21  ;;  %v12033_v1 = vrot.slane %v2960_v16, 4  ;;  %v12069_v30 = vld [vmem:[#allocation2 + $0x5c] sm:$0x1]  ;;  %v12077_v50 = vld [vmem:[#allocation2 + $0x64] sm:$0x1] }
 0x1df   :  { %v2659_v11 = vrot.slane %v2658_v17, 4  ;;  %v8571_v2 = vcombine.low %v2636_v9, %v2650_v39  ;;  %v3248_v4 = vsel %vm12017_vm4, %v8597_v49, %v3247_v23  ;;  %v3252_v13 = vsel %vm12017_vm4, %v8598_v58, %v3251_v62  ;;  %v12054_v49 = vld [vmem:[#allocation2 + $0x54] sm:$0x1]  ;;  %v3202_v23 = vld [vmem:[#allocation2 + $0x50] sm:$0xe]  ;;  %v11000_v58 = vld [vmem:[%s14127_s3 + $0x108] sm:$0xff]  }
 0x1e0   :  { %v2672_v6 = vor.u32 %v2671_v24, %v2668_v61  ;;  %v2663_v16 = vrot.slane %v2661_v5, 5  ;;  %9836 = vmatpush3.bf16.msra.mxu0 %v10995_v33  ;;  %v8508_v48 = vcombine.low %v11918_v8, %v11925_v25  ;;  %v12058_v45 = vrot.slane %v2963_v44, 5  ;;  %v3204_v57 = vld [vmem:[#allocation2 + $0x60] sm:$0xe]  ;;  %v3205_v24 = vld [vmem:[#allocation2 + $0x68] sm:$0xe] }
 0x1e1   :  { %9821 = vmatprep.mubr.bf16.mxu1 %v8571_v2  ;;  %v2677_v34 = vrot.slane %v2675_v55, 5  ;;  %9837 = vmatprep.subr.bf16.mxu0 %v10997_v26  ;;  %v8599_v15 = vrot.slane %v3196_v10, 9  ;;  %v3255_v29 = vrot.slane %v12022_v31, 5  ;;  %v8629_v25 = vcombine.low %v3248_v4, %v3252_v13  ;;  %v12099_v2 = vld [vmem:[#allocation2 + $0x74] sm:$0x1] }
 0x1e2   :  { %v2673_v0 = vrot.slane %v2672_v6, 4  ;;  %v2664_v8 = vsel %vm11207_vm13, %v2659_v11, %v2663_v16  ;;  %v8602_v3 = vrot.slane %v3199_v37, 9  ;;  %v3267_v20 = vrot.slane %v12048_v56, 5  ;;  %v2923_v11 = vld [vmem:[#allocation2 + $0x8] sm:$0xf] }
 0x1e3   :  { %9758 = vmatmul.mubr.bf16.gmra.mrb[28].mxu0 %v8508_v48  ;;  %v8600_v42 = vrot.slane %v3197_v28, 9  ;;  %v3259_v47 = vrot.slane %v12028_v52, 5  ;;  %v8601_v18 = vrot.slane %v3198_v7, 9  ;;  %v3263_v19 = vrot.slane %v12046_v36, 5  ;;  %v3206_v6 = vld [vmem:[#allocation2 + $0x70] sm:$0xe] }
 0x1e4   :  { %v2678_v44 = vsel %vm11207_vm13, %v2673_v0, %v2677_v34  ;;  %9838 = vmatpush3.bf16.msra.mxu0 %v10997_v26  ;;  %9841 = vmatprep.mubr.bf16.mxu0 %v8629_v25  ;;  %v8603_v33 = vrot.slane %v3200_v38, 9  ;;  %v3271_v35 = vrot.slane %v12052_v54, 5  ;;  %v8605_v43 = vrot.slane %v3202_v23, 9  ;;  %v12087_v26 = vld [vmem:[#allocation2 + $0x6c] sm:$0x1]  ;;  %v11001_v25 = vld [vmem:[%s14127_s3 + $0x110] sm:$0xff]  }
 0x1e5   :  { %v8572_v63 = vcombine.low %v2664_v8, %v2678_v44  ;;  %9839 = vmatprep.subr.bf16.mxu0 %v10998_v41  ;;  %v3279_v51 = vrot.slane %v12054_v49, 5  ;;  %v3256_v5 = vsel %vm12017_vm4, %v8599_v15, %v3255_v29  ;;  %v3268_v61 = vsel %vm12017_vm4, %v8602_v3, %v3267_v20  ;;  %v2925_v13 = vld [vmem:[#allocation2 + $0x10] sm:$0xf]  ;;  %v12110_v7 = vld [vmem:[#allocation2 + $0x7c] sm:$0x1] }
 0x1e6   :  { %v8604_v59 = vrot.slane %v3201_v32, 9  ;;  %v3275_v27 = vrot.slane %v12064_v22, 5  ;;  %v3260_v12 = vsel %vm12017_vm4, %v8600_v42, %v3259_v47  ;;  %v8606_v17 = vrot.slane %v3203_v14, 9  ;;  %v3207_v23 = vld [vmem:[#allocation2 + $0x78] sm:$0xe] }
 0x1e7   :  { %9822 = vmatmul.mubr.bf16.gmra.mrb[12].mxu1 %v8572_v63  ;;  %v3283_v21 = vrot.slane %v12069_v30, 5  ;;  %v3264_v55 = vsel %vm12017_vm4, %v8601_v18, %v3263_v19  ;;  %v12096_v62 = vsel %vm12017_vm4, %v8603_v33, %v3271_v35  ;;  %v8607_v9 = vrot.slane %v3204_v57, 9  ;;  %v12115_v15 = vld [vmem:[#allocation2 + $0x84] sm:$0x1]  ;;  %v3208_v29 = vld [vmem:[#allocation2 + $0x80] sm:$0xe] }
 0x1e8   :  { %9840 = vmatpush3.bf16.msra.mxu0 %v10998_v41  ;;  %v3287_v39 = vrot.slane %v12077_v50, 5  ;;  %v8630_v10 = vcombine.low %v3256_v5, %v3260_v12  ;;  %v8631_v28 = vcombine.low %v3264_v55, %v3268_v61  ;;  %v2966_v4 = vsel %vm11207_vm13, %v12033_v1, %v12058_v45  ;;  %v2927_v44 = vld [vmem:[#allocation2 + $0x18] sm:$0xf]  ;;  %v2929_v33 = vld [vmem:[#allocation2 + $0x20] sm:$0xf] }
 0x1e9   :  { %9857 = vmatprep.subr.bf16.mxu0 %v10999_v40  ;;  %v3276_v41 = vsel %vm12017_vm4, %v8604_v59, %v3275_v27  ;;  %v3280_v37 = vsel %vm12017_vm4, %v8605_v43, %v3279_v51  ;;  %v8608_v16 = vrot.slane %v3205_v24, 9  ;;  %v3291_v48 = vrot.slane %v12087_v26, 5  ;;  %v12130_v43 = vld [vmem:[#allocation2 + $0x8c] sm:$0x1]  ;;  %v3209_v51 = vld [vmem:[#allocation2 + $0x88] sm:$0xe] }
 0x1ea   :  { %v8632_v0 = vcombine.low %v12096_v62, %v3276_v41  ;;  %v3284_v34 = vsel %vm12017_vm4, %v8606_v17, %v3283_v21  ;;  %v2968_v38 = vshrl.u32 %v2923_v11, 16  ;;  %v2971_v8 = vshll.u32 %v2923_v11, 16  ;;  %v2931_v21 = vld [vmem:[#allocation2 + $0x28] sm:$0xf]  ;;  %v11002_v62 = vld [vmem:[%s14127_s3 + $0x118] sm:$0xff]  }
 0x1eb   :  { %9842 = vmatmul.mubr.bf16.vlgmr.msra.gmra.mrb[32].mxu0 %v8630_v10  ;;  %v12122_v3 = vsel %vm12017_vm4, %v8607_v9, %v3287_v39  ;;  %v8609_v20 = vrot.slane %v3206_v6, 9  ;;  %v3295_v32 = vrot.slane %v12099_v2, 5  ;;  %v2982_v42 = vshrl.u32 %v2925_v13, 16 }
 0x1ec   :  { %9845 = vmatprep.mubr.bf16.mxu0 %v8631_v28  ;;  %9858 = vmatpush3.bf16.msra.mxu0 %v10999_v40  ;;  %v8610_v47 = vrot.slane %v3207_v23, 9  ;;  %v2970_v18 = vrot.slane %v2968_v38, 4  ;;  %v2973_v63 = vrot.slane %v2971_v8, 5  ;;  %v2985_v19 = vshll.u32 %v2925_v13, 16  ;;  %v2933_v23 = vld [vmem:[#allocation2 + $0x30] sm:$0xf] }
 0x1ed   :  { %9859 = vmatprep.subr.bf16.mxu0 %v11000_v58  ;;  %v8633_v40 = vcombine.low %v3280_v37, %v3284_v34  ;;  %v12127_v35 = vsel %vm12017_vm4, %v8608_v16, %v3291_v48  ;;  %v3299_v14 = vrot.slane %v12110_v7, 5  ;;  %v8611_v57 = vrot.slane %v3208_v29, 9 }
 0x1ee   :  { %v3303_v5 = vrot.slane %v12115_v15, 5  ;;  %v2974_v61 = vor.u32 %v2973_v63, %v2970_v18  ;;  %v2996_v59 = vshrl.u32 %v2927_v44, 16  ;;  %v2999_v27 = vshll.u32 %v2927_v44, 16 }
 0x1ef   :  { %v2984_v12 = vrot.slane %v2982_v42, 4  ;;  %v2987_v17 = vrot.slane %v2985_v19, 5  ;;  %v3010_v24 = vshrl.u32 %v2929_v33, 16  ;;  %v3013_v55 = vshll.u32 %v2929_v33, 16 }
 0x1f0   :  { %9860 = vmatpush3.bf16.msra.mxu0 %v11000_v58  ;;  %v8634_v9 = vcombine.low %v12122_v3, %v12127_v35  ;;  %v8612_v39 = vrot.slane %v3209_v51, 9  ;;  %v3307_v11 = vrot.slane %v12130_v43, 5  ;;  %v2977_v10 = vshll.u32 %v12008_v46, 16 }
 0x1f1   :  { %9861 = vmatprep.subr.bf16.mxu0 %v11001_v25  ;;  %v3296_v58 = vsel %vm12017_vm4, %v8609_v20, %v3295_v32  ;;  %v3300_v28 = vsel %vm12017_vm4, %v8610_v47, %v3299_v14  ;;  %v2998_v6 = vrot.slane %v2996_v59, 4  ;;  %v3001_v13 = vrot.slane %v2999_v27, 5  ;;  %v2935_v32 = vld [vmem:[#allocation2 + $0x38] sm:$0xf] }
 0x1f2   :  { %v12146_v41 = vsel %vm12017_vm4, %v8611_v57, %v3303_v5  ;;  %v2975_v37 = vrot.slane %v2974_v61, 4  ;;  %v2991_v16 = vshll.u32 %v12022_v31, 16  ;;  %v3024_v48 = vshrl.u32 %v2931_v21, 16  ;;  %v2939_v57 = vld [vmem:[#allocation2 + $0x58] sm:$0xf]  ;;  %v11004_v5 = vld [vmem:[%s14127_s3 + $0x128] sm:$0xff]  }
 0x1f3   :  { %9846 = vmatmul.mubr.bf16.gmra.mrb[36].mxu0 %v8632_v0  ;;  %v2988_v46 = vor.u32 %v2987_v17, %v2984_v12  ;;  %v3012_v34 = vrot.slane %v3010_v24, 4  ;;  %v3015_v29 = vrot.slane %v3013_v55, 5  ;;  %v3027_v38 = vshll.u32 %v2931_v21, 16  ;;  %v11003_v0 = vld [vmem:[%s14127_s3 + $0x120] sm:$0xff]  }
 0x1f4   :  { %9849 = vmatprep.mubr.bf16.mxu0 %v8633_v40  ;;  %9862 = vmatpush3.bf16.msra.mxu0 %v11001_v25  ;;  %v12154_v8 = vsel %vm12017_vm4, %v8612_v39, %v3307_v11  ;;  %v2979_v3 = vrot.slane %v2977_v10, 5  ;;  %v3005_v31 = vshll.u32 %v12028_v52, 16  ;;  %v3026_v20 = vrot.slane %v3024_v48, 4  ;;  %v2937_v40 = vld [vmem:[#allocation2 + $0x50] sm:$0xf] }
 0x1f5   :  { %9863 = vmatprep.subr.bf16.mxu0 %v11002_v62  ;;  %v3002_v44 = vor.u32 %v3001_v13, %v2998_v6  ;;  %v3029_v25 = vrot.slane %v3027_v38, 5  ;;  %v3038_v42 = vshrl.u32 %v2933_v23, 16  ;;  %v3041_v47 = vshll.u32 %v2933_v23, 16  ;;  %v2941_v13 = vld [vmem:[#allocation2 + $0x60] sm:$0xf] }
 0x1f6   :  { %v8635_v18 = vcombine.low %v3296_v58, %v3300_v28  ;;  %v8636_v63 = vcombine.low %v12146_v41, %v12154_v8  ;;  %v2993_v19 = vrot.slane %v2991_v16, 5  ;;  %v3019_v33 = vshll.u32 %v12046_v36, 16 }
 0x1f7   :  { %v2980_v35 = vsel %vm11207_vm13, %v2975_v37, %v2979_v3  ;;  %v2989_v14 = vrot.slane %v2988_v46, 4  ;;  %v3016_v52 = vor.u32 %v3015_v29, %v3012_v34  ;;  %v3052_v51 = vshrl.u32 %v2935_v32, 16  ;;  %v2943_v29 = vld [vmem:[#allocation2 + $0x68] sm:$0xf] }
 0x1f8   :  { %9864 = vmatpush3.bf16.msra.mxu0 %v11002_v62  ;;  %v3030_v61 = vor.u32 %v3029_v25, %v3026_v20  ;;  %v3040_v59 = vrot.slane %v3038_v42, 4  ;;  %v3043_v27 = vrot.slane %v3041_v47, 5  ;;  %v3055_v12 = vshll.u32 %v2935_v32, 16  ;;  %v2945_v47 = vld [vmem:[#allocation2 + $0x70] sm:$0xf] }
 0x1f9   :  { %9865 = vmatprep.subr.bf16.mxu0 %v11003_v0  ;;  %v3003_v17 = vrot.slane %v3002_v44, 4  ;;  %v3007_v36 = vrot.slane %v3005_v31, 5  ;;  %v3066_v21 = vshrl.u32 %v2937_v40, 16  ;;  %v3069_v24 = vshll.u32 %v2937_v40, 16 }
 0x1fa   :  { %v8645_v55 = vcombine.low %v2966_v4, %v2980_v35  ;;  %v3021_v62 = vrot.slane %v3019_v33, 5  ;;  %v3033_v39 = vshll.u32 %v12048_v56, 16  ;;  %v3080_v11 = vshrl.u32 %v2939_v57, 16  ;;  %v2947_v35 = vld [vmem:[#allocation2 + $0x78] sm:$0xf] }
 0x1fb   :  { %9850 = vmatmul.mubr.bf16.gmra.mrb[40].mxu0 %v8634_v9  ;;  %v2994_v10 = vsel %vm11207_vm13, %v2989_v14, %v2993_v19  ;;  %v3017_v58 = vrot.slane %v3016_v52, 4  ;;  %v3054_v28 = vrot.slane %v3052_v51, 4  ;;  %v3057_v6 = vrot.slane %v3055_v12, 5  ;;  %v11005_v9 = vld [vmem:[%s14127_s3 + $0x130] sm:$0xff]   ;;  %v2949_v12 = vld [vmem:[#allocation2 + $0x80] sm:$0xf] }
 0x1fc   :  { %9853 = vmatprep.mubr.bf16.mxu0 %v8635_v18  ;;  %9866 = vmatpush3.bf16.msra.mxu0 %v11003_v0  ;;  %v3031_v1 = vrot.slane %v3030_v61, 4  ;;  %v3044_v45 = vor.u32 %v3043_v27, %v3040_v59  ;;  %v3068_v4 = vrot.slane %v3066_v21, 4  ;;  %v3071_v37 = vrot.slane %v3069_v24, 5 }
 0x1fd   :  { %9867 = vmatprep.subr.bf16.mxu0 %v11004_v5  ;;  %v3008_v56 = vsel %vm11207_vm13, %v3003_v17, %v3007_v36  ;;  %v3047_v16 = vshll.u32 %v12052_v54, 16  ;;  %v3061_v48 = vshll.u32 %v12064_v22, 16  ;;  %v3083_v23 = vshll.u32 %v2939_v57, 16  ;;  %v11006_v54 = vld [vmem:[%s14127_s3 + $0x138] sm:$0xff]  }
 0x1fe   :  { %v3035_v46 = vrot.slane %v3033_v39, 5  ;;  %v3082_v34 = vrot.slane %v3080_v11, 4  ;;  %v3094_v38 = vshrl.u32 %v2941_v13, 16  ;;  %v3097_v0 = vshll.u32 %v2941_v13, 16 }
 0x1ff   :  { %v8646_v3 = vcombine.low %v2994_v10, %v3008_v56  ;;  %v3022_v31 = vsel %vm11207_vm13, %v3017_v58, %v3021_v62  ;;  %v3058_v20 = vor.u32 %v3057_v6, %v3054_v28  ;;  %v3085_v32 = vrot.slane %v3083_v23, 5  ;;  %v3680_v23 = vld [vmem:[#allocation2 + $0x8] sm:$0xf] }
 0x200   :  { %9868 = vmatpush3.bf16.msra.mxu0 %v11004_v5  ;;  %v3036_v22 = vsel %vm11207_vm13, %v3031_v1, %v3035_v46  ;;  %v3045_v44 = vrot.slane %v3044_v45, 4  ;;  %v3072_v25 = vor.u32 %v3071_v37, %v3068_v4  ;;  %v3075_v42 = vshll.u32 %v12054_v49, 16 }
 0x201   :  { %9869 = vmatprep.subr.bf16.mxu0 %v11005_v9  ;;  %v3049_v18 = vrot.slane %v3047_v16, 5  ;;  %v3063_v19 = vrot.slane %v3061_v48, 5  ;;  %v3089_v33 = vshll.u32 %v12069_v30, 16  ;;  %v3108_v40 = vshrl.u32 %v2943_v29, 16  ;;  %v11007_v30 = vld [vmem:[%s14127_s3 + $0x180] sm:$0xff]  }
 0x202   :  { %v3086_v14 = vor.u32 %v3085_v32, %v3082_v34  ;;  %v3096_v52 = vrot.slane %v3094_v38, 4  ;;  %v3099_v51 = vrot.slane %v3097_v0, 5  ;;  %v3111_v57 = vshll.u32 %v2943_v29, 16  ;;  %v3682_v0 = vld [vmem:[#allocation2 + $0x10] sm:$0xf] }
 0x203   :  { %9854 = vmatmul.mubr.bf16.gmra.mrb[44].mxu0 %v8636_v63  ;;  %v8647_v5 = vcombine.low %v3022_v31, %v3036_v22  ;;  %v3059_v61 = vrot.slane %v3058_v20, 4  ;;  %v3122_v49 = vshrl.u32 %v2945_v47, 16  ;;  %v3125_v59 = vshll.u32 %v2945_v47, 16 }
 0x204   :  { %9870 = vmatpush3.bf16.msra.mxu0 %v11005_v9  ;;  %9873 = vmatprep.mubr.bf16.mxu0 %v8645_v55  ;;  %v3050_v27 = vsel %vm11207_vm13, %v3045_v44, %v3049_v18  ;;  %v3073_v41 = vrot.slane %v3072_v25, 4  ;;  %v3077_v8 = vrot.slane %v3075_v42, 5  ;;  %v3136_v63 = vshrl.u32 %v2947_v35, 16  ;;  %v2951_v55 = vld [vmem:[#allocation2 + $0x88] sm:$0xf] }
 0x205   :  { %9871 = vmatprep.subr.bf16.mxu0 %v11006_v54  ;;  %v3091_v17 = vrot.slane %v3089_v33, 5  ;;  %v3103_v36 = vshll.u32 %v12077_v50, 16  ;;  %v3110_v21 = vrot.slane %v3108_v40, 4  ;;  %v3113_v24 = vrot.slane %v3111_v57, 5  ;;  %v11008_v9 = vld [vmem:[%s14127_s3 + $0x188] sm:$0xff]  }
 0x206   :  { %v3087_v62 = vrot.slane %v3086_v14, 4  ;;  %v3100_v39 = vor.u32 %v3099_v51, %v3096_v52  ;;  %v3124_v11 = vrot.slane %v3122_v49, 4  ;;  %v3127_v10 = vrot.slane %v3125_v59, 5  ;;  %v12216_v14 = vld [vmem:[#allocation2 + $0xc] sm:$0x1] }
 0x207   :  { %v3064_v58 = vsel %vm11207_vm13, %v3059_v61, %v3063_v19  ;;  %v3138_v28 = vrot.slane %v3136_v63, 4  ;;  %v3139_v6 = vshll.u32 %v2947_v35, 16  ;;  %v3150_v13 = vshrl.u32 %v2949_v12, 16  ;;  %v3686_v61 = vld [vmem:[#allocation2 + $0x20] sm:$0xf] }
 0x208   :  { %9872 = vmatpush3.bf16.msra.mxu0 %v11006_v54  ;;  %v8648_v50 = vcombine.low %v3050_v27, %v3064_v58  ;;  %v3117_v1 = vshll.u32 %v12087_v26, 16  ;;  %v3153_v45 = vshll.u32 %v2949_v12, 16  ;;  %v3164_v4 = vshrl.u32 %v2951_v55, 16  ;;  %v11009_v54 = vld [vmem:[%s14127_s3 + $0x190] sm:$0xff]  }
 0x209   :  { %9889 = vmatprep.subr.bf16.mxu0 %v11007_v30  ;;  %v3078_v37 = vsel %vm11207_vm13, %v3073_v41, %v3077_v8  ;;  %v3105_v56 = vrot.slane %v3103_v36, 5  ;;  %v3114_v16 = vor.u32 %v3113_v24, %v3110_v21  ;;  %v3141_v48 = vrot.slane %v3139_v6, 5  ;;  %v3684_v41 = vld [vmem:[#allocation2 + $0x18] sm:$0xf]  ;;  %v12224_v63 = vld [vmem:[#allocation2 + $0x14] sm:$0x1] }
 0x20a   :  { %v3092_v46 = vsel %vm11207_vm13, %v3087_v62, %v3091_v17  ;;  %v3101_v34 = vrot.slane %v3100_v39, 4  ;;  %v3128_v29 = vor.u32 %v3127_v10, %v3124_v11  ;;  %v3131_v38 = vshll.u32 %v12099_v2, 16  ;;  %v12231_v11 = vld [vmem:[#allocation2 + $0x1c] sm:$0x1]  ;;  %v11011_v6 = vld [vmem:[%s14127_s3 + $0x1a0] sm:$0xff]  }
 0x20b   :  { %9874 = vmatmul.mubr.bf16.vlgmr.msra.gmra.mrb[32].mxu0 %v8646_v3  ;;  %v3142_v26 = vor.u32 %v3141_v48, %v3138_v28  ;;  %v3152_v31 = vrot.slane %v3150_v13, 4  ;;  %v3155_v20 = vrot.slane %v3153_v45, 5  ;;  %v3167_v32 = vshll.u32 %v2951_v55, 16  ;;  %v3688_v55 = vld [vmem:[#allocation2 + $0x28] sm:$0xf] }
 0x20c   :  { %9877 = vmatprep.mubr.bf16.mxu0 %v8647_v5  ;;  %9890 = vmatpush3.bf16.msra.mxu0 %v11007_v30  ;;  %v3119_v3 = vrot.slane %v3117_v1, 5  ;;  %v3166_v22 = vrot.slane %v3164_v4, 4  ;;  %v3713_v44 = vshrl.u32 %v3680_v23, 16  ;;  %v3716_v25 = vshll.u32 %v3680_v23, 16  ;;  %v3690_v28 = vld [vmem:[#allocation2 + $0x30] sm:$0xf] }
 0x20d   :  { %9891 = vmatprep.subr.bf16.mxu0 %v11008_v9  ;;  %v3115_v42 = vrot.slane %v3114_v16, 4  ;;  %v3145_v47 = vshll.u32 %v12110_v7, 16  ;;  %v3169_v2 = vrot.slane %v3167_v32, 5  ;;  %v3727_v18 = vshrl.u32 %v3682_v0, 16  ;;  %v11010_v7 = vld [vmem:[%s14127_s3 + $0x198] sm:$0xff]   ;;  %v11012_v48 = vld [vmem:[%s14127_s3 + $0x1a8] sm:$0xff]  }
 0x20e   :  { %v8649_v19 = vcombine.low %v3078_v37, %v3092_v46  ;;  %v3106_v33 = vsel %vm11207_vm13, %v3101_v34, %v3105_v56  ;;  %v3133_v40 = vrot.slane %v3131_v38, 5  ;;  %v3159_v35 = vshll.u32 %v12115_v15, 16  ;;  %v12242_v46 = vld [vmem:[#allocation2 + $0x24] sm:$0x1]  ;;  %v3692_v32 = vld [vmem:[#allocation2 + $0x38] sm:$0xf] }
 0x20f   :  { %v3129_v52 = vrot.slane %v3128_v29, 4  ;;  %v3143_v51 = vrot.slane %v3142_v26, 4  ;;  %v3156_v57 = vor.u32 %v3155_v20, %v3152_v31  ;;  %v3173_v5 = vshll.u32 %v12130_v43, 16  ;;  %v12244_v31 = vld [vmem:[#allocation2 + $0x2c] sm:$0x1] }
 0x210   :  { %9892 = vmatpush3.bf16.msra.mxu0 %v11008_v9  ;;  %v3170_v49 = vor.u32 %v3169_v2, %v3166_v22  ;;  %v3715_v59 = vrot.slane %v3713_v44, 4  ;;  %v3718_v30 = vrot.slane %v3716_v25, 5  ;;  %v3730_v27 = vshll.u32 %v3682_v0, 16  ;;  %v12251_v25 = vld [vmem:[#allocation2 + $0x34] sm:$0x1] }
 0x211   :  { %9893 = vmatprep.subr.bf16.mxu0 %v11009_v54  ;;  %v3120_v15 = vsel %vm11207_vm13, %v3115_v42, %v3119_v3  ;;  %v3147_v8 = vrot.slane %v3145_v47, 5  ;;  %v3722_v12 = vshll.u32 %v12216_v14, 16  ;;  %v3729_v43 = vrot.slane %v3727_v18, 4  ;;  %v3694_v42 = vld [vmem:[#allocation2 + $0x40] sm:$0xf] }
 0x212   :  { %v8650_v17 = vcombine.low %v3106_v33, %v3120_v15  ;;  %v3161_v36 = vrot.slane %v3159_v35, 5  ;;  %v3732_v21 = vrot.slane %v3730_v27, 5  ;;  %v3755_v24 = vshrl.u32 %v3686_v61, 16  ;;  %v3696_v15 = vld [vmem:[#allocation2 + $0x58] sm:$0xf] }
 0x213   :  { %9878 = vmatmul.mubr.bf16.gmra.mrb[36].mxu0 %v8648_v50  ;;  %v3134_v62 = vsel %vm11207_vm13, %v3129_v52, %v3133_v40  ;;  %v3148_v39 = vsel %vm11207_vm13, %v3143_v51, %v3147_v8  ;;  %v3741_v10 = vshrl.u32 %v3684_v41, 16  ;;  %v3744_v58 = vshll.u32 %v3684_v41, 16 }
 0x214   :  { %9881 = vmatprep.mubr.bf16.mxu0 %v8649_v19  ;;  %9894 = vmatpush3.bf16.msra.mxu0 %v11009_v54  ;;  %v3157_v13 = vrot.slane %v3156_v57, 4  ;;  %v3171_v9 = vrot.slane %v3170_v49, 4  ;;  %v3175_v50 = vrot.slane %v3173_v5, 5  ;;  %v3719_v1 = vor.u32 %v3718_v30, %v3715_v59  ;;  %v11013_v49 = vld [vmem:[%s14127_s3 + $0x1b0] sm:$0xff]  }
 0x215   :  { %9895 = vmatprep.subr.bf16.mxu0 %v11010_v7  ;;  %v12236_v45 = vrot.slane %v3722_v12, 5  ;;  %v3733_v4 = vor.u32 %v3732_v21, %v3729_v43  ;;  %v3757_v37 = vrot.slane %v3755_v24, 4  ;;  %v3758_v56 = vshll.u32 %v3686_v61, 16  ;;  %v12254_v61 = vld [vmem:[#allocation2 + $0x3c] sm:$0x1] }
 0x216   :  { %v8651_v16 = vcombine.low %v3134_v62, %v3148_v39  ;;  %v3736_v23 = vshll.u32 %v12224_v63, 16  ;;  %v3769_v34 = vshrl.u32 %v3688_v55, 16  ;;  %v3772_v29 = vshll.u32 %v3688_v55, 16  ;;  %v11014_v21 = vld [vmem:[%s14127_s3 + $0x1b8] sm:$0xff]  }
 0x217   :  { %v3743_v38 = vrot.slane %v3741_v10, 4  ;;  %v3746_v0 = vrot.slane %v3744_v58, 5  ;;  %v3760_v26 = vrot.slane %v3758_v56, 5  ;;  %v3783_v20 = vshrl.u32 %v3690_v28, 16 }
 0x218   :  { %9896 = vmatpush3.bf16.msra.mxu0 %v11010_v7  ;;  %v3162_v54 = vsel %vm11207_vm13, %v3157_v13, %v3161_v36  ;;  %v3176_v3 = vsel %vm11207_vm13, %v3171_v9, %v3175_v50  ;;  %v3720_v22 = vrot.slane %v3719_v1, 4  ;;  %v3750_v44 = vshll.u32 %v12231_v11, 16  ;;  %v3698_v36 = vld [vmem:[#allocation2 + $0x60] sm:$0xf] }
 0x219   :  { %9897 = vmatprep.subr.bf16.mxu0 %v11011_v6  ;;  %v3734_v47 = vrot.slane %v3733_v4, 4  ;;  %v3761_v2 = vor.u32 %v3760_v26, %v3757_v37  ;;  %v3771_v18 = vrot.slane %v3769_v34, 4  ;;  %v3774_v19 = vrot.slane %v3772_v29, 5  ;;  %v3700_v34 = vld [vmem:[#allocation2 + $0x68] sm:$0xf] }
 0x21a   :  { %v3738_v33 = vrot.slane %v3736_v23, 5  ;;  %v3785_v40 = vrot.slane %v3783_v20, 4  ;;  %v3786_v35 = vshll.u32 %v3690_v28, 16  ;;  %v3797_v52 = vshrl.u32 %v3692_v32, 16  ;;  %v12269_v28 = vld [vmem:[#allocation2 + $0x44] sm:$0x1] }
 0x21b   :  { %9882 = vmatmul.mubr.bf16.gmra.mrb[40].mxu0 %v8650_v17  ;;  %v8652_v51 = vcombine.low %v3162_v54, %v3176_v3  ;;  %v3747_v57 = vor.u32 %v3746_v0, %v3743_v38  ;;  %v3764_v5 = vshll.u32 %v12242_v46, 16  ;;  %v3800_v7 = vshll.u32 %v3692_v32, 16  ;;  %v12272_v23 = vld [vmem:[#allocation2 + $0x5c] sm:$0x1] }
 0x21c   :  { %9885 = vmatprep.mubr.bf16.mxu0 %v8651_v16  ;;  %9898 = vmatpush3.bf16.msra.mxu0 %v11011_v6  ;;  %v3725_v59 = vsel %vm11207_vm13, %v3720_v22, %v12236_v45  ;;  %v3778_v30 = vshll.u32 %v12244_v31, 16  ;;  %v3788_v27 = vrot.slane %v3786_v35, 5  ;;  %v3811_v41 = vshrl.u32 %v3694_v42, 16 }
 0x21d   :  { %9899 = vmatprep.subr.bf16.mxu0 %v11012_v48  ;;  %v3739_v8 = vsel %vm11207_vm13, %v3734_v47, %v3738_v33  ;;  %v3762_v12 = vrot.slane %v3761_v2, 4  ;;  %v3775_v43 = vor.u32 %v3774_v19, %v3771_v18  ;;  %v3792_v17 = vshll.u32 %v12251_v25, 16  ;;  %v12284_v18 = vld [vmem:[#allocation2 + $0x64] sm:$0x1] }
 0x21e   :  { %v3789_v24 = vor.u32 %v3788_v27, %v3785_v40  ;;  %v3799_v55 = vrot.slane %v3797_v52, 4  ;;  %v3802_v62 = vrot.slane %v3800_v7, 5  ;;  %v3814_v39 = vshll.u32 %v3694_v42, 16  ;;  %v3704_v7 = vld [vmem:[#allocation2 + $0x78] sm:$0xf] }
 0x21f   :  { %v3748_v10 = vrot.slane %v3747_v57, 4  ;;  %v3766_v58 = vrot.slane %v3764_v5, 5  ;;  %v3825_v6 = vshrl.u32 %v3696_v15, 16  ;;  %v3828_v13 = vshll.u32 %v3696_v15, 16 }
 0x220   :  { %9900 = vmatpush3.bf16.msra.mxu0 %v11012_v48  ;;  %v3806_v9 = vshll.u32 %v12254_v61, 16  ;;  %v3813_v50 = vrot.slane %v3811_v41, 4  ;;  %v3816_v1 = vrot.slane %v3814_v39, 5  ;;  %v3839_v45 = vshrl.u32 %v3698_v36, 16  ;;  %v3702_v48 = vld [vmem:[#allocation2 + $0x70] sm:$0xf] }
 0x221   :  { %9901 = vmatprep.subr.bf16.mxu0 %v11013_v49  ;;  %v8677_v4 = vcombine.low %v3725_v59, %v3739_v8  ;;  %v3752_v37 = vrot.slane %v3750_v44, 5  ;;  %v3780_v56 = vrot.slane %v3778_v30, 5  ;;  %v3790_v16 = vrot.slane %v3789_v24, 4  ;;  %v11015_v44 = vld [vmem:[%s14127_s3 + $0x1c0] sm:$0xff]   ;;  %v11016_v8 = vld [vmem:[%s14127_s3 + $0x1c8] sm:$0xff]  }
 0x222   :  { %v3767_v29 = vsel %vm11207_vm13, %v3762_v12, %v3766_v58  ;;  %v3776_v38 = vrot.slane %v3775_v43, 4  ;;  %v3794_v0 = vrot.slane %v3792_v17, 5  ;;  %v3803_v26 = vor.u32 %v3802_v62, %v3799_v55  ;;  %v3706_v41 = vld [vmem:[#allocation2 + $0x80] sm:$0xf]  ;;  %v12295_v24 = vld [vmem:[#allocation2 + $0x6c] sm:$0x1] }
 0x223   :  { %9886 = vmatmul.mubr.bf16.gmra.mrb[44].mxu0 %v8652_v51  ;;  %v3827_v20 = vrot.slane %v3825_v6, 4  ;;  %v3830_v32 = vrot.slane %v3828_v13, 5  ;;  %v3841_v54 = vrot.slane %v3839_v45, 4  ;;  %v3842_v3 = vshll.u32 %v3698_v36, 16  ;;  %v12297_v39 = vld [vmem:[#allocation2 + $0x74] sm:$0x1] }
 0x224   :  { %9902 = vmatpush3.bf16.msra.mxu0 %v11013_v49  ;;  %9905 = vmatprep.mubr.bf16.mxu0 %v8677_v4  ;;  %v3753_v22 = vsel %vm11207_vm13, %v3748_v10, %v3752_v37  ;;  %v12281_v42 = vrot.slane %v3806_v9, 5  ;;  %v3817_v47 = vor.u32 %v3816_v1, %v3813_v50  ;;  %v3820_v2 = vshll.u32 %v12269_v28, 16  ;;  %v3710_v45 = vld [vmem:[#allocation2 + $0x90] sm:$0xf] }
 0x225   :  { %9903 = vmatprep.subr.bf16.mxu0 %v11014_v21  ;;  %v8678_v19 = vcombine.low %v3753_v22, %v3767_v29  ;;  %v3795_v33 = vsel %vm11207_vm13, %v3790_v16, %v3794_v0  ;;  %v3844_v40 = vrot.slane %v3842_v3, 5  ;;  %v3867_v35 = vshrl.u32 %v3702_v48, 16  ;;  %v12309_v0 = vld [vmem:[#allocation2 + $0x84] sm:$0x1] }
 0x226   :  { %v3781_v52 = vsel %vm11207_vm13, %v3776_v38, %v3780_v56  ;;  %v3834_v51 = vshll.u32 %v12272_v23, 16  ;;  %v3853_v57 = vshrl.u32 %v3700_v34, 16  ;;  %v3856_v5 = vshll.u32 %v3700_v34, 16  ;;  %v11017_v56 = vld [vmem:[%s14127_s3 + $0x1d0] sm:$0xff]  }
 0x227   :  { %v3804_v49 = vrot.slane %v3803_v26, 4  ;;  %v3831_v59 = vor.u32 %v3830_v32, %v3827_v20  ;;  %v3845_v30 = vor.u32 %v3844_v40, %v3841_v54  ;;  %v3848_v27 = vshll.u32 %v12284_v18, 16 }
 0x228   :  { %9904 = vmatpush3.bf16.msra.mxu0 %v11014_v21  ;;  %v8679_v15 = vcombine.low %v3781_v52, %v3795_v33  ;;  %v3818_v12 = vrot.slane %v3817_v47, 4  ;;  %v3822_v43 = vrot.slane %v3820_v2, 5  ;;  %v3870_v17 = vshll.u32 %v3702_v48, 16  ;;  %v3708_v48 = vld [vmem:[#allocation2 + $0x88] sm:$0xf] }
 0x229   :  { %9921 = vmatprep.subr.bf16.mxu0 %v11015_v44  ;;  %v3846_v36 = vrot.slane %v3845_v30, 4  ;;  %v3869_v55 = vrot.slane %v3867_v35, 4  ;;  %v3881_v21 = vshrl.u32 %v3704_v7, 16  ;;  %v3884_v62 = vshll.u32 %v3704_v7, 16  ;;  %v11018_v35 = vld [vmem:[%s14127_s3 + $0x1d8] sm:$0xff]  }
 0x22a   :  { %v3855_v10 = vrot.slane %v3853_v57, 4  ;;  %v3858_v58 = vrot.slane %v3856_v5, 5  ;;  %v3872_v6 = vrot.slane %v3870_v17, 5  ;;  %v3895_v13 = vshrl.u32 %v3706_v41, 16 }
 0x22b   :  { %9906 = vmatmul.mubr.bf16.vlgmr.msra.gmra.mrb[32].mxu0 %v8678_v19  ;;  %v3832_v9 = vrot.slane %v3831_v59, 4  ;;  %v3836_v50 = vrot.slane %v3834_v51, 5  ;;  %v3850_v1 = vrot.slane %v3848_v27, 5  ;;  %v3809_v4 = vsel %vm11207_vm13, %v3804_v49, %v12281_v42  ;;  %v12315_v42 = vld [vmem:[#allocation2 + $0x7c] sm:$0x1] }
 0x22c   :  { %9909 = vmatprep.mubr.bf16.mxu0 %v8679_v15  ;;  %9922 = vmatpush3.bf16.msra.mxu0 %v11015_v44  ;;  %v3823_v37 = vsel %vm11207_vm13, %v3818_v12, %v3822_v43  ;;  %v3883_v16 = vrot.slane %v3881_v21, 4  ;;  %v3886_v34 = vrot.slane %v3884_v62, 5  ;;  %v3873_v38 = vor.u32 %v3872_v6, %v3869_v55  ;;  %v11019_v43 = vld [vmem:[%s14127_s3 + $0x1e0] sm:$0xff]   ;;  %v12325_v55 = vld [vmem:[#allocation2 + $0x94] sm:$0x1] }
 0x22d   :  { %9923 = vmatprep.subr.bf16.mxu0 %v11016_v8  ;;  %v3851_v29 = vsel %vm11207_vm13, %v3846_v36, %v3850_v1  ;;  %v3897_v26 = vrot.slane %v3895_v13, 4  ;;  %v3898_v20 = vshll.u32 %v3706_v41, 16  ;;  %v3859_v32 = vor.u32 %v3858_v58, %v3855_v10  ;;  %v12331_v13 = vld [vmem:[#allocation2 + $0x8c] sm:$0x1] }
 0x22e   :  { %v3862_v54 = vshll.u32 %v12295_v24, 16  ;;  %v3876_v3 = vshll.u32 %v12297_v39, 16  ;;  %v3923_v22 = vshrl.u32 %v3710_v45, 16  ;;  %v3837_v44 = vsel %vm11207_vm13, %v3832_v9, %v3836_v50 }
 0x22f   :  { %v3900_v47 = vrot.slane %v3898_v20, 5  ;;  %v3909_v2 = vshrl.u32 %v3708_v48, 16  ;;  %v3912_v19 = vshll.u32 %v3708_v48, 16  ;;  %v8680_v33 = vcombine.low %v3809_v4, %v3823_v37 }
 0x230   :  { %9924 = vmatpush3.bf16.msra.mxu0 %v11016_v8  ;;  %v8681_v40 = vcombine.low %v3837_v44, %v3851_v29  ;;  %v3887_v52 = vor.u32 %v3886_v34, %v3883_v16  ;;  %v3904_v51 = vshll.u32 %v12309_v0, 16  ;;  %v3874_v57 = vrot.slane %v3873_v38, 4  ;;  %v4146_v29 = vld [vmem:[#allocation2 + $0x8] sm:$0xe] }
 0x231   :  { %9925 = vmatprep.subr.bf16.mxu0 %v11017_v56  ;;  %v3901_v5 = vor.u32 %v3900_v47, %v3897_v26  ;;  %v3925_v7 = vrot.slane %v3923_v22, 4  ;;  %v3926_v49 = vshll.u32 %v3710_v45, 16  ;;  %v3860_v59 = vrot.slane %v3859_v32, 4  ;;  %v4147_v45 = vld [vmem:[#allocation2 + $0x10] sm:$0xe] }
 0x232   :  { %v3878_v30 = vrot.slane %v3876_v3, 5  ;;  %v3890_v27 = vshll.u32 %v12315_v42, 16  ;;  %v3911_v15 = vrot.slane %v3909_v2, 4  ;;  %v3914_v8 = vrot.slane %v3912_v19, 5 }
 0x233   :  { %9910 = vmatmul.mubr.bf16.gmra.mrb[36].mxu0 %v8680_v33  ;;  %v3902_v41 = vrot.slane %v3901_v5, 4  ;;  %v3928_v12 = vrot.slane %v3926_v49, 5  ;;  %v3888_v17 = vrot.slane %v3887_v52, 4  ;;  %v3906_v36 = vrot.slane %v3904_v51, 5  ;;  %v4151_v33 = vld [vmem:[#allocation2 + $0x30] sm:$0xe] }
 0x234   :  { %9913 = vmatprep.mubr.bf16.mxu0 %v8681_v40  ;;  %9926 = vmatpush3.bf16.msra.mxu0 %v11017_v56  ;;  %v3864_v21 = vrot.slane %v3862_v54, 5  ;;  %v3879_v62 = vsel %vm11207_vm13, %v3874_v57, %v3878_v30  ;;  %v3892_v58 = vrot.slane %v3890_v27, 5  ;;  %v3915_v50 = vor.u32 %v3914_v8, %v3911_v15  ;;  %v11020_v56 = vld [vmem:[%s14127_s3 + $0x1e8] sm:$0xff]   ;;  %v11021_v54 = vld [vmem:[%s14127_s3 + $0x1f0] sm:$0xff]   ;;  %v4148_v52 = vld [vmem:[#allocation2 + $0x18] sm:$0xe] }
 0x235   :  { %9927 = vmatprep.subr.bf16.mxu0 %v11018_v35  ;;  %v3929_v10 = vor.u32 %v3928_v12, %v3925_v7  ;;  %v3907_v6 = vsel %vm11207_vm13, %v3902_v41, %v3906_v36  ;;  %v3932_v1 = vshll.u32 %v12325_v55, 16  ;;  %v3918_v34 = vshll.u32 %v12331_v13, 16  ;;  %v4150_v7 = vld [vmem:[#allocation2 + $0x28] sm:$0xe]  ;;  %v4153_v41 = vld [vmem:[#allocation2 + $0x40] sm:$0xe] }
 0x236   :  { %v3865_v9 = vsel %vm11207_vm13, %v3860_v59, %v3864_v21  ;;  %v3893_v37 = vsel %vm11207_vm13, %v3888_v17, %v3892_v58  ;;  %v8694_v38 = vrot.slane %v4147_v45, 9  ;;  %v4200_v26 = vrot.slane %v12224_v63, 5  ;;  %v4149_v63 = vld [vmem:[#allocation2 + $0x20] sm:$0xe] }
 0x237   :  { %v8682_v4 = vcombine.low %v3865_v9, %v3879_v62  ;;  %v8683_v16 = vcombine.low %v3893_v37, %v3907_v6  ;;  %v3930_v48 = vrot.slane %v3929_v10, 4  ;;  %v3916_v20 = vrot.slane %v3915_v50, 4  ;;  %v11023_v15 = vld [vmem:[%s14127_s3 + $0x240] sm:$0xff]   ;;  %v11024_v50 = vld [vmem:[%s14127_s3 + $0x248] sm:$0xff]  }
 0x238   :  { %9928 = vmatpush3.bf16.msra.mxu0 %v11018_v35  ;;  %v3934_v32 = vrot.slane %v3932_v1, 5  ;;  %v8693_v3 = vrot.slane %v4146_v29, 9  ;;  %v4196_v22 = vrot.slane %v12216_v14, 5  ;;  %v3920_v44 = vrot.slane %v3918_v34, 5  ;;  %v11022_v14 = vld [vmem:[%s14127_s3 + $0x1f8] sm:$0xff]  }
 0x239   :  { %9929 = vmatprep.subr.bf16.mxu0 %v11019_v43  ;;  %v4201_v2 = vsel %vm12017_vm4, %v8694_v38, %v4200_v26  ;;  %v8696_v57 = vrot.slane %v4149_v63, 9  ;;  %v4208_v5 = vrot.slane %v12242_v46, 5  ;;  %v8698_v49 = vrot.slane %v4151_v33, 9  ;;  %v4152_v46 = vld [vmem:[#allocation2 + $0x38] sm:$0xe] }
 0x23a   :  { %v3935_v47 = vsel %vm11207_vm13, %v3930_v48, %v3934_v32  ;;  %v3921_v19 = vsel %vm11207_vm13, %v3916_v20, %v3920_v44  ;;  %v4197_v35 = vsel %vm12017_vm4, %v8693_v3, %v4196_v22  ;;  %v4216_v59 = vrot.slane %v12251_v25, 5  ;;  %v4155_v21 = vld [vmem:[#allocation2 + $0x60] sm:$0xe]  ;;  %v12378_v1 = vld [vmem:[#allocation2 + $0x8] sm:$0xf] }
 0x23b   :  { %9914 = vmatmul.mubr.bf16.gmra.mrb[40].mxu0 %v8682_v4  ;;  %v8684_v40 = vcombine.low %v3921_v19, %v3935_v47  ;;  %v8725_v51 = vcombine.low %v4197_v35, %v4201_v2  ;;  %v8695_v30 = vrot.slane %v4148_v52, 9  ;;  %v4204_v27 = vrot.slane %v12231_v11, 5  ;;  %v4154_v11 = vld [vmem:[#allocation2 + $0x58] sm:$0xe]  ;;  %v12397_v22 = vld [vmem:[#allocation2 + $0x20] sm:$0xf] }
 0x23c   :  { %9917 = vmatprep.mubr.bf16.mxu0 %v8683_v16  ;;  %9930 = vmatpush3.bf16.msra.mxu0 %v11019_v43  ;;  %v8697_v8 = vrot.slane %v4150_v7, 9  ;;  %v4212_v12 = vrot.slane %v12244_v31, 5  ;;  %v4209_v43 = vsel %vm12017_vm4, %v8696_v57, %v4208_v5  ;;  %v4217_v25 = vsel %vm12017_vm4, %v8698_v49, %v4216_v59  ;;  %v4157_v31 = vld [vmem:[#allocation2 + $0x70] sm:$0xe]  ;;  %v4158_v26 = vld [vmem:[#allocation2 + $0x78] sm:$0xe] }
 0x23d   :  { %9931 = vmatprep.subr.bf16.mxu0 %v11020_v56  ;;  %v8700_v17 = vrot.slane %v4153_v41, 9  ;;  %v4224_v36 = vrot.slane %v12269_v28, 5  ;;  %v4205_v62 = vsel %vm12017_vm4, %v8695_v30, %v4204_v27  ;;  %v8699_v10 = vrot.slane %v4152_v46, 9  ;;  %v4156_v28 = vld [vmem:[#allocation2 + $0x68] sm:$0xe]  ;;  %v11026_v5 = vld [vmem:[%s14127_s3 + $0x258] sm:$0xff]  }
 0x23e   :  { %v4220_v58 = vrot.slane %v12254_v61, 5  ;;  %v8726_v6 = vcombine.low %v4205_v62, %v4209_v43  ;;  %v4213_v9 = vsel %vm12017_vm4, %v8697_v8, %v4212_v12  ;;  %v8701_v4 = vrot.slane %v4154_v11, 9  ;;  %v12381_v16 = vld [vmem:[#allocation2 + $0x10] sm:$0xf]  ;;  %v4159_v47 = vld [vmem:[#allocation2 + $0x80] sm:$0xe] }
 0x23f   :  { %v8727_v45 = vcombine.low %v4213_v9, %v4217_v25  ;;  %v4228_v37 = vrot.slane %v12272_v23, 5  ;;  %v4225_v61 = vsel %vm12017_vm4, %v8700_v17, %v4224_v36  ;;  %v4232_v34 = vrot.slane %v12284_v18, 5  ;;  %v11025_v23 = vld [vmem:[%s14127_s3 + $0x250] sm:$0xff]   ;;  %v12409_v52 = vld [vmem:[#allocation2 + $0x18] sm:$0xf] }
 0x240   :  { %9932 = vmatpush3.bf16.msra.mxu0 %v11020_v56  ;;  %v8702_v56 = vrot.slane %v4155_v21, 9  ;;  %v8704_v48 = vrot.slane %v4157_v31, 9  ;;  %v4240_v29 = vrot.slane %v12297_v39, 5  ;;  %v4221_v38 = vsel %vm12017_vm4, %v8699_v10, %v4220_v58  ;;  %v4814_v12 = vld [vmem:[#allocation2 + $0xc] sm:$0x1]  ;;  %v11027_v58 = vld [vmem:[%s14127_s3 + $0x260] sm:$0xff]  }
 0x241   :  { %9933 = vmatprep.subr.bf16.mxu0 %v11021_v54  ;;  %v4831_v20 = vshrl.u32 %v12378_v1, 16  ;;  %v4834_v32 = vshll.u32 %v12378_v1, 16  ;;  %v4236_v18 = vrot.slane %v12295_v24, 5  ;;  %v4845_v39 = vshrl.u32 %v12381_v16, 16  ;;  %v12407_v24 = vld [vmem:[#allocation2 + $0x88] sm:$0xe] }
 0x242   :  { %v4848_v3 = vshll.u32 %v12381_v16, 16  ;;  %v8728_v44 = vcombine.low %v4221_v38, %v4225_v61  ;;  %v4229_v2 = vsel %vm12017_vm4, %v8701_v4, %v4228_v37  ;;  %v4233_v63 = vsel %vm12017_vm4, %v8702_v56, %v4232_v34  ;;  %v12421_v46 = vld [vmem:[#allocation2 + $0x28] sm:$0xf]  ;;  %v4815_v17 = vld [vmem:[#allocation2 + $0x14] sm:$0x1] }
 0x243   :  { %9918 = vmatmul.mubr.bf16.gmra.mrb[44].mxu0 %v8684_v40  ;;  %v12405_v19 = vsel %vm12017_vm4, %v8704_v48, %v4240_v29  ;;  %v8705_v33 = vrot.slane %v4158_v26, 9  ;;  %v4161_v40 = vld [vmem:[#allocation2 + $0x90] sm:$0xe]  ;;  %v4833_v35 = vrot.slane %v4831_v20, 4  ;;  %v4876_v57 = vshll.u32 %v12397_v22, 16  ;;  %v11028_v38 = vld [vmem:[%s14127_s3 + $0x268] sm:$0xff]  }
 0x244   :  { %9934 = vmatpush3.bf16.msra.mxu0 %v11021_v54  ;;  %9937 = vmatprep.mubr.bf16.mxu0 %v8725_v51  ;;  %v8703_v54 = vrot.slane %v4156_v28, 9  ;;  %v4873_v51 = vshrl.u32 %v12397_v22, 16  ;;  %v4244_v49 = vrot.slane %v12315_v42, 5  ;;  %v4847_v59 = vrot.slane %v4845_v39, 4  ;;  %v4816_v9 = vld [vmem:[#allocation2 + $0x1c] sm:$0x1] }
 0x245   :  { %9935 = vmatprep.subr.bf16.mxu0 %v11022_v14  ;;  %v4850_v30 = vrot.slane %v4848_v3, 5  ;;  %v8729_v27 = vcombine.low %v4229_v2, %v4233_v63  ;;  %v4248_v8 = vrot.slane %v12309_v0, 5  ;;  %v8707_v43 = vrot.slane %v12407_v24, 9  ;;  %v12427_v0 = vld [vmem:[#allocation2 + $0x30] sm:$0xf] }
 0x246   :  { %v4237_v7 = vsel %vm12017_vm4, %v8703_v54, %v4236_v18  ;;  %v8708_v25 = vrot.slane %v4161_v40, 9  ;;  %v4859_v36 = vshrl.u32 %v12409_v52, 16  ;;  %v4862_v42 = vshll.u32 %v12409_v52, 16  ;;  %v4817_v56 = vld [vmem:[#allocation2 + $0x24] sm:$0x1] }
 0x247   :  { %v8730_v41 = vcombine.low %v4237_v7, %v12405_v19  ;;  %v4256_v11 = vrot.slane %v12325_v55, 5  ;;  %v4875_v62 = vrot.slane %v4873_v51, 4  ;;  %v4878_v10 = vrot.slane %v4876_v57, 5  ;;  %v4818_v18 = vld [vmem:[#allocation2 + $0x2c] sm:$0x1] }
 0x248   :  { %9936 = vmatpush3.bf16.msra.mxu0 %v11022_v14  ;;  %v4836_v14 = vrot.slane %v4834_v32, 5  ;;  %v4245_v31 = vsel %vm12017_vm4, %v8705_v33, %v4244_v49  ;;  %v4890_v28 = vshll.u32 %v12421_v46, 16  ;;  %v4840_v4 = vshll.u32 %v4814_v12, 16  ;;  %v12448_v63 = vld [vmem:[#allocation2 + $0x38] sm:$0xf]  ;;  %v11029_v49 = vld [vmem:[%s14127_s3 + $0x270] sm:$0xff]  }
 0x249   :  { %10093 = vmatprep.subr.bf16.mxu0 %v11023_v15  ;;  %v4854_v37 = vshll.u32 %v4815_v17, 16  ;;  %v4861_v61 = vrot.slane %v4859_v36, 4  ;;  %v4864_v34 = vrot.slane %v4862_v42, 5  ;;  %v4901_v48 = vshrl.u32 %v12427_v0, 16  ;;  %v12452_v7 = vld [vmem:[#allocation2 + $0x60] sm:$0xf] }
 0x24a   :  { %v4837_v21 = vor.u32 %v4836_v14, %v4833_v35  ;;  %v4904_v29 = vshll.u32 %v12427_v0, 16  ;;  %v4868_v20 = vshll.u32 %v4816_v9, 16  ;;  %v4882_v54 = vshll.u32 %v4817_v56, 16  ;;  %v12450_v35 = vld [vmem:[#allocation2 + $0x40] sm:$0xf]  ;;  %v11030_v9 = vld [vmem:[%s14127_s3 + $0x278] sm:$0xff]  }
 0x24b   :  { %9938 = vmatmul.mubr.bf16.vlgmr.msra.gmra.mrb[32].mxu0 %v8726_v6  ;;  %v4851_v6 = vor.u32 %v4850_v30, %v4847_v59  ;;  %v4892_v3 = vrot.slane %v4890_v28, 5  ;;  %v4842_v2 = vrot.slane %v4840_v4, 5  ;;  %v4856_v19 = vrot.slane %v4854_v37, 5  ;;  %v12465_v36 = vld [vmem:[#allocation2 + $0x58] sm:$0xf] }
 0x24c   :  { %9941 = vmatprep.mubr.bf16.mxu0 %v8727_v45  ;;  %10094 = vmatpush3.bf16.msra.mxu0 %v11023_v15  ;;  %v8706_v15 = vrot.slane %v4159_v47, 9  ;;  %v4252_v45 = vrot.slane %v12331_v13, 5  ;;  %v4838_v26 = vrot.slane %v4837_v21, 4  ;;  %v4879_v13 = vor.u32 %v4878_v10, %v4875_v62 }
 0x24d   :  { %10095 = vmatprep.subr.bf16.mxu0 %v11024_v50  ;;  %v4852_v32 = vrot.slane %v4851_v6, 4  ;;  %v4865_v33 = vor.u32 %v4864_v34, %v4861_v61  ;;  %v4903_v24 = vrot.slane %v4901_v48, 4  ;;  %v4906_v40 = vrot.slane %v4904_v29, 5  ;;  %v4821_v29 = vld [vmem:[#allocation2 + $0x44] sm:$0x1] }
 0x24e   :  { %v4249_v55 = vsel %vm12017_vm4, %v8706_v15, %v4248_v8  ;;  %v4253_v47 = vsel %vm12017_vm4, %v8707_v43, %v4252_v45  ;;  %v4870_v51 = vrot.slane %v4868_v20, 5  ;;  %v4880_v57 = vrot.slane %v4879_v13, 4  ;;  %v4820_v8 = vld [vmem:[#allocation2 + $0x3c] sm:$0x1] }
 0x24f   :  { %v4843_v59 = vsel %vm11207_vm13, %v4838_v26, %v4842_v2  ;;  %v4857_v30 = vsel %vm11207_vm13, %v4852_v32, %v4856_v19  ;;  %v4915_v12 = vshrl.u32 %v12448_v63, 16  ;;  %v4918_v43 = vshll.u32 %v12448_v63, 16  ;;  %v12478_v26 = vld [vmem:[#allocation2 + $0x70] sm:$0xf]  ;;  %v4822_v32 = vld [vmem:[#allocation2 + $0x5c] sm:$0x1] }
 0x250   :  { %10096 = vmatpush3.bf16.msra.mxu0 %v11024_v50  ;;  %v4887_v50 = vshrl.u32 %v12421_v46, 16  ;;  %v4932_v17 = vshll.u32 %v12450_v35, 16  ;;  %v4866_v42 = vrot.slane %v4865_v33, 4  ;;  %v4957_v21 = vshrl.u32 %v12452_v7, 16  ;;  %v12489_v2 = vld [vmem:[#allocation2 + $0x68] sm:$0xf] }
 0x251   :  { %10097 = vmatprep.subr.bf16.mxu0 %v11025_v23  ;;  %v4960_v62 = vshll.u32 %v12452_v7, 16  ;;  %v8793_v10 = vcombine.low %v4843_v59, %v4857_v30  ;;  %v4924_v28 = vshll.u32 %v4820_v8, 16  ;;  %v4946_v45 = vshll.u32 %v12465_v36, 16  ;;  %v11032_v8 = vld [vmem:[%s14127_s3 + $0x208] sm:$0xff]  }
 0x252   :  { %v4889_v39 = vrot.slane %v4887_v50, 4  ;;  %v4917_v4 = vrot.slane %v4915_v12, 4  ;;  %v4920_v37 = vrot.slane %v4918_v43, 5  ;;  %v4934_v61 = vrot.slane %v4932_v17, 5 }
 0x253   :  { %9942 = vmatmul.mubr.bf16.gmra.mrb[36].mxu0 %v8728_v44  ;;  %v8731_v44 = vcombine.low %v4245_v31, %v4249_v55  ;;  %v4943_v55 = vshrl.u32 %v12465_v36, 16  ;;  %v4871_v34 = vsel %vm11207_vm13, %v4866_v42, %v4870_v51  ;;  %v12493_v51 = vld [vmem:[#allocation2 + $0x78] sm:$0xf]  ;;  %v4938_v30 = vshll.u32 %v4821_v29, 16 }
 0x254   :  { %9945 = vmatprep.mubr.bf16.mxu0 %v8729_v27  ;;  %10098 = vmatpush3.bf16.msra.mxu0 %v11025_v23  ;;  %v4257_v23 = vsel %vm12017_vm4, %v8708_v25, %v4256_v11  ;;  %v4884_v27 = vrot.slane %v4882_v54, 5  ;;  %v4893_v15 = vor.u32 %v4892_v3, %v4889_v39  ;;  %v4929_v25 = vshrl.u32 %v12450_v35, 16  ;;  %v12480_v54 = vld [vmem:[#allocation2 + $0x80] sm:$0xf] }
 0x255   :  { %10099 = vmatprep.subr.bf16.mxu0 %v11026_v5  ;;  %v8732_v14 = vcombine.low %v4253_v47, %v4257_v23  ;;  %v4907_v11 = vor.u32 %v4906_v40, %v4903_v24  ;;  %v4962_v23 = vrot.slane %v4960_v62, 5  ;;  %v12487_v3 = vrot.slane %v4924_v28, 5  ;;  %v4823_v24 = vld [vmem:[#allocation2 + $0x64] sm:$0x1]  ;;  %v12509_v28 = vld [vmem:[#allocation2 + $0x90] sm:$0xf] }
 0x256   :  { %v4894_v50 = vrot.slane %v4893_v15, 4  ;;  %v4931_v56 = vrot.slane %v4929_v25, 4  ;;  %v4948_v47 = vrot.slane %v4946_v45, 5  ;;  %v4921_v19 = vor.u32 %v4920_v37, %v4917_v4  ;;  %v4825_v4 = vld [vmem:[#allocation2 + $0x74] sm:$0x1] }
 0x257   :  { %v4908_v48 = vrot.slane %v4907_v11, 4  ;;  %v4985_v40 = vshrl.u32 %v12478_v26, 16  ;;  %v5016_v59 = vshll.u32 %v12480_v54, 16  ;;  %v4974_v15 = vshll.u32 %v12489_v2, 16 }
 0x258   :  { %10100 = vmatpush3.bf16.msra.mxu0 %v11026_v5  ;;  %v4896_v5 = vshll.u32 %v4818_v18, 16  ;;  %v11031_v18 = vld [vmem:[%s14127_s3 + $0x200] sm:$0xff]   ;;  %v4935_v33 = vor.u32 %v4934_v61, %v4931_v56  ;;  %v4966_v43 = vshll.u32 %v4823_v24, 16  ;;  %v4999_v25 = vshrl.u32 %v12493_v51, 16 }
 0x259   :  { %10101 = vmatprep.subr.bf16.mxu0 %v11027_v58  ;;  %v5002_v17 = vshll.u32 %v12493_v51, 16  ;;  %v4987_v62 = vrot.slane %v4985_v40, 4  ;;  %v4976_v56 = vrot.slane %v4974_v15, 5  ;;  %v4994_v24 = vshll.u32 %v4825_v4, 16  ;;  %v4826_v40 = vld [vmem:[#allocation2 + $0x7c] sm:$0x1] }
 0x25a   :  { %v4898_v31 = vrot.slane %v4896_v5, 5  ;;  %v4936_v11 = vrot.slane %v4935_v33, 4 }
 0x25b   :  { %9946 = vmatmul.mubr.bf16.gmra.mrb[40].mxu0 %v8730_v41  ;;  %v4819_v41 = vld [vmem:[#allocation2 + $0x34] sm:$0x1]  ;;  %v5004_v29 = vrot.slane %v5002_v17, 5  ;;  %v4996_v17 = vrot.slane %v4994_v24, 5  ;;  %v8809_v24 = vcombine.low %v12378_v1, %v12381_v16  ;;  %v8811_v1 = vcombine.low %v12421_v46, %v12427_v0  ;;  %v11049_v0 = vld [vmem:[%s14127_s3 + $0x2a0] sm:$0xff]  }
 0x25c   :  { %9949 = vmatprep.mubr.bf16.mxu0 %v8731_v44  ;;  %10102 = vmatpush3.bf16.msra.mxu0 %v11027_v58  ;;  %v4885_v58 = vsel %vm11207_vm13, %v4880_v57, %v4884_v27  ;;  %v4910_v6 = vshll.u32 %v4819_v41, 16  ;;  %v4899_v39 = vsel %vm11207_vm13, %v4894_v50, %v4898_v31  ;;  %v4945_v44 = vrot.slane %v4943_v55, 4  ;;  %v11033_v31 = vld [vmem:[%s14127_s3 + $0x210] sm:$0xff]  }
 0x25d   :  { %10103 = vmatprep.subr.bf16.mxu0 %v11028_v38  ;;  %v8794_v20 = vcombine.low %v4871_v34, %v4885_v58  ;;  %v4952_v27 = vshll.u32 %v4822_v32, 16  ;;  %v4971_v41 = vshrl.u32 %v12489_v2, 16  ;;  %v4922_v58 = vrot.slane %v4921_v19, 4  ;;  %v11045_v16 = vld [vmem:[%s14127_s3 + $0x290] sm:$0xff]  }
 0x25e   :  { %v4912_v13 = vrot.slane %v4910_v6, 5  ;;  %v4949_v12 = vor.u32 %v4948_v47, %v4945_v44  ;;  %v5018_v50 = vrot.slane %v5016_v59, 5  ;;  %v4940_v55 = vrot.slane %v4938_v30, 5 }
 0x25f   :  { %v4954_v45 = vrot.slane %v4952_v27, 5  ;;  %v4973_v37 = vrot.slane %v4971_v41, 4  ;;  %v4968_v34 = vrot.slane %v4966_v43, 5  ;;  %v5041_v32 = vshrl.u32 %v12509_v28, 16 }
 0x260   :  { %10104 = vmatpush3.bf16.msra.mxu0 %v11028_v38  ;;  %v4959_v38 = vrot.slane %v4957_v21, 4  ;;  %v4913_v57 = vsel %vm11207_vm13, %v4908_v48, %v4912_v13  ;;  %v4824_v21 = vld [vmem:[#allocation2 + $0x6c] sm:$0x1]  ;;  %v4950_v61 = vrot.slane %v4949_v12, 4  ;;  %v5001_v48 = vrot.slane %v4999_v25, 4 }
 0x261   :  { %10105 = vmatprep.subr.bf16.mxu0 %v11029_v49  ;;  %v8795_v42 = vcombine.low %v4899_v39, %v4913_v57  ;;  %v4827_v13 = vld [vmem:[#allocation2 + $0x84] sm:$0x1]  ;;  %v4927_v39 = vsel %vm11207_vm13, %v4922_v58, %v12487_v3  ;;  %v4980_v47 = vshll.u32 %v4824_v21, 16  ;;  %v4977_v33 = vor.u32 %v4976_v56, %v4973_v37  ;;  %v11034_v3 = vld [vmem:[%s14127_s3 + $0x218] sm:$0xff]   ;;  %v4829_v58 = vld [vmem:[#allocation2 + $0x94] sm:$0x1] }
 0x262   :  { %v4963_v5 = vor.u32 %v4962_v23, %v4959_v38  ;;  %v12511_v38 = vld [vmem:[#allocation2 + $0x88] sm:$0xf]  ;;  %v4941_v23 = vsel %vm11207_vm13, %v4936_v11, %v4940_v55  ;;  %v5005_v59 = vor.u32 %v5004_v29, %v5001_v48  ;;  %v5022_v30 = vshll.u32 %v4827_v13, 16  ;;  %v11035_v21 = vld [vmem:[%s14127_s3 + $0x220] sm:$0xff]  }
 0x263   :  { %9950 = vmatmul.mubr.bf16.gmra.mrb[44].mxu0 %v8732_v14  ;;  %v4988_v14 = vshll.u32 %v12478_v26, 16  ;;  %v5030_v57 = vshll.u32 %v12511_v38, 16  ;;  %v5043_v15 = vrot.slane %v5041_v32, 4  ;;  %v5008_v12 = vshll.u32 %v4826_v40, 16  ;;  %v11036_v48 = vld [vmem:[%s14127_s3 + $0x228] sm:$0xff]   ;;  %v11041_v40 = vld [vmem:[%s14127_s3 + $0x280] sm:$0xff]  }
 0x264   :  { %10106 = vmatpush3.bf16.msra.mxu0 %v11029_v49  ;;  %10109 = vmatprep.mubr.bf16.mxu0 %v8793_v10  ;;  %v5013_v49 = vshrl.u32 %v12480_v54, 16  ;;  %v4964_v6 = vrot.slane %v4963_v5, 4  ;;  %v8796_v5 = vcombine.low %v4927_v39, %v4941_v23  ;;  %v4978_v25 = vrot.slane %v4977_v33, 4  ;;  %v11039_v33 = vld [vmem:[%s14127_s3 + $0x238] sm:$0xff]  }
 0x265   :  { %10107 = vmatprep.subr.bf16.mxu0 %v11030_v9  ;;  %v4990_v10 = vrot.slane %v4988_v14, 5  ;;  %v5027_v14 = vshrl.u32 %v12511_v38, 16  ;;  %v5032_v11 = vrot.slane %v5030_v57, 5  ;;  %v5010_v55 = vrot.slane %v5008_v12, 5  ;;  %v11043_v57 = vld [vmem:[%s14127_s3 + $0x288] sm:$0xff]  }
 0x266   :  { %v4969_v44 = vsel %vm11207_vm13, %v4964_v6, %v4968_v34  ;;  %v4982_v6 = vrot.slane %v4980_v47, 5  ;;  %v5050_v56 = vshll.u32 %v4829_v58, 16  ;;  %v8813_v46 = vcombine.low %v12465_v36, %v12452_v7 }
 0x267   :  { %v8815_v7 = vcombine.low %v12493_v51, %v12480_v54 }
 0x268   :  { %10108 = vmatpush3.bf16.msra.mxu0 %v11030_v9  ;;  %v5015_v9 = vrot.slane %v5013_v49, 4  ;;  %v4955_v49 = vsel %vm11207_vm13, %v4950_v61, %v4954_v45  ;;  %v4828_v45 = vld [vmem:[#allocation2 + $0x8c] sm:$0x1]  ;;  %v4983_v4 = vsel %vm11207_vm13, %v4978_v25, %v4982_v6  ;;  %v5052_v32 = vrot.slane %v5050_v56, 5 }
 0x269   :  { %10125 = vmatprep.subr.bf16.mxu0 %v11031_v18  ;;  %v8797_v27 = vcombine.low %v4955_v49, %v4969_v44  ;;  %v5036_v23 = vshll.u32 %v4828_v45, 16  ;;  %v11053_v49 = vld [vmem:[%s14127_s3 + $0x2b0] sm:$0xff]   ;;  %v11059_v56 = vld [vmem:[%s14127_s3 + $0x2c8] sm:$0xff]  }
 0x26a   :  { %v5019_v19 = vor.u32 %v5018_v50, %v5015_v9 }
 0x26b   :  { %10110 = vmatmul.mubr.bf16.vlgmr.msra.gmra.mrb[48].mxu0 %v8794_v20  ;;  %v4991_v20 = vor.u32 %v4990_v10, %v4987_v62  ;;  %v5006_v62 = vrot.slane %v5005_v59, 4  ;;  %v5024_v10 = vrot.slane %v5022_v30, 5  ;;  %v5038_v39 = vrot.slane %v5036_v23, 5 }
 0x26c   :  { %10113 = vmatprep.mubr.bf16.mxu0 %v8795_v42  ;;  %10126 = vmatpush3.bf16.msra.mxu0 %v11031_v18  ;;  %v5044_v18 = vshll.u32 %v12509_v28, 16  ;;  %v5020_v43 = vrot.slane %v5019_v19, 4  ;;  %v5029_v42 = vrot.slane %v5027_v14, 4  ;;  %v8810_v14 = vcombine.low %v12409_v52, %v12397_v22  ;;  %v11047_v52 = vld [vmem:[%s14127_s3 + $0x298] sm:$0xff]  }
 0x26d   :  { %10127 = vmatprep.subr.bf16.mxu0 %v11032_v8  ;;  %v4992_v41 = vrot.slane %v4991_v20, 4  ;;  %v5011_v34 = vsel %vm11207_vm13, %v5006_v62, %v5010_v55  ;;  %v8812_v22 = vcombine.low %v12448_v63, %v12450_v35  ;;  %v8814_v63 = vcombine.low %v12489_v2, %v12478_v26  ;;  %v11051_v35 = vld [vmem:[%s14127_s3 + $0x2a8] sm:$0xff]  }
 0x26e   :  { %v5033_v37 = vor.u32 %v5032_v11, %v5029_v42  ;;  %v5684_v42 = vld [vmem:[#allocation2 + $0x10] sm:$0xf]  ;;  %v14139_v11 = vmov 0.0|0.0  }
 0x26f   :  { %v4997_v9 = vsel %vm11207_vm13, %v4992_v41, %v4996_v17  ;;  %v11057_v17 = vld [vmem:[%s14127_s3 + $0x2c0] sm:$0xff]   ;;  %10489 = vmatprep.subr.bf16.mxu1 %v14139_v11  ;;  %v5717_v55 = vshrl.u32 %v5684_v42, 16 }
 0x270   :  { %10128 = vmatpush3.bf16.msra.mxu0 %v11032_v8  ;;  %v5046_v8 = vrot.slane %v5044_v18, 5  ;;  %v8798_v61 = vcombine.low %v4983_v4, %v4997_v9  ;;  %v5034_v13 = vrot.slane %v5033_v37, 4  ;;  %v11037_v18 = vld [vmem:[%s14127_s3 + $0x230] sm:$0xff]   ;;  %v11056_v37 = vld [vmem:[#allocation2 + $0x20] ss:$8 sps:$4 sm:$0xff]  }
 0x271   :  { %10129 = vmatprep.subr.bf16.mxu0 %v11033_v31 }
 0x272   :  { %v5047_v50 = vor.u32 %v5046_v8, %v5043_v15  ;;  %v5039_v47 = vsel %vm11207_vm13, %v5034_v13, %v5038_v39  ;;  %v8816_v15 = vcombine.low %v12511_v38, %v12509_v28  ;;  %v11055_v8 = vld [vmem:[%s14127_s3 + $0x2b8] sm:$0xff]  }
 0x273   :  { %10114 = vmatmul.mubr.bf16.gmra.mrb[52].mxu0 %v8796_v5 }
 0x274   :  { %10117 = vmatprep.mubr.bf16.mxu0 %v8797_v27  ;;  %10130 = vmatpush3.bf16.msra.mxu0 %v11033_v31  ;;  %v5025_v31 = vsel %vm11207_vm13, %v5020_v43, %v5024_v10  ;;  %v5048_v20 = vrot.slane %v5047_v50, 4  ;;  %v11054_v43 = vld [vmem:[#allocation2 + $0x10] ss:$8 sps:$4 sm:$0xff]  }
 0x275   :  { %10131 = vmatprep.subr.bf16.mxu0 %v11034_v3  ;;  %v8799_v29 = vcombine.low %v5011_v34, %v5025_v31  ;;  %v5686_v50 = vld [vmem:[#allocation2 + $0x18] sm:$0xf]  ;;  %v5720_v31 = vshll.u32 %v5684_v42, 16 }
 0x276   :  { %v5053_v44 = vsel %vm11207_vm13, %v5048_v20, %v5052_v32  ;;  %v11058_v34 = vld [vmem:[#allocation2 + $0x30] ss:$8 sps:$4 sm:$0xff]   ;;  %v5734_v23 = vshll.u32 %v5686_v50, 16  ;;  %v5719_v20 = vrot.slane %v5717_v55, 4  ;;  %v5688_v32 = vld [vmem:[#allocation2 + $0x20] sm:$0xf] }
 0x277   :  { %v8800_v19 = vcombine.low %v5039_v47, %v5053_v44  ;;  %v5722_v13 = vrot.slane %v5720_v31, 5 }
 0x278   :  { %10132 = vmatpush3.bf16.msra.mxu0 %v11034_v3 }
 0x279   :  { %10133 = vmatprep.subr.bf16.mxu0 %v11035_v21 }
 0x27b   :  { %10118 = vmatmul.mubr.bf16.gmra.mrb[56].mxu0 %v8798_v61 }
 0x27c   :  { %10121 = vmatprep.mubr.bf16.mxu0 %v8799_v29  ;;  %10134 = vmatpush3.bf16.msra.mxu0 %v11035_v21  ;;  %v5731_v29 = vshrl.u32 %v5686_v50, 16 }
 0x27d   :  { %10135 = vmatprep.subr.bf16.mxu0 %v11036_v48 }
 0x280   :  { %10136 = vmatpush3.bf16.msra.mxu0 %v11036_v48  ;;  %v5690_v48 = vld [vmem:[#allocation2 + $0x28] sm:$0xf] }
 0x281   :  { %10137 = vmatprep.subr.bf16.mxu0 %v11037_v18  ;;  %v5759_v39 = vshrl.u32 %v5690_v48, 16  ;;  %v5762_v44 = vshll.u32 %v5690_v48, 16 }
 0x283   :  { %10122 = vmatmul.mubr.bf16.gmra.mrb[60].mxu0 %v8800_v19  ;;  %v5685_v19 = vld [vmem:[#allocation2 + $0x14] sm:$0x1] }
 0x284   :  { %10138 = vmatpush3.bf16.msra.mxu0 %v11037_v18  ;;  %10141 = vmatprep.mubr.bf16.mxu0 %v8809_v24  ;;  %v11061_v18 = vld [vmem:[%s14127_s3 + $0x2d0] sm:$0xff]  }
 0x285   :  { %10139 = vmatprep.subr.bf16.mxu0 %v11039_v33 }
 0x288   :  { %10140 = vmatpush3.bf16.msra.mxu0 %v11039_v33  ;;  %v5687_v33 = vld [vmem:[#allocation2 + $0x1c] sm:$0x1] }
 0x289   :  { %10157 = vmatprep.subr.bf16.mxu0 %v11041_v40 }
 0x28b   :  { %10142 = vmatmul.mubr.bf16.vlgmr.msra.gmra.mrb[48].mxu0 %v8810_v14  ;;  %v11060_v14 = vld [vmem:[#allocation2 + $0x40] ss:$8 sps:$4 sm:$0xff]  }
 0x28c   :  { %10145 = vmatprep.mubr.bf16.mxu0 %v8811_v1  ;;  %10158 = vmatpush3.bf16.msra.mxu0 %v11041_v40  ;;  %v5736_v1 = vrot.slane %v5734_v23, 5 }
 0x28d   :  { %10159 = vmatprep.subr.bf16.mxu0 %v11043_v57 }
 0x290   :  { %10160 = vmatpush3.bf16.msra.mxu0 %v11043_v57  ;;  %v5733_v57 = vrot.slane %v5731_v29, 4  ;;  %v11064_v29 = vld [vmem:[#allocation2 + $0x70] ss:$8 sps:$4 sm:$0xff]  }
 0x291   :  { %10161 = vmatprep.subr.bf16.mxu0 %v11045_v16 }
 0x293   :  { %10146 = vmatmul.mubr.bf16.gmra.mrb[52].mxu0 %v8812_v22  ;;  %v5745_v22 = vshrl.u32 %v5688_v32, 16 }
 0x294   :  { %10149 = vmatprep.mubr.bf16.mxu0 %v8813_v46  ;;  %10162 = vmatpush3.bf16.msra.mxu0 %v11045_v16  ;;  %v5689_v16 = vld [vmem:[#allocation2 + $0x24] sm:$0x1] }
 0x295   :  { %10163 = vmatprep.subr.bf16.mxu0 %v11047_v52  ;;  %v5747_v42 = vrot.slane %v5745_v22, 4 }
 0x298   :  { %10164 = vmatpush3.bf16.msra.mxu0 %v11047_v52 }
 0x299   :  { %10165 = vmatprep.subr.bf16.mxu0 %v11049_v0 }
 0x29b   :  { %10150 = vmatmul.mubr.bf16.gmra.mrb[56].mxu0 %v8814_v63  ;;  %v5723_v63 = vor.u32 %v5722_v13, %v5719_v20 }
 0x29c   :  { %v9811_v36 = vpop.f32.mrb[0].mxu1  ;;  %10153 = vmatprep.mubr.bf16.mxu0 %v8815_v7  ;;  %10166 = vmatpush3.bf16.msra.mxu0 %v11049_v0  ;;  %v5692_v7 = vld [vmem:[#allocation2 + $0x30] sm:$0xf] }
 0x29d   :  { %v2810_v5 = vpop.f32.mrb[1].mxu1  ;;  %10167 = vmatprep.subr.bf16.mxu0 %v11051_v35  ;;  %v5776_v55 = vshll.u32 %v5692_v7, 16 }
 0x29e   :  { %v9812_v3 = vpop.f32.mrb[2].mxu1  ;;  %v9747_v26 = vpop.f32.mrb[16].mxu0 }
 0x29f   :  { %v2813_v2 = vpop.f32.mrb[3].mxu1  ;;  %v12588_v59 = vadd.f32 %v9811_v36, %v9747_v26  ;;  %v2118_v30 = vpop.f32.mrb[17].mxu0  ;;  %v5761_v26 = vrot.slane %v5759_v39, 4  ;;  %v5778_v22 = vrot.slane %v5776_v55, 5  ;;  %v5702_v55 = vld [vmem:[#allocation2 + $0x68] sm:$0xf] }
 0x2a0   :  { %v12590_v27 = vadd.f32 %v2810_v5, %v2118_v30  ;;  %v9748_v41 = vpop.f32.mrb[18].mxu0  ;;  %10168 = vmatpush3.bf16.msra.mxu0 %v11051_v35  ;;  %v5748_v35 = vshll.u32 %v5688_v32, 16  ;;  %v12639_v32 = vld [vmem:[#allocation2 + $0x34] sm:$0x1] }
 0x2a1   :  { %14229 = vst [vmem:[#allocation3_spill] sm:$0xff] %v12588_v59  ;;  %v12592_v54 = vadd.f32 %v9812_v3, %v9748_v41  ;;  %v2121_v51 = vpop.f32.mrb[19].mxu0  ;;  %10169 = vmatprep.subr.bf16.mxu0 %v11053_v49  ;;  %v11063_v3 = vld [vmem:[%s14127_s3 + $0x2d8] sm:$0xff]  }
 0x2a2   :  { %14230 = vst [vmem:[#allocation4_spill] sm:$0xff] %v12590_v27  ;;  %v12599_v12 = vadd.f32 %v2813_v2, %v2121_v51  ;;  %v5764_v2 = vrot.slane %v5762_v44, 5  ;;  %v11062_v51 = vld [vmem:[#allocation2 + $0x60] ss:$8 sps:$4 sm:$0xff]  }
 0x2a3   :  { %14231 = vst [vmem:[#allocation5_spill] sm:$0xff] %v12592_v54  ;;  %10154 = vmatmul.mubr.bf16.gmra.mrb[60].mxu0 %v8816_v15  ;;  %v5726_v15 = vshll.u32 %v5685_v19, 16  ;;  %v11066_v44 = vld [vmem:[#allocation2 + $0x80] ss:$8 sps:$4 sm:$0xff]  }
 0x2a4   :  { %14232 = vst [vmem:[#allocation6_spill] sm:$0xff] %v12599_v12  ;;  %10170 = vmatpush3.bf16.msra.mxu0 %v11053_v49  ;;  %10173 = vmatprep.mubr.bf16.mxu0 %v11054_v43  ;;  %v5765_v50 = vor.u32 %v5764_v2, %v5761_v26 }
 0x2a5   :  { %10171 = vmatprep.subr.bf16.mxu0 %v11055_v8 }
 0x2a6   :  { %v9815_v25 = vpop.f32.mrb[4].mxu1  ;;  %v9751_v38 = vpop.f32.mrb[20].mxu0 }
 0x2a7   :  { %v2826_v28 = vpop.f32.mrb[5].mxu1  ;;  %v12605_v62 = vadd.f32 %v9815_v25, %v9751_v38  ;;  %v2134_v10 = vpop.f32.mrb[21].mxu0  ;;  %v5737_v25 = vor.u32 %v5736_v1, %v5733_v57  ;;  %v5691_v38 = vld [vmem:[#allocation2 + $0x2c] sm:$0x1] }
 0x2a8   :  { %v9816_v21 = vpop.f32.mrb[6].mxu1  ;;  %v12607_v6 = vadd.f32 %v2826_v28, %v2134_v10  ;;  %v9752_v9 = vpop.f32.mrb[22].mxu0  ;;  %10172 = vmatpush3.bf16.msra.mxu0 %v11055_v8  ;;  %v5694_v8 = vld [vmem:[#allocation2 + $0x38] sm:$0xf]  ;;  %v12630_v28 = vrot.slane %v5723_v63, 4  ;;  %v5754_v10 = vshll.u32 %v5689_v16, 16 }
 0x2a9   :  { %14233 = vst [vmem:[#allocation7_spill] sm:$0xff] %v12605_v62  ;;  %v2829_v58 = vpop.f32.mrb[7].mxu1  ;;  %v12609_v45 = vadd.f32 %v9816_v21, %v9752_v9  ;;  %v2137_v4 = vpop.f32.mrb[23].mxu0  ;;  %10189 = vmatprep.subr.bf16.mxu0 %v11057_v17  ;;  %v5750_v21 = vrot.slane %v5748_v35, 5  ;;  %v11065_v9 = vld [vmem:[%s14127_s3 + $0x2e0] sm:$0xff]   ;;  %v5787_v31 = vshrl.u32 %v5694_v8, 16 }
 0x2aa   :  { %14234 = vst [vmem:[#allocation8_spill] sm:$0xff] %v12607_v6  ;;  %v12614_v61 = vadd.f32 %v2829_v58, %v2137_v4  ;;  %v5773_v58 = vshrl.u32 %v5692_v7, 16  ;;  %v5790_v4 = vshll.u32 %v5694_v8, 16  ;;  %v12637_v23 = vrot.slane %v5737_v25, 4  ;;  %v5695_v7 = vld [vmem:[#allocation2 + $0x3c] sm:$0x1] }
 0x2ab   :  { %14235 = vst [vmem:[#allocation9_spill] sm:$0xff] %v12609_v45  ;;  %10174 = vmatmul.mubr.bf16.vlgmr.msra.gmra.mrb[48].mxu0 %v11056_v37  ;;  %v5768_v13 = vshll.u32 %v5691_v38, 16  ;;  %v5766_v16 = vrot.slane %v5765_v50, 4  ;;  %v5796_v50 = vshll.u32 %v5695_v7, 16  ;;  %v5703_v7 = vld [vmem:[#allocation2 + $0x6c] sm:$0x1] }
 0x2ac   :  { %14236 = vst [vmem:[#allocation10_spill] sm:$0xff] %v12614_v61  ;;  %10177 = vmatprep.mubr.bf16.mxu0 %v11058_v34  ;;  %10190 = vmatpush3.bf16.msra.mxu0 %v11057_v17  ;;  %v5740_v17 = vshll.u32 %v5687_v33, 16  ;;  %v5696_v34 = vld [vmem:[#allocation2 + $0x40] sm:$0xf]  ;;  %v5751_v33 = vor.u32 %v5750_v21, %v5747_v42  ;;  %v11069_v21 = vld [vmem:[%s14127_s3 + $0x2f0] sm:$0xff]  }
 0x2ad   :  { %10191 = vmatprep.subr.bf16.mxu0 %v11059_v56  ;;  %v5770_v42 = vrot.slane %v5768_v13, 5  ;;  %v5843_v13 = vshrl.u32 %v5702_v55, 16 }
 0x2ae   :  { %v9755_v47 = vpop.f32.mrb[24].mxu0  ;;  %v5742_v20 = vrot.slane %v5740_v17, 5 }
 0x2af   :  { %v2150_v40 = vpop.f32.mrb[25].mxu0 }
 0x2b0   :  { %v9819_v24 = vpop.f32.mrb[8].mxu1  ;;  %v9756_v0 = vpop.f32.mrb[26].mxu0  ;;  %10192 = vmatpush3.bf16.msra.mxu0 %v11059_v56  ;;  %v12635_v56 = vrot.slane %v5726_v15, 5  ;;  %v5743_v17 = vsel %vm11207_vm13, %v12637_v23, %v5742_v20 }
 0x2b1   :  { %v2842_v52 = vpop.f32.mrb[9].mxu1  ;;  %v12619_v46 = vadd.f32 %v9819_v24, %v9755_v47  ;;  %v2153_v49 = vpop.f32.mrb[27].mxu0  ;;  %10193 = vmatprep.subr.bf16.mxu0 %v11061_v18  ;;  %v11067_v47 = vld [vmem:[%s14127_s3 + $0x2e8] sm:$0xff]   ;;  %v12648_v24 = vrot.slane %v5754_v10, 5  ;;  %v5752_v10 = vrot.slane %v5751_v33, 4 }
 0x2b2   :  { %v9820_v36 = vpop.f32.mrb[10].mxu1  ;;  %v12621_v5 = vadd.f32 %v2842_v52, %v2150_v40  ;;  %v5729_v19 = vsel %vm11207_vm13, %v12630_v28, %v12635_v56  ;;  %v5775_v40 = vrot.slane %v5773_v58, 4  ;;  %v5789_v52 = vrot.slane %v5787_v31, 4 }
 0x2b3   :  { %14237 = vst [vmem:[#allocation11_spill] sm:$0xff] %v12619_v46  ;;  %v2845_v30 = vpop.f32.mrb[11].mxu1  ;;  %v12626_v41 = vadd.f32 %v9820_v36, %v9756_v0  ;;  %10178 = vmatmul.mubr.bf16.gmra.mrb[52].mxu0 %v11060_v14  ;;  %v5700_v14 = vld [vmem:[#allocation2 + $0x60] sm:$0xf]  ;;  %v5792_v0 = vrot.slane %v5790_v4, 5  ;;  %v5801_v36 = vshrl.u32 %v5696_v34, 16 }
 0x2b4   :  { %14238 = vst [vmem:[#allocation12_spill] sm:$0xff] %v12621_v5  ;;  %v12628_v43 = vadd.f32 %v2845_v30, %v2153_v49  ;;  %10181 = vmatprep.mubr.bf16.mxu0 %v11062_v51  ;;  %10194 = vmatpush3.bf16.msra.mxu0 %v11061_v18  ;;  %v5698_v18 = vld [vmem:[#allocation2 + $0x48] sm:$0xf]  ;;  %v5804_v49 = vshll.u32 %v5696_v34, 16  ;;  %v5829_v51 = vshrl.u32 %v5700_v14, 16  ;;  %v5832_v15 = vshll.u32 %v5700_v14, 16 }
 0x2b5   :  { %14239 = vst [vmem:[#allocation13_spill] sm:$0xff] %v12626_v41  ;;  %10195 = vmatprep.subr.bf16.mxu0 %v11063_v3  ;;  %v5818_v30 = vshll.u32 %v5698_v18, 16  ;;  %v5782_v28 = vshll.u32 %v12639_v32, 16  ;;  %v5779_v58 = vor.u32 %v5778_v22, %v5775_v40  ;;  %v5793_v31 = vor.u32 %v5792_v0, %v5789_v52  ;;  %v5697_v4 = vld [vmem:[#allocation2 + $0x44] sm:$0x1] }
 0x2b6   :  { %14240 = vst [vmem:[#allocation14_spill] sm:$0xff] %v12628_v43  ;;  %v9759_v37 = vpop.f32.mrb[28].mxu0  ;;  %v5806_v56 = vrot.slane %v5804_v49, 5  ;;  %v5699_v34 = vld [vmem:[#allocation2 + $0x4c] sm:$0x1]  ;;  %v5831_v23 = vrot.slane %v5829_v51, 4 }
 0x2b7   :  { %v2166_v48 = vpop.f32.mrb[29].mxu0  ;;  %v5834_v20 = vrot.slane %v5832_v15, 5  ;;  %v5846_v32 = vshll.u32 %v5702_v55, 16  ;;  %v5780_v33 = vrot.slane %v5779_v58, 4  ;;  %v5810_v40 = vshll.u32 %v5697_v4, 16 }
 0x2b8   :  { %v9760_v39 = vpop.f32.mrb[30].mxu0  ;;  %10196 = vmatpush3.bf16.msra.mxu0 %v11063_v3  ;;  %v5815_v3 = vshrl.u32 %v5698_v18, 16  ;;  %v11068_v18 = vld [vmem:[#allocation2 + $0x90] ss:$8 sps:$4 sm:$0xff]   ;;  %v14130_v14 = vmov 0.0   ;;  %v5784_v52 = vrot.slane %v5782_v28, 5 }
 0x2b9   :  { %v2169_v1 = vpop.f32.mrb[31].mxu0  ;;  %10197 = vmatprep.subr.bf16.mxu0 %v11065_v9  ;;  %9985 = vmatprep.mubr.msk.f32.mxu1 %vm11109_vm5, %v14130_v14  ;;  %v5706_v22 = vld [vmem:[#allocation2 + $0x78] sm:$0xf]  ;;  %v5798_v0 = vrot.slane %v5796_v50, 5  ;;  %v5835_v49 = vor.u32 %v5834_v20, %v5831_v23  ;;  %v5708_v51 = vld [vmem:[#allocation2 + $0x80] sm:$0xf] }
 0x2ba   :  { %v9823_v57 = vpop.f32.mrb[12].mxu1  ;;  %v5812_v15 = vrot.slane %v5810_v40, 5  ;;  %v5710_v58 = vld [vmem:[#allocation2 + $0x88] sm:$0xf]  ;;  %v5852_v50 = vshll.u32 %v5703_v7, 16 }
 0x2bb   :  { %v2858_v63 = vpop.f32.mrb[13].mxu1  ;;  %v12650_v35 = vadd.f32 %v9823_v57, %v9759_v37  ;;  %10182 = vmatmul.mubr.bf16.gmra.mrb[56].mxu0 %v11064_v29  ;;  %v5803_v37 = vrot.slane %v5801_v36, 4  ;;  %v5820_v29 = vrot.slane %v5818_v30, 5  ;;  %v5794_v57 = vrot.slane %v5793_v31, 4  ;;  %v5704_v30 = vld [vmem:[#allocation2 + $0x70] sm:$0xf] }
 0x2bc   :  { %v9824_v26 = vpop.f32.mrb[14].mxu1  ;;  %v12652_v2 = vadd.f32 %v2858_v63, %v2166_v48  ;;  %10185 = vmatprep.mubr.bf16.mxu0 %v11066_v44  ;;  %10198 = vmatpush3.bf16.msra.mxu0 %v11065_v9  ;;  %v5771_v9 = vsel %vm11207_vm13, %v5766_v16, %v5770_v42  ;;  %v5817_v48 = vrot.slane %v5815_v3, 4  ;;  %v11070_v44 = vld [vmem:[%s14127_s3 + $0x2f8] sm:$0xff]   ;;  %v5824_v16 = vshll.u32 %v5699_v34, 16  ;;  %v5701_v63 = vld [vmem:[#allocation2 + $0x64] sm:$0x1] }
 0x2bd   :  { %14241 = vst [vmem:[#allocation15_spill] sm:$0xff] %v12650_v35  ;;  %v2861_v8 = vpop.f32.mrb[15].mxu1  ;;  %v12654_v25 = vadd.f32 %v9824_v26, %v9760_v39  ;;  %10199 = vmatprep.subr.bf16.mxu0 %v11067_v47  ;;  %v8873_v39 = vcombine.low %v5729_v19, %v5743_v17  ;;  %v5845_v3 = vrot.slane %v5843_v13, 4  ;;  %v5848_v26 = vrot.slane %v5846_v32, 5 }
 0x2be   :  { %14242 = vst [vmem:[#allocation16_spill] sm:$0xff] %v12652_v2  ;;  %v12660_v38 = vadd.f32 %v2861_v8, %v2169_v1  ;;  %v5807_v1 = vor.u32 %v5806_v56, %v5803_v37  ;;  %v5821_v36 = vor.u32 %v5820_v29, %v5817_v48  ;;  %v5871_v8 = vshrl.u32 %v5706_v22, 16 }
 0x2bf   :  { %14243 = vst [vmem:[#allocation17_spill] sm:$0xff] %v12654_v25  ;;  %v5874_v17 = vshll.u32 %v5706_v22, 16  ;;  %v5799_v42 = vsel %vm11207_vm13, %v5794_v57, %v5798_v0  ;;  %v5857_v55 = vshrl.u32 %v5704_v30, 16  ;;  %v5888_v31 = vshll.u32 %v5708_v51, 16  ;;  %v5714_v57 = vld [vmem:[#allocation2 + $0x98] sm:$0xf] }
 0x2c0   :  { %14244 = vst [vmem:[#allocation18_spill] sm:$0xff] %v12660_v38  ;;  %10200 = vmatpush3.bf16.msra.mxu0 %v11067_v47  ;;  %v5757_v47 = vsel %vm11207_vm13, %v5752_v10, %v12648_v24  ;;  %v5785_v24 = vsel %vm11207_vm13, %v5780_v33, %v5784_v52  ;;  %v5808_v28 = vrot.slane %v5807_v1, 4  ;;  %v5826_v10 = vrot.slane %v5824_v16, 5  ;;  %v5705_v16 = vld [vmem:[#allocation2 + $0x74] sm:$0x1] }
 0x2c1   :  { %10201 = vmatprep.subr.bf16.mxu0 %v11069_v21  ;;  %v8874_v19 = vcombine.low %v5757_v47, %v5771_v9  ;;  %v5885_v9 = vshrl.u32 %v5708_v51, 16  ;;  %v5822_v4 = vrot.slane %v5821_v36, 4  ;;  %v5836_v37 = vrot.slane %v5835_v49, 4  ;;  %v5709_v49 = vld [vmem:[#allocation2 + $0x84] sm:$0x1] }
 0x2c2   :  { %v5849_v56 = vor.u32 %v5848_v26, %v5845_v3  ;;  %v5860_v34 = vshll.u32 %v5704_v30, 16  ;;  %v5873_v48 = vrot.slane %v5871_v8, 4  ;;  %v5876_v29 = vrot.slane %v5874_v17, 5 }
 0x2c3   :  { %10186 = vmatmul.mubr.bf16.gmra.mrb[60].mxu0 %v11068_v18  ;;  %v5899_v23 = vshrl.u32 %v5710_v58, 16  ;;  %v5902_v20 = vshll.u32 %v5710_v58, 16  ;;  %v8875_v13 = vcombine.low %v5785_v24, %v5799_v42  ;;  %v5813_v32 = vsel %vm11207_vm13, %v5808_v28, %v5812_v15  ;;  %v5712_v18 = vld [vmem:[#allocation2 + $0x90] sm:$0xf] }
 0x2c4   :  { %10202 = vmatpush3.bf16.msra.mxu0 %v11069_v21  ;;  %10205 = vmatprep.mubr.bf16.mxu0 %v8873_v39  ;;  %v5838_v21 = vshll.u32 %v5701_v63, 16  ;;  %v5854_v33 = vrot.slane %v5852_v50, 5  ;;  %v5887_v40 = vrot.slane %v5885_v9, 4  ;;  %v5890_v47 = vrot.slane %v5888_v31, 5  ;;  %v5707_v63 = vld [vmem:[#allocation2 + $0x7c] sm:$0x1] }
 0x2c5   :  { %10203 = vmatprep.subr.bf16.mxu0 %v11070_v44  ;;  %v5850_v1 = vrot.slane %v5849_v56, 4  ;;  %v5859_v22 = vrot.slane %v5857_v55, 4  ;;  %v5862_v52 = vrot.slane %v5860_v34, 5  ;;  %v5877_v7 = vor.u32 %v5876_v29, %v5873_v48  ;;  %v5715_v48 = vld [vmem:[#allocation2 + $0x9c] sm:$0x1] }
 0x2c6   :  { %v5840_v39 = vrot.slane %v5838_v21, 5  ;;  %v5901_v36 = vrot.slane %v5899_v23, 4  ;;  %v5913_v3 = vshrl.u32 %v5712_v18, 16  ;;  %v5916_v26 = vshll.u32 %v5712_v18, 16  ;;  %v5713_v18 = vld [vmem:[#allocation2 + $0x94] sm:$0x1] }
 0x2c7   :  { %v5927_v30 = vshrl.u32 %v5714_v57, 16  ;;  %v5930_v51 = vshll.u32 %v5714_v57, 16  ;;  %v5866_v24 = vshll.u32 %v5705_v16, 16  ;;  %v5891_v15 = vor.u32 %v5890_v47, %v5887_v40 }
 0x2c8   :  { %10204 = vmatpush3.bf16.msra.mxu0 %v11070_v44  ;;  %v5827_v44 = vsel %vm11207_vm13, %v5822_v4, %v5826_v10  ;;  %v5841_v0 = vsel %vm11207_vm13, %v5836_v37, %v5840_v39  ;;  %v5855_v17 = vsel %vm11207_vm13, %v5850_v1, %v5854_v33  ;;  %v5863_v42 = vor.u32 %v5862_v52, %v5859_v22  ;;  %v5711_v10 = vld [vmem:[#allocation2 + $0x8c] sm:$0x1] }
 0x2c9   :  { %v8876_v8 = vcombine.low %v5813_v32, %v5827_v44  ;;  %v5880_v28 = vshll.u32 %v5707_v63, 16  ;;  %v8877_v21 = vcombine.low %v5841_v0, %v5855_v17  ;;  %v5878_v58 = vrot.slane %v5877_v7, 4 }
 0x2ca   :  { %v5894_v50 = vshll.u32 %v5709_v49, 16  ;;  %v5915_v9 = vrot.slane %v5913_v3, 4  ;;  %v5918_v31 = vrot.slane %v5916_v26, 5  ;;  %v5929_v4 = vrot.slane %v5927_v30, 4 }
 0x2cb   :  { %10206 = vmatmul.mubr.bf16.vlgmr.msra.gmra.mrb[48].mxu0 %v8874_v19  ;;  %v5904_v19 = vrot.slane %v5902_v20, 5  ;;  %v5932_v37 = vrot.slane %v5930_v51, 5  ;;  %v5892_v56 = vrot.slane %v5891_v15, 4  ;;  %v5908_v34 = vshll.u32 %v5711_v10, 16 }
 0x2cc   :  { %10209 = vmatprep.mubr.bf16.mxu0 %v8875_v13  ;;  %v5864_v29 = vrot.slane %v5863_v42, 4  ;;  %v5882_v23 = vrot.slane %v5880_v28, 5  ;;  %v5868_v20 = vrot.slane %v5866_v24, 5  ;;  %v5896_v13 = vrot.slane %v5894_v50, 5 }
 0x2cd   :  { %v5905_v55 = vor.u32 %v5904_v19, %v5901_v36  ;;  %v5919_v33 = vor.u32 %v5918_v31, %v5915_v9  ;;  %v5933_v40 = vor.u32 %v5932_v37, %v5929_v4  ;;  %v5936_v47 = vshll.u32 %v5715_v48, 16 }
 0x2ce   :  { %v5883_v39 = vsel %vm11207_vm13, %v5878_v58, %v5882_v23  ;;  %v5897_v57 = vsel %vm11207_vm13, %v5892_v56, %v5896_v13  ;;  %v5910_v44 = vrot.slane %v5908_v34, 5  ;;  %v5869_v1 = vsel %vm11207_vm13, %v5864_v29, %v5868_v20 }
 0x2cf   :  { %v5906_v32 = vrot.slane %v5905_v55, 4  ;;  %v5922_v16 = vshll.u32 %v5713_v18, 16  ;;  %v8878_v22 = vcombine.low %v5869_v1, %v5883_v39  ;;  %v5920_v63 = vrot.slane %v5919_v33, 4 }
 0x2d0   :  { %v5934_v7 = vrot.slane %v5933_v40, 4  ;;  %v5938_v36 = vrot.slane %v5936_v47, 5  ;;  %v10514_v13 = vpack.c.bf16 %v12599_v12, %v12590_v27  ;;  %v14132_v58 = vmov 1.0  }
 0x2d1   :  { %v5911_v52 = vsel %vm11207_vm13, %v5906_v32, %v5910_v44  ;;  %v5924_v19 = vrot.slane %v5922_v16, 5  ;;  %v1512_v32 = vlaneseq }
 0x2d2   :  { %v8879_v0 = vcombine.low %v5897_v57, %v5911_v52  ;;  %v5939_v3 = vsel %vm11207_vm13, %v5934_v7, %v5938_v36 }
 0x2d3   :  { %10210 = vmatmul.mubr.bf16.gmra.mrb[52].mxu0 %v8876_v8  ;;  %v5925_v49 = vsel %vm11207_vm13, %v5920_v63, %v5924_v19  ;;  %v12785_v1 = vshrl.u32 %v1512_v32, 7 }
 0x2d4   :  { %10213 = vmatprep.mubr.bf16.mxu0 %v8877_v21  ;;  %v8880_v26 = vcombine.low %v5925_v49, %v5939_v3  ;;  %v1513_v3 = vand.u32 127, %v1512_v32 }
 0x2d5   :  { %v1516_v7 = vmul.u32 64, %v12785_v1 }
 0x2d7   :  { %vm1517_vm6 = vcmp.ge.s32.totalorder %v1513_v3, %v1516_v7 }
 0x2db   :  { %10214 = vmatmul.mubr.bf16.gmra.mrb[56].mxu0 %v8878_v22 }
 0x2dc   :  { %10217 = vmatprep.mubr.bf16.mxu0 %v8879_v0 }
 0x2e3   :  { %10218 = vmatmul.mubr.bf16.gmra.mrb[60].mxu0 %v8880_v26 }
 0x31e   :  { %v12699_v30 = vpop.f32.mrb[32].mxu0 }
 0x31f   :  { %v12701_v51 = vpop.f32.mrb[33].mxu0  ;;  %v12707_v15 = vmul.f32 %v12699_v30, %v12699_v30 }
 0x320   :  { %v12703_v24 = vpop.f32.mrb[34].mxu0  ;;  %v12719_v28 = vmul.f32 %v12701_v51, %v12701_v51 }
 0x321   :  { %v10493_v8 = vpack.c.bf16 %v12703_v24, %v12699_v30  ;;  %v12713_v17 = vmul.f32 %v12703_v24, %v12703_v24  ;;  %v12715_v42 = vpop.f32.mrb[35].mxu0 }
 0x322   :  { %v10490_v10 = vpack.c.bf16 %v12715_v42, %v12701_v51  ;;  %v12725_v21 = vmul.f32 %v12715_v42, %v12715_v42 }
 0x324   :  { %v10538_v50 = vpack.c.bf16 %v12725_v21, %v12719_v28  ;;  %10491 = vmatpush3.bf16.msra.mxu1 %v10490_v10 }
 0x325   :  { %10492 = vmatprep.subr.bf16.mxu1 %v14139_v11 }
 0x326   :  { %v12732_v55 = vpop.f32.mrb[36].mxu0 }
 0x327   :  { %14245 = vst [vmem:[#allocation19_spill] sm:$0xff] %v12732_v55  ;;  %v12734_v9 = vpop.f32.mrb[37].mxu0  ;;  %v12740_v4 = vmul.f32 %v12732_v55, %v12732_v55 }
 0x328   :  { %v12736_v31 = vpop.f32.mrb[38].mxu0  ;;  %10494 = vmatpush3.bf16.msra.mxu1 %v10493_v8  ;;  %v12753_v48 = vmul.f32 %v12734_v9, %v12734_v9 }
 0x329   :  { %14246 = vst [vmem:[#allocation20_spill] sm:$0xff] %v12736_v31  ;;  %v10499_v37 = vpack.c.bf16 %v12736_v31, %v12732_v55  ;;  %v12746_v56 = vmul.f32 %v12736_v31, %v12736_v31  ;;  %v12748_v34 = vpop.f32.mrb[39].mxu0  ;;  %10495 = vmatprep.subr.bf16.mxu1 %v14139_v11 }
 0x32a   :  { %v10496_v29 = vpack.c.bf16 %v12748_v34, %v12734_v9  ;;  %v12759_v23 = vmul.f32 %v12748_v34, %v12748_v34 }
 0x32b   :  { %v14259_v28 = vpack.c.bf16 %v12746_v56, %v12740_v4  ;;  %v2892_v4 = vmul.f32 %v12592_v54, %v12592_v54 }
 0x32c   :  { %10497 = vmatpush3.bf16.msra.mxu1 %v10496_v29  ;;  %v1518_v29 = vadd.s32 64, %v1516_v7  ;;  %v10517_v7 = vpack.c.bf16 %v12592_v54, %v12588_v59 }
 0x32d   :  { %10498 = vmatprep.subr.bf16.mxu1 %v14139_v11 }
 0x32e   :  { %v12766_v18 = vpop.f32.mrb[40].mxu0  ;;  %vm1519_vm7 = vcmp.lt.s32.totalorder %v1513_v3, %v1518_v29  ;;  %v10520_v3 = vpack.c.bf16 %v12614_v61, %v12607_v6  ;;  %v10535_v29 = vpack.c.bf16 %v12654_v25, %v12650_v35 }
 0x32f   :  { %14247 = vst [vmem:[#allocation21_spill] sm:$0xff] %v12766_v18  ;;  %v12768_v39 = vpop.f32.mrb[41].mxu0  ;;  %v12774_v40 = vmul.f32 %v12766_v18, %v12766_v18  ;;  %vm12828_vm8 = vmand %vm1517_vm6, %vm1519_vm7 }
 0x330   :  { %14248 = vst [vmem:[#allocation22_spill] sm:$0xff] %v12768_v39  ;;  %v12770_v33 = vpop.f32.mrb[42].mxu0  ;;  %10500 = vmatpush3.bf16.msra.mxu1 %v10499_v37  ;;  %v12789_v16 = vmul.f32 %v12768_v39, %v12768_v39 }
 0x331   :  { %14249 = vst [vmem:[#allocation23_spill] sm:$0xff] %v12770_v33  ;;  %v10505_v47 = vpack.c.bf16 %v12770_v33, %v12766_v18  ;;  %v12780_v57 = vmul.f32 %v12770_v33, %v12770_v33  ;;  %v12782_v44 = vpop.f32.mrb[43].mxu0  ;;  %10501 = vmatprep.subr.bf16.mxu1 %v14139_v11 }
 0x332   :  { %14250 = vst [vmem:[#allocation24_spill] sm:$0xff] %v12782_v44  ;;  %v10502_v22 = vpack.c.bf16 %v12782_v44, %v12768_v39  ;;  %v12795_v52 = vmul.f32 %v12782_v44, %v12782_v44  ;;  %v6331_v44 = vld [vmem:[#allocation2 + $0x20] sm:$0xf] }
 0x333   :  { %v6400_v31 = vshrl.u32 %v6331_v44, 16 }
 0x334   :  { %10503 = vmatpush3.bf16.msra.mxu1 %v10502_v22  ;;  %v14260_v21 = vpack.c.bf16 %v12795_v52, %v12789_v16  ;;  %v2896_v16 = vmul.f32 %v12609_v45, %v12609_v45 }
 0x335   :  { %10504 = vmatprep.subr.bf16.mxu1 %v14139_v11 }
 0x336   :  { %v12803_v36 = vpop.f32.mrb[44].mxu0 }
 0x337   :  { %14251 = vst [vmem:[#allocation25_spill] sm:$0xff] %v12803_v36  ;;  %v12805_v19 = vpop.f32.mrb[45].mxu0  ;;  %v12811_v26 = vmul.f32 %v12803_v36, %v12803_v36 }
 0x338   :  { %14252 = vst [vmem:[#allocation26_spill] sm:$0xff] %v12805_v19  ;;  %v12807_v49 = vpop.f32.mrb[46].mxu0  ;;  %10506 = vmatpush3.bf16.msra.mxu1 %v10505_v47  ;;  %v4620_v22 = vmul.f32 %v12805_v19, %v12805_v19 }
 0x339   :  { %14253 = vst [vmem:[#allocation27_spill] sm:$0xff] %v12807_v49  ;;  %v10511_v8 = vpack.c.bf16 %v12807_v49, %v12803_v36  ;;  %v4623_v10 = vmul.f32 %v12807_v49, %v12807_v49  ;;  %v12817_v37 = vpop.f32.mrb[47].mxu0  ;;  %10507 = vmatprep.subr.bf16.mxu1 %v14139_v11  ;;  %v6613_v36 = vld [vmem:[#allocation2 + $0x90] sm:$0xe] }
 0x33a   :  { %14254 = vst [vmem:[#allocation28_spill] sm:$0xff] %v12817_v37  ;;  %v10508_v32 = vpack.c.bf16 %v12817_v37, %v12805_v19  ;;  %v4621_v47 = vmul.f32 %v12817_v37, %v12817_v37 }
 0x33b   :  { %v10559_v0 = vpack.c.bf16 %v4623_v10, %v12811_v26  ;;  %v10526_v26 = vpack.c.bf16 %v12628_v43, %v12621_v5  ;;  %v10532_v10 = vpack.c.bf16 %v12660_v38, %v12652_v2 }
 0x33c   :  { %v10556_v63 = vpack.c.bf16 %v4621_v47, %v4620_v22  ;;  %10509 = vmatpush3.bf16.msra.mxu1 %v10508_v32  ;;  %v14257_v22 = vpack.c.bf16 %v12713_v17, %v12707_v15  ;;  %v14258_v32 = vpack.c.bf16 %v12759_v23, %v12753_v48  ;;  %v14261_v15 = vpack.c.bf16 %v12780_v57, %v12774_v40 }
 0x33d   :  { %10510 = vmatprep.subr.bf16.mxu1 %v14139_v11  ;;  %v2890_v17 = vmul.f32 %v12599_v12, %v12599_v12  ;;  %v2891_v48 = vmul.f32 %v12588_v59, %v12588_v59  ;;  %v2894_v40 = vmul.f32 %v12614_v61, %v12614_v61  ;;  %v2893_v57 = vmul.f32 %v12607_v6, %v12607_v6  ;;  %v6604_v61 = vld [vmem:[#allocation2 + $0x38] sm:$0xe] }
 0x33e   :  { %v2898_v47 = vmul.f32 %v12628_v43, %v12628_v43 }
 0x33f   :  { %v10565_v23 = vpack.c.bf16 %v2892_v4, %v2891_v48  ;;  %v10568_v52 = vpack.c.bf16 %v2894_v40, %v2893_v57 }
 0x340   :  { %10512 = vmatpush3.bf16.msra.mxu1 %v10511_v8  ;;  %v10529_v8 = vpack.c.bf16 %v12626_v41, %v12619_v46 }
 0x341   :  { %10513 = vmatprep.subr.bf16.mxu1 %v14139_v11 }
 0x343   :  { %9986 = vmatmul.mubr.msk.f32.vlgmr.msra.gmra.mrb[16].mxu1 %vm12828_vm8, %v14132_v58 }
 0x344   :  { %10515 = vmatpush3.bf16.msra.mxu1 %v10514_v13  ;;  %10020 = vmatprep.mubr.msk.f32.mxu1 %vm11109_vm5, %v14130_v14  ;;  %v10523_v13 = vpack.c.bf16 %v12609_v45, %v12605_v62 }
 0x345   :  { %10516 = vmatprep.subr.bf16.mxu1 %v14139_v11 }
 0x348   :  { %10518 = vmatpush3.bf16.msra.mxu1 %v10517_v7  ;;  %v2897_v7 = vmul.f32 %v12621_v5, %v12621_v5  ;;  %v13088_v5 = vld [vmem:[#allocation2 + $0x3c] sm:$0x1] }
 0x349   :  { %10519 = vmatprep.subr.bf16.mxu1 %v14139_v11 }
 0x34c   :  { %10521 = vmatpush3.bf16.msra.mxu1 %v10520_v3  ;;  %v2900_v3 = vmul.f32 %v12626_v41, %v12626_v41  ;;  %v14279_v41 = vmov 0.0  }
 0x34d   :  { %10522 = vmatprep.subr.bf16.mxu1 %v14139_v11 }
 0x350   :  { %10524 = vmatpush3.bf16.msra.mxu1 %v10523_v13  ;;  %v10574_v13 = vpack.c.bf16 %v2898_v47, %v2897_v7 }
 0x351   :  { %10525 = vmatprep.subr.bf16.mxu1 %v14139_v11 }
 0x354   :  { %10527 = vmatpush3.bf16.msra.mxu1 %v10526_v26  ;;  %v2899_v26 = vmul.f32 %v12619_v46, %v12619_v46 }
 0x355   :  { %10528 = vmatprep.subr.bf16.mxu1 %v14139_v11 }
 0x358   :  { %10530 = vmatpush3.bf16.msra.mxu1 %v10529_v8  ;;  %v10577_v8 = vpack.c.bf16 %v2900_v3, %v2899_v26 }
 0x359   :  { %10531 = vmatprep.subr.bf16.mxu1 %v14139_v11 }
 0x35c   :  { %10533 = vmatpush3.bf16.msra.mxu1 %v10532_v10  ;;  %v2902_v10 = vmul.f32 %v12660_v38, %v12660_v38 }
 0x35d   :  { %10534 = vmatprep.subr.bf16.mxu1 %v14139_v11 }
 0x360   :  { %10536 = vmatpush3.bf16.msra.mxu1 %v10535_v29  ;;  %v2901_v29 = vmul.f32 %v12652_v2, %v12652_v2  ;;  %v14278_v2 = vmov 1.0  }
 0x361   :  { %10537 = vmatprep.subr.bf16.mxu1 %v14139_v11 }
 0x363   :  { %10021 = vmatmul.mubr.msk.f32.vlgmr.msra.gmra.mrb[16].mxu1 %vm12828_vm8, %v14132_v58 }
 0x364   :  { %10539 = vmatpush3.bf16.msra.mxu1 %v10538_v50  ;;  %10055 = vmatprep.mubr.msk.f32.mxu1 %vm11109_vm5, %v14130_v14  ;;  %v2889_v50 = vmul.f32 %v12590_v27, %v12590_v27  ;;  %v6605_v27 = vld [vmem:[#allocation2 + $0x40] sm:$0xe] }
 0x365   :  { %10540 = vmatprep.subr.bf16.mxu1 %v14139_v11 }
 0x366   :  { %v10562_v56 = vpack.c.bf16 %v2890_v17, %v2889_v50 }
 0x368   :  { %10542 = vmatpush3.bf16.msra.mxu1 %v14257_v22  ;;  %v2904_v22 = vmul.f32 %v12654_v25, %v12654_v25 }
 0x369   :  { %10543 = vmatprep.subr.bf16.mxu1 %v14139_v11 }
 0x36c   :  { %10545 = vmatpush3.bf16.msra.mxu1 %v14258_v32  ;;  %v10580_v32 = vpack.c.bf16 %v2902_v10, %v2901_v29 }
 0x36d   :  { %10546 = vmatprep.subr.bf16.mxu1 %v14139_v11 }
 0x370   :  { %10548 = vmatpush3.bf16.msra.mxu1 %v14259_v28  ;;  %v2903_v28 = vmul.f32 %v12650_v35, %v12650_v35 }
 0x371   :  { %10549 = vmatprep.subr.bf16.mxu1 %v14139_v11 }
 0x374   :  { %10551 = vmatpush3.bf16.msra.mxu1 %v14260_v21  ;;  %v10583_v21 = vpack.c.bf16 %v2904_v22, %v2903_v28 }
 0x375   :  { %10552 = vmatprep.subr.bf16.mxu1 %v14139_v11 }
 0x378   :  { %10554 = vmatpush3.bf16.msra.mxu1 %v14261_v15 }
 0x379   :  { %10555 = vmatprep.subr.bf16.mxu1 %v14139_v11 }
 0x37c   :  { %10557 = vmatpush3.bf16.msra.mxu1 %v10556_v63 }
 0x37d   :  { %10558 = vmatprep.subr.bf16.mxu1 %v14139_v11 }
 0x380   :  { %10560 = vmatpush3.bf16.msra.mxu1 %v10559_v0  ;;  %v2895_v0 = vmul.f32 %v12605_v62, %v12605_v62 }
 0x381   :  { %10561 = vmatprep.subr.bf16.mxu1 %v14139_v11 }
 0x382   :  { %v10571_v63 = vpack.c.bf16 %v2896_v16, %v2895_v0 }
 0x383   :  { %10056 = vmatmul.mubr.msk.f32.vlgmr.msra.gmra.mrb[18].mxu1 %vm12828_vm8, %v14132_v58 }
 0x384   :  { %10563 = vmatpush3.bf16.msra.mxu1 %v10562_v56  ;;  %10090 = vmatprep.mubr.msk.f32.mxu1 %vm11109_vm5, %v14130_v14 }
 0x385   :  { %10564 = vmatprep.subr.bf16.mxu1 %v14139_v11 }
 0x388   :  { %10566 = vmatpush3.bf16.msra.mxu1 %v10565_v23 }
 0x389   :  { %10567 = vmatprep.subr.bf16.mxu1 %v14139_v11 }
 0x38c   :  { %10569 = vmatpush3.bf16.msra.mxu1 %v10568_v52 }
 0x38d   :  { %10570 = vmatprep.subr.bf16.mxu1 %v14139_v11 }
 0x390   :  { %10572 = vmatpush3.bf16.msra.mxu1 %v10571_v63 }
 0x391   :  { %10573 = vmatprep.subr.bf16.mxu1 %v14139_v11 }
 0x394   :  { %10575 = vmatpush3.bf16.msra.mxu1 %v10574_v13 }
 0x395   :  { %10576 = vmatprep.subr.bf16.mxu1 %v14139_v11 }
 0x398   :  { %10578 = vmatpush3.bf16.msra.mxu1 %v10577_v8 }
 0x399   :  { %10579 = vmatprep.subr.bf16.mxu1 %v14139_v11 }
 0x39c   :  { %10581 = vmatpush3.bf16.msra.mxu1 %v10580_v32 }
 0x39d   :  { %10582 = vmatprep.subr.bf16.mxu1 %v14139_v11 }
 0x39e   :  { %v12937_v15 = vpop.f32.mrb[48].mxu0 }
 0x39f   :  { %14262 = vst [vmem:[#allocation29_spill] sm:$0xff] %v12937_v15  ;;  %v12939_v17 = vpop.f32.mrb[49].mxu0  ;;  %v12945_v4 = vmul.f32 %v12937_v15, %v12937_v15 }
 0x3a0   :  { %14263 = vst [vmem:[#allocation30_spill] sm:$0xff] %v12939_v17  ;;  %10584 = vmatpush3.bf16.msra.mxu1 %v10583_v21  ;;  %v12941_v50 = vpop.f32.mrb[50].mxu0  ;;  %v6221_v40 = vmul.f32 %v12939_v17, %v12939_v17 }
 0x3a1   :  { %14264 = vst [vmem:[#allocation31_spill] sm:$0xff] %v12941_v50  ;;  %v10589_v56 = vpack.c.bf16 %v12941_v50, %v12937_v15  ;;  %v12951_v48 = vmul.f32 %v12941_v50, %v12941_v50  ;;  %v12953_v23 = vpop.f32.mrb[51].mxu0  ;;  %10585 = vmatprep.subr.bf16.mxu1 %v14139_v11  ;;  %v13134_v50 = vld [vmem:[#allocation2 + $0x8c] sm:$0x1] }
 0x3a2   :  { %14265 = vst [vmem:[#allocation32_spill] sm:$0xff] %v12953_v23  ;;  %v10586_v57 = vpack.c.bf16 %v12953_v23, %v12939_v17  ;;  %v6222_v16 = vmul.f32 %v12953_v23, %v12953_v23  ;;  %v6612_v17 = vld [vmem:[#allocation2 + $0x88] sm:$0xe] }
 0x3a3   :  { %v10613_v52 = vpack.c.bf16 %v12951_v48, %v12945_v4  ;;  %10091 = vmatmul.mubr.msk.f32.vlgmr.msra.gmra.mrb[18].mxu1 %vm12828_vm8, %v14132_v58 }
 0x3a4   :  { %v10610_v0 = vpack.c.bf16 %v6222_v16, %v6221_v40  ;;  %10587 = vmatpush3.bf16.msra.mxu1 %v10586_v57  ;;  %10253 = vmatprep.mubr.msk.f32.mxu1 %vm11109_vm5, %v14130_v14 }
 0x3a5   :  { %10588 = vmatprep.subr.bf16.mxu1 %v14139_v11 }
 0x3a6   :  { %v12970_v63 = vpop.f32.mrb[52].mxu0 }
 0x3a7   :  { %14266 = vst [vmem:[#allocation33_spill] sm:$0xff] %v12970_v63  ;;  %v12972_v47 = vpop.f32.mrb[53].mxu0  ;;  %v6227_v3 = vmul.f32 %v12970_v63, %v12970_v63 }
 0x3a8   :  { %14267 = vst [vmem:[#allocation34_spill] sm:$0xff] %v12972_v47  ;;  %v12974_v7 = vpop.f32.mrb[54].mxu0  ;;  %10590 = vmatpush3.bf16.msra.mxu1 %v10589_v56  ;;  %v6225_v10 = vmul.f32 %v12972_v47, %v12972_v47 }
 0x3a9   :  { %14268 = vst [vmem:[#allocation35_spill] sm:$0xff] %v12974_v7  ;;  %v10595_v13 = vpack.c.bf16 %v12974_v7, %v12970_v63  ;;  %v6228_v26 = vmul.f32 %v12974_v7, %v12974_v7  ;;  %v12982_v8 = vpop.f32.mrb[55].mxu0  ;;  %10591 = vmatprep.subr.bf16.mxu1 %v14139_v11  ;;  %v6610_v63 = vld [vmem:[#allocation2 + $0x78] sm:$0xe] }
 0x3aa   :  { %14269 = vst [vmem:[#allocation36_spill] sm:$0xff] %v12982_v8  ;;  %v10592_v29 = vpack.c.bf16 %v12982_v8, %v12972_v47  ;;  %v6226_v22 = vmul.f32 %v12982_v8, %v12982_v8  ;;  %v8935_v18 = vrot.slane %v6610_v63, 9 }
 0x3ab   :  { %v10619_v32 = vpack.c.bf16 %v6228_v26, %v6227_v3 }
 0x3ac   :  { %v10616_v28 = vpack.c.bf16 %v6226_v22, %v6225_v10  ;;  %10593 = vmatpush3.bf16.msra.mxu1 %v10592_v29 }
 0x3ad   :  { %10594 = vmatprep.subr.bf16.mxu1 %v14139_v11 }
 0x3ae   :  { %v12992_v21 = vpop.f32.mrb[56].mxu0 }
 0x3af   :  { %14270 = vst [vmem:[#allocation37_spill] sm:$0xff] %v12992_v21  ;;  %v12994_v4 = vpop.f32.mrb[57].mxu0  ;;  %v6231_v48 = vmul.f32 %v12992_v21, %v12992_v21 }
 0x3b0   :  { %14271 = vst [vmem:[#allocation38_spill] sm:$0xff] %v12994_v4  ;;  %v12996_v56 = vpop.f32.mrb[58].mxu0  ;;  %10596 = vmatpush3.bf16.msra.mxu1 %v10595_v13  ;;  %v6229_v3 = vmul.f32 %v12994_v4, %v12994_v4 }
 0x3b1   :  { %14272 = vst [vmem:[#allocation39_spill] sm:$0xff] %v12996_v56  ;;  %v10601_v40 = vpack.c.bf16 %v12996_v56, %v12992_v21  ;;  %v6232_v57 = vmul.f32 %v12996_v56, %v12996_v56  ;;  %v13004_v16 = vpop.f32.mrb[59].mxu0  ;;  %10597 = vmatprep.subr.bf16.mxu1 %v14139_v11  ;;  %v6672_v56 = vrot.slane %v13088_v5, 5  ;;  %v13111_v21 = vld [vmem:[#allocation2 + $0x6c] sm:$0x1] }
 0x3b2   :  { %14273 = vst [vmem:[#allocation40_spill] sm:$0xff] %v13004_v16  ;;  %v10598_v26 = vpack.c.bf16 %v13004_v16, %v12994_v4  ;;  %v6230_v13 = vmul.f32 %v13004_v16, %v13004_v16  ;;  %v13113_v16 = vld [vmem:[#allocation2 + $0x74] sm:$0x1]  ;;  %v11079_v4 = vld [vmem:[%s14127_s3 + $0x300] sm:$0xff]   ;;  %v6688_v49 = vrot.slane %v13111_v21, 5 }
 0x3b3   :  { %v10625_v10 = vpack.c.bf16 %v6232_v57, %v6231_v48 }
 0x3b4   :  { %v10622_v29 = vpack.c.bf16 %v6230_v13, %v6229_v3  ;;  %10599 = vmatpush3.bf16.msra.mxu1 %v10598_v26 }
 0x3b5   :  { %10600 = vmatprep.subr.bf16.mxu1 %v14139_v11 }
 0x3b6   :  { %v13014_v22 = vpop.f32.mrb[60].mxu0 }
 0x3b7   :  { %14274 = vst [vmem:[#allocation41_spill] sm:$0xff] %v13014_v22  ;;  %v13016_v14 = vpop.f32.mrb[61].mxu0  ;;  %v6235_v25 = vmul.f32 %v13014_v22, %v13014_v22 }
 0x3b8   :  { %14275 = vst [vmem:[#allocation42_spill] sm:$0xff] %v13016_v14  ;;  %v13018_v58 = vpop.f32.mrb[62].mxu0  ;;  %10602 = vmatpush3.bf16.msra.mxu1 %v10601_v40  ;;  %v6233_v3 = vmul.f32 %v13016_v14, %v13016_v14 }
 0x3b9   :  { %14276 = vst [vmem:[#allocation43_spill] sm:$0xff] %v13018_v58  ;;  %v10607_v35 = vpack.c.bf16 %v13018_v58, %v13014_v22  ;;  %v6236_v48 = vmul.f32 %v13018_v58, %v13018_v58  ;;  %v13026_v57 = vpop.f32.mrb[63].mxu0  ;;  %10603 = vmatprep.subr.bf16.mxu1 %v14139_v11  ;;  %v13098_v58 = vld [vmem:[#allocation2 + $0x64] sm:$0x1] }
 0x3ba   :  { %14277 = vst [vmem:[#allocation44_spill] sm:$0xff] %v13026_v57  ;;  %v10604_v26 = vpack.c.bf16 %v13026_v57, %v13016_v14  ;;  %v6234_v40 = vmul.f32 %v13026_v57, %v13026_v57  ;;  %v8929_v14 = vrot.slane %v6604_v61, 9 }
 0x3bb   :  { %v10631_v13 = vpack.c.bf16 %v6236_v48, %v6235_v25  ;;  %v6599_v25 = vld [vmem:[#allocation2 + $0x10] sm:$0xe] }
 0x3bc   :  { %v10628_v38 = vpack.c.bf16 %v6234_v40, %v6233_v3  ;;  %10605 = vmatpush3.bf16.msra.mxu1 %v10604_v26  ;;  %v8924_v48 = vrot.slane %v6599_v25, 9  ;;  %v11074_v25 = vld [vmem:[%s14127_s3 + $0x358] sm:$0xff]  }
 0x3bd   :  { %10606 = vmatprep.subr.bf16.mxu1 %v14139_v11 }
 0x3c0   :  { %10608 = vmatpush3.bf16.msra.mxu1 %v10607_v35  ;;  %v13047_v35 = vld [vmem:[#allocation2 + $0x14] sm:$0x1] }
 0x3c1   :  { %10609 = vmatprep.subr.bf16.mxu1 %v14139_v11 }
 0x3c3   :  { %10254 = vmatmul.mubr.msk.f32.vlgmr.msra.gmra.mrb[16].mxu1 %vm12828_vm8, %v14278_v2 }
 0x3c4   :  { %10611 = vmatpush3.bf16.msra.mxu1 %v10610_v0  ;;  %10288 = vmatprep.mubr.msk.f32.mxu1 %vm11109_vm5, %v14279_v41  ;;  %v13050_v0 = vld [vmem:[#allocation2 + $0xc] sm:$0x1] }
 0x3c5   :  { %10612 = vmatprep.subr.bf16.mxu1 %v14139_v11 }
 0x3c8   :  { %10614 = vmatpush3.bf16.msra.mxu1 %v10613_v52  ;;  %v6598_v52 = vld [vmem:[#allocation2 + $0x8] sm:$0xe] }
 0x3c9   :  { %10615 = vmatprep.subr.bf16.mxu1 %v14139_v11 }
 0x3cc   :  { %10617 = vmatpush3.bf16.msra.mxu1 %v10616_v28  ;;  %v6652_v28 = vrot.slane %v13047_v35, 5 }
 0x3cd   :  { %10618 = vmatprep.subr.bf16.mxu1 %v14139_v11 }
 0x3ce   :  { %v6653_v3 = vsel %vm12017_vm4, %v8924_v48, %v6652_v28  ;;  %v11076_v48 = vld [vmem:[%s14127_s3 + $0x368] sm:$0xff]   ;;  %v6332_v28 = vld [vmem:[#allocation2 + $0x24] sm:$0x1] }
 0x3cf   :  { %v6409_v62 = vshll.u32 %v6332_v28, 16 }
 0x3d0   :  { %10620 = vmatpush3.bf16.msra.mxu1 %v10619_v32  ;;  %v11071_v32 = vld [vmem:[%s14127_s3 + $0x340] sm:$0xff]  }
 0x3d1   :  { %10621 = vmatprep.subr.bf16.mxu1 %v14139_v11  ;;  %v13108_v57 = vrot.slane %v6409_v62, 5  ;;  %v6609_v62 = vld [vmem:[#allocation2 + $0x70] sm:$0xe] }
 0x3d2   :  { %v8934_v23 = vrot.slane %v6609_v62, 9 }
 0x3d4   :  { %10623 = vmatpush3.bf16.msra.mxu1 %v10622_v29  ;;  %v8923_v29 = vrot.slane %v6598_v52, 9  ;;  %v11075_v52 = vld [vmem:[%s14127_s3 + $0x360] sm:$0xff]  }
 0x3d5   :  { %10624 = vmatprep.subr.bf16.mxu1 %v14139_v11 }
 0x3d8   :  { %10626 = vmatpush3.bf16.msra.mxu1 %v10625_v10  ;;  %v6648_v10 = vrot.slane %v13050_v0, 5 }
 0x3d9   :  { %10627 = vmatprep.subr.bf16.mxu1 %v14139_v11 }
 0x3da   :  { %v6649_v26 = vsel %vm12017_vm4, %v8923_v29, %v6648_v10  ;;  %v13080_v29 = vld [vmem:[#allocation2 + $0x34] sm:$0x1]  ;;  %v6603_v10 = vld [vmem:[#allocation2 + $0x30] sm:$0xe] }
 0x3db   :  { %v8955_v40 = vcombine.low %v6649_v26, %v6653_v3  ;;  %v6330_v3 = vld [vmem:[#allocation2 + $0x1c] sm:$0x1]  ;;  %v6600_v26 = vld [vmem:[#allocation2 + $0x18] sm:$0xe]  ;;  %v8928_v46 = vrot.slane %v6603_v10, 9  ;;  %v6668_v43 = vrot.slane %v13080_v29, 5 }
 0x3dc   :  { %10629 = vmatpush3.bf16.msra.mxu1 %v10628_v38  ;;  %v11072_v38 = vld [vmem:[%s14127_s3 + $0x348] sm:$0xff]   ;;  %v6395_v45 = vshll.u32 %v6330_v3, 16  ;;  %v8925_v6 = vrot.slane %v6600_v26, 9  ;;  %v6656_v54 = vrot.slane %v6330_v3, 5  ;;  %v13096_v10 = vld [vmem:[#allocation2 + $0x5c] sm:$0x1] }
 0x3dd   :  { %10630 = vmatprep.subr.bf16.mxu1 %v14139_v11  ;;  %v6660_v11 = vrot.slane %v6332_v28, 5  ;;  %v13104_v3 = vld [vmem:[#allocation2 + $0x58] sm:$0xe]  ;;  %v6607_v26 = vld [vmem:[#allocation2 + $0x60] sm:$0xe]  ;;  %v6680_v8 = vrot.slane %v13096_v10, 5 }
 0x3de   :  { %v13106_v22 = vrot.slane %v6395_v45, 5  ;;  %v8932_v47 = vrot.slane %v6607_v26, 9 }
 0x3e0   :  { %10632 = vmatpush3.bf16.msra.mxu1 %v10631_v13  ;;  %v11073_v13 = vld [vmem:[%s14127_s3 + $0x350] sm:$0xff]  }
 0x3e1   :  { %10291 = vmatprep.subr.bf16.mxu1 %v11071_v32 }
 0x3e3   :  { %10289 = vmatmul.mubr.msk.f32.vlgmr.msra.gmra.mrb[18].mxu1 %vm12828_vm8, %v14278_v2 }
 0x3e4   :  { %10292 = vmatpush3.bf16.msra.mxu1 %v11071_v32  ;;  %10307 = vmatprep.mubr.bf16.mxu1 %v8955_v40  ;;  %v6601_v32 = vld [vmem:[#allocation2 + $0x20] sm:$0xe]  ;;  %v13085_v40 = vld [vmem:[#allocation2 + $0x2c] sm:$0x1] }
 0x3e5   :  { %10293 = vmatprep.subr.bf16.mxu1 %v11072_v38  ;;  %v6664_v12 = vrot.slane %v13085_v40, 5 }
 0x3e8   :  { %10294 = vmatpush3.bf16.msra.mxu1 %v11072_v38  ;;  %v11077_v38 = vld [vmem:[%s14127_s3 + $0x370] sm:$0xff]  }
 0x3e9   :  { %10295 = vmatprep.subr.bf16.mxu1 %v11073_v13 }
 0x3ec   :  { %10296 = vmatpush3.bf16.msra.mxu1 %v11073_v13  ;;  %v6602_v13 = vld [vmem:[#allocation2 + $0x28] sm:$0xe] }
 0x3ed   :  { %10297 = vmatprep.subr.bf16.mxu1 %v11074_v25  ;;  %v8927_v59 = vrot.slane %v6602_v13, 9  ;;  %v6327_v13 = vld [vmem:[#allocation2 + $0x10] sm:$0xf] }
 0x3f0   :  { %10298 = vmatpush3.bf16.msra.mxu1 %v11074_v25  ;;  %v8926_v25 = vrot.slane %v6601_v32, 9  ;;  %v11078_v32 = vld [vmem:[%s14127_s3 + $0x378] sm:$0xff]  }
 0x3f1   :  { %10299 = vmatprep.subr.bf16.mxu1 %v11075_v52 }
 0x3f2   :  { %v6661_v28 = vsel %vm12017_vm4, %v8926_v25, %v6660_v11  ;;  %v6657_v11 = vsel %vm12017_vm4, %v8925_v6, %v6656_v54  ;;  %v13120_v25 = vld [vmem:[#allocation2 + $0x68] sm:$0xe]  ;;  %v13127_v54 = vld [vmem:[#allocation2 + $0x80] sm:$0xe] }
 0x3f3   :  { %v8956_v61 = vcombine.low %v6657_v11, %v6661_v28  ;;  %v6325_v6 = vld [vmem:[#allocation2 + $0x8] sm:$0xf]  ;;  %v6684_v28 = vrot.slane %v13098_v58, 5  ;;  %v13132_v11 = vld [vmem:[#allocation2 + $0x84] sm:$0x1]  ;;  %v8933_v15 = vrot.slane %v13120_v25, 9 }
 0x3f4   :  { %10300 = vmatpush3.bf16.msra.mxu1 %v11075_v52  ;;  %v13090_v52 = vld [vmem:[#allocation2 + $0x44] sm:$0x1]  ;;  %v6358_v37 = vshrl.u32 %v6325_v6, 16  ;;  %v6361_v19 = vshll.u32 %v6325_v6, 16  ;;  %v6700_v39 = vrot.slane %v13132_v11, 5 }
 0x3f5   :  { %10301 = vmatprep.subr.bf16.mxu1 %v11076_v48  ;;  %v6676_v45 = vrot.slane %v13090_v52, 5 }
 0x3f8   :  { %10302 = vmatpush3.bf16.msra.mxu1 %v11076_v48  ;;  %v6669_v48 = vsel %vm12017_vm4, %v8928_v46, %v6668_v43  ;;  %v6665_v46 = vsel %vm12017_vm4, %v8927_v59, %v6664_v12  ;;  %v8930_v43 = vrot.slane %v6605_v27, 9  ;;  %v6372_v59 = vshrl.u32 %v6327_v13, 16 }
 0x3f9   :  { %10303 = vmatprep.subr.bf16.mxu1 %v11077_v38  ;;  %v8957_v7 = vcombine.low %v6665_v46, %v6669_v48  ;;  %v6375_v27 = vshll.u32 %v6327_v13, 16  ;;  %v8931_v12 = vrot.slane %v13104_v3, 9  ;;  %v6329_v48 = vld [vmem:[#allocation2 + $0x18] sm:$0xf]  ;;  %v13138_v46 = vsel %vm12017_vm4, %v8929_v14, %v6672_v56  ;;  %v13142_v3 = vld [vmem:[#allocation2 + $0x94] sm:$0x1] }
 0x3fa   :  { %v6692_v13 = vrot.slane %v13113_v16, 5  ;;  %v6677_v26 = vsel %vm12017_vm4, %v8930_v43, %v6676_v45  ;;  %v11080_v14 = vld [vmem:[%s14127_s3 + $0x308] sm:$0xff]   ;;  %v6374_v56 = vrot.slane %v6372_v59, 4  ;;  %v6386_v62 = vshrl.u32 %v6329_v48, 16 }
 0x3fb   :  { %v6377_v25 = vrot.slane %v6375_v27, 5  ;;  %v6389_v33 = vshll.u32 %v6329_v48, 16  ;;  %v8936_v45 = vrot.slane %v13127_v54, 9  ;;  %v8937_v59 = vrot.slane %v6612_v17, 9 }
 0x3fc   :  { %10304 = vmatpush3.bf16.msra.mxu1 %v11077_v38  ;;  %v13125_v38 = vld [vmem:[#allocation2 + $0x7c] sm:$0x1]  ;;  %v13156_v6 = vsel %vm12017_vm4, %v8934_v23, %v6692_v13  ;;  %v6704_v27 = vrot.slane %v13134_v50, 5  ;;  %v8938_v48 = vrot.slane %v6613_v36, 9  ;;  %v6708_v63 = vrot.slane %v13142_v3, 5 }
 0x3fd   :  { %10305 = vmatprep.subr.bf16.mxu1 %v11078_v32  ;;  %v6696_v43 = vrot.slane %v13125_v38, 5  ;;  %v6378_v54 = vor.u32 %v6377_v25, %v6374_v56  ;;  %v6388_v23 = vrot.slane %v6386_v62, 4  ;;  %v6391_v13 = vrot.slane %v6389_v33, 5  ;;  %v6333_v25 = vld [vmem:[#allocation2 + $0x28] sm:$0xf] }
 0x3fe   :  { %v8958_v17 = vcombine.low %v13138_v46, %v6677_v26  ;;  %v13169_v36 = vsel %vm12017_vm4, %v8933_v15, %v6688_v49  ;;  %v6381_v33 = vshll.u32 %v13047_v35, 16  ;;  %v6335_v46 = vld [vmem:[#allocation2 + $0x30] sm:$0xf]  ;;  %v13188_v49 = vsel %vm12017_vm4, %v8938_v48, %v6708_v63  ;;  %v11082_v35 = vld [vmem:[%s14127_s3 + $0x318] sm:$0xff]   ;;  %v6339_v62 = vld [vmem:[#allocation2 + $0x40] sm:$0xf] }
 0x3ff   :  { %v13175_v56 = vsel %vm12017_vm4, %v8935_v18, %v6696_v43  ;;  %v6337_v18 = vld [vmem:[#allocation2 + $0x38] sm:$0xf]  ;;  %v6379_v26 = vrot.slane %v6378_v54, 4  ;;  %v6414_v43 = vshrl.u32 %v6333_v25, 16  ;;  %v6431_v48 = vshll.u32 %v6335_v46, 16 }
 0x400   :  { %10306 = vmatpush3.bf16.msra.mxu1 %v11078_v32  ;;  %v6685_v32 = vsel %vm12017_vm4, %v8932_v47, %v6684_v28  ;;  %v6360_v47 = vrot.slane %v6358_v37, 4  ;;  %v6363_v28 = vrot.slane %v6361_v19, 5  ;;  %v6403_v37 = vshll.u32 %v6331_v44, 16 }
 0x401   :  { %10323 = vmatprep.subr.bf16.mxu1 %v11079_v4  ;;  %v13184_v44 = vsel %vm12017_vm4, %v8937_v59, %v6704_v27  ;;  %v6428_v59 = vshrl.u32 %v6335_v46, 16  ;;  %v6383_v27 = vrot.slane %v6381_v33, 5  ;;  %v6442_v63 = vshrl.u32 %v6337_v18, 16  ;;  %v6343_v46 = vld [vmem:[#allocation2 + $0x60] sm:$0xf] }
 0x402   :  { %v6364_v15 = vor.u32 %v6363_v28, %v6360_v47  ;;  %v6445_v47 = vshll.u32 %v6337_v18, 16  ;;  %v6459_v54 = vshll.u32 %v6339_v62, 16 }
 0x403   :  { %10308 = vmatmul.mubr.bf16.vlgmr.msra.gmra.mrb[20].mxu1 %v8956_v61  ;;  %v11081_v61 = vld [vmem:[%s14127_s3 + $0x310] sm:$0xff]  }
 0x404   :  { %10311 = vmatprep.mubr.bf16.mxu1 %v8957_v7  ;;  %10324 = vmatpush3.bf16.msra.mxu1 %v11079_v4  ;;  %v6681_v7 = vsel %vm12017_vm4, %v8931_v12, %v6680_v8  ;;  %v13180_v8 = vsel %vm12017_vm4, %v8936_v45, %v6700_v39  ;;  %v6367_v12 = vshll.u32 %v13050_v0, 16  ;;  %v6392_v39 = vor.u32 %v6391_v13, %v6388_v23  ;;  %v6341_v23 = vld [vmem:[#allocation2 + $0x58] sm:$0xf] }
 0x405   :  { %10325 = vmatprep.subr.bf16.mxu1 %v11080_v14  ;;  %v8959_v19 = vcombine.low %v6681_v7, %v6685_v32  ;;  %v6405_v32 = vrot.slane %v6403_v37, 5  ;;  %v6417_v45 = vshll.u32 %v6333_v25, 16  ;;  %v8961_v28 = vcombine.low %v13175_v56, %v13180_v8 }
 0x406   :  { %v6365_v7 = vrot.slane %v6364_v15, 4  ;;  %v6456_v0 = vshrl.u32 %v6339_v62, 16  ;;  %v6384_v37 = vsel %vm11207_vm13, %v6379_v26, %v6383_v27  ;;  %v6416_v56 = vrot.slane %v6414_v43, 4  ;;  %v11084_v26 = vld [vmem:[%s14127_s3 + $0x328] sm:$0xff]  }
 0x407   :  { %v6419_v33 = vrot.slane %v6417_v45, 5  ;;  %v6430_v25 = vrot.slane %v6428_v59, 4  ;;  %v6433_v8 = vrot.slane %v6431_v48, 5  ;;  %v6444_v15 = vrot.slane %v6442_v63, 4  ;;  %v6345_v45 = vld [vmem:[#allocation2 + $0x68] sm:$0xf] }
 0x408   :  { %10326 = vmatpush3.bf16.msra.mxu1 %v11080_v14  ;;  %v6402_v14 = vrot.slane %v6400_v31, 4  ;;  %v11083_v31 = vld [vmem:[%s14127_s3 + $0x320] sm:$0xff]   ;;  %v6447_v18 = vrot.slane %v6445_v47, 5  ;;  %v6470_v62 = vshrl.u32 %v6341_v23, 16  ;;  %v6458_v13 = vrot.slane %v6456_v0, 4 }
 0x409   :  { %10327 = vmatprep.subr.bf16.mxu1 %v11081_v61  ;;  %v6473_v55 = vshll.u32 %v6341_v23, 16  ;;  %v6487_v43 = vshll.u32 %v6343_v46, 16  ;;  %v6420_v27 = vor.u32 %v6419_v33, %v6416_v56  ;;  %v6437_v48 = vshll.u32 %v13080_v29, 16  ;;  %v6347_v63 = vld [vmem:[#allocation2 + $0x70] sm:$0xf] }
 0x40a   :  { %v14280_v47 = vcombine.low %v13169_v36, %v13156_v6  ;;  %v6472_v0 = vrot.slane %v6470_v62, 4  ;;  %v11085_v29 = vld [vmem:[%s14127_s3 + $0x330] sm:$0xff]   ;;  %v6512_v6 = vshrl.u32 %v6347_v63, 16  ;;  %v6515_v36 = vshll.u32 %v6347_v63, 16 }
 0x40b   :  { %10312 = vmatmul.mubr.bf16.gmra.mrb[24].mxu1 %v8958_v17  ;;  %v6369_v17 = vrot.slane %v6367_v12, 5  ;;  %v6461_v12 = vrot.slane %v6459_v54, 5  ;;  %v6475_v23 = vrot.slane %v6473_v55, 5  ;;  %v6489_v56 = vrot.slane %v6487_v43, 5 }
 0x40c   :  { %10315 = vmatprep.mubr.bf16.mxu1 %v8959_v19  ;;  %10328 = vmatpush3.bf16.msra.mxu1 %v11081_v61  ;;  %v13203_v61 = vrot.slane %v6392_v39, 4  ;;  %v6406_v19 = vor.u32 %v6405_v32, %v6402_v14  ;;  %v6423_v14 = vshll.u32 %v13085_v40, 16  ;;  %v6484_v32 = vshrl.u32 %v6343_v46, 16 }
 0x40d   :  { %10329 = vmatprep.subr.bf16.mxu1 %v11082_v35  ;;  %v6370_v4 = vsel %vm11207_vm13, %v6365_v7, %v6369_v17  ;;  %v6448_v40 = vor.u32 %v6447_v18, %v6444_v15  ;;  %v6451_v7 = vshll.u32 %v13088_v5, 16  ;;  %v6462_v54 = vor.u32 %v6461_v12, %v6458_v13 }
 0x40e   :  { %v8971_v39 = vcombine.low %v6370_v4, %v6384_v37  ;;  %v13215_v59 = vrot.slane %v6406_v19, 4  ;;  %v6434_v4 = vor.u32 %v6433_v8, %v6430_v25  ;;  %v6498_v17 = vshrl.u32 %v6345_v45, 16  ;;  %v6351_v8 = vld [vmem:[#allocation2 + $0x80] sm:$0xf] }
 0x40f   :  { %v6501_v37 = vshll.u32 %v6345_v45, 16  ;;  %v6486_v19 = vrot.slane %v6484_v32, 4  ;;  %v6465_v55 = vshll.u32 %v13090_v52, 16  ;;  %v6439_v33 = vrot.slane %v6437_v48, 5 }
 0x410   :  { %10330 = vmatpush3.bf16.msra.mxu1 %v11082_v35  ;;  %v6398_v35 = vsel %vm11207_vm13, %v13203_v61, %v13106_v22  ;;  %v6412_v5 = vsel %vm11207_vm13, %v13215_v59, %v13108_v57  ;;  %v6435_v13 = vrot.slane %v6434_v4, 4  ;;  %v6449_v25 = vrot.slane %v6448_v40, 4  ;;  %v11086_v57 = vld [vmem:[%s14127_s3 + $0x338] sm:$0xff]   ;;  %v11088_v22 = vld [vmem:[%s14127_s3 + $0x388] sm:$0xff]  }
 0x411   :  { %10331 = vmatprep.subr.bf16.mxu1 %v11083_v31  ;;  %v6479_v46 = vshll.u32 %v13096_v10, 16  ;;  %v6463_v15 = vrot.slane %v6462_v54, 4  ;;  %v6476_v18 = vor.u32 %v6475_v23, %v6472_v0  ;;  %v6500_v62 = vrot.slane %v6498_v17, 4  ;;  %v6349_v10 = vld [vmem:[#allocation2 + $0x78] sm:$0xf] }
 0x412   :  { %v6503_v12 = vrot.slane %v6501_v37, 5  ;;  %v6453_v32 = vrot.slane %v6451_v7, 5  ;;  %v6514_v43 = vrot.slane %v6512_v6, 4  ;;  %v6517_v52 = vrot.slane %v6515_v36, 5  ;;  %v6353_v7 = vld [vmem:[#allocation2 + $0x88] sm:$0xf] }
 0x413   :  { %10316 = vmatmul.mubr.bf16.gmra.mrb[28].mxu1 %v14280_v47  ;;  %v6467_v59 = vrot.slane %v6465_v55, 5  ;;  %v14281_v48 = vcombine.low %v13184_v44, %v13188_v49  ;;  %v6440_v63 = vsel %vm11207_vm13, %v6435_v13, %v6439_v33  ;;  %v6481_v4 = vrot.slane %v6479_v46, 5  ;;  %v11087_v49 = vld [vmem:[%s14127_s3 + $0x380] sm:$0xff]   ;;  %v6355_v55 = vld [vmem:[#allocation2 + $0x90] sm:$0xf] }
 0x414   :  { %10319 = vmatprep.mubr.bf16.mxu1 %v8961_v28  ;;  %10332 = vmatpush3.bf16.msra.mxu1 %v11083_v31  ;;  %v6421_v28 = vrot.slane %v6420_v27, 4  ;;  %v6425_v31 = vrot.slane %v6423_v14, 5  ;;  %v6490_v14 = vor.u32 %v6489_v56, %v6486_v19  ;;  %v6540_v27 = vshrl.u32 %v6351_v8, 16 }
 0x415   :  { %10333 = vmatprep.subr.bf16.mxu1 %v11084_v26  ;;  %v6454_v47 = vsel %vm11207_vm13, %v6449_v25, %v6453_v32  ;;  %v6493_v40 = vshll.u32 %v13098_v58, 16  ;;  %v6468_v0 = vsel %vm11207_vm13, %v6463_v15, %v6467_v59  ;;  %v6477_v54 = vrot.slane %v6476_v18, 4  ;;  %v7083_v18 = vld [vmem:[#allocation2 + $0x18] sm:$0xf] }
 0x416   :  { %v6426_v45 = vsel %vm11207_vm13, %v6421_v28, %v6425_v31  ;;  %v6504_v23 = vor.u32 %v6503_v12, %v6500_v62  ;;  %v6507_v44 = vshll.u32 %v13111_v21, 16  ;;  %v6491_v17 = vrot.slane %v6490_v14, 4 }
 0x417   :  { %v6518_v37 = vor.u32 %v6517_v52, %v6514_v43  ;;  %v6526_v19 = vshrl.u32 %v6349_v10, 16  ;;  %v6529_v56 = vshll.u32 %v6349_v10, 16  ;;  %v6542_v58 = vrot.slane %v6540_v27, 4 }
 0x418   :  { %10334 = vmatpush3.bf16.msra.mxu1 %v11084_v26  ;;  %v6543_v26 = vshll.u32 %v6351_v8, 16  ;;  %v8972_v36 = vcombine.low %v6398_v35, %v6412_v5  ;;  %v8973_v21 = vcombine.low %v6426_v45, %v6440_v63  ;;  %v13255_v28 = vcombine.low %v6454_v47, %v6468_v0  ;;  %v7081_v8 = vld [vmem:[#allocation2 + $0x10] sm:$0xf] }
 0x419   :  { %10335 = vmatprep.subr.bf16.mxu1 %v11085_v29  ;;  %v6495_v31 = vrot.slane %v6493_v40, 5  ;;  %v6482_v13 = vsel %vm11207_vm13, %v6477_v54, %v6481_v4  ;;  %v6505_v33 = vrot.slane %v6504_v23, 4  ;;  %v6509_v25 = vrot.slane %v6507_v44, 5  ;;  %v7085_v4 = vld [vmem:[#allocation2 + $0x20] sm:$0xf] }
 0x41a   :  { %v6545_v6 = vrot.slane %v6543_v26, 5  ;;  %v6521_v46 = vshll.u32 %v13113_v16, 16  ;;  %v6528_v35 = vrot.slane %v6526_v19, 4  ;;  %v6531_v5 = vrot.slane %v6529_v56, 5  ;;  %v7087_v23 = vld [vmem:[#allocation2 + $0x28] sm:$0xf] }
 0x41b   :  { %10320 = vmatmul.mubr.bf16.gmra.mrb[32].mxu1 %v14281_v48  ;;  %v6496_v61 = vsel %vm11207_vm13, %v6491_v17, %v6495_v31  ;;  %v6535_v15 = vshll.u32 %v13125_v38, 16  ;;  %v6519_v62 = vrot.slane %v6518_v37, 4  ;;  %v6568_v16 = vshrl.u32 %v6355_v55, 16  ;;  %v11089_v38 = vld [vmem:[%s14127_s3 + $0x390] sm:$0xff]  }
 0x41c   :  { %10336 = vmatpush3.bf16.msra.mxu1 %v11085_v29  ;;  %10339 = vmatprep.mubr.bf16.mxu1 %v8971_v39  ;;  %v6554_v29 = vshrl.u32 %v6353_v7, 16  ;;  %v6557_v39 = vshll.u32 %v6353_v7, 16  ;;  %v6546_v12 = vor.u32 %v6545_v6, %v6542_v58  ;;  %v6571_v14 = vshll.u32 %v6355_v55, 16  ;;  %v13275_v17 = vld [vmem:[#allocation2 + $0x14] sm:$0x1] }
 0x41d   :  { %10337 = vmatprep.subr.bf16.mxu1 %v11086_v57  ;;  %v7114_v43 = vshrl.u32 %v7081_v8, 16  ;;  %v7117_v52 = vshll.u32 %v7081_v8, 16  ;;  %v8975_v45 = vcombine.low %v6482_v13, %v6496_v61  ;;  %v6523_v59 = vrot.slane %v6521_v46, 5  ;;  %v7089_v46 = vld [vmem:[#allocation2 + $0x30] sm:$0xf] }
 0x41e   :  { %v6559_v32 = vrot.slane %v6557_v39, 5  ;;  %v7128_v10 = vshrl.u32 %v7083_v18, 16  ;;  %v7131_v27 = vshll.u32 %v7083_v18, 16  ;;  %v6510_v26 = vsel %vm11207_vm13, %v6505_v33, %v6509_v25 }
 0x41f   :  { %v6532_v48 = vor.u32 %v6531_v5, %v6528_v35  ;;  %v6537_v63 = vrot.slane %v6535_v15, 5  ;;  %v6549_v47 = vshll.u32 %v13132_v11, 16  ;;  %v6524_v40 = vsel %vm11207_vm13, %v6519_v62, %v6523_v59  ;;  %v7091_v5 = vld [vmem:[#allocation2 + $0x38] sm:$0xf] }
 0x420   :  { %10338 = vmatpush3.bf16.msra.mxu1 %v11086_v57  ;;  %v6556_v57 = vrot.slane %v6554_v29, 4  ;;  %v6547_v7 = vrot.slane %v6546_v12, 4  ;;  %v6563_v54 = vshll.u32 %v13134_v50, 16  ;;  %v6570_v44 = vrot.slane %v6568_v16, 4  ;;  %v11090_v29 = vld [vmem:[%s14127_s3 + $0x398] sm:$0xff]  }
 0x421   :  { %10355 = vmatprep.subr.bf16.mxu1 %v11087_v49  ;;  %v7116_v37 = vrot.slane %v7114_v43, 4  ;;  %v7119_v19 = vrot.slane %v7117_v52, 5  ;;  %v7130_v56 = vrot.slane %v7128_v10, 4  ;;  %v7133_v58 = vrot.slane %v7131_v27, 5  ;;  %v13280_v50 = vld [vmem:[#allocation2 + $0x1c] sm:$0x1] }
 0x422   :  { %v6560_v0 = vor.u32 %v6559_v32, %v6556_v57  ;;  %v7142_v6 = vshrl.u32 %v7085_v4, 16  ;;  %v7145_v11 = vshll.u32 %v7085_v4, 16  ;;  %v8976_v39 = vcombine.low %v6510_v26, %v6524_v40  ;;  %v13297_v52 = vld [vmem:[#allocation2 + $0x24] sm:$0x1]  ;;  %v7093_v4 = vld [vmem:[#allocation2 + $0x40] sm:$0xf] }
 0x423   :  { %10340 = vmatmul.mubr.bf16.vlgmr.msra.gmra.mrb[20].mxu1 %v8972_v36  ;;  %v6551_v36 = vrot.slane %v6549_v47, 5  ;;  %v7159_v31 = vshll.u32 %v7087_v23, 16  ;;  %v6533_v55 = vrot.slane %v6532_v48, 4  ;;  %v13282_v13 = vrot.slane %v6563_v54, 5  ;;  %v13305_v47 = vld [vmem:[#allocation2 + $0x34] sm:$0x1] }
 0x424   :  { %10343 = vmatprep.mubr.bf16.mxu1 %v8973_v21  ;;  %10356 = vmatpush3.bf16.msra.mxu1 %v11087_v49  ;;  %v6573_v49 = vrot.slane %v6571_v14, 5  ;;  %v7156_v21 = vshrl.u32 %v7087_v23, 16  ;;  %v6577_v33 = vshll.u32 %v13142_v3, 16  ;;  %v7123_v25 = vshll.u32 %v13275_v17, 16  ;;  %v7095_v54 = vld [vmem:[#allocation2 + $0x48] sm:$0xf] }
 0x425   :  { %10357 = vmatprep.subr.bf16.mxu1 %v11088_v22  ;;  %v6552_v8 = vsel %vm11207_vm13, %v6547_v7, %v6551_v36  ;;  %v7120_v35 = vor.u32 %v7119_v19, %v7116_v37  ;;  %v7134_v15 = vor.u32 %v7133_v58, %v7130_v56  ;;  %v7137_v18 = vshll.u32 %v13280_v50, 16  ;;  %v11092_v23 = vld [vmem:[%s14127_s3 + $0x3a8] sm:$0xff]   ;;  %v7097_v56 = vld [vmem:[#allocation2 + $0x60] sm:$0xf] }
 0x426   :  { %v6574_v61 = vor.u32 %v6573_v49, %v6570_v44  ;;  %v7144_v62 = vrot.slane %v7142_v6, 4  ;;  %v7147_v3 = vrot.slane %v7145_v11, 5  ;;  %v7158_v12 = vrot.slane %v7156_v21, 4 }
 0x427   :  { %v7161_v57 = vrot.slane %v7159_v31, 5  ;;  %v7170_v32 = vshrl.u32 %v7089_v46, 16  ;;  %v7173_v16 = vshll.u32 %v7089_v46, 16  ;;  %v6538_v14 = vsel %vm11207_vm13, %v6533_v55, %v6537_v63  ;;  %v13314_v31 = vld [vmem:[#allocation2 + $0x3c] sm:$0x1] }
 0x428   :  { %10358 = vmatpush3.bf16.msra.mxu1 %v11088_v22  ;;  %v13289_v22 = vrot.slane %v6560_v0, 4  ;;  %v6579_v43 = vrot.slane %v6577_v33, 5  ;;  %v7184_v59 = vshrl.u32 %v7091_v5, 16  ;;  %v7187_v10 = vshll.u32 %v7091_v5, 16  ;;  %v13319_v46 = vld [vmem:[#allocation2 + $0x44] sm:$0x1] }
 0x429   :  { %10359 = vmatprep.subr.bf16.mxu1 %v11089_v38  ;;  %v8977_v27 = vcombine.low %v6538_v14, %v6552_v8  ;;  %v6575_v26 = vrot.slane %v6574_v61, 4  ;;  %v7125_v48 = vrot.slane %v7123_v25, 5  ;;  %v7121_v63 = vrot.slane %v7120_v35, 4 }
 0x42a   :  { %v7135_v40 = vrot.slane %v7134_v15, 4  ;;  %v7139_v7 = vrot.slane %v7137_v18, 5  ;;  %v7148_v0 = vor.u32 %v7147_v3, %v7144_v62  ;;  %v7162_v44 = vor.u32 %v7161_v57, %v7158_v12  ;;  %v7099_v18 = vld [vmem:[#allocation2 + $0x68] sm:$0xf] }
 0x42b   :  { %10344 = vmatmul.mubr.bf16.gmra.mrb[24].mxu1 %v13255_v28  ;;  %v11091_v28 = vld [vmem:[%s14127_s3 + $0x3a0] sm:$0xff]   ;;  %v7172_v37 = vrot.slane %v7170_v32, 4  ;;  %v7175_v19 = vrot.slane %v7173_v16, 5  ;;  %v7186_v58 = vrot.slane %v7184_v59, 4  ;;  %v7189_v6 = vrot.slane %v7187_v10, 5 }
 0x42c   :  { %10347 = vmatprep.mubr.bf16.mxu1 %v8975_v45  ;;  %10360 = vmatpush3.bf16.msra.mxu1 %v11089_v38  ;;  %v13299_v45 = vld [vmem:[#allocation2 + $0x2c] sm:$0x1]  ;;  %v6566_v38 = vsel %vm11207_vm13, %v13289_v22, %v13282_v13  ;;  %v7198_v11 = vshrl.u32 %v7093_v4, 16  ;;  %v6580_v36 = vsel %vm11207_vm13, %v6575_v26, %v6579_v43  ;;  %v7151_v21 = vshll.u32 %v13297_v52, 16  ;;  %v11093_v22 = vld [vmem:[%s14127_s3 + $0x3b0] sm:$0xff]  }
 0x42d   :  { %10361 = vmatprep.subr.bf16.mxu1 %v11090_v29  ;;  %v7165_v49 = vshll.u32 %v13299_v45, 16  ;;  %v7212_v55 = vshrl.u32 %v7095_v54, 16  ;;  %v7215_v13 = vshll.u32 %v7095_v54, 16  ;;  %v7126_v33 = vsel %vm11207_vm13, %v7121_v63, %v7125_v48 }
 0x42e   :  { %v7179_v25 = vshll.u32 %v13305_v47, 16  ;;  %v7226_v8 = vshrl.u32 %v7097_v56, 16  ;;  %v7140_v61 = vsel %vm11207_vm13, %v7135_v40, %v7139_v7  ;;  %v7149_v35 = vrot.slane %v7148_v0, 4  ;;  %v13331_v7 = vld [vmem:[#allocation2 + $0x4c] sm:$0x1] }
 0x42f   :  { %v7167_v5 = vrot.slane %v7165_v49, 5  ;;  %v7176_v15 = vor.u32 %v7175_v19, %v7172_v37  ;;  %v7163_v62 = vrot.slane %v7162_v44, 4  ;;  %v7190_v3 = vor.u32 %v7189_v6, %v7186_v58  ;;  %v7103_v49 = vld [vmem:[#allocation2 + $0x78] sm:$0xf]  ;;  %v13338_v58 = vld [vmem:[#allocation2 + $0x64] sm:$0x1] }
 0x430   :  { %10362 = vmatpush3.bf16.msra.mxu1 %v11090_v29  ;;  %v7201_v29 = vshll.u32 %v7093_v4, 16  ;;  %v7193_v57 = vshll.u32 %v13314_v31, 16  ;;  %v7207_v32 = vshll.u32 %v13319_v46, 16  ;;  %v7214_v16 = vrot.slane %v7212_v55, 4  ;;  %v11094_v4 = vld [vmem:[%s14127_s3 + $0x3b8] sm:$0xff]  }
 0x431   :  { %10363 = vmatprep.subr.bf16.mxu1 %v11091_v28  ;;  %v7217_v14 = vrot.slane %v7215_v13, 5  ;;  %v7228_v43 = vrot.slane %v7226_v8, 4  ;;  %v7240_v10 = vshrl.u32 %v7099_v18, 16  ;;  %v8978_v26 = vcombine.low %v6566_v38, %v6580_v36  ;;  %v13340_v6 = vld [vmem:[#allocation2 + $0x6c] sm:$0x1] }
 0x432   :  { %v7203_v12 = vrot.slane %v7201_v29, 5  ;;  %v9003_v48 = vcombine.low %v7126_v33, %v7140_v61  ;;  %v7153_v63 = vrot.slane %v7151_v21, 5  ;;  %v7177_v40 = vrot.slane %v7176_v15, 4  ;;  %v7105_v55 = vld [vmem:[#allocation2 + $0x80] sm:$0xf] }
 0x433   :  { %10348 = vmatmul.mubr.bf16.gmra.mrb[28].mxu1 %v8976_v39  ;;  %v7229_v39 = vshll.u32 %v7097_v56, 16  ;;  %v7168_v0 = vsel %vm11207_vm13, %v7163_v62, %v7167_v5  ;;  %v7191_v54 = vrot.slane %v7190_v3, 4  ;;  %v7221_v44 = vshll.u32 %v13331_v7, 16  ;;  %v11095_v33 = vld [vmem:[%s14127_s3 + $0x3c0] sm:$0xff]   ;;  %v7101_v8 = vld [vmem:[#allocation2 + $0x70] sm:$0xf] }
 0x434   :  { %10351 = vmatprep.mubr.bf16.mxu1 %v8977_v27  ;;  %10364 = vmatpush3.bf16.msra.mxu1 %v11091_v28  ;;  %v7200_v28 = vrot.slane %v7198_v11, 4  ;;  %v7243_v27 = vshll.u32 %v7099_v18, 16  ;;  %v7154_v38 = vsel %vm11207_vm13, %v7149_v35, %v7153_v63  ;;  %v7181_v37 = vrot.slane %v7179_v25, 5  ;;  %v7107_v18 = vld [vmem:[#allocation2 + $0x88] sm:$0xf] }
 0x435   :  { %10365 = vmatprep.subr.bf16.mxu1 %v11092_v23  ;;  %v7231_v59 = vrot.slane %v7229_v39, 5  ;;  %v7195_v19 = vrot.slane %v7193_v57, 5  ;;  %v7218_v56 = vor.u32 %v7217_v14, %v7214_v16  ;;  %v13342_v11 = vrot.slane %v7207_v32, 5 }
 0x436   :  { %v7242_v36 = vrot.slane %v7240_v10, 4  ;;  %v7245_v21 = vrot.slane %v7243_v27, 5  ;;  %v9004_v13 = vcombine.low %v7154_v38, %v7168_v0  ;;  %v7182_v25 = vsel %vm11207_vm13, %v7177_v40, %v7181_v37  ;;  %v7109_v40 = vld [vmem:[#allocation2 + $0x90] sm:$0xf]  ;;  %v13361_v37 = vld [vmem:[#allocation2 + $0x74] sm:$0x1] }
 0x437   :  { %v7232_v29 = vor.u32 %v7231_v59, %v7228_v43  ;;  %v7268_v39 = vshrl.u32 %v7103_v49, 16  ;;  %v7271_v61 = vshll.u32 %v7103_v49, 16  ;;  %v7223_v5 = vrot.slane %v7221_v44, 5  ;;  %v11096_v43 = vld [vmem:[%s14127_s3 + $0x3c8] sm:$0xff]   ;;  %v7111_v44 = vld [vmem:[#allocation2 + $0x98] sm:$0xf] }
 0x438   :  { %10366 = vmatpush3.bf16.msra.mxu1 %v11092_v23  ;;  %v7204_v23 = vor.u32 %v7203_v12, %v7200_v28  ;;  %v7235_v15 = vshll.u32 %v13338_v58, 16  ;;  %v7219_v62 = vrot.slane %v7218_v56, 4  ;;  %v7249_v3 = vshll.u32 %v13340_v6, 16 }
 0x439   :  { %10367 = vmatprep.subr.bf16.mxu1 %v11093_v22  ;;  %v7282_v28 = vshrl.u32 %v7105_v55, 16  ;;  %v7285_v12 = vshll.u32 %v7105_v55, 16  ;;  %v7233_v57 = vrot.slane %v7232_v29, 4  ;;  %v7246_v32 = vor.u32 %v7245_v21, %v7242_v36  ;;  %v13368_v36 = vld [vmem:[#allocation2 + $0x7c] sm:$0x1] }
 0x43a   :  { %v7205_v35 = vrot.slane %v7204_v23, 4  ;;  %v7254_v16 = vshrl.u32 %v7101_v8, 16  ;;  %v7257_v14 = vshll.u32 %v7101_v8, 16  ;;  %v7270_v59 = vrot.slane %v7268_v39, 4 }
 0x43b   :  { %10352 = vmatmul.mubr.bf16.gmra.mrb[32].mxu1 %v8978_v26  ;;  %v7273_v10 = vrot.slane %v7271_v61, 5  ;;  %v7296_v27 = vshrl.u32 %v7107_v18, 16  ;;  %v7299_v26 = vshll.u32 %v7107_v18, 16  ;;  %v7251_v0 = vrot.slane %v7249_v3, 5  ;;  %v13376_v3 = vld [vmem:[#allocation2 + $0x8c] sm:$0x1] }
 0x43c   :  { %10368 = vmatpush3.bf16.msra.mxu1 %v11093_v22  ;;  %10371 = vmatprep.mubr.bf16.mxu1 %v9003_v48  ;;  %v7196_v22 = vsel %vm11207_vm13, %v7191_v54, %v7195_v19  ;;  %v7210_v63 = vsel %vm11207_vm13, %v7205_v35, %v13342_v11  ;;  %v7284_v54 = vrot.slane %v7282_v28, 4  ;;  %v7287_v23 = vrot.slane %v7285_v12, 5  ;;  %v11097_v11 = vld [vmem:[%s14127_s3 + $0x3d0] sm:$0xff]   ;;  %v11098_v12 = vld [vmem:[%s14127_s3 + $0x3d8] sm:$0xff]  }
 0x43d   :  { %10369 = vmatprep.subr.bf16.mxu1 %v11094_v4  ;;  %v9005_v48 = vcombine.low %v7182_v25, %v7196_v22  ;;  %v7224_v49 = vsel %vm11207_vm13, %v7219_v62, %v7223_v5  ;;  %v7247_v38 = vrot.slane %v7246_v32, 4  ;;  %v7256_v19 = vrot.slane %v7254_v16, 4 }
 0x43e   :  { %v7259_v56 = vrot.slane %v7257_v14, 5  ;;  %v7274_v21 = vor.u32 %v7273_v10, %v7270_v59  ;;  %v7298_v55 = vrot.slane %v7296_v27, 4  ;;  %v7310_v25 = vshrl.u32 %v7109_v40, 16 }
 0x43f   :  { %v7313_v8 = vshll.u32 %v7109_v40, 16  ;;  %v7324_v39 = vshrl.u32 %v7111_v44, 16  ;;  %v7327_v61 = vshll.u32 %v7111_v44, 16  ;;  %v7263_v22 = vshll.u32 %v13361_v37, 16  ;;  %v13383_v40 = vld [vmem:[#allocation2 + $0x94] sm:$0x1] }
 0x440   :  { %10370 = vmatpush3.bf16.msra.mxu1 %v11094_v4  ;;  %v7237_v4 = vrot.slane %v7235_v15, 5  ;;  %v7288_v35 = vor.u32 %v7287_v23, %v7284_v54  ;;  %v9006_v5 = vcombine.low %v7210_v63, %v7224_v49  ;;  %v7252_v15 = vsel %vm11207_vm13, %v7247_v38, %v7251_v0  ;;  %v11099_v0 = vld [vmem:[%s14127_s3 + $0x3e0] sm:$0xff]   ;;  %v13388_v44 = vld [vmem:[#allocation2 + $0x9c] sm:$0x1] }
 0x441   :  { %10387 = vmatprep.subr.bf16.mxu1 %v11095_v33  ;;  %v7260_v18 = vor.u32 %v7259_v56, %v7256_v19  ;;  %v7277_v62 = vshll.u32 %v13368_v36, 16  ;;  %v7312_v14 = vrot.slane %v7310_v25, 4  ;;  %v7326_v59 = vrot.slane %v7324_v39, 4  ;;  %v11100_v39 = vld [vmem:[%s14127_s3 + $0x3e8] sm:$0xff]  }
 0x442   :  { %v7238_v29 = vsel %vm11207_vm13, %v7233_v57, %v7237_v4  ;;  %v7275_v57 = vrot.slane %v7274_v21, 4  ;;  %v7329_v10 = vrot.slane %v7327_v61, 5  ;;  %v7289_v27 = vrot.slane %v7288_v35, 4 }
 0x443   :  { %10372 = vmatmul.mubr.bf16.vlgmr.msra.gmra.mrb[20].mxu1 %v9004_v13  ;;  %v7301_v13 = vrot.slane %v7299_v26, 5  ;;  %v9007_v28 = vcombine.low %v7238_v29, %v7252_v15  ;;  %v7305_v26 = vshll.u32 %v13376_v3, 16  ;;  %v7279_v63 = vrot.slane %v7277_v62, 5  ;;  %v7548_v15 = vld [vmem:[#allocation2 + $0x18] sm:$0xe] }
 0x444   :  { %10375 = vmatprep.mubr.bf16.mxu1 %v9005_v48  ;;  %10388 = vmatpush3.bf16.msra.mxu1 %v11095_v33  ;;  %v13370_v33 = vld [vmem:[#allocation2 + $0x84] sm:$0x1]  ;;  %v7261_v48 = vrot.slane %v7260_v18, 4  ;;  %v7265_v4 = vrot.slane %v7263_v22, 5  ;;  %v7330_v19 = vor.u32 %v7329_v10, %v7326_v59  ;;  %v7333_v56 = vshll.u32 %v13388_v44, 16 }
 0x445   :  { %10389 = vmatprep.subr.bf16.mxu1 %v11096_v43  ;;  %v7291_v32 = vshll.u32 %v13370_v33, 16  ;;  %v7302_v16 = vor.u32 %v7301_v13, %v7298_v55  ;;  %v7280_v49 = vsel %vm11207_vm13, %v7275_v57, %v7279_v63  ;;  %v7307_v29 = vrot.slane %v7305_v26, 5  ;;  %v7547_v13 = vld [vmem:[#allocation2 + $0x10] sm:$0xe]  ;;  %v7549_v26 = vld [vmem:[#allocation2 + $0x20] sm:$0xe] }
 0x446   :  { %v7266_v21 = vsel %vm11207_vm13, %v7261_v48, %v7265_v4  ;;  %v7319_v55 = vshll.u32 %v13383_v40, 16  ;;  %v7331_v35 = vrot.slane %v7330_v19, 4  ;;  %v9019_v18 = vrot.slane %v7547_v13, 9  ;;  %v7551_v59 = vld [vmem:[#allocation2 + $0x30] sm:$0xe] }
 0x447   :  { %v7293_v54 = vrot.slane %v7291_v32, 5  ;;  %v7303_v23 = vrot.slane %v7302_v16, 4  ;;  %v9008_v25 = vcombine.low %v7266_v21, %v7280_v49  ;;  %v7597_v62 = vrot.slane %v13275_v17, 5  ;;  %v7552_v4 = vld [vmem:[#allocation2 + $0x38] sm:$0xe] }
 0x448   :  { %10390 = vmatpush3.bf16.msra.mxu1 %v11096_v43  ;;  %v7315_v43 = vrot.slane %v7313_v8, 5  ;;  %v9020_v57 = vrot.slane %v7548_v15, 9  ;;  %v7601_v32 = vrot.slane %v13280_v50, 5  ;;  %v11102_v50 = vld [vmem:[%s14127_s3 + $0x3f8] sm:$0xff]   ;;  %v7609_v53 = vrot.slane %v13299_v45, 5 }
 0x449   :  { %10391 = vmatprep.subr.bf16.mxu1 %v11097_v11  ;;  %v7308_v8 = vsel %vm11207_vm13, %v7303_v23, %v7307_v29  ;;  %v7598_v17 = vsel %vm12017_vm4, %v9019_v18, %v7597_v62  ;;  %v9021_v23 = vrot.slane %v7549_v26, 9  ;;  %v7605_v49 = vrot.slane %v13297_v52, 5  ;;  %v7554_v29 = vld [vmem:[#allocation2 + $0x48] sm:$0xe]  ;;  %v7555_v21 = vld [vmem:[#allocation2 + $0x60] sm:$0xe] }
 0x44a   :  { %v7316_v38 = vor.u32 %v7315_v43, %v7312_v14  ;;  %v7550_v43 = vld [vmem:[#allocation2 + $0x28] sm:$0xe]  ;;  %v7617_v19 = vrot.slane %v13314_v31, 5  ;;  %v7633_v18 = vrot.slane %v13340_v6, 5  ;;  %v7641_v6 = vrot.slane %v13368_v36, 5 }
 0x44b   :  { %10376 = vmatmul.mubr.bf16.gmra.mrb[24].mxu1 %v9006_v5  ;;  %v7335_v5 = vrot.slane %v7333_v56, 5  ;;  %v9022_v63 = vrot.slane %v7550_v43, 9  ;;  %v7649_v26 = vrot.slane %v13376_v3, 5  ;;  %v7562_v36 = vld [vmem:[#allocation2 + $0x98] sm:$0xe] }
 0x44c   :  { %10379 = vmatprep.mubr.bf16.mxu1 %v9007_v28  ;;  %10392 = vmatpush3.bf16.msra.mxu1 %v11097_v11  ;;  %v7294_v11 = vsel %vm11207_vm13, %v7289_v27, %v7293_v54  ;;  %v7317_v22 = vrot.slane %v7316_v38, 4  ;;  %v7321_v28 = vrot.slane %v7319_v55, 5  ;;  %v7602_v27 = vsel %vm12017_vm4, %v9020_v57, %v7601_v32 }
 0x44d   :  { %10393 = vmatprep.subr.bf16.mxu1 %v11098_v12  ;;  %v9009_v61 = vcombine.low %v7294_v11, %v7308_v8  ;;  %v7336_v14 = vsel %vm11207_vm13, %v7331_v35, %v7335_v5  ;;  %v9051_v48 = vcombine.low %v7598_v17, %v7602_v27  ;;  %v7613_v54 = vrot.slane %v13305_v47, 5  ;;  %v7553_v11 = vld [vmem:[#allocation2 + $0x40] sm:$0xe]  ;;  %v7560_v17 = vld [vmem:[#allocation2 + $0x88] sm:$0xe] }
 0x44e   :  { %v7322_v16 = vsel %vm11207_vm13, %v7317_v22, %v7321_v28  ;;  %v9024_v38 = vrot.slane %v7552_v4, 9  ;;  %v7610_v56 = vsel %vm12017_vm4, %v9022_v63, %v7609_v53  ;;  %v7606_v47 = vsel %vm12017_vm4, %v9021_v23, %v7605_v49  ;;  %v7556_v22 = vld [vmem:[#allocation2 + $0x68] sm:$0xe]  ;;  %v7561_v63 = vld [vmem:[#allocation2 + $0x90] sm:$0xe] }
 0x44f   :  { %v9010_v10 = vcombine.low %v7322_v16, %v7336_v14  ;;  %v9052_v55 = vcombine.low %v7606_v47, %v7610_v56  ;;  %v9025_v13 = vrot.slane %v7553_v11, 9  ;;  %v7621_v8 = vrot.slane %v13319_v46, 5 }
 0x450   :  { %10394 = vmatpush3.bf16.msra.mxu1 %v11098_v12  ;;  %v11101_v12 = vld [vmem:[%s14127_s3 + $0x3f0] sm:$0xff]   ;;  %v7618_v52 = vsel %vm12017_vm4, %v9024_v38, %v7617_v19  ;;  %v9027_v35 = vrot.slane %v7555_v21, 9  ;;  %v7629_v5 = vrot.slane %v13338_v58, 5  ;;  %v9028_v15 = vrot.slane %v7556_v22, 9 }
 0x451   :  { %10395 = vmatprep.subr.bf16.mxu1 %v11099_v0  ;;  %v7622_v62 = vsel %vm12017_vm4, %v9025_v13, %v7621_v8  ;;  %v7557_v58 = vld [vmem:[#allocation2 + $0x70] sm:$0xe]  ;;  %v7637_v27 = vrot.slane %v13361_v37, 5  ;;  %v7653_v23 = vrot.slane %v13383_v40, 5  ;;  %v9034_v3 = vrot.slane %v7562_v36, 9 }
 0x452   :  { %v7630_v46 = vsel %vm12017_vm4, %v9027_v35, %v7629_v5  ;;  %v7634_v32 = vsel %vm12017_vm4, %v9028_v15, %v7633_v18  ;;  %v7657_v49 = vrot.slane %v13388_v44, 5 }
 0x453   :  { %10380 = vmatmul.mubr.bf16.gmra.mrb[28].mxu1 %v9008_v25  ;;  %v14282_v25 = vmov 0.0|0.0   ;;  %v9055_v16 = vcombine.low %v7630_v46, %v7634_v32 }
 0x454   :  { %10383 = vmatprep.mubr.bf16.mxu1 %v9009_v61  ;;  %10396 = vmatpush3.bf16.msra.mxu1 %v11099_v0  ;;  %v9023_v0 = vrot.slane %v7551_v59, 9  ;;  %v7625_v61 = vrot.slane %v13331_v7, 5  ;;  %v7559_v7 = vld [vmem:[#allocation2 + $0x80] sm:$0xe]  ;;  %v7645_v59 = vrot.slane %v13370_v33, 5  ;;  %v7658_v19 = vsel %vm12017_vm4, %v9034_v3, %v7657_v49 }
 0x455   :  { %10397 = vmatprep.subr.bf16.mxu1 %v11100_v39  ;;  %v9031_v43 = vrot.slane %v7559_v7, 9 }
 0x456   :  { %v7614_v45 = vsel %vm12017_vm4, %v9023_v0, %v7613_v54  ;;  %v9033_v54 = vrot.slane %v7561_v63, 9 }
 0x457   :  { %v9053_v31 = vcombine.low %v7614_v45, %v7618_v52  ;;  %v7646_v53 = vsel %vm12017_vm4, %v9031_v43, %v7645_v59 }
 0x458   :  { %10398 = vmatpush3.bf16.msra.mxu1 %v11100_v39  ;;  %v9026_v39 = vrot.slane %v7554_v29, 9  ;;  %v7654_v38 = vsel %vm12017_vm4, %v9033_v54, %v7653_v23 }
 0x459   :  { %10399 = vmatprep.subr.bf16.mxu1 %v11101_v12  ;;  %v9058_v56 = vcombine.low %v7654_v38, %v7658_v19 }
 0x45a   :  { %v7626_v28 = vsel %vm12017_vm4, %v9026_v39, %v7625_v61 }
 0x45b   :  { %10384 = vmatmul.mubr.bf16.gmra.mrb[32].mxu1 %v9010_v10  ;;  %v9054_v57 = vcombine.low %v7622_v62, %v7626_v28  ;;  %v9029_v10 = vrot.slane %v7557_v58, 9 }
 0x45c   :  { %10400 = vmatpush3.bf16.msra.mxu1 %v11101_v12  ;;  %10403 = vmatprep.mubr.bf16.mxu1 %v9051_v48  ;;  %v7558_v12 = vld [vmem:[#allocation2 + $0x78] sm:$0xe] }
 0x45d   :  { %10401 = vmatprep.subr.bf16.mxu1 %v11102_v50  ;;  %v9030_v14 = vrot.slane %v7558_v12, 9  ;;  %v7638_v4 = vsel %vm12017_vm4, %v9029_v10, %v7637_v27 }
 0x45f   :  { %v7642_v48 = vsel %vm12017_vm4, %v9030_v14, %v7641_v6 }
 0x460   :  { %10402 = vmatpush3.bf16.msra.mxu1 %v11102_v50  ;;  %v9032_v50 = vrot.slane %v7560_v17, 9  ;;  %v9056_v0 = vcombine.low %v7638_v4, %v7642_v48 }
 0x461   :  { %10633 = vmatprep.subr.bf16.mxu1 %v14282_v25 }
 0x462   :  { %v7650_v33 = vsel %vm12017_vm4, %v9032_v50, %v7649_v26 }
 0x463   :  { %10404 = vmatmul.mubr.bf16.vlgmr.msra.gmra.mrb[20].mxu1 %v9052_v55  ;;  %v9057_v37 = vcombine.low %v7646_v53, %v7650_v33 }
 0x464   :  { %10407 = vmatprep.mubr.bf16.mxu1 %v9053_v31 }
 0x46b   :  { %10408 = vmatmul.mubr.bf16.gmra.mrb[24].mxu1 %v9054_v57 }
 0x46c   :  { %10411 = vmatprep.mubr.bf16.mxu1 %v9055_v16 }
 0x473   :  { %10412 = vmatmul.mubr.bf16.gmra.mrb[28].mxu1 %v9056_v0 }
 0x474   :  { %10415 = vmatprep.mubr.bf16.mxu1 %v9057_v37 }
 0x47b   :  { %10416 = vmatmul.mubr.bf16.gmra.mrb[32].mxu1 %v9058_v56 }
 0x47c   :  { %10451 = vmatprep.mubr.msk.f32.mxu1 %vm11109_vm5, %v14279_v41 }
 0x536   :  { %v13464_v11 = vpop.f32.mrb[20].mxu1 }
 0x537   :  { %14283 = vst [vmem:[#allocation45_spill] sm:$0xff] %v13464_v11  ;;  %v13466_v45 = vpop.f32.mrb[21].mxu1  ;;  %v13472_v44 = vmul.f32 %v13464_v11, %v13464_v11 }
 0x538   :  { %v13468_v40 = vpop.f32.mrb[22].mxu1  ;;  %v7940_v21 = vmul.f32 %v13466_v45, %v13466_v45 }
 0x539   :  { %14284 = vst [vmem:[#allocation46_spill] sm:$0xff] %v13468_v40  ;;  %v10637_v29 = vpack.c.bf16 %v13468_v40, %v13464_v11  ;;  %v13478_v60 = vmul.f32 %v13468_v40, %v13468_v40  ;;  %v13480_v47 = vpop.f32.mrb[23].mxu1  ;;  %v14339_v40 = vld [vmem:[#allocation17_spill] sm:$0xff] }
 0x53a   :  { %14285 = vst [vmem:[#allocation47_spill] sm:$0xff] %v13480_v47  ;;  %v10634_v55 = vpack.c.bf16 %v13480_v47, %v13466_v45  ;;  %v7941_v52 = vmul.f32 %v13480_v47, %v13480_v47 }
 0x53b   :  { %v10661_v13 = vpack.c.bf16 %v13478_v60, %v13472_v44 }
 0x53c   :  { %v10658_v31 = vpack.c.bf16 %v7941_v52, %v7940_v21  ;;  %10635 = vmatpush3.bf16.msra.mxu1 %v10634_v55 }
 0x53d   :  { %10636 = vmatprep.subr.bf16.mxu1 %v14282_v25 }
 0x53e   :  { %v13491_v8 = vpop.f32.mrb[24].mxu1 }
 0x53f   :  { %14286 = vst [vmem:[#allocation48_spill] sm:$0xff] %v13491_v8  ;;  %v13493_v39 = vpop.f32.mrb[25].mxu1  ;;  %v7946_v22 = vmul.f32 %v13491_v8, %v13491_v8 }
 0x540   :  { %14287 = vst [vmem:[#allocation49_spill] sm:$0xff] %v13493_v39  ;;  %v13495_v61 = vpop.f32.mrb[26].mxu1  ;;  %10638 = vmatpush3.bf16.msra.mxu1 %v10637_v29  ;;  %v7944_v18 = vmul.f32 %v13493_v39, %v13493_v39 }
 0x541   :  { %14288 = vst [vmem:[#allocation50_spill] sm:$0xff] %v13495_v61  ;;  %v10643_v35 = vpack.c.bf16 %v13495_v61, %v13491_v8  ;;  %v7947_v5 = vmul.f32 %v13495_v61, %v13495_v61  ;;  %v13503_v15 = vpop.f32.mrb[27].mxu1  ;;  %10639 = vmatprep.subr.bf16.mxu1 %v14282_v25 }
 0x542   :  { %14289 = vst [vmem:[#allocation51_spill] sm:$0xff] %v13503_v15  ;;  %v10640_v62 = vpack.c.bf16 %v13503_v15, %v13493_v39  ;;  %v7945_v28 = vmul.f32 %v13503_v15, %v13503_v15  ;;  %v14337_v15 = vld [vmem:[#allocation18_spill] sm:$0xff]  ;;  %v14338_v39 = vld [vmem:[#allocation15_spill] sm:$0xff] }
 0x543   :  { %v10667_v46 = vpack.c.bf16 %v7947_v5, %v7946_v22  ;;  %v14298_v5 = vld [vmem:[#allocation19_spill] sm:$0xff] }
 0x544   :  { %v10664_v12 = vpack.c.bf16 %v7945_v28, %v7944_v18  ;;  %10641 = vmatpush3.bf16.msra.mxu1 %v10640_v62  ;;  %v14299_v62 = vld [vmem:[#allocation20_spill] sm:$0xff] }
 0x545   :  { %10642 = vmatprep.subr.bf16.mxu1 %v14282_v25 }
 0x546   :  { %v13513_v7 = vpop.f32.mrb[28].mxu1 }
 0x547   :  { %14290 = vst [vmem:[#allocation52_spill] sm:$0xff] %v13513_v7  ;;  %v13515_v57 = vpop.f32.mrb[29].mxu1  ;;  %v7950_v58 = vmul.f32 %v13513_v7, %v13513_v7 }
 0x548   :  { %14291 = vst [vmem:[#allocation53_spill] sm:$0xff] %v13515_v57  ;;  %v13517_v32 = vpop.f32.mrb[30].mxu1  ;;  %10644 = vmatpush3.bf16.msra.mxu1 %v10643_v35  ;;  %v7948_v17 = vmul.f32 %v13515_v57, %v13515_v57 }
 0x549   :  { %14292 = vst [vmem:[#allocation54_spill] sm:$0xff] %v13517_v32  ;;  %v10649_v16 = vpack.c.bf16 %v13517_v32, %v13513_v7  ;;  %v7951_v14 = vmul.f32 %v13517_v32, %v13517_v32  ;;  %v13525_v6 = vpop.f32.mrb[31].mxu1  ;;  %10645 = vmatprep.subr.bf16.mxu1 %v14282_v25 }
 0x54a   :  { %14293 = vst [vmem:[#allocation55_spill] sm:$0xff] %v13525_v6  ;;  %v10646_v43 = vpack.c.bf16 %v13525_v6, %v13515_v57  ;;  %v7949_v59 = vmul.f32 %v13525_v6, %v13525_v6 }
 0x54b   :  { %v10673_v10 = vpack.c.bf16 %v7951_v14, %v7950_v58  ;;  %v14301_v58 = vld [vmem:[#allocation24_spill] sm:$0xff]  ;;  %v14302_v14 = vld [vmem:[#allocation21_spill] sm:$0xff] }
 0x54c   :  { %v10670_v27 = vpack.c.bf16 %v7949_v59, %v7948_v17  ;;  %10647 = vmatpush3.bf16.msra.mxu1 %v10646_v43  ;;  %v14303_v43 = vld [vmem:[#allocation23_spill] sm:$0xff] }
 0x54d   :  { %10648 = vmatprep.subr.bf16.mxu1 %v14282_v25  ;;  %v14323_v59 = vld [vmem:[#allocation43_spill] sm:$0xff] }
 0x54e   :  { %v13535_v50 = vpop.f32.mrb[32].mxu1 }
 0x54f   :  { %14294 = vst [vmem:[#allocation56_spill] sm:$0xff] %v13535_v50  ;;  %v13537_v26 = vpop.f32.mrb[33].mxu1  ;;  %v7954_v63 = vmul.f32 %v13535_v50, %v13535_v50 }
 0x550   :  { %14295 = vst [vmem:[#allocation57_spill] sm:$0xff] %v13537_v26  ;;  %v13539_v48 = vpop.f32.mrb[34].mxu1  ;;  %10650 = vmatpush3.bf16.msra.mxu1 %v10649_v16  ;;  %v7952_v0 = vmul.f32 %v13537_v26, %v13537_v26 }
 0x551   :  { %14296 = vst [vmem:[#allocation58_spill] sm:$0xff] %v13539_v48  ;;  %v10655_v53 = vpack.c.bf16 %v13539_v48, %v13535_v50  ;;  %v7955_v36 = vmul.f32 %v13539_v48, %v13539_v48  ;;  %v13547_v4 = vpop.f32.mrb[35].mxu1  ;;  %10651 = vmatprep.subr.bf16.mxu1 %v14282_v25  ;;  %v14326_v50 = vld [vmem:[#allocation3_spill] sm:$0xff] }
 0x552   :  { %14297 = vst [vmem:[#allocation59_spill] sm:$0xff] %v13547_v4  ;;  %v10652_v33 = vpack.c.bf16 %v13547_v4, %v13537_v26  ;;  %v7953_v54 = vmul.f32 %v13547_v4, %v13547_v4  ;;  %v14324_v26 = vld [vmem:[#allocation4_spill] sm:$0xff]  ;;  %v14325_v4 = vld [vmem:[#allocation6_spill] sm:$0xff] }
 0x553   :  { %v10679_v37 = vpack.c.bf16 %v7955_v36, %v7954_v63  ;;  %v14305_v63 = vld [vmem:[#allocation28_spill] sm:$0xff]  ;;  %v14306_v36 = vld [vmem:[#allocation25_spill] sm:$0xff] }
 0x554   :  { %v10676_v23 = vpack.c.bf16 %v7953_v54, %v7952_v0  ;;  %10653 = vmatpush3.bf16.msra.mxu1 %v10652_v33  ;;  %v14307_v33 = vld [vmem:[#allocation27_spill] sm:$0xff]  ;;  %v14314_v54 = vld [vmem:[#allocation33_spill] sm:$0xff]  ;;  %v14320_v0 = vld [vmem:[#allocation42_spill] sm:$0xff] }
 0x555   :  { %10654 = vmatprep.subr.bf16.mxu1 %v14282_v25 }
 0x558   :  { %10656 = vmatpush3.bf16.msra.mxu1 %v10655_v53  ;;  %v14321_v53 = vld [vmem:[#allocation44_spill] sm:$0xff] }
 0x559   :  { %10657 = vmatprep.subr.bf16.mxu1 %v14282_v25 }
 0x55b   :  { %10452 = vmatmul.mubr.msk.f32.vlgmr.msra.gmra.mrb[16].mxu1 %vm12828_vm8, %v14278_v2 }
 0x55c   :  { %10659 = vmatpush3.bf16.msra.mxu1 %v10658_v31  ;;  %10486 = vmatprep.mubr.msk.f32.mxu1 %vm11109_vm5, %v14279_v41  ;;  %v11112_v41 = vmov 1966171168  }
 0x55d   :  { %10660 = vmatprep.subr.bf16.mxu1 %v14282_v25  ;;  %v8054_v3 = vunpack.c.l.s4 %v11112_v41  ;;  %v14309_v41 = vld [vmem:[#allocation32_spill] sm:$0xff] }
 0x55f   :  { %v8055_v49 = vunpack.c.0.s8 %v8054_v3  ;;  %v14316_v3 = vld [vmem:[#allocation38_spill] sm:$0xff] }
 0x560   :  { %10662 = vmatpush3.bf16.msra.mxu1 %v10661_v13 }
 0x561   :  { %10663 = vmatprep.subr.bf16.mxu1 %v14282_v25  ;;  %v13574_v38 = vsub.s32 %v8055_v49, %v12785_v1  ;;  %v14310_v49 = vld [vmem:[#allocation29_spill] sm:$0xff] }
 0x564   :  { %10665 = vmatpush3.bf16.msra.mxu1 %v10664_v12 }
 0x565   :  { %10666 = vmatprep.subr.bf16.mxu1 %v14282_v25 }
 0x568   :  { %10668 = vmatpush3.bf16.msra.mxu1 %v10667_v46  ;;  %v14300_v46 = vld [vmem:[#allocation22_spill] sm:$0xff] }
 0x569   :  { %10669 = vmatprep.subr.bf16.mxu1 %v14282_v25 }
 0x56c   :  { %10671 = vmatpush3.bf16.msra.mxu1 %v10670_v27  ;;  %v14322_v27 = vld [vmem:[#allocation41_spill] sm:$0xff] }
 0x56d   :  { %10672 = vmatprep.subr.bf16.mxu1 %v14282_v25 }
 0x570   :  { %10674 = vmatpush3.bf16.msra.mxu1 %v10673_v10  ;;  %v14304_v10 = vld [vmem:[#allocation26_spill] sm:$0xff] }
 0x571   :  { %10675 = vmatprep.subr.bf16.mxu1 %v14282_v25 }
 0x574   :  { %10677 = vmatpush3.bf16.msra.mxu1 %v10676_v23  ;;  %v14315_v23 = vld [vmem:[#allocation35_spill] sm:$0xff] }
 0x575   :  { %10678 = vmatprep.subr.bf16.mxu1 %v14282_v25  ;;  %v13579_v25 = vsub.s32 0, %v12785_v1 }
 0x578   :  { %10680 = vmatpush3.bf16.msra.mxu1 %v10679_v37  ;;  %v14308_v37 = vld [vmem:[#allocation30_spill] sm:$0xff] }
 0x57b   :  { %10487 = vmatmul.mubr.msk.f32.vlgmr.msra.gmra.mrb[18].mxu1 %vm12828_vm8, %v14278_v2 }
 0x62e   :  { %v7935_v19 = vpop.f32.mrb[16].mxu1 }
 0x62f   :  { %v8045_v56 = vmul.f32 0.00390625, %v7935_v19  ;;  %v10453_v44 = vpop.f32.mrb[17].mxu1  ;;  %v14317_v19 = vld [vmem:[#allocation40_spill] sm:$0xff] }
 0x630   :  { %v14311_v44 = vld [vmem:[#allocation31_spill] sm:$0xff] }
 0x631   :  { %v8059_v29 = vrot.slane %v8045_v56, %v13574_v38  ;;  %v8047_v12 = vmul.f32 %v8045_v56, %v8045_v56  ;;  %v14327_v56 = vld [vmem:[#allocation5_spill] sm:$0xff] }
 0x633   :  { %v8060_v60 = vcombine.high %v8059_v29, %v8059_v29  ;;  %v8067_v21 = vrot.slane %v8059_v29, %v13574_v38  ;;  %v14318_v29 = vld [vmem:[#allocation37_spill] sm:$0xff] }
 0x635   :  { %v8074_v20 = vrot.slane %v8060_v60, %v13574_v38  ;;  %v13583_v2 = vrot.slane %v8067_v21, %v13579_v25  ;;  %v14312_v60 = vld [vmem:[#allocation34_spill] sm:$0xff]  ;;  %v14319_v21 = vld [vmem:[#allocation39_spill] sm:$0xff] }
 0x637   :  { %v13586_v55 = vrot.slane %v8074_v20, %v13579_v25  ;;  %v14313_v20 = vld [vmem:[#allocation36_spill] sm:$0xff]  ;;  %v8134_v22 = vsub.f32 %v14324_v26, %v13583_v2  ;;  %v8135_v17 = vsub.f32 %v14325_v4, %v13583_v2  ;;  %v8136_v16 = vsub.f32 %v14326_v50, %v13583_v2  ;;  %v14330_v26 = vld [vmem:[#allocation7_spill] sm:$0xff]  ;;  %v14331_v4 = vld [vmem:[#allocation9_spill] sm:$0xff] }
 0x638   :  { %v8141_v48 = vsub.f32 %v14331_v4, %v13583_v2  ;;  %v14332_v50 = vld [vmem:[#allocation12_spill] sm:$0xff] }
 0x639   :  { %v8142_v32 = vsub.f32 %v14332_v50, %v13586_v55  ;;  %v8147_v50 = vsub.f32 %v14337_v15, %v13586_v55 }
 0x64e   :  { %v8022_v1 = vpop.f32.mrb[18].mxu1 }
 0x64f   :  { %v8046_v31 = vmul.f32 0.00390625, %v8022_v1  ;;  %v10488_v13 = vpop.f32.mrb[19].mxu1  ;;  %v8137_v1 = vsub.f32 %v14327_v56, %v13583_v2  ;;  %v14333_v56 = vld [vmem:[#allocation14_spill] sm:$0xff] }
 0x650   :  { %v14328_v13 = vld [vmem:[#allocation8_spill] sm:$0xff]  ;;  %v8143_v6 = vsub.f32 %v14333_v56, %v13586_v55  ;;  %v8148_v56 = vsub.f32 %v14338_v39, %v13586_v55 }
 0x651   :  { %v8048_v28 = vsub.f32 %v8046_v31, %v8047_v12  ;;  %v8138_v31 = vsub.f32 %v14328_v13, %v13583_v2  ;;  %v8140_v12 = vsub.f32 %v14330_v26, %v13583_v2  ;;  %v14334_v13 = vld [vmem:[#allocation11_spill] sm:$0xff]  ;;  %v14336_v26 = vld [vmem:[#allocation16_spill] sm:$0xff] }
 0x652   :  { %v8144_v57 = vsub.f32 %v14334_v13, %v13586_v55  ;;  %v8146_v4 = vsub.f32 %v14336_v26, %v13586_v55  ;;  %v8149_v13 = vsub.f32 %v14339_v40, %v13586_v55 }
 0x653   :  { %v8049_v52 = vmax.f32 %v8048_v28, 0.0 }
 0x655   :  { %v8050_v7 = vadd.f32 1e-05, %v8049_v52 }
 0x657   :  { %11103 = vrsqrt.f32 %v8050_v7  ;;  %v14329_v7 = vld [vmem:[#allocation10_spill] sm:$0xff] }
 0x658   :  { %v8139_v52 = vsub.f32 %v14329_v7, %v13583_v2  ;;  %v14335_v7 = vld [vmem:[#allocation13_spill] sm:$0xff] }
 0x659   :  { %v8145_v61 = vsub.f32 %v14335_v7, %v13586_v55 }
 0x661   :  { %v11104_v18 = vpop.eup %11103 }
 0x662   :  { %v8092_v35 = vrot.slane %v11104_v18, %v13574_v38 }
 0x664   :  { %v8093_v28 = vcombine.high %v8092_v35, %v8092_v35  ;;  %v8100_v18 = vrot.slane %v8092_v35, %v13574_v38 }
 0x666   :  { %v8107_v35 = vrot.slane %v8093_v28, %v13574_v38  ;;  %v13712_v8 = vrot.slane %v8100_v18, %v13579_v25 }
 0x668   :  { %v13723_v11 = vrot.slane %v8107_v35, %v13579_v25  ;;  %v8150_v38 = vmul.f32 %v8134_v22, %v13712_v8  ;;  %v8151_v28 = vmul.f32 %v8135_v17, %v13712_v8  ;;  %v8152_v18 = vmul.f32 %v8136_v16, %v13712_v8 }
 0x669   :  { %v8153_v7 = vmul.f32 %v8137_v1, %v13712_v8  ;;  %v8154_v26 = vmul.f32 %v8138_v31, %v13712_v8  ;;  %v8155_v15 = vmul.f32 %v8139_v52, %v13712_v8  ;;  %v8156_v39 = vmul.f32 %v8140_v12, %v13712_v8 }
 0x66a   :  { %v8157_v47 = vmul.f32 %v8141_v48, %v13712_v8  ;;  %v8158_v40 = vmul.f32 %v8142_v32, %v13723_v11  ;;  %v8159_v25 = vmul.f32 %v8143_v6, %v13723_v11  ;;  %v8160_v22 = vmul.f32 %v8144_v57, %v13723_v11  ;;  %8166 = vst [vmem:[%s14129_s4] sm:$0xff] %v8150_v38 }
 0x66b   :  { %8167 = vst [vmem:[%s14129_s4 + $0x8] sm:$0xff] %v8151_v28  ;;  %8168 = vst [vmem:[%s14129_s4 + $0x10] sm:$0xff] %v8152_v18  ;;  %v8161_v48 = vmul.f32 %v8145_v61, %v13723_v11  ;;  %v8162_v32 = vmul.f32 %v8146_v4, %v13723_v11  ;;  %v8163_v6 = vmul.f32 %v8147_v50, %v13723_v11 }
 0x66c   :  { %v8164_v57 = vmul.f32 %v8148_v56, %v13723_v11  ;;  %8169 = vst [vmem:[%s14129_s4 + $0x18] sm:$0xff] %v8153_v7  ;;  %8170 = vst [vmem:[%s14129_s4 + $0x20] sm:$0xff] %v8154_v26  ;;  %v8165_v61 = vmul.f32 %v8149_v13, %v13723_v11  ;;  %v14340_v16 = vsub.f32 %v12701_v51, %v13583_v2 }
 0x66d   :  { %8171 = vst [vmem:[%s14129_s4 + $0x28] sm:$0xff] %v8155_v15  ;;  %8172 = vst [vmem:[%s14129_s4 + $0x30] sm:$0xff] %v8156_v39  ;;  %v14342_v31 = vsub.f32 %v12699_v30, %v13583_v2  ;;  %v14343_v30 = vsub.f32 %v12703_v24, %v13583_v2  ;;  %v14345_v35 = vsub.f32 %v12748_v34, %v13583_v2 }
 0x66e   :  { %8173 = vst [vmem:[%s14129_s4 + $0x38] sm:$0xff] %v8157_v47  ;;  %8174 = vst [vmem:[%s14129_s4 + $0x100] sm:$0xff] %v8158_v40  ;;  %v8214_v17 = vmul.f32 %v14340_v16, %v13712_v8  ;;  %v14341_v47 = vsub.f32 %v12715_v42, %v13583_v2  ;;  %v14344_v42 = vsub.f32 %v12734_v9, %v13583_v2 }
 0x66f   :  { %8175 = vst [vmem:[%s14129_s4 + $0x108] sm:$0xff] %v8159_v25  ;;  %8176 = vst [vmem:[%s14129_s4 + $0x110] sm:$0xff] %v8160_v22  ;;  %v8216_v52 = vmul.f32 %v14342_v31, %v13712_v8  ;;  %v8217_v51 = vmul.f32 %v14343_v30, %v13712_v8  ;;  %v8219_v4 = vmul.f32 %v14345_v35, %v13712_v8  ;;  %v14375_v35 = vld [vmem:[#allocation45_spill] sm:$0xff] }
 0x670   :  { %v8215_v1 = vmul.f32 %v14341_v47, %v13712_v8  ;;  %8177 = vst [vmem:[%s14129_s4 + $0x118] sm:$0xff] %v8161_v48  ;;  %8178 = vst [vmem:[%s14129_s4 + $0x120] sm:$0xff] %v8162_v32  ;;  %v8218_v12 = vmul.f32 %v14344_v42, %v13712_v8  ;;  %v14346_v50 = vsub.f32 %v14298_v5, %v13583_v2 }
 0x671   :  { %8179 = vst [vmem:[%s14129_s4 + $0x128] sm:$0xff] %v8163_v6  ;;  %8180 = vst [vmem:[%s14129_s4 + $0x130] sm:$0xff] %v8164_v57  ;;  %v14347_v24 = vsub.f32 %v14299_v62, %v13583_v2  ;;  %v14348_v13 = vsub.f32 %v14300_v46, %v13586_v55  ;;  %v14349_v38 = vsub.f32 %v14301_v58, %v13586_v55 }
 0x672   :  { %v8220_v56 = vmul.f32 %v14346_v50, %v13712_v8  ;;  %8181 = vst [vmem:[%s14129_s4 + $0x138] sm:$0xff] %v8165_v61  ;;  %v14350_v28 = vsub.f32 %v14302_v14, %v13586_v55  ;;  %9101 = vst [vmem:[%s14129_s4 + $0x40] sm:$0xff] %v8214_v17  ;;  %v14351_v62 = vsub.f32 %v14303_v43, %v13586_v55 }
 0x673   :  { %v8221_v9 = vmul.f32 %v14347_v24, %v13712_v8  ;;  %v8222_v34 = vmul.f32 %v14348_v13, %v13723_v11  ;;  %v8223_v5 = vmul.f32 %v14349_v38, %v13723_v11  ;;  %9102 = vst [vmem:[%s14129_s4 + $0x48] sm:$0xff] %v8215_v1  ;;  %9103 = vst [vmem:[%s14129_s4 + $0x50] sm:$0xff] %v8216_v52  ;;  %v14381_v38 = vld [vmem:[#allocation51_spill] sm:$0xff] }
 0x674   :  { %v8224_v18 = vmul.f32 %v14350_v28, %v13723_v11  ;;  %v8225_v46 = vmul.f32 %v14351_v62, %v13723_v11  ;;  %v14352_v58 = vsub.f32 %v14304_v10, %v13586_v55  ;;  %v14353_v7 = vsub.f32 %v14305_v63, %v13586_v55  ;;  %9104 = vst [vmem:[%s14129_s4 + $0x58] sm:$0xff] %v8217_v51 }
 0x675   :  { %v14354_v15 = vsub.f32 %v14306_v36, %v13586_v55  ;;  %9105 = vst [vmem:[%s14129_s4 + $0x60] sm:$0xff] %v8218_v12  ;;  %9106 = vst [vmem:[%s14129_s4 + $0x68] sm:$0xff] %v8219_v4  ;;  %v14355_v43 = vsub.f32 %v14307_v33, %v13586_v55  ;;  %v14356_v63 = vsub.f32 %v14308_v37, %v13583_v2 }
 0x676   :  { %v8226_v14 = vmul.f32 %v14352_v58, %v13723_v11  ;;  %v8227_v26 = vmul.f32 %v14353_v7, %v13723_v11  ;;  %9107 = vst [vmem:[%s14129_s4 + $0x70] sm:$0xff] %v8220_v56  ;;  %9108 = vst [vmem:[%s14129_s4 + $0x78] sm:$0xff] %v8221_v9  ;;  %v14357_v33 = vsub.f32 %v14309_v41, %v13583_v2  ;;  %v14379_v9 = vld [vmem:[#allocation49_spill] sm:$0xff]  ;;  %v14385_v58 = vld [vmem:[#allocation50_spill] sm:$0xff] }
 0x677   :  { %v8228_v39 = vmul.f32 %v14354_v15, %v13723_v11  ;;  %v8229_v10 = vmul.f32 %v14355_v43, %v13723_v11  ;;  %9109 = vst [vmem:[%s14129_s4 + $0x140] sm:$0xff] %v8222_v34  ;;  %9110 = vst [vmem:[%s14129_s4 + $0x148] sm:$0xff] %v8223_v5  ;;  %v8278_v36 = vmul.f32 %v14356_v63, %v13712_v8  ;;  %v14389_v43 = vld [vmem:[#allocation55_spill] sm:$0xff] }
 0x678   :  { %9111 = vst [vmem:[%s14129_s4 + $0x150] sm:$0xff] %v8224_v18  ;;  %v8279_v40 = vmul.f32 %v14357_v33, %v13712_v8  ;;  %v14358_v25 = vsub.f32 %v14310_v49, %v13583_v2  ;;  %9112 = vst [vmem:[%s14129_s4 + $0x158] sm:$0xff] %v8225_v46  ;;  %v14359_v37 = vsub.f32 %v14311_v44, %v13583_v2  ;;  %v14383_v18 = vld [vmem:[#allocation48_spill] sm:$0xff] }
 0x679   :  { %9113 = vst [vmem:[%s14129_s4 + $0x160] sm:$0xff] %v8226_v14  ;;  %9114 = vst [vmem:[%s14129_s4 + $0x168] sm:$0xff] %v8227_v26  ;;  %v14360_v49 = vsub.f32 %v14312_v60, %v13583_v2  ;;  %v14361_v32 = vsub.f32 %v14313_v20, %v13583_v2  ;;  %v14362_v57 = vsub.f32 %v14314_v54, %v13583_v2  ;;  %v14387_v26 = vld [vmem:[#allocation53_spill] sm:$0xff] }
 0x67a   :  { %v8280_v22 = vmul.f32 %v14358_v25, %v13712_v8  ;;  %9115 = vst [vmem:[%s14129_s4 + $0x170] sm:$0xff] %v8228_v39  ;;  %v8281_v41 = vmul.f32 %v14359_v37, %v13712_v8  ;;  %9116 = vst [vmem:[%s14129_s4 + $0x178] sm:$0xff] %v8229_v10  ;;  %v14363_v44 = vsub.f32 %v14315_v23, %v13583_v2 }
 0x67b   :  { %v8282_v48 = vmul.f32 %v14360_v49, %v13712_v8  ;;  %v8283_v6 = vmul.f32 %v14361_v32, %v13712_v8  ;;  %v8284_v61 = vmul.f32 %v14362_v57, %v13712_v8  ;;  %v14364_v16 = vsub.f32 %v14316_v3, %v13586_v55  ;;  %9133 = vst [vmem:[%s14129_s4 + $0x80] sm:$0xff] %v8278_v36  ;;  %v14391_v36 = vld [vmem:[#allocation52_spill] sm:$0xff]  ;;  %v14397_v49 = vld [vmem:[#allocation59_spill] sm:$0xff] }
 0x67c   :  { %v8285_v60 = vmul.f32 %v14363_v44, %v13712_v8  ;;  %v14365_v17 = vsub.f32 %v14317_v19, %v13586_v55  ;;  %v14366_v47 = vsub.f32 %v14318_v29, %v13586_v55  ;;  %9134 = vst [vmem:[%s14129_s4 + $0x88] sm:$0xff] %v8279_v40  ;;  %9135 = vst [vmem:[%s14129_s4 + $0x90] sm:$0xff] %v8280_v22  ;;  %v14395_v22 = vld [vmem:[#allocation57_spill] sm:$0xff]  ;;  %v14401_v44 = vld [vmem:[#allocation58_spill] sm:$0xff] }
 0x67d   :  { %v8286_v20 = vmul.f32 %v14364_v16, %v13723_v11  ;;  %v14367_v23 = vsub.f32 %v14319_v21, %v13586_v55  ;;  %v14368_v19 = vsub.f32 %v14320_v0, %v13586_v55  ;;  %v14369_v31 = vsub.f32 %v14321_v53, %v13586_v55  ;;  %9136 = vst [vmem:[%s14129_s4 + $0x98] sm:$0xff] %v8281_v41  ;;  %v14373_v21 = vld [vmem:[#allocation47_spill] sm:$0xff] }
 0x67e   :  { %v8287_v54 = vmul.f32 %v14365_v17, %v13723_v11  ;;  %v8288_v1 = vmul.f32 %v14366_v47, %v13723_v11  ;;  %v14370_v30 = vsub.f32 %v14322_v27, %v13586_v55  ;;  %9137 = vst [vmem:[%s14129_s4 + $0xa0] sm:$0xff] %v8282_v48  ;;  %9138 = vst [vmem:[%s14129_s4 + $0xa8] sm:$0xff] %v8283_v6  ;;  %v14399_v6 = vld [vmem:[#allocation56_spill] sm:$0xff] }
 0x67f   :  { %v8289_v3 = vmul.f32 %v14367_v23, %v13723_v11  ;;  %v8290_v29 = vmul.f32 %v14368_v19, %v13723_v11  ;;  %v8291_v52 = vmul.f32 %v14369_v31, %v13723_v11  ;;  %9139 = vst [vmem:[%s14129_s4 + $0xb0] sm:$0xff] %v8284_v61  ;;  %v14371_v27 = vsub.f32 %v14323_v59, %v13586_v55 }
 0x680   :  { %v8292_v51 = vmul.f32 %v14370_v30, %v13723_v11  ;;  %9140 = vst [vmem:[%s14129_s4 + $0xb8] sm:$0xff] %v8285_v60  ;;  %9141 = vst [vmem:[%s14129_s4 + $0x180] sm:$0xff] %v8286_v20  ;;  %v14372_v59 = vsub.f32 %v13466_v45, %v13583_v2  ;;  %v14374_v42 = vsub.f32 %v14373_v21, %v13583_v2  ;;  %v14377_v45 = vld [vmem:[#allocation46_spill] sm:$0xff] }
 0x681   :  { %v8293_v53 = vmul.f32 %v14371_v27, %v13723_v11  ;;  %9142 = vst [vmem:[%s14129_s4 + $0x188] sm:$0xff] %v8287_v54  ;;  %9143 = vst [vmem:[%s14129_s4 + $0x190] sm:$0xff] %v8288_v1  ;;  %v14376_v4 = vsub.f32 %v14375_v35, %v13583_v2  ;;  %v14378_v56 = vsub.f32 %v14377_v45, %v13583_v2 }
 0x682   :  { %v8342_v0 = vmul.f32 %v14372_v59, %v13712_v8  ;;  %v8343_v12 = vmul.f32 %v14374_v42, %v13712_v8  ;;  %9144 = vst [vmem:[%s14129_s4 + $0x198] sm:$0xff] %v8289_v3  ;;  %9145 = vst [vmem:[%s14129_s4 + $0x1a0] sm:$0xff] %v8290_v29  ;;  %v14380_v13 = vsub.f32 %v14379_v9, %v13583_v2 }
 0x683   :  { %v8344_v50 = vmul.f32 %v14376_v4, %v13712_v8  ;;  %9146 = vst [vmem:[%s14129_s4 + $0x1a8] sm:$0xff] %v8291_v52  ;;  %9147 = vst [vmem:[%s14129_s4 + $0x1b0] sm:$0xff] %v8292_v51  ;;  %v8345_v24 = vmul.f32 %v14378_v56, %v13712_v8  ;;  %v14382_v5 = vsub.f32 %v14381_v38, %v13583_v2 }
 0x684   :  { %v8346_v34 = vmul.f32 %v14380_v13, %v13712_v8  ;;  %v14384_v62 = vsub.f32 %v14383_v18, %v13583_v2  ;;  %9148 = vst [vmem:[%s14129_s4 + $0x1b8] sm:$0xff] %v8293_v53  ;;  %v14386_v14 = vsub.f32 %v14385_v58, %v13583_v2  ;;  %v14388_v15 = vsub.f32 %v14387_v26, %v13586_v55 }
 0x685   :  { %v8347_v28 = vmul.f32 %v14382_v5, %v13712_v8  ;;  %v14390_v10 = vsub.f32 %v14389_v43, %v13586_v55  ;;  %v14392_v33 = vsub.f32 %v14391_v36, %v13586_v55  ;;  %9165 = vst [vmem:[%s14129_s4 + $0xc0] sm:$0xff] %v8342_v0  ;;  %9166 = vst [vmem:[%s14129_s4 + $0xc8] sm:$0xff] %v8343_v12 }
 0x686   :  { %v8348_v46 = vmul.f32 %v14384_v62, %v13712_v8  ;;  %v8349_v7 = vmul.f32 %v14386_v14, %v13712_v8  ;;  %v8350_v39 = vmul.f32 %v14388_v15, %v13723_v11  ;;  %9167 = vst [vmem:[%s14129_s4 + $0xd0] sm:$0xff] %v8344_v50  ;;  %v14393_v8 = vld [vmem:[#allocation54_spill] sm:$0xff]  ;;  %v14396_v37 = vsub.f32 %v14395_v22, %v13586_v55 }
 0x687   :  { %v8351_v63 = vmul.f32 %v14390_v10, %v13723_v11  ;;  %v8352_v40 = vmul.f32 %v14392_v33, %v13723_v11  ;;  %v14394_v2 = vsub.f32 %v14393_v8, %v13586_v55  ;;  %v14398_v48 = vsub.f32 %v14397_v49, %v13586_v55  ;;  %9168 = vst [vmem:[%s14129_s4 + $0xd8] sm:$0xff] %v8345_v24 }
 0x688   :  { %v8354_v41 = vmul.f32 %v14396_v37, %v13723_v11  ;;  %v14400_v57 = vsub.f32 %v14399_v6, %v13586_v55  ;;  %9169 = vst [vmem:[%s14129_s4 + $0xe0] sm:$0xff] %v8346_v34  ;;  %9170 = vst [vmem:[%s14129_s4 + $0xe8] sm:$0xff] %v8347_v28  ;;  %v14402_v60 = vsub.f32 %v14401_v44, %v13586_v55 }
 0x689   :  { %v8353_v25 = vmul.f32 %v14394_v2, %v13723_v11  ;;  %v8355_v32 = vmul.f32 %v14398_v48, %v13723_v11  ;;  %9171 = vst [vmem:[%s14129_s4 + $0xf0] sm:$0xff] %v8348_v46  ;;  %9172 = vst [vmem:[%s14129_s4 + $0xf8] sm:$0xff] %v8349_v7 }
 0x68a   :  { %v8356_v61 = vmul.f32 %v14400_v57, %v13723_v11  ;;  %v8357_v16 = vmul.f32 %v14402_v60, %v13723_v11  ;;  %9173 = vst [vmem:[%s14129_s4 + $0x1c0] sm:$0xff] %v8350_v39  ;;  %9174 = vst [vmem:[%s14129_s4 + $0x1c8] sm:$0xff] %v8351_v63 }
 0x68b   :  { %9175 = vst [vmem:[%s14129_s4 + $0x1d0] sm:$0xff] %v8352_v40  ;;  %9176 = vst [vmem:[%s14129_s4 + $0x1d8] sm:$0xff] %v8353_v25 }
 0x68c   :  { %9177 = vst [vmem:[%s14129_s4 + $0x1e0] sm:$0xff] %v8354_v41  ;;  %9178 = vst [vmem:[%s14129_s4 + $0x1e8] sm:$0xff] %v8355_v32 }
 0x68d   :  { %9179 = vst [vmem:[%s14129_s4 + $0x1f0] sm:$0xff] %v8356_v61  ;;  %9180 = vst [vmem:[%s14129_s4 + $0x1f8] sm:$0xff] %v8357_v16 }

</bundles_post_ra>
